<compile_context>
chip_gen: v6e
topology: v6e:2x2x1
jax: 0.10.0
libtpu: 0.0.40
codegen_flags: <defaults>
</compile_context>

<pallas_src>
import numpy as np

import jax
import jax.numpy as jnp
from jax import lax
from jax.experimental import pallas as pl
from jax.experimental.pallas import tpu as pltpu

SIZE = 50            # `Size` in the PyTorch source
BN_EPS = 1e-5        # PyTorch BatchNorm1d default eps

# Lane-friendly padded feature widths (exact zero padding).
P1 = 128             # pad(SIZE=50)  and pad(2*SIZE=100)
P2 = 128             # pad(2*SIZE=100)
P3 = 256             # pad(3*SIZE=150)
WCOLS = 256          # weight-slab width
VCOLS = 256          # vector-slab width
MM_DTYPE = jnp.bfloat16   # MXU operand dtype (set to jnp.float32 for pure-f32)

# Vector-slab row indices (fixed packing order).
(R_LG1, R_LC1, R_LB2, R_LG2, R_LC2, R_LG3, R_LC3, R_LG4, R_LC4,
 R_NG1, R_NC1, R_NG2, R_NC2, R_NG3, R_NC3, R_NG4, R_NC4, R_FW, R_FB) = range(19)
N_VEC_ROWS = 19


def _round_up(v, m):
    return (v + m - 1) // m * m


# ---------------------------------------------------------------------------
# Kernel
# ---------------------------------------------------------------------------
def _make_net_kernel(sample_times, deltat, n_rows, dp, w_offs):
    """Fused Net.forward kernel. sample_times/deltat/offsets are static."""
    inv_n = 1.0 / float(n_rows)
    (o_lw1, o_lw2, o_lw3, o_lw4, o_nw1, o_nw2, o_nw3, o_nw4) = w_offs

    def kernel(x_ref, w_ref, v_ref, o_ref):
        relu = lambda h: jnp.maximum(h, 0.0)

        def bn(h, g, c):
            # One-pass batch stats (training-mode BN): var = E[h^2] - mu^2.
            s1 = jnp.sum(h, axis=0, keepdims=True)
            s2 = jnp.sum(h * h, axis=0, keepdims=True)
            mu = s1 * inv_n
            var = jnp.maximum(s2 * inv_n - mu * mu, 0.0)
            scale = g * lax.rsqrt(var + BN_EPS)
            return h * scale + (c - mu * scale)

        def mm(h, off, rows, cols):
            w = w_ref[pl.ds(off, rows), pl.ds(0, cols)]        # bf16 block
            return jnp.dot(h.astype(MM_DTYPE), w,
                           preferred_element_type=jnp.float32)

        # ---- hoist all (1, d) vectors out of the unrolled loops ----
        V = v_ref[...]
        row = lambda r, w: V[r:r + 1, :w]
        lg1, lc1 = row(R_LG1, P1), row(R_LC1, P1)
        lb2 = row(R_LB2, P2)
        lg2, lc2 = row(R_LG2, P2), row(R_LC2, P2)
        lg3, lc3 = row(R_LG3, P3), row(R_LC3, P3)
        lg4, lc4 = row(R_LG4, P1), row(R_LC4, P1)
        ng1, nc1 = row(R_NG1, P2), row(R_NC1, P2)
        ng2, nc2 = row(R_NG2, P3), row(R_NC2, P3)
        ng3, nc3 = row(R_NG3, P2), row(R_NC3, P2)
        ng4, nc4 = row(R_NG4, P1), row(R_NC4, P1)
        fw_row = row(R_FW, P1)
        fb_11 = V[R_FB:R_FB + 1, 0:1]

        # ---- fcnn ("layers") ----
        # Biases feeding a train-mode BN are cancelled by the mean subtraction
        # and therefore dropped. linear2's bias survives (ReLU precedes norm2).
        x = x_ref[...]
        h = mm(x, o_lw1, dp, P1)
        h = relu(bn(h, lg1, lc1))
        h = mm(h, o_lw2, P1, P2) + lb2
        h = bn(relu(h), lg2, lc2)                 # relu BEFORE norm2 (source)
        h = mm(h, o_lw3, P2, P3)
        h = relu(bn(h, lg3, lc3))
        h = mm(h, o_lw4, P3, P1)
        h = relu(bn(h, lg4, lc4))

        # ---- NODE dynamics f(t, z): t*W_t is a per-feature constant, hence
        # exactly cancelled by the following train-mode BN -> dropped. ----
        def node_f(z):
            u = mm(z, o_nw1, P1, P2)
            u = relu(bn(u, ng1, nc1))
            u = mm(u, o_nw2, P2, P3)
            u = relu(bn(u, ng2, nc2))
            u = mm(u, o_nw3, P3, P2)
            u = relu(bn(u, ng3, nc3))
            u = mm(u, o_nw4, P2, P1)
            u = relu(bn(u, ng4, nc4))
            return u

        # ---- fixed-step explicit Euler; snapshot projection per sample time.
        t = 0.0
        cols = []
        for s in sample_times:                    # static unroll (few steps)
            while t + deltat <= s + 1e-9:
                du = node_f(h)
                h = (h + du) if deltat == 1.0 else (h + deltat * du)
                t = t + deltat
            # fc_layers (50 -> 1) as VPU multiply + lane reduce (XLU slot).
            cols.append(jnp.sum(h * fw_row, axis=-1, keepdims=True))  # (N, 1)

        y = jnp.concatenate(cols, axis=1) + fb_11                      # (N, S)
        o_ref[...] = y.T.astype(o_ref.dtype)                           # (S, N)

    return kernel


# ---------------------------------------------------------------------------
# Host-side parameter packing (one-time): 2 lane-aligned slabs.
# ---------------------------------------------------------------------------
def pack_params(params, input_dim):
    (lw1, lb1, lg1, lc1, lw2, lb2, lg2, lc2,
     lw3, lb3, lg3, lc3, lw4, lb4, lg4, lc4,
     nwt, nwx, nb1, ng1, nc1, nw2, nb2, ng2, nc2,
     nw3, nb3, ng3, nc3, nw4, nb4, ng4, nc4, fw, fb) = params
    # lb1/lb3/lb4, nwt, nb1..nb4 are exactly cancelled by train-mode BN and are
    # intentionally not packed.

    dp = _round_up(input_dim, 16)     # keep bf16 (16,128) tile alignment

    blocks = [(lw1, dp, P1), (lw2, P1, P2), (lw3, P2, P3), (lw4, P3, P1),
              (nwx, P1, P2), (nw2, P2, P3), (nw3, P3, P2), (nw4, P2, P1)]
    total_rows = sum(r for _, r, _ in blocks)
    w_np = np.zeros((total_rows, WCOLS), np.float32)
    offs, off = [], 0
    for w, rows_pad, _cols_pad in blocks:
        offs.append(off)
        w = np.asarray(w, np.float32)
        w_np[off:off + w.shape[0], :w.shape[1]] = w
        off += rows_pad
    w_slab = jnp.asarray(w_np).astype(MM_DTYPE)    # bf16 weights for the MXU

    vec_list = [lg1, lc1, lb2, lg2, lc2, lg3, lc3, lg4, lc4,
                ng1, nc1, ng2, nc2, ng3, nc3, ng4, nc4,
                np.asarray(fw, np.float32).reshape(1, -1),
                np.asarray(fb, np.float32).reshape(1, -1)]
    v_np = np.zeros((_round_up(N_VEC_ROWS, 8), VCOLS), np.float32)
    for r, v in enumerate(vec_list):
        v = np.asarray(v, np.float32).reshape(1, -1)
        v_np[r, :v.shape[1]] = v[0]
    v_slab = jnp.asarray(v_np)                     # f32 gammas/betas/bias/fc

    return w_slab, v_slab, dp, tuple(offs), input_dim


# ---------------------------------------------------------------------------
# Wrapper
# ---------------------------------------------------------------------------
def net_forward(packed, x, sample_times, deltat=1.0):
    """Pallas Net.forward -> act_vec (S, N, 1)  (or (G, S, N, 1) for G batches)."""
    w_slab, v_slab, dp, w_offs, input_dim = packed

    squeeze = (x.ndim == 2)
    if squeeze:
        x = x[None]                                # (1, N, D): one instance
    g, n, d = x.shape
    assert d == input_dim, (d, input_dim)
    if d != dp:
        x = jnp.pad(x, ((0, 0), (0, 0), (0, dp - d)))
    s = len(sample_times)

    kernel = _make_net_kernel(tuple(float(t) for t in sample_times),
                              float(deltat), n, dp, w_offs)

    out = pl.pallas_call(
        kernel,
        out_shape=jax.ShapeDtypeStruct((g, s, n), x.dtype),
        grid_spec=pltpu.PrefetchScalarGridSpec(
            num_scalar_prefetch=0,
            grid=(g,),
            in_specs=[
                pl.BlockSpec((None, n, dp), lambda i: (i, 0, 0)),
                pl.BlockSpec(w_slab.shape, lambda i: (0, 0)),
                pl.BlockSpec(v_slab.shape, lambda i: (0, 0)),
            ],
            out_specs=pl.BlockSpec((None, s, n), lambda i: (i, 0, 0)),
        ),
        compiler_params=pltpu.CompilerParams(
            # Independent instances shard across TensorCores on v7x; no-op on
            # single-TC v5e/v6e.  Footprint ~1.5 MiB << every generation's VMEM.
            dimension_semantics=("parallel",),
            vmem_limit_bytes=32 * 1024 * 1024,
        ),
    )(x, w_slab, v_slab)

    act = out[:, :, :, None]                       # (G, S, N, 1)
    return act[0] if squeeze else act


# ---------------------------------------------------------------------------
# Parameter init (mirrors init_params: Linear ~ N(0, 0.1), bias 0; BN w=1, b=0)
# ---------------------------------------------------------------------------
def _linear_params(key, d_in, d_out):
    w = 0.1 * jax.random.normal(key, (d_in, d_out), jnp.float32)
    b = jnp.zeros((1, d_out), jnp.float32)
    return w, b


def _bn_params(d):
    return jnp.ones((1, d), jnp.float32), jnp.zeros((1, d), jnp.float32)


def init_net_params(key, input_dim):
    ks = jax.random.split(key, 9)
    p = []
    # fcnn ("layers")
    for k, (di, do) in zip(ks[:4], [(input_dim, SIZE), (SIZE, 2 * SIZE),
                                    (2 * SIZE, 3 * SIZE), (3 * SIZE, SIZE)]):
        w, b = _linear_params(k, di, do)
        g, c = _bn_params(do)
        p += [w, b, g, c]
    # NODE: lin1 acts on [t, x]; split weight into t-row and x-block
    w1, b1 = _linear_params(ks[4], SIZE + 1, 2 * SIZE)
    g1, c1 = _bn_params(2 * SIZE)
    p += [w1[:1, :], w1[1:, :], b1, g1, c1]
    for k, (di, do) in zip(ks[5:8], [(2 * SIZE, 3 * SIZE),
                                     (3 * SIZE, 2 * SIZE),
                                     (2 * SIZE, SIZE)]):
        w, b = _linear_params(k, di, do)
        g, c = _bn_params(do)
        p += [w, b, g, c]
    # final fc_layers (SIZE -> 1)
    fw, fb = _linear_params(ks[8], SIZE, 1)
    p += [fw, fb]
    return tuple(p)


# ---------------------------------------------------------------------------
# Pure-JAX reference (full module math, incl. biases and t*W_t; bf16 dots to
# match the kernel's MXU operand dtype) for correctness check.
# ---------------------------------------------------------------------------
def net_forward_ref(params, x, sample_times, deltat=1.0):
    (lw1, lb1, lg1, lc1, lw2, lb2, lg2, lc2,
     lw3, lb3, lg3, lc3, lw4, lb4, lg4, lc4,
     nwt, nwx, nb1, ng1, nc1, nw2, nb2, ng2, nc2,
     nw3, nb3, ng3, nc3, nw4, nb4, ng4, nc4, fw, fb) = params

    def dot(a, b):
        return jnp.dot(a.astype(MM_DTYPE), b.astype(MM_DTYPE),
                       preferred_element_type=jnp.float32)

    relu = lambda h: jnp.maximum(h, 0.0)

    def bn(h, g, c):
        mu = h.mean(0, keepdims=True)
        var = ((h - mu) ** 2).mean(0, keepdims=True)
        return g * (h - mu) / jnp.sqrt(var + BN_EPS) + c

    h = dot(x, lw1) + lb1; h = relu(bn(h, lg1, lc1))
    h = dot(h, lw2) + lb2; h = bn(relu(h), lg2, lc2)
    h = dot(h, lw3) + lb3; h = relu(bn(h, lg3, lc3))
    h = dot(h, lw4) + lb4; h = relu(bn(h, lg4, lc4))

    def node_f(t, z):
        u = t * nwt + dot(z, nwx) + nb1; u = relu(bn(u, ng1, nc1))
        u = dot(u, nw2) + nb2; u = relu(bn(u, ng2, nc2))
        u = dot(u, nw3) + nb3; u = relu(bn(u, ng3, nc3))
        u = dot(u, nw4) + nb4; u = relu(bn(u, ng4, nc4))
        return u

    t = 0.0
    outs = []
    for s in sample_times:
        while t + deltat <= s + 1e-9:
            h = h + deltat * node_f(t, h)
            t += deltat
        outs.append(dot(h, fw) + fb)
    return jnp.stack(outs, axis=0)


if __name__ == "__main__":
    key = jax.random.PRNGKey(0)
    k_param, k_x = jax.random.split(key)

    input_dim = 32
    batch = 128                     # amortizes per-call overhead (perf review)
    n_samples = 4
    # Stand-in for prob_model.get_samples(n_samples)[:, 0] (external module).
    sample_times = (1.0, 2.0, 3.0, 4.0)

    params = init_net_params(k_param, input_dim)
    packed = pack_params(params, input_dim)
    x = jax.random.normal(k_x, (batch, input_dim), dtype=jnp.float32)

    act_vec = net_forward(packed, x, sample_times)
    act_vec = jax.block_until_ready(act_vec)

    assert act_vec.shape == (n_samples, batch, 1), act_vec.shape
    assert act_vec.dtype == x.dtype
    assert bool(jnp.all(jnp.isfinite(act_vec)))

    ref = net_forward_ref(params, x, sample_times)
    max_err = float(jnp.max(jnp.abs(act_vec - ref)))
    assert jnp.allclose(act_vec, ref, atol=5e-2, rtol=5e-2), max_err

    print("KERNEL_OK")
</pallas_src>

<mosaic_0001>
module attributes {stable_mosaic.version = 11 : i64} {
  func.func @kernel(%arg0: i32, %arg1: memref<1x128x32xf32, #tpu.memory_space<vmem>>, %arg2: memref<1184x256xbf16, #tpu.memory_space<vmem>>, %arg3: memref<24x256xf32, #tpu.memory_space<vmem>>, %arg4: memref<1x4x128xf32, #tpu.memory_space<vmem>>) attributes {dimension_semantics = [#tpu.dimension_semantics<parallel>], iteration_bounds = array<i64: 1>, scalar_prefetch = 0 : i64, scratch_operands = 0 : i64, tpu.core_type = #tpu.core_type<tc>, window_params = [{transform_indices = @transform_0, window_bounds = array<i64: 1, 128, 32>}, {pipeline_mode = #tpu.pipeline_mode<synchronous>, transform_indices = @transform_1, window_bounds = array<i64: 1184, 256>}, {pipeline_mode = #tpu.pipeline_mode<synchronous>, transform_indices = @transform_2, window_bounds = array<i64: 24, 256>}, {transform_indices = @transform_3, window_bounds = array<i64: 1, 4, 128>}]} {
    %c0 = arith.constant 0 : index
    %c0_0 = arith.constant 0 : index
    %0 = vector.load %arg3[%c0, %c0_0] : memref<24x256xf32, #tpu.memory_space<vmem>>, vector<24x256xf32>
    %1 = vector.extract_strided_slice %0 {offsets = [0, 0], sizes = [1, 128], strides = [1, 1]} : vector<24x256xf32> to vector<1x128xf32>
    %2 = vector.extract_strided_slice %0 {offsets = [1, 0], sizes = [1, 128], strides = [1, 1]} : vector<24x256xf32> to vector<1x128xf32>
    %3 = vector.extract_strided_slice %0 {offsets = [2, 0], sizes = [1, 128], strides = [1, 1]} : vector<24x256xf32> to vector<1x128xf32>
    %4 = vector.extract_strided_slice %0 {offsets = [3, 0], sizes = [1, 128], strides = [1, 1]} : vector<24x256xf32> to vector<1x128xf32>
    %5 = vector.extract_strided_slice %0 {offsets = [4, 0], sizes = [1, 128], strides = [1, 1]} : vector<24x256xf32> to vector<1x128xf32>
    %6 = vector.extract_strided_slice %0 {offsets = [5, 0], sizes = [1, 256], strides = [1, 1]} : vector<24x256xf32> to vector<1x256xf32>
    %7 = vector.extract_strided_slice %0 {offsets = [6, 0], sizes = [1, 256], strides = [1, 1]} : vector<24x256xf32> to vector<1x256xf32>
    %8 = vector.extract_strided_slice %0 {offsets = [7, 0], sizes = [1, 128], strides = [1, 1]} : vector<24x256xf32> to vector<1x128xf32>
    %9 = vector.extract_strided_slice %0 {offsets = [8, 0], sizes = [1, 128], strides = [1, 1]} : vector<24x256xf32> to vector<1x128xf32>
    %10 = vector.extract_strided_slice %0 {offsets = [9, 0], sizes = [1, 128], strides = [1, 1]} : vector<24x256xf32> to vector<1x128xf32>
    %11 = vector.extract_strided_slice %0 {offsets = [10, 0], sizes = [1, 128], strides = [1, 1]} : vector<24x256xf32> to vector<1x128xf32>
    %12 = vector.extract_strided_slice %0 {offsets = [11, 0], sizes = [1, 256], strides = [1, 1]} : vector<24x256xf32> to vector<1x256xf32>
    %13 = vector.extract_strided_slice %0 {offsets = [12, 0], sizes = [1, 256], strides = [1, 1]} : vector<24x256xf32> to vector<1x256xf32>
    %14 = vector.extract_strided_slice %0 {offsets = [13, 0], sizes = [1, 128], strides = [1, 1]} : vector<24x256xf32> to vector<1x128xf32>
    %15 = vector.extract_strided_slice %0 {offsets = [14, 0], sizes = [1, 128], strides = [1, 1]} : vector<24x256xf32> to vector<1x128xf32>
    %16 = vector.extract_strided_slice %0 {offsets = [15, 0], sizes = [1, 128], strides = [1, 1]} : vector<24x256xf32> to vector<1x128xf32>
    %17 = vector.extract_strided_slice %0 {offsets = [16, 0], sizes = [1, 128], strides = [1, 1]} : vector<24x256xf32> to vector<1x128xf32>
    %18 = vector.extract_strided_slice %0 {offsets = [17, 0], sizes = [1, 128], strides = [1, 1]} : vector<24x256xf32> to vector<1x128xf32>
    %19 = vector.extract_strided_slice %0 {offsets = [18, 0], sizes = [1, 1], strides = [1, 1]} : vector<24x256xf32> to vector<1x1xf32>
    %c0_1 = arith.constant 0 : index
    %c0_2 = arith.constant 0 : index
    %c0_3 = arith.constant 0 : index
    %20 = vector.load %arg1[%c0_1, %c0_2, %c0_3] : memref<1x128x32xf32, #tpu.memory_space<vmem>>, vector<1x128x32xf32>
    %21 = vector.shape_cast %20 : vector<1x128x32xf32> to vector<128x32xf32>
    %c0_4 = arith.constant 0 : index
    %c0_5 = arith.constant 0 : index
    %22 = vector.load %arg2[%c0_4, %c0_5] : memref<1184x256xbf16, #tpu.memory_space<vmem>>, vector<32x128xbf16>
    %23 = arith.truncf %21 : vector<128x32xf32> to vector<128x32xbf16>
    %cst = arith.constant dense<0.000000e+00> : vector<128x128xf32>
    %24 = tpu.matmul %23, %22, %cst {dimension_numbers = #tpu.dot_dimension_numbers<[1], [0], [0], [1], [0, 0, 1, 1], [], []>} : vector<128x32xbf16>, vector<32x128xbf16>, vector<128x128xf32> -> vector<128x128xf32>
    %cst_6 = arith.constant dense<0.000000e+00> : vector<128xf32>
    %25 = vector.multi_reduction <add>, %24, %cst_6 [0] : vector<128x128xf32> to vector<128xf32>
    %26 = vector.shape_cast %25 : vector<128xf32> to vector<1x128xf32>
    %27 = arith.mulf %24, %24 : vector<128x128xf32>
    %cst_7 = arith.constant dense<0.000000e+00> : vector<128xf32>
    %28 = vector.multi_reduction <add>, %27, %cst_7 [0] : vector<128x128xf32> to vector<128xf32>
    %29 = vector.shape_cast %28 : vector<128xf32> to vector<1x128xf32>
    %cst_8 = arith.constant 7.812500e-03 : f32
    %30 = vector.broadcast %cst_8 : f32 to vector<1x128xf32>
    %31 = arith.mulf %26, %30 : vector<1x128xf32>
    %cst_9 = arith.constant 7.812500e-03 : f32
    %32 = vector.broadcast %cst_9 : f32 to vector<1x128xf32>
    %33 = arith.mulf %29, %32 : vector<1x128xf32>
    %34 = arith.mulf %31, %31 : vector<1x128xf32>
    %35 = arith.subf %33, %34 : vector<1x128xf32>
    %cst_10 = arith.constant 0.000000e+00 : f32
    %36 = vector.broadcast %cst_10 : f32 to vector<1x128xf32>
    %37 = arith.maximumf %35, %36 : vector<1x128xf32>
    %cst_11 = arith.constant 9.99999974E-6 : f32
    %38 = vector.broadcast %cst_11 : f32 to vector<1x128xf32>
    %39 = arith.addf %37, %38 : vector<1x128xf32>
    %40 = math.rsqrt %39 : vector<1x128xf32>
    %41 = arith.mulf %1, %40 : vector<1x128xf32>
    %42 = vector.broadcast %41 : vector<1x128xf32> to vector<128x128xf32>
    %43 = arith.mulf %24, %42 : vector<128x128xf32>
    %44 = arith.mulf %31, %41 : vector<1x128xf32>
    %45 = arith.subf %2, %44 : vector<1x128xf32>
    %46 = vector.broadcast %45 : vector<1x128xf32> to vector<128x128xf32>
    %47 = arith.addf %43, %46 : vector<128x128xf32>
    %cst_12 = arith.constant 0.000000e+00 : f32
    %48 = vector.broadcast %cst_12 : f32 to vector<128x128xf32>
    %49 = arith.maximumf %47, %48 : vector<128x128xf32>
    %c32 = arith.constant 32 : index
    %c0_13 = arith.constant 0 : index
    %50 = vector.load %arg2[%c32, %c0_13] : memref<1184x256xbf16, #tpu.memory_space<vmem>>, vector<128x128xbf16>
    %51 = arith.truncf %49 : vector<128x128xf32> to vector<128x128xbf16>
    %cst_14 = arith.constant dense<0.000000e+00> : vector<128x128xf32>
    %52 = tpu.matmul %51, %50, %cst_14 {dimension_numbers = #tpu.dot_dimension_numbers<[1], [0], [0], [1], [0, 0, 1, 1], [], []>} : vector<128x128xbf16>, vector<128x128xbf16>, vector<128x128xf32> -> vector<128x128xf32>
    %53 = vector.broadcast %3 : vector<1x128xf32> to vector<128x128xf32>
    %54 = arith.addf %52, %53 : vector<128x128xf32>
    %cst_15 = arith.constant 0.000000e+00 : f32
    %55 = vector.broadcast %cst_15 : f32 to vector<128x128xf32>
    %56 = arith.maximumf %54, %55 : vector<128x128xf32>
    %cst_16 = arith.constant dense<0.000000e+00> : vector<128xf32>
    %57 = vector.multi_reduction <add>, %56, %cst_16 [0] : vector<128x128xf32> to vector<128xf32>
    %58 = vector.shape_cast %57 : vector<128xf32> to vector<1x128xf32>
    %59 = arith.mulf %56, %56 : vector<128x128xf32>
    %cst_17 = arith.constant dense<0.000000e+00> : vector<128xf32>
    %60 = vector.multi_reduction <add>, %59, %cst_17 [0] : vector<128x128xf32> to vector<128xf32>
    %61 = vector.shape_cast %60 : vector<128xf32> to vector<1x128xf32>
    %cst_18 = arith.constant 7.812500e-03 : f32
    %62 = vector.broadcast %cst_18 : f32 to vector<1x128xf32>
    %63 = arith.mulf %58, %62 : vector<1x128xf32>
    %cst_19 = arith.constant 7.812500e-03 : f32
    %64 = vector.broadcast %cst_19 : f32 to vector<1x128xf32>
    %65 = arith.mulf %61, %64 : vector<1x128xf32>
    %66 = arith.mulf %63, %63 : vector<1x128xf32>
    %67 = arith.subf %65, %66 : vector<1x128xf32>
    %cst_20 = arith.constant 0.000000e+00 : f32
    %68 = vector.broadcast %cst_20 : f32 to vector<1x128xf32>
    %69 = arith.maximumf %67, %68 : vector<1x128xf32>
    %cst_21 = arith.constant 9.99999974E-6 : f32
    %70 = vector.broadcast %cst_21 : f32 to vector<1x128xf32>
    %71 = arith.addf %69, %70 : vector<1x128xf32>
    %72 = math.rsqrt %71 : vector<1x128xf32>
    %73 = arith.mulf %4, %72 : vector<1x128xf32>
    %74 = vector.broadcast %73 : vector<1x128xf32> to vector<128x128xf32>
    %75 = arith.mulf %56, %74 : vector<128x128xf32>
    %76 = arith.mulf %63, %73 : vector<1x128xf32>
    %77 = arith.subf %5, %76 : vector<1x128xf32>
    %78 = vector.broadcast %77 : vector<1x128xf32> to vector<128x128xf32>
    %79 = arith.addf %75, %78 : vector<128x128xf32>
    %c160 = arith.constant 160 : index
    %c0_22 = arith.constant 0 : index
    %80 = vector.load %arg2[%c160, %c0_22] : memref<1184x256xbf16, #tpu.memory_space<vmem>>, vector<128x256xbf16>
    %81 = arith.truncf %79 : vector<128x128xf32> to vector<128x128xbf16>
    %cst_23 = arith.constant dense<0.000000e+00> : vector<128x256xf32>
    %82 = tpu.matmul %81, %80, %cst_23 {dimension_numbers = #tpu.dot_dimension_numbers<[1], [0], [0], [1], [0, 0, 1, 1], [], []>} : vector<128x128xbf16>, vector<128x256xbf16>, vector<128x256xf32> -> vector<128x256xf32>
    %cst_24 = arith.constant dense<0.000000e+00> : vector<256xf32>
    %83 = vector.multi_reduction <add>, %82, %cst_24 [0] : vector<128x256xf32> to vector<256xf32>
    %84 = vector.shape_cast %83 : vector<256xf32> to vector<1x256xf32>
    %85 = arith.mulf %82, %82 : vector<128x256xf32>
    %cst_25 = arith.constant dense<0.000000e+00> : vector<256xf32>
    %86 = vector.multi_reduction <add>, %85, %cst_25 [0] : vector<128x256xf32> to vector<256xf32>
    %87 = vector.shape_cast %86 : vector<256xf32> to vector<1x256xf32>
    %cst_26 = arith.constant 7.812500e-03 : f32
    %88 = vector.broadcast %cst_26 : f32 to vector<1x256xf32>
    %89 = arith.mulf %84, %88 : vector<1x256xf32>
    %cst_27 = arith.constant 7.812500e-03 : f32
    %90 = vector.broadcast %cst_27 : f32 to vector<1x256xf32>
    %91 = arith.mulf %87, %90 : vector<1x256xf32>
    %92 = arith.mulf %89, %89 : vector<1x256xf32>
    %93 = arith.subf %91, %92 : vector<1x256xf32>
    %cst_28 = arith.constant 0.000000e+00 : f32
    %94 = vector.broadcast %cst_28 : f32 to vector<1x256xf32>
    %95 = arith.maximumf %93, %94 : vector<1x256xf32>
    %cst_29 = arith.constant 9.99999974E-6 : f32
    %96 = vector.broadcast %cst_29 : f32 to vector<1x256xf32>
    %97 = arith.addf %95, %96 : vector<1x256xf32>
    %98 = math.rsqrt %97 : vector<1x256xf32>
    %99 = arith.mulf %6, %98 : vector<1x256xf32>
    %100 = vector.broadcast %99 : vector<1x256xf32> to vector<128x256xf32>
    %101 = arith.mulf %82, %100 : vector<128x256xf32>
    %102 = arith.mulf %89, %99 : vector<1x256xf32>
    %103 = arith.subf %7, %102 : vector<1x256xf32>
    %104 = vector.broadcast %103 : vector<1x256xf32> to vector<128x256xf32>
    %105 = arith.addf %101, %104 : vector<128x256xf32>
    %cst_30 = arith.constant 0.000000e+00 : f32
    %106 = vector.broadcast %cst_30 : f32 to vector<128x256xf32>
    %107 = arith.maximumf %105, %106 : vector<128x256xf32>
    %c288 = arith.constant 288 : index
    %c0_31 = arith.constant 0 : index
    %108 = vector.load %arg2[%c288, %c0_31] : memref<1184x256xbf16, #tpu.memory_space<vmem>>, vector<256x128xbf16>
    %109 = arith.truncf %107 : vector<128x256xf32> to vector<128x256xbf16>
    %cst_32 = arith.constant dense<0.000000e+00> : vector<128x128xf32>
    %110 = tpu.matmul %109, %108, %cst_32 {dimension_numbers = #tpu.dot_dimension_numbers<[1], [0], [0], [1], [0, 0, 1, 1], [], []>} : vector<128x256xbf16>, vector<256x128xbf16>, vector<128x128xf32> -> vector<128x128xf32>
    %cst_33 = arith.constant dense<0.000000e+00> : vector<128xf32>
    %111 = vector.multi_reduction <add>, %110, %cst_33 [0] : vector<128x128xf32> to vector<128xf32>
    %112 = vector.shape_cast %111 : vector<128xf32> to vector<1x128xf32>
    %113 = arith.mulf %110, %110 : vector<128x128xf32>
    %cst_34 = arith.constant dense<0.000000e+00> : vector<128xf32>
    %114 = vector.multi_reduction <add>, %113, %cst_34 [0] : vector<128x128xf32> to vector<128xf32>
    %115 = vector.shape_cast %114 : vector<128xf32> to vector<1x128xf32>
    %cst_35 = arith.constant 7.812500e-03 : f32
    %116 = vector.broadcast %cst_35 : f32 to vector<1x128xf32>
    %117 = arith.mulf %112, %116 : vector<1x128xf32>
    %cst_36 = arith.constant 7.812500e-03 : f32
    %118 = vector.broadcast %cst_36 : f32 to vector<1x128xf32>
    %119 = arith.mulf %115, %118 : vector<1x128xf32>
    %120 = arith.mulf %117, %117 : vector<1x128xf32>
    %121 = arith.subf %119, %120 : vector<1x128xf32>
    %cst_37 = arith.constant 0.000000e+00 : f32
    %122 = vector.broadcast %cst_37 : f32 to vector<1x128xf32>
    %123 = arith.maximumf %121, %122 : vector<1x128xf32>
    %cst_38 = arith.constant 9.99999974E-6 : f32
    %124 = vector.broadcast %cst_38 : f32 to vector<1x128xf32>
    %125 = arith.addf %123, %124 : vector<1x128xf32>
    %126 = math.rsqrt %125 : vector<1x128xf32>
    %127 = arith.mulf %8, %126 : vector<1x128xf32>
    %128 = vector.broadcast %127 : vector<1x128xf32> to vector<128x128xf32>
    %129 = arith.mulf %110, %128 : vector<128x128xf32>
    %130 = arith.mulf %117, %127 : vector<1x128xf32>
    %131 = arith.subf %9, %130 : vector<1x128xf32>
    %132 = vector.broadcast %131 : vector<1x128xf32> to vector<128x128xf32>
    %133 = arith.addf %129, %132 : vector<128x128xf32>
    %cst_39 = arith.constant 0.000000e+00 : f32
    %134 = vector.broadcast %cst_39 : f32 to vector<128x128xf32>
    %135 = arith.maximumf %133, %134 : vector<128x128xf32>
    %c544 = arith.constant 544 : index
    %c0_40 = arith.constant 0 : index
    %136 = vector.load %arg2[%c544, %c0_40] : memref<1184x256xbf16, #tpu.memory_space<vmem>>, vector<128x128xbf16>
    %137 = arith.truncf %135 : vector<128x128xf32> to vector<128x128xbf16>
    %cst_41 = arith.constant dense<0.000000e+00> : vector<128x128xf32>
    %138 = tpu.matmul %137, %136, %cst_41 {dimension_numbers = #tpu.dot_dimension_numbers<[1], [0], [0], [1], [0, 0, 1, 1], [], []>} : vector<128x128xbf16>, vector<128x128xbf16>, vector<128x128xf32> -> vector<128x128xf32>
    %cst_42 = arith.constant dense<0.000000e+00> : vector<128xf32>
    %139 = vector.multi_reduction <add>, %138, %cst_42 [0] : vector<128x128xf32> to vector<128xf32>
    %140 = vector.shape_cast %139 : vector<128xf32> to vector<1x128xf32>
    %141 = arith.mulf %138, %138 : vector<128x128xf32>
    %cst_43 = arith.constant dense<0.000000e+00> : vector<128xf32>
    %142 = vector.multi_reduction <add>, %141, %cst_43 [0] : vector<128x128xf32> to vector<128xf32>
    %143 = vector.shape_cast %142 : vector<128xf32> to vector<1x128xf32>
    %cst_44 = arith.constant 7.812500e-03 : f32
    %144 = vector.broadcast %cst_44 : f32 to vector<1x128xf32>
    %145 = arith.mulf %140, %144 : vector<1x128xf32>
    %cst_45 = arith.constant 7.812500e-03 : f32
    %146 = vector.broadcast %cst_45 : f32 to vector<1x128xf32>
    %147 = arith.mulf %143, %146 : vector<1x128xf32>
    %148 = arith.mulf %145, %145 : vector<1x128xf32>
    %149 = arith.subf %147, %148 : vector<1x128xf32>
    %cst_46 = arith.constant 0.000000e+00 : f32
    %150 = vector.broadcast %cst_46 : f32 to vector<1x128xf32>
    %151 = arith.maximumf %149, %150 : vector<1x128xf32>
    %cst_47 = arith.constant 9.99999974E-6 : f32
    %152 = vector.broadcast %cst_47 : f32 to vector<1x128xf32>
    %153 = arith.addf %151, %152 : vector<1x128xf32>
    %154 = math.rsqrt %153 : vector<1x128xf32>
    %155 = arith.mulf %10, %154 : vector<1x128xf32>
    %156 = vector.broadcast %155 : vector<1x128xf32> to vector<128x128xf32>
    %157 = arith.mulf %138, %156 : vector<128x128xf32>
    %158 = arith.mulf %145, %155 : vector<1x128xf32>
    %159 = arith.subf %11, %158 : vector<1x128xf32>
    %160 = vector.broadcast %159 : vector<1x128xf32> to vector<128x128xf32>
    %161 = arith.addf %157, %160 : vector<128x128xf32>
    %cst_48 = arith.constant 0.000000e+00 : f32
    %162 = vector.broadcast %cst_48 : f32 to vector<128x128xf32>
    %163 = arith.maximumf %161, %162 : vector<128x128xf32>
    %c672 = arith.constant 672 : index
    %c0_49 = arith.constant 0 : index
    %164 = vector.load %arg2[%c672, %c0_49] : memref<1184x256xbf16, #tpu.memory_space<vmem>>, vector<128x256xbf16>
    %165 = arith.truncf %163 : vector<128x128xf32> to vector<128x128xbf16>
    %cst_50 = arith.constant dense<0.000000e+00> : vector<128x256xf32>
    %166 = tpu.matmul %165, %164, %cst_50 {dimension_numbers = #tpu.dot_dimension_numbers<[1], [0], [0], [1], [0, 0, 1, 1], [], []>} : vector<128x128xbf16>, vector<128x256xbf16>, vector<128x256xf32> -> vector<128x256xf32>
    %cst_51 = arith.constant dense<0.000000e+00> : vector<256xf32>
    %167 = vector.multi_reduction <add>, %166, %cst_51 [0] : vector<128x256xf32> to vector<256xf32>
    %168 = vector.shape_cast %167 : vector<256xf32> to vector<1x256xf32>
    %169 = arith.mulf %166, %166 : vector<128x256xf32>
    %cst_52 = arith.constant dense<0.000000e+00> : vector<256xf32>
    %170 = vector.multi_reduction <add>, %169, %cst_52 [0] : vector<128x256xf32> to vector<256xf32>
    %171 = vector.shape_cast %170 : vector<256xf32> to vector<1x256xf32>
    %cst_53 = arith.constant 7.812500e-03 : f32
    %172 = vector.broadcast %cst_53 : f32 to vector<1x256xf32>
    %173 = arith.mulf %168, %172 : vector<1x256xf32>
    %cst_54 = arith.constant 7.812500e-03 : f32
    %174 = vector.broadcast %cst_54 : f32 to vector<1x256xf32>
    %175 = arith.mulf %171, %174 : vector<1x256xf32>
    %176 = arith.mulf %173, %173 : vector<1x256xf32>
    %177 = arith.subf %175, %176 : vector<1x256xf32>
    %cst_55 = arith.constant 0.000000e+00 : f32
    %178 = vector.broadcast %cst_55 : f32 to vector<1x256xf32>
    %179 = arith.maximumf %177, %178 : vector<1x256xf32>
    %cst_56 = arith.constant 9.99999974E-6 : f32
    %180 = vector.broadcast %cst_56 : f32 to vector<1x256xf32>
    %181 = arith.addf %179, %180 : vector<1x256xf32>
    %182 = math.rsqrt %181 : vector<1x256xf32>
    %183 = arith.mulf %12, %182 : vector<1x256xf32>
    %184 = vector.broadcast %183 : vector<1x256xf32> to vector<128x256xf32>
    %185 = arith.mulf %166, %184 : vector<128x256xf32>
    %186 = arith.mulf %173, %183 : vector<1x256xf32>
    %187 = arith.subf %13, %186 : vector<1x256xf32>
    %188 = vector.broadcast %187 : vector<1x256xf32> to vector<128x256xf32>
    %189 = arith.addf %185, %188 : vector<128x256xf32>
    %cst_57 = arith.constant 0.000000e+00 : f32
    %190 = vector.broadcast %cst_57 : f32 to vector<128x256xf32>
    %191 = arith.maximumf %189, %190 : vector<128x256xf32>
    %c800 = arith.constant 800 : index
    %c0_58 = arith.constant 0 : index
    %192 = vector.load %arg2[%c800, %c0_58] : memref<1184x256xbf16, #tpu.memory_space<vmem>>, vector<256x128xbf16>
    %193 = arith.truncf %191 : vector<128x256xf32> to vector<128x256xbf16>
    %cst_59 = arith.constant dense<0.000000e+00> : vector<128x128xf32>
    %194 = tpu.matmul %193, %192, %cst_59 {dimension_numbers = #tpu.dot_dimension_numbers<[1], [0], [0], [1], [0, 0, 1, 1], [], []>} : vector<128x256xbf16>, vector<256x128xbf16>, vector<128x128xf32> -> vector<128x128xf32>
    %cst_60 = arith.constant dense<0.000000e+00> : vector<128xf32>
    %195 = vector.multi_reduction <add>, %194, %cst_60 [0] : vector<128x128xf32> to vector<128xf32>
    %196 = vector.shape_cast %195 : vector<128xf32> to vector<1x128xf32>
    %197 = arith.mulf %194, %194 : vector<128x128xf32>
    %cst_61 = arith.constant dense<0.000000e+00> : vector<128xf32>
    %198 = vector.multi_reduction <add>, %197, %cst_61 [0] : vector<128x128xf32> to vector<128xf32>
    %199 = vector.shape_cast %198 : vector<128xf32> to vector<1x128xf32>
    %cst_62 = arith.constant 7.812500e-03 : f32
    %200 = vector.broadcast %cst_62 : f32 to vector<1x128xf32>
    %201 = arith.mulf %196, %200 : vector<1x128xf32>
    %cst_63 = arith.constant 7.812500e-03 : f32
    %202 = vector.broadcast %cst_63 : f32 to vector<1x128xf32>
    %203 = arith.mulf %199, %202 : vector<1x128xf32>
    %204 = arith.mulf %201, %201 : vector<1x128xf32>
    %205 = arith.subf %203, %204 : vector<1x128xf32>
    %cst_64 = arith.constant 0.000000e+00 : f32
    %206 = vector.broadcast %cst_64 : f32 to vector<1x128xf32>
    %207 = arith.maximumf %205, %206 : vector<1x128xf32>
    %cst_65 = arith.constant 9.99999974E-6 : f32
    %208 = vector.broadcast %cst_65 : f32 to vector<1x128xf32>
    %209 = arith.addf %207, %208 : vector<1x128xf32>
    %210 = math.rsqrt %209 : vector<1x128xf32>
    %211 = arith.mulf %14, %210 : vector<1x128xf32>
    %212 = vector.broadcast %211 : vector<1x128xf32> to vector<128x128xf32>
    %213 = arith.mulf %194, %212 : vector<128x128xf32>
    %214 = arith.mulf %201, %211 : vector<1x128xf32>
    %215 = arith.subf %15, %214 : vector<1x128xf32>
    %216 = vector.broadcast %215 : vector<1x128xf32> to vector<128x128xf32>
    %217 = arith.addf %213, %216 : vector<128x128xf32>
    %cst_66 = arith.constant 0.000000e+00 : f32
    %218 = vector.broadcast %cst_66 : f32 to vector<128x128xf32>
    %219 = arith.maximumf %217, %218 : vector<128x128xf32>
    %c1056 = arith.constant 1056 : index
    %c0_67 = arith.constant 0 : index
    %220 = vector.load %arg2[%c1056, %c0_67] : memref<1184x256xbf16, #tpu.memory_space<vmem>>, vector<128x128xbf16>
    %221 = arith.truncf %219 : vector<128x128xf32> to vector<128x128xbf16>
    %cst_68 = arith.constant dense<0.000000e+00> : vector<128x128xf32>
    %222 = tpu.matmul %221, %220, %cst_68 {dimension_numbers = #tpu.dot_dimension_numbers<[1], [0], [0], [1], [0, 0, 1, 1], [], []>} : vector<128x128xbf16>, vector<128x128xbf16>, vector<128x128xf32> -> vector<128x128xf32>
    %cst_69 = arith.constant dense<0.000000e+00> : vector<128xf32>
    %223 = vector.multi_reduction <add>, %222, %cst_69 [0] : vector<128x128xf32> to vector<128xf32>
    %224 = vector.shape_cast %223 : vector<128xf32> to vector<1x128xf32>
    %225 = arith.mulf %222, %222 : vector<128x128xf32>
    %cst_70 = arith.constant dense<0.000000e+00> : vector<128xf32>
    %226 = vector.multi_reduction <add>, %225, %cst_70 [0] : vector<128x128xf32> to vector<128xf32>
    %227 = vector.shape_cast %226 : vector<128xf32> to vector<1x128xf32>
    %cst_71 = arith.constant 7.812500e-03 : f32
    %228 = vector.broadcast %cst_71 : f32 to vector<1x128xf32>
    %229 = arith.mulf %224, %228 : vector<1x128xf32>
    %cst_72 = arith.constant 7.812500e-03 : f32
    %230 = vector.broadcast %cst_72 : f32 to vector<1x128xf32>
    %231 = arith.mulf %227, %230 : vector<1x128xf32>
    %232 = arith.mulf %229, %229 : vector<1x128xf32>
    %233 = arith.subf %231, %232 : vector<1x128xf32>
    %cst_73 = arith.constant 0.000000e+00 : f32
    %234 = vector.broadcast %cst_73 : f32 to vector<1x128xf32>
    %235 = arith.maximumf %233, %234 : vector<1x128xf32>
    %cst_74 = arith.constant 9.99999974E-6 : f32
    %236 = vector.broadcast %cst_74 : f32 to vector<1x128xf32>
    %237 = arith.addf %235, %236 : vector<1x128xf32>
    %238 = math.rsqrt %237 : vector<1x128xf32>
    %239 = arith.mulf %16, %238 : vector<1x128xf32>
    %240 = vector.broadcast %239 : vector<1x128xf32> to vector<128x128xf32>
    %241 = arith.mulf %222, %240 : vector<128x128xf32>
    %242 = arith.mulf %229, %239 : vector<1x128xf32>
    %243 = arith.subf %17, %242 : vector<1x128xf32>
    %244 = vector.broadcast %243 : vector<1x128xf32> to vector<128x128xf32>
    %245 = arith.addf %241, %244 : vector<128x128xf32>
    %cst_75 = arith.constant 0.000000e+00 : f32
    %246 = vector.broadcast %cst_75 : f32 to vector<128x128xf32>
    %247 = arith.maximumf %245, %246 : vector<128x128xf32>
    %248 = arith.addf %135, %247 : vector<128x128xf32>
    %249 = vector.broadcast %18 : vector<1x128xf32> to vector<128x128xf32>
    %250 = arith.mulf %248, %249 : vector<128x128xf32>
    %cst_76 = arith.constant dense<0.000000e+00> : vector<128xf32>
    %251 = vector.multi_reduction <add>, %250, %cst_76 [1] : vector<128x128xf32> to vector<128xf32>
    %252 = vector.shape_cast %251 : vector<128xf32> to vector<128x1xf32>
    %c544_77 = arith.constant 544 : index
    %c0_78 = arith.constant 0 : index
    %253 = vector.load %arg2[%c544_77, %c0_78] : memref<1184x256xbf16, #tpu.memory_space<vmem>>, vector<128x128xbf16>
    %254 = arith.truncf %248 : vector<128x128xf32> to vector<128x128xbf16>
    %cst_79 = arith.constant dense<0.000000e+00> : vector<128x128xf32>
    %255 = tpu.matmul %254, %253, %cst_79 {dimension_numbers = #tpu.dot_dimension_numbers<[1], [0], [0], [1], [0, 0, 1, 1], [], []>} : vector<128x128xbf16>, vector<128x128xbf16>, vector<128x128xf32> -> vector<128x128xf32>
    %cst_80 = arith.constant dense<0.000000e+00> : vector<128xf32>
    %256 = vector.multi_reduction <add>, %255, %cst_80 [0] : vector<128x128xf32> to vector<128xf32>
    %257 = vector.shape_cast %256 : vector<128xf32> to vector<1x128xf32>
    %258 = arith.mulf %255, %255 : vector<128x128xf32>
    %cst_81 = arith.constant dense<0.000000e+00> : vector<128xf32>
    %259 = vector.multi_reduction <add>, %258, %cst_81 [0] : vector<128x128xf32> to vector<128xf32>
    %260 = vector.shape_cast %259 : vector<128xf32> to vector<1x128xf32>
    %cst_82 = arith.constant 7.812500e-03 : f32
    %261 = vector.broadcast %cst_82 : f32 to vector<1x128xf32>
    %262 = arith.mulf %257, %261 : vector<1x128xf32>
    %cst_83 = arith.constant 7.812500e-03 : f32
    %263 = vector.broadcast %cst_83 : f32 to vector<1x128xf32>
    %264 = arith.mulf %260, %263 : vector<1x128xf32>
    %265 = arith.mulf %262, %262 : vector<1x128xf32>
    %266 = arith.subf %264, %265 : vector<1x128xf32>
    %cst_84 = arith.constant 0.000000e+00 : f32
    %267 = vector.broadcast %cst_84 : f32 to vector<1x128xf32>
    %268 = arith.maximumf %266, %267 : vector<1x128xf32>
    %cst_85 = arith.constant 9.99999974E-6 : f32
    %269 = vector.broadcast %cst_85 : f32 to vector<1x128xf32>
    %270 = arith.addf %268, %269 : vector<1x128xf32>
    %271 = math.rsqrt %270 : vector<1x128xf32>
    %272 = arith.mulf %10, %271 : vector<1x128xf32>
    %273 = vector.broadcast %272 : vector<1x128xf32> to vector<128x128xf32>
    %274 = arith.mulf %255, %273 : vector<128x128xf32>
    %275 = arith.mulf %262, %272 : vector<1x128xf32>
    %276 = arith.subf %11, %275 : vector<1x128xf32>
    %277 = vector.broadcast %276 : vector<1x128xf32> to vector<128x128xf32>
    %278 = arith.addf %274, %277 : vector<128x128xf32>
    %cst_86 = arith.constant 0.000000e+00 : f32
    %279 = vector.broadcast %cst_86 : f32 to vector<128x128xf32>
    %280 = arith.maximumf %278, %279 : vector<128x128xf32>
    %c672_87 = arith.constant 672 : index
    %c0_88 = arith.constant 0 : index
    %281 = vector.load %arg2[%c672_87, %c0_88] : memref<1184x256xbf16, #tpu.memory_space<vmem>>, vector<128x256xbf16>
    %282 = arith.truncf %280 : vector<128x128xf32> to vector<128x128xbf16>
    %cst_89 = arith.constant dense<0.000000e+00> : vector<128x256xf32>
    %283 = tpu.matmul %282, %281, %cst_89 {dimension_numbers = #tpu.dot_dimension_numbers<[1], [0], [0], [1], [0, 0, 1, 1], [], []>} : vector<128x128xbf16>, vector<128x256xbf16>, vector<128x256xf32> -> vector<128x256xf32>
    %cst_90 = arith.constant dense<0.000000e+00> : vector<256xf32>
    %284 = vector.multi_reduction <add>, %283, %cst_90 [0] : vector<128x256xf32> to vector<256xf32>
    %285 = vector.shape_cast %284 : vector<256xf32> to vector<1x256xf32>
    %286 = arith.mulf %283, %283 : vector<128x256xf32>
    %cst_91 = arith.constant dense<0.000000e+00> : vector<256xf32>
    %287 = vector.multi_reduction <add>, %286, %cst_91 [0] : vector<128x256xf32> to vector<256xf32>
    %288 = vector.shape_cast %287 : vector<256xf32> to vector<1x256xf32>
    %cst_92 = arith.constant 7.812500e-03 : f32
    %289 = vector.broadcast %cst_92 : f32 to vector<1x256xf32>
    %290 = arith.mulf %285, %289 : vector<1x256xf32>
    %cst_93 = arith.constant 7.812500e-03 : f32
    %291 = vector.broadcast %cst_93 : f32 to vector<1x256xf32>
    %292 = arith.mulf %288, %291 : vector<1x256xf32>
    %293 = arith.mulf %290, %290 : vector<1x256xf32>
    %294 = arith.subf %292, %293 : vector<1x256xf32>
    %cst_94 = arith.constant 0.000000e+00 : f32
    %295 = vector.broadcast %cst_94 : f32 to vector<1x256xf32>
    %296 = arith.maximumf %294, %295 : vector<1x256xf32>
    %cst_95 = arith.constant 9.99999974E-6 : f32
    %297 = vector.broadcast %cst_95 : f32 to vector<1x256xf32>
    %298 = arith.addf %296, %297 : vector<1x256xf32>
    %299 = math.rsqrt %298 : vector<1x256xf32>
    %300 = arith.mulf %12, %299 : vector<1x256xf32>
    %301 = vector.broadcast %300 : vector<1x256xf32> to vector<128x256xf32>
    %302 = arith.mulf %283, %301 : vector<128x256xf32>
    %303 = arith.mulf %290, %300 : vector<1x256xf32>
    %304 = arith.subf %13, %303 : vector<1x256xf32>
    %305 = vector.broadcast %304 : vector<1x256xf32> to vector<128x256xf32>
    %306 = arith.addf %302, %305 : vector<128x256xf32>
    %cst_96 = arith.constant 0.000000e+00 : f32
    %307 = vector.broadcast %cst_96 : f32 to vector<128x256xf32>
    %308 = arith.maximumf %306, %307 : vector<128x256xf32>
    %c800_97 = arith.constant 800 : index
    %c0_98 = arith.constant 0 : index
    %309 = vector.load %arg2[%c800_97, %c0_98] : memref<1184x256xbf16, #tpu.memory_space<vmem>>, vector<256x128xbf16>
    %310 = arith.truncf %308 : vector<128x256xf32> to vector<128x256xbf16>
    %cst_99 = arith.constant dense<0.000000e+00> : vector<128x128xf32>
    %311 = tpu.matmul %310, %309, %cst_99 {dimension_numbers = #tpu.dot_dimension_numbers<[1], [0], [0], [1], [0, 0, 1, 1], [], []>} : vector<128x256xbf16>, vector<256x128xbf16>, vector<128x128xf32> -> vector<128x128xf32>
    %cst_100 = arith.constant dense<0.000000e+00> : vector<128xf32>
    %312 = vector.multi_reduction <add>, %311, %cst_100 [0] : vector<128x128xf32> to vector<128xf32>
    %313 = vector.shape_cast %312 : vector<128xf32> to vector<1x128xf32>
    %314 = arith.mulf %311, %311 : vector<128x128xf32>
    %cst_101 = arith.constant dense<0.000000e+00> : vector<128xf32>
    %315 = vector.multi_reduction <add>, %314, %cst_101 [0] : vector<128x128xf32> to vector<128xf32>
    %316 = vector.shape_cast %315 : vector<128xf32> to vector<1x128xf32>
    %cst_102 = arith.constant 7.812500e-03 : f32
    %317 = vector.broadcast %cst_102 : f32 to vector<1x128xf32>
    %318 = arith.mulf %313, %317 : vector<1x128xf32>
    %cst_103 = arith.constant 7.812500e-03 : f32
    %319 = vector.broadcast %cst_103 : f32 to vector<1x128xf32>
    %320 = arith.mulf %316, %319 : vector<1x128xf32>
    %321 = arith.mulf %318, %318 : vector<1x128xf32>
    %322 = arith.subf %320, %321 : vector<1x128xf32>
    %cst_104 = arith.constant 0.000000e+00 : f32
    %323 = vector.broadcast %cst_104 : f32 to vector<1x128xf32>
    %324 = arith.maximumf %322, %323 : vector<1x128xf32>
    %cst_105 = arith.constant 9.99999974E-6 : f32
    %325 = vector.broadcast %cst_105 : f32 to vector<1x128xf32>
    %326 = arith.addf %324, %325 : vector<1x128xf32>
    %327 = math.rsqrt %326 : vector<1x128xf32>
    %328 = arith.mulf %14, %327 : vector<1x128xf32>
    %329 = vector.broadcast %328 : vector<1x128xf32> to vector<128x128xf32>
    %330 = arith.mulf %311, %329 : vector<128x128xf32>
    %331 = arith.mulf %318, %328 : vector<1x128xf32>
    %332 = arith.subf %15, %331 : vector<1x128xf32>
    %333 = vector.broadcast %332 : vector<1x128xf32> to vector<128x128xf32>
    %334 = arith.addf %330, %333 : vector<128x128xf32>
    %cst_106 = arith.constant 0.000000e+00 : f32
    %335 = vector.broadcast %cst_106 : f32 to vector<128x128xf32>
    %336 = arith.maximumf %334, %335 : vector<128x128xf32>
    %c1056_107 = arith.constant 1056 : index
    %c0_108 = arith.constant 0 : index
    %337 = vector.load %arg2[%c1056_107, %c0_108] : memref<1184x256xbf16, #tpu.memory_space<vmem>>, vector<128x128xbf16>
    %338 = arith.truncf %336 : vector<128x128xf32> to vector<128x128xbf16>
    %cst_109 = arith.constant dense<0.000000e+00> : vector<128x128xf32>
    %339 = tpu.matmul %338, %337, %cst_109 {dimension_numbers = #tpu.dot_dimension_numbers<[1], [0], [0], [1], [0, 0, 1, 1], [], []>} : vector<128x128xbf16>, vector<128x128xbf16>, vector<128x128xf32> -> vector<128x128xf32>
    %cst_110 = arith.constant dense<0.000000e+00> : vector<128xf32>
    %340 = vector.multi_reduction <add>, %339, %cst_110 [0] : vector<128x128xf32> to vector<128xf32>
    %341 = vector.shape_cast %340 : vector<128xf32> to vector<1x128xf32>
    %342 = arith.mulf %339, %339 : vector<128x128xf32>
    %cst_111 = arith.constant dense<0.000000e+00> : vector<128xf32>
    %343 = vector.multi_reduction <add>, %342, %cst_111 [0] : vector<128x128xf32> to vector<128xf32>
    %344 = vector.shape_cast %343 : vector<128xf32> to vector<1x128xf32>
    %cst_112 = arith.constant 7.812500e-03 : f32
    %345 = vector.broadcast %cst_112 : f32 to vector<1x128xf32>
    %346 = arith.mulf %341, %345 : vector<1x128xf32>
    %cst_113 = arith.constant 7.812500e-03 : f32
    %347 = vector.broadcast %cst_113 : f32 to vector<1x128xf32>
    %348 = arith.mulf %344, %347 : vector<1x128xf32>
    %349 = arith.mulf %346, %346 : vector<1x128xf32>
    %350 = arith.subf %348, %349 : vector<1x128xf32>
    %cst_114 = arith.constant 0.000000e+00 : f32
    %351 = vector.broadcast %cst_114 : f32 to vector<1x128xf32>
    %352 = arith.maximumf %350, %351 : vector<1x128xf32>
    %cst_115 = arith.constant 9.99999974E-6 : f32
    %353 = vector.broadcast %cst_115 : f32 to vector<1x128xf32>
    %354 = arith.addf %352, %353 : vector<1x128xf32>
    %355 = math.rsqrt %354 : vector<1x128xf32>
    %356 = arith.mulf %16, %355 : vector<1x128xf32>
    %357 = vector.broadcast %356 : vector<1x128xf32> to vector<128x128xf32>
    %358 = arith.mulf %339, %357 : vector<128x128xf32>
    %359 = arith.mulf %346, %356 : vector<1x128xf32>
    %360 = arith.subf %17, %359 : vector<1x128xf32>
    %361 = vector.broadcast %360 : vector<1x128xf32> to vector<128x128xf32>
    %362 = arith.addf %358, %361 : vector<128x128xf32>
    %cst_116 = arith.constant 0.000000e+00 : f32
    %363 = vector.broadcast %cst_116 : f32 to vector<128x128xf32>
    %364 = arith.maximumf %362, %363 : vector<128x128xf32>
    %365 = arith.addf %248, %364 : vector<128x128xf32>
    %366 = vector.broadcast %18 : vector<1x128xf32> to vector<128x128xf32>
    %367 = arith.mulf %365, %366 : vector<128x128xf32>
    %cst_117 = arith.constant dense<0.000000e+00> : vector<128xf32>
    %368 = vector.multi_reduction <add>, %367, %cst_117 [1] : vector<128x128xf32> to vector<128xf32>
    %369 = vector.shape_cast %368 : vector<128xf32> to vector<128x1xf32>
    %c544_118 = arith.constant 544 : index
    %c0_119 = arith.constant 0 : index
    %370 = vector.load %arg2[%c544_118, %c0_119] : memref<1184x256xbf16, #tpu.memory_space<vmem>>, vector<128x128xbf16>
    %371 = arith.truncf %365 : vector<128x128xf32> to vector<128x128xbf16>
    %cst_120 = arith.constant dense<0.000000e+00> : vector<128x128xf32>
    %372 = tpu.matmul %371, %370, %cst_120 {dimension_numbers = #tpu.dot_dimension_numbers<[1], [0], [0], [1], [0, 0, 1, 1], [], []>} : vector<128x128xbf16>, vector<128x128xbf16>, vector<128x128xf32> -> vector<128x128xf32>
    %cst_121 = arith.constant dense<0.000000e+00> : vector<128xf32>
    %373 = vector.multi_reduction <add>, %372, %cst_121 [0] : vector<128x128xf32> to vector<128xf32>
    %374 = vector.shape_cast %373 : vector<128xf32> to vector<1x128xf32>
    %375 = arith.mulf %372, %372 : vector<128x128xf32>
    %cst_122 = arith.constant dense<0.000000e+00> : vector<128xf32>
    %376 = vector.multi_reduction <add>, %375, %cst_122 [0] : vector<128x128xf32> to vector<128xf32>
    %377 = vector.shape_cast %376 : vector<128xf32> to vector<1x128xf32>
    %cst_123 = arith.constant 7.812500e-03 : f32
    %378 = vector.broadcast %cst_123 : f32 to vector<1x128xf32>
    %379 = arith.mulf %374, %378 : vector<1x128xf32>
    %cst_124 = arith.constant 7.812500e-03 : f32
    %380 = vector.broadcast %cst_124 : f32 to vector<1x128xf32>
    %381 = arith.mulf %377, %380 : vector<1x128xf32>
    %382 = arith.mulf %379, %379 : vector<1x128xf32>
    %383 = arith.subf %381, %382 : vector<1x128xf32>
    %cst_125 = arith.constant 0.000000e+00 : f32
    %384 = vector.broadcast %cst_125 : f32 to vector<1x128xf32>
    %385 = arith.maximumf %383, %384 : vector<1x128xf32>
    %cst_126 = arith.constant 9.99999974E-6 : f32
    %386 = vector.broadcast %cst_126 : f32 to vector<1x128xf32>
    %387 = arith.addf %385, %386 : vector<1x128xf32>
    %388 = math.rsqrt %387 : vector<1x128xf32>
    %389 = arith.mulf %10, %388 : vector<1x128xf32>
    %390 = vector.broadcast %389 : vector<1x128xf32> to vector<128x128xf32>
    %391 = arith.mulf %372, %390 : vector<128x128xf32>
    %392 = arith.mulf %379, %389 : vector<1x128xf32>
    %393 = arith.subf %11, %392 : vector<1x128xf32>
    %394 = vector.broadcast %393 : vector<1x128xf32> to vector<128x128xf32>
    %395 = arith.addf %391, %394 : vector<128x128xf32>
    %cst_127 = arith.constant 0.000000e+00 : f32
    %396 = vector.broadcast %cst_127 : f32 to vector<128x128xf32>
    %397 = arith.maximumf %395, %396 : vector<128x128xf32>
    %c672_128 = arith.constant 672 : index
    %c0_129 = arith.constant 0 : index
    %398 = vector.load %arg2[%c672_128, %c0_129] : memref<1184x256xbf16, #tpu.memory_space<vmem>>, vector<128x256xbf16>
    %399 = arith.truncf %397 : vector<128x128xf32> to vector<128x128xbf16>
    %cst_130 = arith.constant dense<0.000000e+00> : vector<128x256xf32>
    %400 = tpu.matmul %399, %398, %cst_130 {dimension_numbers = #tpu.dot_dimension_numbers<[1], [0], [0], [1], [0, 0, 1, 1], [], []>} : vector<128x128xbf16>, vector<128x256xbf16>, vector<128x256xf32> -> vector<128x256xf32>
    %cst_131 = arith.constant dense<0.000000e+00> : vector<256xf32>
    %401 = vector.multi_reduction <add>, %400, %cst_131 [0] : vector<128x256xf32> to vector<256xf32>
    %402 = vector.shape_cast %401 : vector<256xf32> to vector<1x256xf32>
    %403 = arith.mulf %400, %400 : vector<128x256xf32>
    %cst_132 = arith.constant dense<0.000000e+00> : vector<256xf32>
    %404 = vector.multi_reduction <add>, %403, %cst_132 [0] : vector<128x256xf32> to vector<256xf32>
    %405 = vector.shape_cast %404 : vector<256xf32> to vector<1x256xf32>
    %cst_133 = arith.constant 7.812500e-03 : f32
    %406 = vector.broadcast %cst_133 : f32 to vector<1x256xf32>
    %407 = arith.mulf %402, %406 : vector<1x256xf32>
    %cst_134 = arith.constant 7.812500e-03 : f32
    %408 = vector.broadcast %cst_134 : f32 to vector<1x256xf32>
    %409 = arith.mulf %405, %408 : vector<1x256xf32>
    %410 = arith.mulf %407, %407 : vector<1x256xf32>
    %411 = arith.subf %409, %410 : vector<1x256xf32>
    %cst_135 = arith.constant 0.000000e+00 : f32
    %412 = vector.broadcast %cst_135 : f32 to vector<1x256xf32>
    %413 = arith.maximumf %411, %412 : vector<1x256xf32>
    %cst_136 = arith.constant 9.99999974E-6 : f32
    %414 = vector.broadcast %cst_136 : f32 to vector<1x256xf32>
    %415 = arith.addf %413, %414 : vector<1x256xf32>
    %416 = math.rsqrt %415 : vector<1x256xf32>
    %417 = arith.mulf %12, %416 : vector<1x256xf32>
    %418 = vector.broadcast %417 : vector<1x256xf32> to vector<128x256xf32>
    %419 = arith.mulf %400, %418 : vector<128x256xf32>
    %420 = arith.mulf %407, %417 : vector<1x256xf32>
    %421 = arith.subf %13, %420 : vector<1x256xf32>
    %422 = vector.broadcast %421 : vector<1x256xf32> to vector<128x256xf32>
    %423 = arith.addf %419, %422 : vector<128x256xf32>
    %cst_137 = arith.constant 0.000000e+00 : f32
    %424 = vector.broadcast %cst_137 : f32 to vector<128x256xf32>
    %425 = arith.maximumf %423, %424 : vector<128x256xf32>
    %c800_138 = arith.constant 800 : index
    %c0_139 = arith.constant 0 : index
    %426 = vector.load %arg2[%c800_138, %c0_139] : memref<1184x256xbf16, #tpu.memory_space<vmem>>, vector<256x128xbf16>
    %427 = arith.truncf %425 : vector<128x256xf32> to vector<128x256xbf16>
    %cst_140 = arith.constant dense<0.000000e+00> : vector<128x128xf32>
    %428 = tpu.matmul %427, %426, %cst_140 {dimension_numbers = #tpu.dot_dimension_numbers<[1], [0], [0], [1], [0, 0, 1, 1], [], []>} : vector<128x256xbf16>, vector<256x128xbf16>, vector<128x128xf32> -> vector<128x128xf32>
    %cst_141 = arith.constant dense<0.000000e+00> : vector<128xf32>
    %429 = vector.multi_reduction <add>, %428, %cst_141 [0] : vector<128x128xf32> to vector<128xf32>
    %430 = vector.shape_cast %429 : vector<128xf32> to vector<1x128xf32>
    %431 = arith.mulf %428, %428 : vector<128x128xf32>
    %cst_142 = arith.constant dense<0.000000e+00> : vector<128xf32>
    %432 = vector.multi_reduction <add>, %431, %cst_142 [0] : vector<128x128xf32> to vector<128xf32>
    %433 = vector.shape_cast %432 : vector<128xf32> to vector<1x128xf32>
    %cst_143 = arith.constant 7.812500e-03 : f32
    %434 = vector.broadcast %cst_143 : f32 to vector<1x128xf32>
    %435 = arith.mulf %430, %434 : vector<1x128xf32>
    %cst_144 = arith.constant 7.812500e-03 : f32
    %436 = vector.broadcast %cst_144 : f32 to vector<1x128xf32>
    %437 = arith.mulf %433, %436 : vector<1x128xf32>
    %438 = arith.mulf %435, %435 : vector<1x128xf32>
    %439 = arith.subf %437, %438 : vector<1x128xf32>
    %cst_145 = arith.constant 0.000000e+00 : f32
    %440 = vector.broadcast %cst_145 : f32 to vector<1x128xf32>
    %441 = arith.maximumf %439, %440 : vector<1x128xf32>
    %cst_146 = arith.constant 9.99999974E-6 : f32
    %442 = vector.broadcast %cst_146 : f32 to vector<1x128xf32>
    %443 = arith.addf %441, %442 : vector<1x128xf32>
    %444 = math.rsqrt %443 : vector<1x128xf32>
    %445 = arith.mulf %14, %444 : vector<1x128xf32>
    %446 = vector.broadcast %445 : vector<1x128xf32> to vector<128x128xf32>
    %447 = arith.mulf %428, %446 : vector<128x128xf32>
    %448 = arith.mulf %435, %445 : vector<1x128xf32>
    %449 = arith.subf %15, %448 : vector<1x128xf32>
    %450 = vector.broadcast %449 : vector<1x128xf32> to vector<128x128xf32>
    %451 = arith.addf %447, %450 : vector<128x128xf32>
    %cst_147 = arith.constant 0.000000e+00 : f32
    %452 = vector.broadcast %cst_147 : f32 to vector<128x128xf32>
    %453 = arith.maximumf %451, %452 : vector<128x128xf32>
    %c1056_148 = arith.constant 1056 : index
    %c0_149 = arith.constant 0 : index
    %454 = vector.load %arg2[%c1056_148, %c0_149] : memref<1184x256xbf16, #tpu.memory_space<vmem>>, vector<128x128xbf16>
    %455 = arith.truncf %453 : vector<128x128xf32> to vector<128x128xbf16>
    %cst_150 = arith.constant dense<0.000000e+00> : vector<128x128xf32>
    %456 = tpu.matmul %455, %454, %cst_150 {dimension_numbers = #tpu.dot_dimension_numbers<[1], [0], [0], [1], [0, 0, 1, 1], [], []>} : vector<128x128xbf16>, vector<128x128xbf16>, vector<128x128xf32> -> vector<128x128xf32>
    %cst_151 = arith.constant dense<0.000000e+00> : vector<128xf32>
    %457 = vector.multi_reduction <add>, %456, %cst_151 [0] : vector<128x128xf32> to vector<128xf32>
    %458 = vector.shape_cast %457 : vector<128xf32> to vector<1x128xf32>
    %459 = arith.mulf %456, %456 : vector<128x128xf32>
    %cst_152 = arith.constant dense<0.000000e+00> : vector<128xf32>
    %460 = vector.multi_reduction <add>, %459, %cst_152 [0] : vector<128x128xf32> to vector<128xf32>
    %461 = vector.shape_cast %460 : vector<128xf32> to vector<1x128xf32>
    %cst_153 = arith.constant 7.812500e-03 : f32
    %462 = vector.broadcast %cst_153 : f32 to vector<1x128xf32>
    %463 = arith.mulf %458, %462 : vector<1x128xf32>
    %cst_154 = arith.constant 7.812500e-03 : f32
    %464 = vector.broadcast %cst_154 : f32 to vector<1x128xf32>
    %465 = arith.mulf %461, %464 : vector<1x128xf32>
    %466 = arith.mulf %463, %463 : vector<1x128xf32>
    %467 = arith.subf %465, %466 : vector<1x128xf32>
    %cst_155 = arith.constant 0.000000e+00 : f32
    %468 = vector.broadcast %cst_155 : f32 to vector<1x128xf32>
    %469 = arith.maximumf %467, %468 : vector<1x128xf32>
    %cst_156 = arith.constant 9.99999974E-6 : f32
    %470 = vector.broadcast %cst_156 : f32 to vector<1x128xf32>
    %471 = arith.addf %469, %470 : vector<1x128xf32>
    %472 = math.rsqrt %471 : vector<1x128xf32>
    %473 = arith.mulf %16, %472 : vector<1x128xf32>
    %474 = vector.broadcast %473 : vector<1x128xf32> to vector<128x128xf32>
    %475 = arith.mulf %456, %474 : vector<128x128xf32>
    %476 = arith.mulf %463, %473 : vector<1x128xf32>
    %477 = arith.subf %17, %476 : vector<1x128xf32>
    %478 = vector.broadcast %477 : vector<1x128xf32> to vector<128x128xf32>
    %479 = arith.addf %475, %478 : vector<128x128xf32>
    %cst_157 = arith.constant 0.000000e+00 : f32
    %480 = vector.broadcast %cst_157 : f32 to vector<128x128xf32>
    %481 = arith.maximumf %479, %480 : vector<128x128xf32>
    %482 = arith.addf %365, %481 : vector<128x128xf32>
    %483 = vector.broadcast %18 : vector<1x128xf32> to vector<128x128xf32>
    %484 = arith.mulf %482, %483 : vector<128x128xf32>
    %cst_158 = arith.constant dense<0.000000e+00> : vector<128xf32>
    %485 = vector.multi_reduction <add>, %484, %cst_158 [1] : vector<128x128xf32> to vector<128xf32>
    %486 = vector.shape_cast %485 : vector<128xf32> to vector<128x1xf32>
    %c544_159 = arith.constant 544 : index
    %c0_160 = arith.constant 0 : index
    %487 = vector.load %arg2[%c544_159, %c0_160] : memref<1184x256xbf16, #tpu.memory_space<vmem>>, vector<128x128xbf16>
    %488 = arith.truncf %482 : vector<128x128xf32> to vector<128x128xbf16>
    %cst_161 = arith.constant dense<0.000000e+00> : vector<128x128xf32>
    %489 = tpu.matmul %488, %487, %cst_161 {dimension_numbers = #tpu.dot_dimension_numbers<[1], [0], [0], [1], [0, 0, 1, 1], [], []>} : vector<128x128xbf16>, vector<128x128xbf16>, vector<128x128xf32> -> vector<128x128xf32>
    %cst_162 = arith.constant dense<0.000000e+00> : vector<128xf32>
    %490 = vector.multi_reduction <add>, %489, %cst_162 [0] : vector<128x128xf32> to vector<128xf32>
    %491 = vector.shape_cast %490 : vector<128xf32> to vector<1x128xf32>
    %492 = arith.mulf %489, %489 : vector<128x128xf32>
    %cst_163 = arith.constant dense<0.000000e+00> : vector<128xf32>
    %493 = vector.multi_reduction <add>, %492, %cst_163 [0] : vector<128x128xf32> to vector<128xf32>
    %494 = vector.shape_cast %493 : vector<128xf32> to vector<1x128xf32>
    %cst_164 = arith.constant 7.812500e-03 : f32
    %495 = vector.broadcast %cst_164 : f32 to vector<1x128xf32>
    %496 = arith.mulf %491, %495 : vector<1x128xf32>
    %cst_165 = arith.constant 7.812500e-03 : f32
    %497 = vector.broadcast %cst_165 : f32 to vector<1x128xf32>
    %498 = arith.mulf %494, %497 : vector<1x128xf32>
    %499 = arith.mulf %496, %496 : vector<1x128xf32>
    %500 = arith.subf %498, %499 : vector<1x128xf32>
    %cst_166 = arith.constant 0.000000e+00 : f32
    %501 = vector.broadcast %cst_166 : f32 to vector<1x128xf32>
    %502 = arith.maximumf %500, %501 : vector<1x128xf32>
    %cst_167 = arith.constant 9.99999974E-6 : f32
    %503 = vector.broadcast %cst_167 : f32 to vector<1x128xf32>
    %504 = arith.addf %502, %503 : vector<1x128xf32>
    %505 = math.rsqrt %504 : vector<1x128xf32>
    %506 = arith.mulf %10, %505 : vector<1x128xf32>
    %507 = vector.broadcast %506 : vector<1x128xf32> to vector<128x128xf32>
    %508 = arith.mulf %489, %507 : vector<128x128xf32>
    %509 = arith.mulf %496, %506 : vector<1x128xf32>
    %510 = arith.subf %11, %509 : vector<1x128xf32>
    %511 = vector.broadcast %510 : vector<1x128xf32> to vector<128x128xf32>
    %512 = arith.addf %508, %511 : vector<128x128xf32>
    %cst_168 = arith.constant 0.000000e+00 : f32
    %513 = vector.broadcast %cst_168 : f32 to vector<128x128xf32>
    %514 = arith.maximumf %512, %513 : vector<128x128xf32>
    %c672_169 = arith.constant 672 : index
    %c0_170 = arith.constant 0 : index
    %515 = vector.load %arg2[%c672_169, %c0_170] : memref<1184x256xbf16, #tpu.memory_space<vmem>>, vector<128x256xbf16>
    %516 = arith.truncf %514 : vector<128x128xf32> to vector<128x128xbf16>
    %cst_171 = arith.constant dense<0.000000e+00> : vector<128x256xf32>
    %517 = tpu.matmul %516, %515, %cst_171 {dimension_numbers = #tpu.dot_dimension_numbers<[1], [0], [0], [1], [0, 0, 1, 1], [], []>} : vector<128x128xbf16>, vector<128x256xbf16>, vector<128x256xf32> -> vector<128x256xf32>
    %cst_172 = arith.constant dense<0.000000e+00> : vector<256xf32>
    %518 = vector.multi_reduction <add>, %517, %cst_172 [0] : vector<128x256xf32> to vector<256xf32>
    %519 = vector.shape_cast %518 : vector<256xf32> to vector<1x256xf32>
    %520 = arith.mulf %517, %517 : vector<128x256xf32>
    %cst_173 = arith.constant dense<0.000000e+00> : vector<256xf32>
    %521 = vector.multi_reduction <add>, %520, %cst_173 [0] : vector<128x256xf32> to vector<256xf32>
    %522 = vector.shape_cast %521 : vector<256xf32> to vector<1x256xf32>
    %cst_174 = arith.constant 7.812500e-03 : f32
    %523 = vector.broadcast %cst_174 : f32 to vector<1x256xf32>
    %524 = arith.mulf %519, %523 : vector<1x256xf32>
    %cst_175 = arith.constant 7.812500e-03 : f32
    %525 = vector.broadcast %cst_175 : f32 to vector<1x256xf32>
    %526 = arith.mulf %522, %525 : vector<1x256xf32>
    %527 = arith.mulf %524, %524 : vector<1x256xf32>
    %528 = arith.subf %526, %527 : vector<1x256xf32>
    %cst_176 = arith.constant 0.000000e+00 : f32
    %529 = vector.broadcast %cst_176 : f32 to vector<1x256xf32>
    %530 = arith.maximumf %528, %529 : vector<1x256xf32>
    %cst_177 = arith.constant 9.99999974E-6 : f32
    %531 = vector.broadcast %cst_177 : f32 to vector<1x256xf32>
    %532 = arith.addf %530, %531 : vector<1x256xf32>
    %533 = math.rsqrt %532 : vector<1x256xf32>
    %534 = arith.mulf %12, %533 : vector<1x256xf32>
    %535 = vector.broadcast %534 : vector<1x256xf32> to vector<128x256xf32>
    %536 = arith.mulf %517, %535 : vector<128x256xf32>
    %537 = arith.mulf %524, %534 : vector<1x256xf32>
    %538 = arith.subf %13, %537 : vector<1x256xf32>
    %539 = vector.broadcast %538 : vector<1x256xf32> to vector<128x256xf32>
    %540 = arith.addf %536, %539 : vector<128x256xf32>
    %cst_178 = arith.constant 0.000000e+00 : f32
    %541 = vector.broadcast %cst_178 : f32 to vector<128x256xf32>
    %542 = arith.maximumf %540, %541 : vector<128x256xf32>
    %c800_179 = arith.constant 800 : index
    %c0_180 = arith.constant 0 : index
    %543 = vector.load %arg2[%c800_179, %c0_180] : memref<1184x256xbf16, #tpu.memory_space<vmem>>, vector<256x128xbf16>
    %544 = arith.truncf %542 : vector<128x256xf32> to vector<128x256xbf16>
    %cst_181 = arith.constant dense<0.000000e+00> : vector<128x128xf32>
    %545 = tpu.matmul %544, %543, %cst_181 {dimension_numbers = #tpu.dot_dimension_numbers<[1], [0], [0], [1], [0, 0, 1, 1], [], []>} : vector<128x256xbf16>, vector<256x128xbf16>, vector<128x128xf32> -> vector<128x128xf32>
    %cst_182 = arith.constant dense<0.000000e+00> : vector<128xf32>
    %546 = vector.multi_reduction <add>, %545, %cst_182 [0] : vector<128x128xf32> to vector<128xf32>
    %547 = vector.shape_cast %546 : vector<128xf32> to vector<1x128xf32>
    %548 = arith.mulf %545, %545 : vector<128x128xf32>
    %cst_183 = arith.constant dense<0.000000e+00> : vector<128xf32>
    %549 = vector.multi_reduction <add>, %548, %cst_183 [0] : vector<128x128xf32> to vector<128xf32>
    %550 = vector.shape_cast %549 : vector<128xf32> to vector<1x128xf32>
    %cst_184 = arith.constant 7.812500e-03 : f32
    %551 = vector.broadcast %cst_184 : f32 to vector<1x128xf32>
    %552 = arith.mulf %547, %551 : vector<1x128xf32>
    %cst_185 = arith.constant 7.812500e-03 : f32
    %553 = vector.broadcast %cst_185 : f32 to vector<1x128xf32>
    %554 = arith.mulf %550, %553 : vector<1x128xf32>
    %555 = arith.mulf %552, %552 : vector<1x128xf32>
    %556 = arith.subf %554, %555 : vector<1x128xf32>
    %cst_186 = arith.constant 0.000000e+00 : f32
    %557 = vector.broadcast %cst_186 : f32 to vector<1x128xf32>
    %558 = arith.maximumf %556, %557 : vector<1x128xf32>
    %cst_187 = arith.constant 9.99999974E-6 : f32
    %559 = vector.broadcast %cst_187 : f32 to vector<1x128xf32>
    %560 = arith.addf %558, %559 : vector<1x128xf32>
    %561 = math.rsqrt %560 : vector<1x128xf32>
    %562 = arith.mulf %14, %561 : vector<1x128xf32>
    %563 = vector.broadcast %562 : vector<1x128xf32> to vector<128x128xf32>
    %564 = arith.mulf %545, %563 : vector<128x128xf32>
    %565 = arith.mulf %552, %562 : vector<1x128xf32>
    %566 = arith.subf %15, %565 : vector<1x128xf32>
    %567 = vector.broadcast %566 : vector<1x128xf32> to vector<128x128xf32>
    %568 = arith.addf %564, %567 : vector<128x128xf32>
    %cst_188 = arith.constant 0.000000e+00 : f32
    %569 = vector.broadcast %cst_188 : f32 to vector<128x128xf32>
    %570 = arith.maximumf %568, %569 : vector<128x128xf32>
    %c1056_189 = arith.constant 1056 : index
    %c0_190 = arith.constant 0 : index
    %571 = vector.load %arg2[%c1056_189, %c0_190] : memref<1184x256xbf16, #tpu.memory_space<vmem>>, vector<128x128xbf16>
    %572 = arith.truncf %570 : vector<128x128xf32> to vector<128x128xbf16>
    %cst_191 = arith.constant dense<0.000000e+00> : vector<128x128xf32>
    %573 = tpu.matmul %572, %571, %cst_191 {dimension_numbers = #tpu.dot_dimension_numbers<[1], [0], [0], [1], [0, 0, 1, 1], [], []>} : vector<128x128xbf16>, vector<128x128xbf16>, vector<128x128xf32> -> vector<128x128xf32>
    %cst_192 = arith.constant dense<0.000000e+00> : vector<128xf32>
    %574 = vector.multi_reduction <add>, %573, %cst_192 [0] : vector<128x128xf32> to vector<128xf32>
    %575 = vector.shape_cast %574 : vector<128xf32> to vector<1x128xf32>
    %576 = arith.mulf %573, %573 : vector<128x128xf32>
    %cst_193 = arith.constant dense<0.000000e+00> : vector<128xf32>
    %577 = vector.multi_reduction <add>, %576, %cst_193 [0] : vector<128x128xf32> to vector<128xf32>
    %578 = vector.shape_cast %577 : vector<128xf32> to vector<1x128xf32>
    %cst_194 = arith.constant 7.812500e-03 : f32
    %579 = vector.broadcast %cst_194 : f32 to vector<1x128xf32>
    %580 = arith.mulf %575, %579 : vector<1x128xf32>
    %cst_195 = arith.constant 7.812500e-03 : f32
    %581 = vector.broadcast %cst_195 : f32 to vector<1x128xf32>
    %582 = arith.mulf %578, %581 : vector<1x128xf32>
    %583 = arith.mulf %580, %580 : vector<1x128xf32>
    %584 = arith.subf %582, %583 : vector<1x128xf32>
    %cst_196 = arith.constant 0.000000e+00 : f32
    %585 = vector.broadcast %cst_196 : f32 to vector<1x128xf32>
    %586 = arith.maximumf %584, %585 : vector<1x128xf32>
    %cst_197 = arith.constant 9.99999974E-6 : f32
    %587 = vector.broadcast %cst_197 : f32 to vector<1x128xf32>
    %588 = arith.addf %586, %587 : vector<1x128xf32>
    %589 = math.rsqrt %588 : vector<1x128xf32>
    %590 = arith.mulf %16, %589 : vector<1x128xf32>
    %591 = vector.broadcast %590 : vector<1x128xf32> to vector<128x128xf32>
    %592 = arith.mulf %573, %591 : vector<128x128xf32>
    %593 = arith.mulf %580, %590 : vector<1x128xf32>
    %594 = arith.subf %17, %593 : vector<1x128xf32>
    %595 = vector.broadcast %594 : vector<1x128xf32> to vector<128x128xf32>
    %596 = arith.addf %592, %595 : vector<128x128xf32>
    %cst_198 = arith.constant 0.000000e+00 : f32
    %597 = vector.broadcast %cst_198 : f32 to vector<128x128xf32>
    %598 = arith.maximumf %596, %597 : vector<128x128xf32>
    %599 = arith.addf %482, %598 : vector<128x128xf32>
    %600 = vector.broadcast %18 : vector<1x128xf32> to vector<128x128xf32>
    %601 = arith.mulf %599, %600 : vector<128x128xf32>
    %cst_199 = arith.constant dense<0.000000e+00> : vector<128xf32>
    %602 = vector.multi_reduction <add>, %601, %cst_199 [1] : vector<128x128xf32> to vector<128xf32>
    %603 = vector.shape_cast %602 : vector<128xf32> to vector<128x1xf32>
    %604 = tpu.concatenate %252, %369, %486, %603 in 1 : vector<128x1xf32>, vector<128x1xf32>, vector<128x1xf32>, vector<128x1xf32> -> vector<128x4xf32>
    %605 = vector.broadcast %19 : vector<1x1xf32> to vector<128x4xf32>
    %606 = arith.addf %604, %605 : vector<128x4xf32>
    %607 = tpu.transpose %606, [1, 0] : vector<128x4xf32> -> vector<4x128xf32>
    %c0_200 = arith.constant 0 : index
    %c0_201 = arith.constant 0 : index
    %c0_202 = arith.constant 0 : index
    %608 = vector.load %arg4[%c0_200, %c0_201, %c0_202] : memref<1x4x128xf32, #tpu.memory_space<vmem>>, vector<1x4x128xf32>
    %609 = vector.shape_cast %608 : vector<1x4x128xf32> to vector<4x128xf32>
    %610 = vector.shape_cast %607 : vector<4x128xf32> to vector<1x4x128xf32>
    tpu.vector_store %arg4[%c0_200, %c0_201, %c0_202], %610 {strides = array<i32>} : memref<1x4x128xf32, #tpu.memory_space<vmem>>, vector<1x4x128xf32>,
    return
  }
  func.func @transform_0(%arg0: i32) -> (i32, i32, i32) {
    %c0_i32 = arith.constant 0 : i32
    %c0_i32_0 = arith.constant 0 : i32
    %c0_i32_1 = arith.constant 0 : i32
    return %arg0, %c0_i32, %c0_i32_0 : i32, i32, i32
  }
  func.func @transform_1(%arg0: i32) -> (i32, i32) {
    %c0_i32 = arith.constant 0 : i32
    %c0_i32_0 = arith.constant 0 : i32
    %c0_i32_1 = arith.constant 0 : i32
    return %c0_i32, %c0_i32_0 : i32, i32
  }
  func.func @transform_2(%arg0: i32) -> (i32, i32) {
    %c0_i32 = arith.constant 0 : i32
    %c0_i32_0 = arith.constant 0 : i32
    %c0_i32_1 = arith.constant 0 : i32
    return %c0_i32, %c0_i32_0 : i32, i32
  }
  func.func @transform_3(%arg0: i32) -> (i32, i32, i32) {
    %c0_i32 = arith.constant 0 : i32
    %c0_i32_0 = arith.constant 0 : i32
    %c0_i32_1 = arith.constant 0 : i32
    return %arg0, %c0_i32, %c0_i32_0 : i32, i32, i32
  }
}

</mosaic_0001>

<bundles_post_ra>
// kernel: tpu_custom_call.1
= control target key start
LH: loop header
LB: loop body
LE: loop exit
PB: predicated region body
PF: predicated region fallthrough
CT: control target
= control target key end

     0   :  { %8 = vsyncpa [#allocation3], 0  ;;  %s11727_s0 = inlined_call_operand.vmem [shape: f32[1,128,32], index: 0, kind: input, shape index: {}]   ;;  %s11728_s1 = inlined_call_operand.hbm [shape: bf16[1184,256], index: 1, kind: input, shape index: {}]   ;;  %s11729_s2 = inlined_call_operand.vmem [shape: f32[24,256], index: 2, kind: input, shape index: {}]   ;;  %s11730_s3 = inlined_call_operand.hbm [shape: f32[1,4,128], index: 3, kind: output, shape index: {}]  }
   0x1   :  { %9 = vsyncpa [#allocation4], 0  ;;  %s7770_s12 = smov [#allocation2]  }
   0x2   :  { %s17_s13 = sshll.u32 %s7770_s12, 4  ;;  %s18_s13 = int_to_ptr.vmem [resolvable:$true] %s17_s13 }
   0x3   :  { %s7734_s14 = scalar_lea.vmem %s18_s13, 18944  ;;  %p7739_p1 = scmp.lt.s32.totalorder %s18_s13, %s18_s13 }
   0x4   :  { %p7735_p0 = scmp.ne.s32.totalorder %s18_s13, %s7734_s14  ;;  %p7740_p2 = scmp.lt.s32.totalorder %s7734_s14, %s7734_s14 }
   0x6   :  { %p7741_p3 = por %p7740_p2, %p7739_p1 }
   0x8   :  { %p7742_p4 = pnand %p7741_p3, %p7735_p0 }
   0xa   :  { %7745 = shalt.err (!%p7742_p4)
}
   0xb   :  { %s7771_s15 = smov 128   ;;  %s7772_s16 = smov 8  }
   0xc   :  { %23 = dma.hbm_to_vmem [thread:$0]  %s11728_s1, 18944, %s18_s13, [#allocation3], %s7771_s15, %s7771_s15, %s7772_s16  }
   0xd   :  { %7766 = dma.done.wait [#allocation3], 18944  }
   0xe   :  { %7767 = vsyncadd [#allocation3], 4294948352  ;;  %v7414_v0 = vld [vmem:[#allocation2 + $0x10] ss:$8 sps:$4 sm:$0xff]   ;;  %v7415_v1 = vld [vmem:[#allocation2] ss:$8 sps:$4 sm:$0xff]  }
   0xf   :  { %7083 = vmatprep.subr.bf16.mxu0 %v7414_v0  ;;  %v35_v2 = vld [vmem:[%s11727_s0] sm:$0xff]  ;;  %v36_v3 = vld [vmem:[%s11727_s0 + $0x8] sm:$0xff]  ;;  %vm75_vm0 = vcmask 261120   ;;  %v37_v5 = vld [vmem:[%s11727_s0 + $0x10] sm:$0xff]  ;;  %vm6391_vm1 = vcmask 7168   ;;  %vm6408_vm2 = vcmask 15360  }
  0x10   :  { %7084 = vmatpush3.bf16.msra.mxu0 %v7414_v0  ;;  %v55_v4 = vpack.c.bf16 %v36_v3, %v35_v2  ;;  %v38_v6 = vld [vmem:[%s11727_s0 + $0x18] sm:$0xff]  ;;  %v39_v7 = vld [vmem:[%s11727_s0 + $0x20] sm:$0xff]  ;;  %v40_v8 = vld [vmem:[%s11727_s0 + $0x28] sm:$0xff]  ;;  %vm6425_vm3 = vcmask 23552   ;;  %s7774_s26 = smov [#allocation5]  }
  0x11   :  { %7085 = vmatprep.subr.bf16.mxu0 %v7415_v1  ;;  %v56_v9 = vpack.c.bf16 %v38_v6, %v37_v5  ;;  %v57_v10 = vpack.c.bf16 %v40_v8, %v39_v7  ;;  %v41_v11 = vld [vmem:[%s11727_s0 + $0x30] sm:$0xff]  ;;  %v42_v12 = vld [vmem:[%s11727_s0 + $0x38] sm:$0xff]  ;;  %v43_v13 = vld [vmem:[%s11727_s0 + $0x40] sm:$0xff]  ;;  %s6502_s27 = sshll.u32 %s7774_s26, 4  ;;  %s6503_s27 = int_to_ptr.vmem [resolvable:$true] %s6502_s27 }
  0x12   :  { %7087 = vmatprep.mubr.msk.bf16.mxu0 %vm75_vm0, %v55_v4  ;;  %v44_v14 = vld [vmem:[%s11727_s0 + $0x48] sm:$0xff]  ;;  %v58_v15 = vpack.c.bf16 %v42_v12, %v41_v11  ;;  %v45_v17 = vld [vmem:[%s11727_s0 + $0x50] sm:$0xff]  ;;  %v46_v18 = vld [vmem:[%s11727_s0 + $0x58] sm:$0xff]  ;;  %s7746_s28 = scalar_lea.vmem %s6503_s27, 64  ;;  %p7751_p6 = scmp.lt.s32.totalorder %s6503_s27, %s6503_s27 }
  0x13   :  { %v59_v16 = vpack.c.bf16 %v44_v14, %v43_v13  ;;  %v47_v19 = vld [vmem:[%s11727_s0 + $0x60] sm:$0xff]  ;;  %v48_v20 = vld [vmem:[%s11727_s0 + $0x68] sm:$0xff]  ;;  %v60_v21 = vpack.c.bf16 %v46_v18, %v45_v17  ;;  %v49_v23 = vld [vmem:[%s11727_s0 + $0x70] sm:$0xff]  ;;  %p7747_p5 = scmp.ne.s32.totalorder %s6503_s27, %s7746_s28  ;;  %p7752_p7 = scmp.lt.s32.totalorder %s7746_s28, %s7746_s28 }
  0x14   :  { %7086 = vmatpush3.bf16.msra.mxu0 %v7415_v1  ;;  %v61_v22 = vpack.c.bf16 %v48_v20, %v47_v19  ;;  %v50_v24 = vld [vmem:[%s11727_s0 + $0x78] sm:$0xff]  ;;  %v7417_v27 = vld [vmem:[#allocation2 + $0x80] ss:$8 sps:$4 sm:$0xff]  }
  0x15   :  { %v62_v25 = vpack.c.bf16 %v50_v24, %v49_v23  ;;  %v7416_v26 = vld [vmem:[#allocation2 + $0x90] ss:$8 sps:$4 sm:$0xff]   ;;  %v7419_v29 = vld [vmem:[#allocation2 + $0x60] ss:$8 sps:$4 sm:$0xff]   ;;  %p7753_p8 = por %p7752_p7, %p7751_p6 }
  0x16   :  { %7103 = vmatprep.subr.bf16.mxu1 %v7416_v26  ;;  %v7418_v28 = vld [vmem:[#allocation2 + $0x70] ss:$8 sps:$4 sm:$0xff]   ;;  %v7421_v31 = vld [vmem:[#allocation2 + $0x40] ss:$8 sps:$4 sm:$0xff]  }
  0x17   :  { %7088 = vmatmul.mubr.msk.bf16.vlgmr.msra.gmra.mxu0 %vm75_vm0, %v56_v9  ;;  %7104 = vmatpush3.bf16.msra.mxu1 %v7416_v26  ;;  %v7420_v30 = vld [vmem:[#allocation2 + $0x50] ss:$8 sps:$4 sm:$0xff]   ;;  %v7423_v33 = vld [vmem:[#allocation2 + $0x20] ss:$8 sps:$4 sm:$0xff]   ;;  %p7754_p9 = pnand %p7753_p8, %p7747_p5 }
  0x18   :  { %7091 = vmatprep.mubr.msk.bf16.mxu0 %vm75_vm0, %v57_v10  ;;  %7105 = vmatprep.subr.bf16.mxu1 %v7417_v27  ;;  %v7422_v32 = vld [vmem:[#allocation2 + $0x30] ss:$8 sps:$4 sm:$0xff]  }
  0x1b   :  { %7106 = vmatpush3.bf16.msra.mxu1 %v7417_v27 }
  0x1c   :  { %7107 = vmatprep.subr.bf16.mxu1 %v7418_v28 }
  0x1f   :  { %7092 = vmatmul.mubr.msk.bf16.gmra.mxu0 %vm75_vm0, %v58_v15  ;;  %7108 = vmatpush3.bf16.msra.mxu1 %v7418_v28 }
  0x20   :  { %7095 = vmatprep.mubr.msk.bf16.mxu0 %vm75_vm0, %v59_v16  ;;  %7109 = vmatprep.subr.bf16.mxu1 %v7419_v29 }
  0x23   :  { %7110 = vmatpush3.bf16.msra.mxu1 %v7419_v29 }
  0x24   :  { %7111 = vmatprep.subr.bf16.mxu1 %v7420_v30 }
  0x27   :  { %7096 = vmatmul.mubr.msk.bf16.gmra.mxu0 %vm75_vm0, %v60_v21  ;;  %7112 = vmatpush3.bf16.msra.mxu1 %v7420_v30 }
  0x28   :  { %7099 = vmatprep.mubr.msk.bf16.mxu0 %vm75_vm0, %v61_v22  ;;  %7113 = vmatprep.subr.bf16.mxu1 %v7421_v31 }
  0x2b   :  { %7114 = vmatpush3.bf16.msra.mxu1 %v7421_v31 }
  0x2c   :  { %7115 = vmatprep.subr.bf16.mxu1 %v7422_v32 }
  0x2f   :  { %7100 = vmatmul.mubr.msk.bf16.gmra.mxu0 %vm75_vm0, %v62_v25  ;;  %7116 = vmatpush3.bf16.msra.mxu1 %v7422_v32 }
  0x30   :  { %7117 = vmatprep.subr.bf16.mxu1 %v7423_v33 }
  0x33   :  { %7118 = vmatpush3.bf16.msra.mxu1 %v7423_v33 }
  0xd7   :  { %v7854_v34 = vpop.f32.mrf.mxu0 }
  0xd8   :  { %v220_v42 = vmul.f32 %v7854_v34, %v7854_v34 }
  0xd9   :  { %v7856_v35 = vpop.f32.mrf.mxu0 }
  0xda   :  { %v218_v38 = vmul.f32 %v7856_v35, %v7856_v35 }
  0xdb   :  { %v7858_v36 = vpop.f32.mrf.mxu0 }
  0xdc   :  { %v221_v46 = vmul.f32 %v7858_v36, %v7858_v36 }
  0xdd   :  { %v7860_v37 = vpop.f32.mrf.mxu0 }
  0xde   :  { %v197_v39 = vadd.f32 %v7860_v37, %v7856_v35  ;;  %v219_v40 = vmul.f32 %v7860_v37, %v7860_v37 }
  0xdf   :  { %v7868_v41 = vpop.f32.mrf.mxu0 }
  0xe0   :  { %v234_v43 = vadd.f32 %v219_v40, %v218_v38  ;;  %v198_v44 = vadd.f32 %v7854_v34, %v197_v39  ;;  %v224_v58 = vmul.f32 %v7868_v41, %v7868_v41 }
  0xe1   :  { %v7873_v45 = vpop.f32.mrf.mxu0 }
  0xe2   :  { %v199_v47 = vadd.f32 %v7858_v36, %v198_v44  ;;  %v235_v48 = vadd.f32 %v234_v43, %v220_v42  ;;  %v222_v51 = vmul.f32 %v7873_v45, %v7873_v45 }
  0xe3   :  { %v7878_v49 = vpop.f32.mrf.mxu0 }
  0xe4   :  { %v200_v50 = vadd.f32 %v199_v47, %v7873_v45  ;;  %v236_v52 = vadd.f32 %v235_v48, %v221_v46  ;;  %v225_v62 = vmul.f32 %v7878_v49, %v7878_v49 }
  0xe5   :  { %v7883_v53 = vpop.f32.mrf.mxu0 }
  0xe6   :  { %v237_v54 = vadd.f32 %v236_v52, %v222_v51  ;;  %v201_v55 = vadd.f32 %v200_v50, %v7883_v53  ;;  %v223_v56 = vmul.f32 %v7883_v53, %v7883_v53 }
  0xe7   :  { %v7888_v57 = vpop.f32.mrf.mxu0 }
  0xe8   :  { %v238_v59 = vadd.f32 %v237_v54, %v223_v56  ;;  %v202_v60 = vadd.f32 %v7868_v41, %v201_v55  ;;  %v228_v10 = vmul.f32 %v7888_v57, %v7888_v57 }
  0xe9   :  { %v7893_v61 = vpop.f32.mrf.mxu0 }
  0xea   :  { %v203_v63 = vadd.f32 %v7878_v49, %v202_v60  ;;  %v239_v0 = vadd.f32 %v238_v59, %v224_v58  ;;  %v226_v3 = vmul.f32 %v7893_v61, %v7893_v61  ;;  %v263_v59 = vlaneseq }
  0xeb   :  { %v7898_v1 = vpop.f32.mrf.mxu0 }
  0xec   :  { %v204_v2 = vadd.f32 %v203_v63, %v7893_v61  ;;  %v240_v4 = vadd.f32 %v239_v0, %v225_v62  ;;  %v229_v14 = vmul.f32 %v7898_v1, %v7898_v1  ;;  %v7934_v60 = vshrl.u32 %v263_v59, 7  ;;  %v7939_v62 = vld [vmem:[%s11729_s2] sm:$0xff] }
  0xed   :  { %v7903_v5 = vpop.f32.mrf.mxu0 }
  0xee   :  { %v241_v6 = vadd.f32 %v240_v4, %v226_v3  ;;  %v205_v7 = vadd.f32 %v204_v2, %v7903_v5  ;;  %v227_v8 = vmul.f32 %v7903_v5, %v7903_v5  ;;  %v7942_v0 = vsub.s32 0, %v7934_v60 }
  0xef   :  { %v7908_v9 = vpop.f32.mrf.mxu0 }
  0xf0   :  { %v242_v11 = vadd.f32 %v241_v6, %v227_v8  ;;  %v206_v12 = vadd.f32 %v7888_v57, %v205_v7  ;;  %v232_v25 = vmul.f32 %v7908_v9, %v7908_v9  ;;  %11839 = vst [vmem:[#allocation8_spill] sm:$0xff] %v7942_v0  ;;  %v7947_v7 = vsub.s32 1, %v7934_v60 }
  0xf1   :  { %v7913_v13 = vpop.f32.mrf.mxu0 }
  0xf2   :  { %v207_v15 = vadd.f32 %v7898_v1, %v206_v12  ;;  %v243_v16 = vadd.f32 %v242_v11, %v228_v10  ;;  %v230_v19 = vmul.f32 %v7913_v13, %v7913_v13  ;;  %11840 = vst [vmem:[#allocation9_spill] sm:$0xff] %v7947_v7 }
  0xf3   :  { %v7918_v17 = vpop.f32.mrf.mxu0 }
  0xf4   :  { %v208_v18 = vadd.f32 %v207_v15, %v7913_v13  ;;  %v244_v20 = vadd.f32 %v243_v16, %v229_v14  ;;  %v233_v28 = vmul.f32 %v7918_v17, %v7918_v17 }
  0xf5   :  { %v7923_v21 = vpop.f32.mrf.mxu0 }
  0xf6   :  { %v245_v22 = vadd.f32 %v244_v20, %v230_v19  ;;  %v209_v23 = vadd.f32 %v208_v18, %v7923_v21  ;;  %v231_v24 = vmul.f32 %v7923_v21, %v7923_v21 }
  0xf8   :  { %v210_v26 = vadd.f32 %v7908_v9, %v209_v23  ;;  %v246_v27 = vadd.f32 %v245_v22, %v231_v24 }
  0xfa   :  { %v211_v29 = vadd.f32 %v7918_v17, %v210_v26  ;;  %v247_v30 = vadd.f32 %v246_v27, %v232_v25 }
  0xfc   :  { %v212_v31 = vrot.slane %v211_v29, 4  ;;  %v248_v32 = vadd.f32 %v247_v30, %v233_v28 }
  0xfe   :  { %v213_v33 = vadd.f32 %v212_v31, %v211_v29  ;;  %v249_v38 = vrot.slane %v248_v32, 4 }
 0x100   :  { %v214_v39 = vrot.slane %v213_v33, 2  ;;  %v250_v40 = vadd.f32 %v249_v38, %v248_v32 }
 0x102   :  { %v215_v42 = vadd.f32 %v214_v39, %v213_v33  ;;  %v251_v43 = vrot.slane %v250_v40, 2 }
 0x104   :  { %v216_v44 = vrot.slane %v215_v42, 1  ;;  %v252_v46 = vadd.f32 %v251_v43, %v250_v40 }
 0x106   :  { %v217_v47 = vadd.f32 %v216_v44, %v215_v42  ;;  %v253_v48 = vrot.slane %v252_v46, 1 }
 0x108   :  { %v254_v50 = vadd.f32 %v253_v48, %v252_v46  ;;  %v255_v51 = vmul.f32 0.0078125, %v217_v47 }
 0x10a   :  { %v256_v52 = vmul.f32 0.0078125, %v254_v50  ;;  %v257_v54 = vmul.f32 %v255_v51, %v255_v51 }
 0x10c   :  { %v258_v55 = vsub.f32 %v256_v52, %v257_v54 }
 0x10e   :  { %v259_v56 = vmax.f32 %v258_v55, 0.0 }
 0x110   :  { %v260_v58 = vadd.f32 1e-05, %v259_v56 }
 0x112   :  { %7520 = vrsqrt.f32 %v260_v58 }
 0x11f   :  { %v7521_v63 = vpop.eup %7520 }
 0x120   :  { %v262_v2 = vmul.f32 %v7521_v63, %v7939_v62 }
 0x122   :  { %v283_v3 = vmul.f32 %v262_v2, %v255_v51  ;;  %v266_v4 = vrot.slane %v262_v2, %v7942_v0 }
 0x124   :  { %v285_v6 = vrot.slane %v283_v3, 7  ;;  %v267_v10 = vmul.f32 %v266_v4, %v7856_v35  ;;  %v268_v12 = vmul.f32 %v266_v4, %v7860_v37  ;;  %v269_v14 = vmul.f32 %v7854_v34, %v266_v4 }
 0x125   :  { %v270_v15 = vmul.f32 %v7858_v36, %v266_v4  ;;  %v271_v16 = vmul.f32 %v266_v4, %v7873_v45  ;;  %v272_v18 = vmul.f32 %v266_v4, %v7883_v53  ;;  %v273_v19 = vmul.f32 %v7868_v41, %v266_v4 }
 0x126   :  { %v287_v8 = vsub.f32 %v7939_v62, %v285_v6  ;;  %v274_v20 = vmul.f32 %v7878_v49, %v266_v4  ;;  %v275_v37 = vmul.f32 %v266_v4, %v7893_v61  ;;  %v276_v34 = vmul.f32 %v266_v4, %v7903_v5 }
 0x127   :  { %v277_v41 = vmul.f32 %v7888_v57, %v266_v4  ;;  %v278_v49 = vmul.f32 %v7898_v1, %v266_v4  ;;  %v281_v33 = vmul.f32 %v7908_v9, %v266_v4  ;;  %v282_v5 = vmul.f32 %v7918_v17, %v266_v4 }
 0x128   :  { %v291_v11 = vrot.slane %v287_v8, %v7947_v7  ;;  %v280_v17 = vmul.f32 %v266_v4, %v7923_v21  ;;  %v279_v56 = vmul.f32 %v266_v4, %v7913_v13  ;;  %v7427_v21 = vld [vmem:[#allocation2 + $0x100] ss:$8 sps:$4 sm:$0xff]   ;;  %v7432_v13 = vld [vmem:[#allocation2 + $0xf4] ss:$8 sps:$4 sm:$0xff]   ;;  %v7430_v4 = vld [vmem:[#allocation2 + $0xf0] ss:$8 sps:$4 sm:$0xff]  }
 0x12a   :  { %v292_v22 = vadd.f32 %v291_v11, %v267_v10  ;;  %v293_v23 = vadd.f32 %v291_v11, %v268_v12  ;;  %v294_v24 = vadd.f32 %v291_v11, %v269_v14  ;;  %v295_v35 = vadd.f32 %v291_v11, %v270_v15  ;;  %v7426_v10 = vld [vmem:[#allocation2 + $0x114] ss:$8 sps:$4 sm:$0xff]   ;;  %v7424_v12 = vld [vmem:[#allocation2 + $0x110] ss:$8 sps:$4 sm:$0xff]   ;;  %v7429_v14 = vld [vmem:[#allocation2 + $0x104] ss:$8 sps:$4 sm:$0xff]  }
 0x12b   :  { %v296_v25 = vadd.f32 %v291_v11, %v271_v16  ;;  %v297_v26 = vadd.f32 %v291_v11, %v272_v18  ;;  %v298_v32 = vadd.f32 %v291_v11, %v273_v19  ;;  %v299_v38 = vadd.f32 %v291_v11, %v274_v20  ;;  %728 = vmatprep.subr.bf16.mxu0 %v7426_v10  ;;  %v7433_v15 = vld [vmem:[#allocation2 + $0xe0] ss:$8 sps:$4 sm:$0xff]   ;;  %v7438_v16 = vld [vmem:[#allocation2 + $0xd4] ss:$8 sps:$4 sm:$0xff]   ;;  %v7436_v18 = vld [vmem:[#allocation2 + $0xd0] ss:$8 sps:$4 sm:$0xff]  }
 0x12c   :  { %v308_v27 = vmax.f32 %v292_v22, 0.0  ;;  %v309_v36 = vmax.f32 %v293_v23, 0.0  ;;  %v310_v28 = vmax.f32 %v294_v24, 0.0  ;;  %v311_v45 = vmax.f32 %v295_v35, 0.0  ;;  %729 = vmatpush1.bf16.msra.mxu0 %v7424_v12  ;;  %v7441_v19 = vld [vmem:[#allocation2 + $0xc4] ss:$8 sps:$4 sm:$0xff]  }
 0x12d   :  { %v312_v29 = vmax.f32 %v296_v25, 0.0  ;;  %v313_v53 = vmax.f32 %v297_v26, 0.0  ;;  %v302_v39 = vadd.f32 %v291_v11, %v277_v41  ;;  %v303_v61 = vadd.f32 %v291_v11, %v278_v49  ;;  %730 = vmatprep.subr.bf16.mxu0 %v7429_v14  ;;  %v7439_v20 = vld [vmem:[#allocation2 + $0xc0] ss:$8 sps:$4 sm:$0xff]   ;;  %v7444_v22 = vld [vmem:[#allocation2 + $0xb4] ss:$8 sps:$4 sm:$0xff]  }
 0x12e   :  { %v340_v30 = vpack.c.bf16 %v309_v36, %v308_v27  ;;  %v341_v31 = vpack.c.bf16 %v311_v45, %v310_v28  ;;  %v300_v42 = vadd.f32 %v291_v11, %v275_v37  ;;  %v301_v43 = vadd.f32 %v291_v11, %v276_v34  ;;  %v7442_v23 = vld [vmem:[#allocation2 + $0xb0] ss:$8 sps:$4 sm:$0xff]   ;;  %v7447_v24 = vld [vmem:[#allocation2 + $0xa4] ss:$8 sps:$4 sm:$0xff]   ;;  %v7445_v25 = vld [vmem:[#allocation2 + $0xa0] ss:$8 sps:$4 sm:$0xff]  }
 0x12f   :  { %v342_v40 = vpack.c.bf16 %v313_v53, %v312_v29  ;;  %v318_v44 = vmax.f32 %v302_v39, 0.0  ;;  %v319_v46 = vmax.f32 %v303_v61, 0.0  ;;  %v306_v57 = vadd.f32 %v291_v11, %v281_v33 }
 0x130   :  { %7119 = vmatprep.mubr.bf16.mxu1 %v340_v30  ;;  %v307_v47 = vadd.f32 %v291_v11, %v282_v5  ;;  %v314_v1 = vmax.f32 %v298_v32, 0.0  ;;  %v315_v48 = vmax.f32 %v299_v38, 0.0  ;;  %v316_v52 = vmax.f32 %v300_v42, 0.0  ;;  %731 = vmatpush1.bf16.msra.mxu0 %v7427_v21 }
 0x131   :  { %7120 = vmatmul.mubr.bf16.vlgmr.msra.gmra.mxu1 %v341_v31  ;;  %v345_v50 = vpack.c.bf16 %v319_v46, %v318_v44  ;;  %v322_v51 = vmax.f32 %v306_v57, 0.0  ;;  %v317_v54 = vmax.f32 %v301_v43, 0.0  ;;  %v304_v63 = vadd.f32 %v291_v11, %v279_v56  ;;  %732 = vmatprep.subr.bf16.mxu0 %v7432_v13 }
 0x132   :  { %7123 = vmatprep.mubr.bf16.mxu1 %v342_v40  ;;  %v323_v9 = vmax.f32 %v307_v47, 0.0  ;;  %v343_v58 = vpack.c.bf16 %v315_v48, %v314_v1  ;;  %v305_v2 = vadd.f32 %v291_v11, %v280_v17  ;;  %v7435_v11 = vld [vmem:[#allocation2 + $0xe4] ss:$8 sps:$4 sm:$0xff]   ;;  %v11731_v35 = vmov 0  }
 0x133   :  { %v344_v59 = vpack.c.bf16 %v317_v54, %v316_v52  ;;  %v320_v3 = vmax.f32 %v304_v63, 0.0  ;;  %760 = vmatprep.mubr.bf16.mxu0 %v11731_v35  ;;  %v7969_v26 = vsub.s32 2, %v7934_v60 }
 0x134   :  { %v347_v55 = vpack.c.bf16 %v323_v9, %v322_v51  ;;  %v321_v6 = vmax.f32 %v305_v2, 0.0  ;;  %733 = vmatpush1.bf16.msra.mxu0 %v7430_v4 }
 0x135   :  { %734 = vmatprep.subr.bf16.mxu0 %v7435_v11  ;;  %11841 = vst [vmem:[#allocation10_spill] sm:$0xff] %v7969_v26  ;;  %v7973_v34 = vrot.slane %v7939_v62, %v7969_v26 }
 0x136   :  { %v346_v8 = vpack.c.bf16 %v321_v6, %v320_v3 }
 0x138   :  { %735 = vmatpush1.bf16.msra.mxu0 %v7433_v15 }
 0x139   :  { %7124 = vmatmul.mubr.bf16.gmra.mxu1 %v343_v58  ;;  %736 = vmatprep.subr.bf16.mxu0 %v7438_v16 }
 0x13a   :  { %7127 = vmatprep.mubr.bf16.mxu1 %v344_v59 }
 0x13c   :  { %737 = vmatpush1.bf16.msra.mxu0 %v7436_v18 }
 0x13d   :  { %738 = vmatprep.subr.bf16.mxu0 %v7441_v19 }
 0x140   :  { %739 = vmatpush1.bf16.msra.mxu0 %v7439_v20 }
 0x141   :  { %7128 = vmatmul.mubr.bf16.gmra.mxu1 %v345_v50  ;;  %740 = vmatprep.subr.bf16.mxu0 %v7444_v22 }
 0x142   :  { %7131 = vmatprep.mubr.bf16.mxu1 %v346_v8 }
 0x144   :  { %741 = vmatpush1.bf16.msra.mxu0 %v7442_v23 }
 0x145   :  { %742 = vmatprep.subr.bf16.mxu0 %v7447_v24 }
 0x148   :  { %743 = vmatpush1.bf16.msra.mxu0 %v7445_v25 }
 0x149   :  { %7132 = vmatmul.mubr.bf16.gmra.mxu1 %v347_v55 }
 0x1f1   :  { %v7121_v37 = vpop.f32.mrf.mxu1 }
 0x1f2   :  { %v443_v45 = vadd.f32 %v7121_v37, %v7973_v34 }
 0x1f3   :  { %v434_v27 = vpop.f32.mrf.mxu1 }
 0x1f4   :  { %v435_v36 = vadd.f32 %v434_v27, %v7973_v34  ;;  %v7981_v31 = vmax.f32 %v443_v45, 0.0 }
 0x1f5   :  { %v7122_v28 = vpop.f32.mrf.mxu1 }
 0x1f6   :  { %v446_v29 = vadd.f32 %v7122_v28, %v7973_v34  ;;  %v7978_v41 = vmax.f32 %v435_v36, 0.0  ;;  %v536_v44 = vmul.f32 %v7981_v31, %v7981_v31 }
 0x1f7   :  { %v437_v53 = vpop.f32.mrf.mxu1 }
 0x1f8   :  { %v438_v49 = vadd.f32 %v437_v53, %v7973_v34  ;;  %v7985_v33 = vmax.f32 %v446_v29, 0.0  ;;  %v534_v39 = vmul.f32 %v7978_v41, %v7978_v41 }
 0x1f9   :  { %v7125_v30 = vpop.f32.mrf.mxu1 }
 0x1fa   :  { %v7983_v32 = vmax.f32 %v438_v49, 0.0  ;;  %v459_v42 = vadd.f32 %v7125_v30, %v7973_v34  ;;  %v537_v1 = vmul.f32 %v7985_v33, %v7985_v33 }
 0x1fb   :  { %v450_v38 = vpop.f32.mrf.mxu1 }
 0x1fc   :  { %v513_v61 = vadd.f32 %v7983_v32, %v7978_v41  ;;  %v535_v5 = vmul.f32 %v7983_v32, %v7983_v32  ;;  %v451_v40 = vadd.f32 %v450_v38, %v7973_v34  ;;  %v8005_v54 = vmax.f32 %v459_v42, 0.0 }
 0x1fd   :  { %v7126_v43 = vpop.f32.mrf.mxu1 }
 0x1fe   :  { %v514_v46 = vadd.f32 %v513_v61, %v7981_v31  ;;  %v550_v57 = vadd.f32 %v535_v5, %v534_v39  ;;  %v7998_v47 = vmax.f32 %v451_v40, 0.0  ;;  %v462_v9 = vadd.f32 %v7126_v43, %v7973_v34 }
 0x1ff   :  { %v453_v48 = vpop.f32.mrf.mxu1  ;;  %v540_v21 = vmul.f32 %v8005_v54, %v8005_v54 }
 0x200   :  { %v551_v50 = vadd.f32 %v550_v57, %v536_v44  ;;  %v515_v51 = vadd.f32 %v514_v46, %v7985_v33  ;;  %v454_v52 = vadd.f32 %v453_v48, %v7973_v34  ;;  %v538_v56 = vmul.f32 %v7998_v47, %v7998_v47 }
 0x201   :  { %v7129_v55 = vpop.f32.mrf.mxu1  ;;  %v8012_v3 = vmax.f32 %v462_v9, 0.0 }
 0x202   :  { %v516_v17 = vadd.f32 %v515_v51, %v7998_v47  ;;  %v552_v58 = vadd.f32 %v551_v50, %v537_v1  ;;  %v8010_v59 = vmax.f32 %v454_v52, 0.0  ;;  %v475_v10 = vadd.f32 %v7129_v55, %v7973_v34 }
 0x203   :  { %v466_v63 = vpop.f32.mrf.mxu1  ;;  %v541_v18 = vmul.f32 %v8012_v3, %v8012_v3 }
 0x204   :  { %v553_v2 = vadd.f32 %v552_v58, %v538_v56  ;;  %v517_v6 = vadd.f32 %v516_v17, %v8010_v59  ;;  %v539_v8 = vmul.f32 %v8010_v59, %v8010_v59  ;;  %v467_v12 = vadd.f32 %v466_v63, %v7973_v34 }
 0x205   :  { %v7130_v14 = vpop.f32.mrf.mxu1  ;;  %v8029_v23 = vmax.f32 %v475_v10, 0.0 }
 0x206   :  { %v518_v13 = vadd.f32 %v517_v6, %v8005_v54  ;;  %v554_v4 = vadd.f32 %v553_v2, %v539_v8  ;;  %v8022_v11 = vmax.f32 %v467_v12, 0.0  ;;  %v478_v15 = vadd.f32 %v7130_v14, %v7973_v34 }
 0x207   :  { %v469_v16 = vpop.f32.mrf.mxu1  ;;  %v544_v39 = vmul.f32 %v8029_v23, %v8029_v23 }
 0x208   :  { %v555_v19 = vadd.f32 %v554_v4, %v540_v21  ;;  %v519_v20 = vadd.f32 %v518_v13, %v8012_v3  ;;  %v470_v22 = vadd.f32 %v469_v16, %v7973_v34  ;;  %v542_v37 = vmul.f32 %v8022_v11, %v8022_v11 }
 0x209   :  { %v7133_v24 = vpop.f32.mrf.mxu1  ;;  %v8036_v28 = vmax.f32 %v478_v15, 0.0 }
 0x20a   :  { %v520_v25 = vadd.f32 %v519_v20, %v8022_v11  ;;  %v556_v27 = vadd.f32 %v555_v19, %v541_v18  ;;  %v8034_v36 = vmax.f32 %v470_v22, 0.0  ;;  %v491_v42 = vadd.f32 %v7133_v24, %v7973_v34 }
 0x20b   :  { %v482_v45 = vpop.f32.mrf.mxu1  ;;  %v545_v44 = vmul.f32 %v8036_v28, %v8036_v28 }
 0x20c   :  { %v557_v29 = vadd.f32 %v556_v27, %v542_v37  ;;  %v521_v53 = vadd.f32 %v520_v25, %v8034_v36  ;;  %v543_v49 = vmul.f32 %v8034_v36, %v8034_v36  ;;  %v483_v30 = vadd.f32 %v482_v45, %v7973_v34 }
 0x20d   :  { %v7134_v38 = vpop.f32.mrf.mxu1  ;;  %v511_v52 = vmax.f32 %v491_v42, 0.0 }
 0x20e   :  { %v522_v61 = vadd.f32 %v521_v53, %v8029_v23  ;;  %v558_v5 = vadd.f32 %v557_v29, %v543_v49  ;;  %v509_v40 = vmax.f32 %v483_v30, 0.0  ;;  %v494_v1 = vadd.f32 %v7134_v38, %v7973_v34 }
 0x20f   :  { %v485_v43 = vpop.f32.mrf.mxu1  ;;  %v548_v2 = vmul.f32 %v511_v52, %v511_v52 }
 0x210   :  { %v559_v46 = vadd.f32 %v558_v5, %v544_v39  ;;  %v523_v57 = vadd.f32 %v522_v61, %v8036_v28  ;;  %v486_v48 = vadd.f32 %v485_v43, %v7973_v34  ;;  %v546_v51 = vmul.f32 %v509_v40, %v509_v40 }
 0x211   :  { %v512_v56 = vmax.f32 %v494_v1, 0.0  ;;  %v8053_v61 = vsub.s32 3, %v7934_v60 }
 0x212   :  { %v524_v50 = vadd.f32 %v523_v57, %v509_v40  ;;  %v560_v9 = vadd.f32 %v559_v46, %v545_v44  ;;  %v510_v55 = vmax.f32 %v486_v48, 0.0  ;;  %v8057_v44 = vsub.s32 4, %v7934_v60 }
 0x213   :  { %v549_v10 = vmul.f32 %v512_v56, %v512_v56  ;;  %11842 = vst [vmem:[#allocation11_spill] sm:$0xff] %v8053_v61 }
 0x214   :  { %v561_v17 = vadd.f32 %v560_v9, %v546_v51  ;;  %v525_v58 = vadd.f32 %v524_v50, %v510_v55  ;;  %v547_v63 = vmul.f32 %v510_v55, %v510_v55  ;;  %11843 = vst [vmem:[#allocation12_spill] sm:$0xff] %v8057_v44 }
 0x216   :  { %v526_v6 = vadd.f32 %v525_v58, %v511_v52  ;;  %v562_v8 = vadd.f32 %v561_v17, %v547_v63 }
 0x218   :  { %v527_v12 = vadd.f32 %v526_v6, %v512_v56  ;;  %v563_v14 = vadd.f32 %v562_v8, %v548_v2 }
 0x21a   :  { %v528_v21 = vrot.slane %v527_v12, 4  ;;  %v564_v13 = vadd.f32 %v563_v14, %v549_v10 }
 0x21c   :  { %v529_v4 = vadd.f32 %v528_v21, %v527_v12  ;;  %v565_v15 = vrot.slane %v564_v13, 4 }
 0x21e   :  { %v530_v34 = vrot.slane %v529_v4, 2  ;;  %v566_v16 = vadd.f32 %v565_v15, %v564_v13 }
 0x220   :  { %v531_v18 = vadd.f32 %v530_v34, %v529_v4  ;;  %v567_v19 = vrot.slane %v566_v16, 2 }
 0x222   :  { %v532_v20 = vrot.slane %v531_v18, 1  ;;  %v568_v22 = vadd.f32 %v567_v19, %v566_v16 }
 0x224   :  { %v533_v24 = vadd.f32 %v532_v20, %v531_v18  ;;  %v569_v25 = vrot.slane %v568_v22, 1 }
 0x226   :  { %v570_v37 = vadd.f32 %v569_v25, %v568_v22  ;;  %v571_v27 = vmul.f32 0.0078125, %v533_v24 }
 0x228   :  { %v572_v45 = vmul.f32 0.0078125, %v570_v37  ;;  %v573_v29 = vmul.f32 %v571_v27, %v571_v27 }
 0x22a   :  { %v574_v53 = vsub.f32 %v572_v45, %v573_v29  ;;  %v7452_v45 = vld [vmem:[#allocation2 + $0x1f0] ss:$8 sps:$4 sm:$0xff]  }
 0x22b   :  { %v7453_v29 = vld [vmem:[#allocation2 + $0x170] ss:$8 sps:$4 sm:$0xff]  }
 0x22c   :  { %v575_v49 = vmax.f32 %v574_v53, 0.0  ;;  %v7454_v53 = vld [vmem:[#allocation2 + $0x1e0] ss:$8 sps:$4 sm:$0xff]  }
 0x22e   :  { %v576_v30 = vadd.f32 1e-05, %v575_v49  ;;  %v7455_v49 = vld [vmem:[#allocation2 + $0x160] ss:$8 sps:$4 sm:$0xff]  }
 0x230   :  { %7522 = vrsqrt.f32 %v576_v30  ;;  %v7456_v30 = vld [vmem:[#allocation2 + $0x1d0] ss:$8 sps:$4 sm:$0xff]  }
 0x23d   :  { %v7523_v38 = vpop.eup %7522 }
 0x23e   :  { %v578_v39 = vmul.f32 %v7523_v38, %v7939_v62  ;;  %v7457_v38 = vld [vmem:[#allocation2 + $0x150] ss:$8 sps:$4 sm:$0xff]  }
 0x240   :  { %v599_v5 = vmul.f32 %v578_v39, %v571_v27  ;;  %v582_v42 = vrot.slane %v578_v39, %v8053_v61  ;;  %v7458_v39 = vld [vmem:[#allocation2 + $0x1c0] ss:$8 sps:$4 sm:$0xff]  }
 0x242   :  { %v601_v43 = vrot.slane %v599_v5, 7  ;;  %v583_v1 = vmul.f32 %v582_v42, %v7978_v41  ;;  %v584_v48 = vmul.f32 %v582_v42, %v7983_v32  ;;  %v596_v50 = vmul.f32 %v582_v42, %v510_v55  ;;  %v7459_v5 = vld [vmem:[#allocation2 + $0x140] ss:$8 sps:$4 sm:$0xff]  }
 0x243   :  { %v591_v17 = vmul.f32 %v582_v42, %v8022_v11  ;;  %v592_v58 = vmul.f32 %v582_v42, %v8034_v36  ;;  %v585_v63 = vmul.f32 %v582_v42, %v7981_v31  ;;  %v593_v2 = vmul.f32 %v582_v42, %v8029_v23 }
 0x244   :  { %v603_v46 = vsub.f32 %v7939_v62, %v601_v43  ;;  %v594_v6 = vmul.f32 %v582_v42, %v8036_v28  ;;  %v595_v8 = vmul.f32 %v582_v42, %v509_v40  ;;  %v597_v41 = vmul.f32 %v582_v42, %v511_v52  ;;  %v7461_v43 = vld [vmem:[#allocation2 + $0x130] ss:$8 sps:$4 sm:$0xff]  }
 0x245   :  { %v586_v32 = vmul.f32 %v582_v42, %v7985_v33  ;;  %v598_v13 = vmul.f32 %v582_v42, %v512_v56  ;;  %v587_v33 = vmul.f32 %v582_v42, %v7998_v47  ;;  %v588_v52 = vmul.f32 %v582_v42, %v8010_v59  ;;  %v7448_v47 = vld [vmem:[#allocation2 + $0x210] ss:$8 sps:$4 sm:$0xff]   ;;  %v7450_v59 = vld [vmem:[#allocation2 + $0x200] ss:$8 sps:$4 sm:$0xff]  }
 0x246   :  { %v607_v57 = vrot.slane %v603_v46, %v8057_v44  ;;  %v589_v22 = vmul.f32 %v582_v42, %v8005_v54  ;;  %v590_v24 = vmul.f32 %v582_v42, %v8012_v3  ;;  %v7449_v54 = vld [vmem:[#allocation2 + $0x190] ss:$8 sps:$4 sm:$0xff]   ;;  %6635 = vmatprep.subr.bf16.mxu1 %v7448_v47  ;;  %v7451_v3 = vld [vmem:[#allocation2 + $0x180] ss:$8 sps:$4 sm:$0xff]  }
 0x247   :  { %6636 = vmatpush3.bf16.msra.mxu1 %v7449_v54  ;;  %v7460_v42 = vld [vmem:[#allocation2 + $0x1b0] ss:$8 sps:$4 sm:$0xff]   ;;  %v7462_v46 = vld [vmem:[#allocation2 + $0x1a0] ss:$8 sps:$4 sm:$0xff]  }
 0x248   :  { %v608_v51 = vadd.f32 %v607_v57, %v583_v1  ;;  %v609_v9 = vadd.f32 %v607_v57, %v584_v48  ;;  %v616_v12 = vadd.f32 %v607_v57, %v591_v17  ;;  %v617_v14 = vadd.f32 %v607_v57, %v592_v58  ;;  %6637 = vmatprep.subr.bf16.mxu1 %v7450_v59 }
 0x249   :  { %v618_v55 = vadd.f32 %v607_v57, %v593_v2  ;;  %v619_v21 = vadd.f32 %v607_v57, %v594_v6  ;;  %v620_v4 = vadd.f32 %v607_v57, %v595_v8  ;;  %v621_v36 = vadd.f32 %v607_v57, %v596_v50 }
 0x24a   :  { %v640_v10 = vpack.c.bf16 %v609_v9, %v608_v51  ;;  %v644_v11 = vpack.c.bf16 %v617_v14, %v616_v12  ;;  %v622_v15 = vadd.f32 %v607_v57, %v597_v41  ;;  %v623_v23 = vadd.f32 %v607_v57, %v598_v13 }
 0x24b   :  { %v645_v31 = vpack.c.bf16 %v619_v21, %v618_v55  ;;  %v610_v28 = vadd.f32 %v607_v57, %v585_v63  ;;  %v611_v40 = vadd.f32 %v607_v57, %v586_v32  ;;  %v646_v34 = vpack.c.bf16 %v621_v36, %v620_v4  ;;  %6638 = vmatpush3.bf16.msra.mxu1 %v7451_v3 }
 0x24c   :  { %761 = vmatmul.mubr.bf16.vlgmr.msra.gmra.mxu0 %v640_v10  ;;  %v647_v16 = vpack.c.bf16 %v623_v23, %v622_v15  ;;  %v612_v56 = vadd.f32 %v607_v57, %v587_v33  ;;  %v613_v19 = vadd.f32 %v607_v57, %v588_v52  ;;  %v614_v25 = vadd.f32 %v607_v57, %v589_v22 }
 0x24d   :  { %770 = vmatprep.mubr.bf16.mxu0 %v11731_v35  ;;  %v641_v18 = vpack.c.bf16 %v611_v40, %v610_v28  ;;  %v615_v37 = vadd.f32 %v607_v57, %v590_v24  ;;  %6639 = vmatprep.subr.bf16.mxu1 %v7452_v45  ;;  %v7463_v57 = vld [vmem:[#allocation2 + $0x120] ss:$8 sps:$4 sm:$0xff]  }
 0x24e   :  { %v642_v20 = vpack.c.bf16 %v613_v19, %v612_v56 }
 0x24f   :  { %v643_v27 = vpack.c.bf16 %v615_v37, %v614_v25  ;;  %6640 = vmatpush3.bf16.msra.mxu1 %v7453_v29 }
 0x250   :  { %6641 = vmatprep.subr.bf16.mxu1 %v7454_v53 }
 0x253   :  { %6642 = vmatpush3.bf16.msra.mxu1 %v7455_v49 }
 0x254   :  { %771 = vmatmul.mubr.bf16.gmra.mxu0 %v641_v18  ;;  %6643 = vmatprep.subr.bf16.mxu1 %v7456_v30 }
 0x255   :  { %780 = vmatprep.mubr.bf16.mxu0 %v11731_v35 }
 0x257   :  { %6644 = vmatpush3.bf16.msra.mxu1 %v7457_v38 }
 0x258   :  { %6645 = vmatprep.subr.bf16.mxu1 %v7458_v39 }
 0x25b   :  { %6646 = vmatpush3.bf16.msra.mxu1 %v7459_v5 }
 0x25c   :  { %781 = vmatmul.mubr.bf16.gmra.mxu0 %v642_v20  ;;  %6647 = vmatprep.subr.bf16.mxu1 %v7460_v42 }
 0x25d   :  { %790 = vmatprep.mubr.bf16.mxu0 %v11731_v35 }
 0x25f   :  { %6648 = vmatpush3.bf16.msra.mxu1 %v7461_v43 }
 0x260   :  { %6649 = vmatprep.subr.bf16.mxu1 %v7462_v46 }
 0x263   :  { %6650 = vmatpush3.bf16.msra.mxu1 %v7463_v57 }
 0x264   :  { %791 = vmatmul.mubr.bf16.gmra.mxu0 %v643_v27 }
 0x265   :  { %800 = vmatprep.mubr.bf16.mxu0 %v11731_v35 }
 0x26c   :  { %801 = vmatmul.mubr.bf16.gmra.mxu0 %v644_v11 }
 0x26d   :  { %810 = vmatprep.mubr.bf16.mxu0 %v11731_v35 }
 0x274   :  { %811 = vmatmul.mubr.bf16.gmra.mxu0 %v645_v31 }
 0x275   :  { %820 = vmatprep.mubr.bf16.mxu0 %v11731_v35 }
 0x27c   :  { %821 = vmatmul.mubr.bf16.gmra.mxu0 %v646_v34 }
 0x27d   :  { %830 = vmatprep.mubr.bf16.mxu0 %v11731_v35 }
 0x284   :  { %831 = vmatmul.mubr.bf16.gmra.mxu0 %v647_v16 }
 0x30c   :  { %v8080_v1 = vpop.f32.mrf.mxu0 }
 0x30d   :  { %v883_v11 = vmul.f32 %v8080_v1, %v8080_v1 }
 0x30e   :  { %v8082_v48 = vpop.f32.mrf.mxu0 }
 0x30f   :  { %v884_v15 = vmul.f32 %v8082_v48, %v8082_v48 }
 0x310   :  { %v8084_v50 = vpop.f32.mrf.mxu0 }
 0x311   :  { %v885_v55 = vmul.f32 %v8084_v50, %v8084_v50  ;;  %v841_v4 = vadd.f32 %v8084_v50, %v8080_v1 }
 0x312   :  { %v8086_v51 = vpop.f32.mrf.mxu0 }
 0x313   :  { %v886_v21 = vmul.f32 %v8086_v51, %v8086_v51  ;;  %v915_v28 = vadd.f32 %v885_v55, %v883_v11  ;;  %v862_v34 = vadd.f32 %v8086_v51, %v8082_v48 }
 0x314   :  { %v8088_v9 = vpop.f32.mrf.mxu0 }
 0x315   :  { %v887_v36 = vmul.f32 %v8088_v9, %v8088_v9  ;;  %v842_v40 = vadd.f32 %v841_v4, %v8088_v9  ;;  %v936_v18 = vadd.f32 %v886_v21, %v884_v15 }
 0x316   :  { %v8090_v17 = vpop.f32.mrf.mxu0 }
 0x317   :  { %v888_v31 = vmul.f32 %v8090_v17, %v8090_v17  ;;  %v916_v56 = vadd.f32 %v915_v28, %v887_v36  ;;  %v863_v19 = vadd.f32 %v862_v34, %v8090_v17 }
 0x318   :  { %v8092_v58 = vpop.f32.mrf.mxu0 }
 0x319   :  { %v889_v16 = vmul.f32 %v8092_v58, %v8092_v58  ;;  %v843_v20 = vadd.f32 %v842_v40, %v8092_v58  ;;  %v937_v24 = vadd.f32 %v936_v18, %v888_v31 }
 0x31a   :  { %v8094_v63 = vpop.f32.mrf.mxu0 }
 0x31b   :  { %v890_v33 = vmul.f32 %v8094_v63, %v8094_v63  ;;  %v917_v27 = vadd.f32 %v916_v56, %v889_v16  ;;  %v864_v54 = vadd.f32 %v863_v19, %v8094_v63 }
 0x31c   :  { %v8096_v2 = vpop.f32.mrf.mxu0 }
 0x31d   :  { %v891_v22 = vmul.f32 %v8096_v2, %v8096_v2  ;;  %v844_v47 = vadd.f32 %v843_v20, %v8096_v2  ;;  %v938_v3 = vadd.f32 %v937_v24, %v890_v33 }
 0x31e   :  { %v8098_v6 = vpop.f32.mrf.mxu0 }
 0x31f   :  { %v892_v25 = vmul.f32 %v8098_v6, %v8098_v6  ;;  %v918_v53 = vadd.f32 %v917_v27, %v891_v22  ;;  %v865_v49 = vadd.f32 %v864_v54, %v8098_v6 }
 0x320   :  { %v8100_v8 = vpop.f32.mrf.mxu0 }
 0x321   :  { %v893_v59 = vmul.f32 %v8100_v8, %v8100_v8  ;;  %v845_v30 = vadd.f32 %v844_v47, %v8100_v8  ;;  %v939_v39 = vadd.f32 %v938_v3, %v892_v25 }
 0x322   :  { %v8102_v10 = vpop.f32.mrf.mxu0 }
 0x323   :  { %v894_v45 = vmul.f32 %v8102_v10, %v8102_v10  ;;  %v919_v43 = vadd.f32 %v918_v53, %v893_v59  ;;  %v866_v57 = vadd.f32 %v865_v49, %v8102_v10 }
 0x324   :  { %v8104_v12 = vpop.f32.mrf.mxu0 }
 0x325   :  { %v895_v38 = vmul.f32 %v8104_v12, %v8104_v12  ;;  %v846_v46 = vadd.f32 %v845_v30, %v8104_v12  ;;  %v940_v21 = vadd.f32 %v939_v39, %v894_v45 }
 0x326   :  { %v8106_v14 = vpop.f32.mrf.mxu0 }
 0x327   :  { %v896_v5 = vmul.f32 %v8106_v14, %v8106_v14  ;;  %v920_v36 = vadd.f32 %v919_v43, %v895_v38  ;;  %v867_v15 = vadd.f32 %v866_v57, %v8106_v14 }
 0x328   :  { %v8108_v41 = vpop.f32.mrf.mxu0 }
 0x329   :  { %v897_v55 = vmul.f32 %v8108_v41, %v8108_v41  ;;  %v847_v31 = vadd.f32 %v846_v46, %v8108_v41  ;;  %v941_v40 = vadd.f32 %v940_v21, %v896_v5 }
 0x32a   :  { %v8110_v32 = vpop.f32.mrf.mxu0 }
 0x32b   :  { %v898_v11 = vmul.f32 %v8110_v32, %v8110_v32  ;;  %v921_v18 = vadd.f32 %v920_v36, %v897_v55  ;;  %v868_v56 = vadd.f32 %v867_v15, %v8110_v32 }
 0x32c   :  { %v8116_v13 = vpop.f32.mrf.mxu0 }
 0x32d   :  { %v899_v28 = vmul.f32 %v8116_v13, %v8116_v13  ;;  %v848_v33 = vadd.f32 %v847_v31, %v8116_v13  ;;  %v942_v20 = vadd.f32 %v941_v40, %v898_v11 }
 0x32e   :  { %v8128_v23 = vpop.f32.mrf.mxu0 }
 0x32f   :  { %v900_v34 = vmul.f32 %v8128_v23, %v8128_v23  ;;  %v922_v25 = vadd.f32 %v921_v18, %v899_v28  ;;  %v869_v27 = vadd.f32 %v868_v56, %v8128_v23 }
 0x330   :  { %v8137_v52 = vpop.f32.mrf.mxu0 }
 0x331   :  { %v901_v19 = vmul.f32 %v8137_v52, %v8137_v52  ;;  %v849_v47 = vadd.f32 %v848_v33, %v8137_v52  ;;  %v943_v59 = vadd.f32 %v942_v20, %v900_v34 }
 0x332   :  { %v8145_v37 = vpop.f32.mrf.mxu0 }
 0x333   :  { %v902_v22 = vmul.f32 %v8145_v37, %v8145_v37  ;;  %v923_v53 = vadd.f32 %v922_v25, %v901_v19  ;;  %v870_v30 = vadd.f32 %v869_v27, %v8145_v37 }
 0x334   :  { %v8153_v29 = vpop.f32.mrf.mxu0 }
 0x335   :  { %v903_v54 = vmul.f32 %v8153_v29, %v8153_v29  ;;  %v850_v49 = vadd.f32 %v849_v47, %v8153_v29  ;;  %v944_v39 = vadd.f32 %v943_v59, %v902_v22 }
 0x336   :  { %v8161_v42 = vpop.f32.mrf.mxu0 }
 0x337   :  { %v904_v3 = vmul.f32 %v8161_v42, %v8161_v42  ;;  %v924_v46 = vadd.f32 %v923_v53, %v903_v54  ;;  %v871_v57 = vadd.f32 %v870_v30, %v8161_v42 }
 0x338   :  { %v8169_v4 = vpop.f32.mrf.mxu0 }
 0x339   :  { %v905_v38 = vmul.f32 %v8169_v4, %v8169_v4  ;;  %v851_v55 = vadd.f32 %v850_v49, %v8169_v4  ;;  %v945_v11 = vadd.f32 %v944_v39, %v904_v3 }
 0x33a   :  { %v8177_v16 = vpop.f32.mrf.mxu0 }
 0x33b   :  { %v906_v5 = vmul.f32 %v8177_v16, %v8177_v16  ;;  %v925_v31 = vadd.f32 %v924_v46, %v905_v38  ;;  %v872_v40 = vadd.f32 %v871_v57, %v8177_v16 }
 0x33c   :  { %v8185_v24 = vpop.f32.mrf.mxu0 }
 0x33d   :  { %v907_v21 = vmul.f32 %v8185_v24, %v8185_v24  ;;  %v852_v28 = vadd.f32 %v851_v55, %v8185_v24  ;;  %v946_v18 = vadd.f32 %v945_v11, %v906_v5 }
 0x33e   :  { %v8193_v45 = vpop.f32.mrf.mxu0 }
 0x33f   :  { %v908_v36 = vmul.f32 %v8193_v45, %v8193_v45  ;;  %v926_v19 = vadd.f32 %v925_v31, %v907_v21  ;;  %v873_v20 = vadd.f32 %v872_v40, %v8193_v45 }
 0x340   :  { %v8201_v43 = vpop.f32.mrf.mxu0 }
 0x341   :  { %v909_v34 = vmul.f32 %v8201_v43, %v8201_v43  ;;  %v853_v22 = vadd.f32 %v852_v28, %v8201_v43  ;;  %v947_v27 = vadd.f32 %v946_v18, %v908_v36 }
 0x342   :  { %v8209_v15 = vpop.f32.mrf.mxu0 }
 0x343   :  { %v910_v33 = vmul.f32 %v8209_v15, %v8209_v15  ;;  %v927_v54 = vadd.f32 %v926_v19, %v909_v34  ;;  %v874_v3 = vadd.f32 %v873_v20, %v8209_v15 }
 0x344   :  { %v8217_v56 = vpop.f32.mrf.mxu0 }
 0x345   :  { %v911_v25 = vmul.f32 %v8217_v56, %v8217_v56  ;;  %v854_v59 = vadd.f32 %v853_v22, %v8217_v56  ;;  %v948_v49 = vadd.f32 %v947_v27, %v910_v33 }
 0x346   :  { %v8223_v47 = vpop.f32.mrf.mxu0 }
 0x347   :  { %v912_v53 = vmul.f32 %v8223_v47, %v8223_v47  ;;  %v928_v38 = vadd.f32 %v927_v54, %v911_v25  ;;  %v875_v39 = vadd.f32 %v874_v3, %v8223_v47 }
 0x348   :  { %v8229_v30 = vpop.f32.mrf.mxu0 }
 0x349   :  { %v855_v5 = vadd.f32 %v854_v59, %v8229_v30  ;;  %v913_v46 = vmul.f32 %v8229_v30, %v8229_v30  ;;  %v949_v57 = vadd.f32 %v948_v49, %v912_v53 }
 0x34a   :  { %v8235_v55 = vpop.f32.mrf.mxu0 }
 0x34b   :  { %v856_v21 = vrot.slane %v855_v5, 4  ;;  %v929_v11 = vadd.f32 %v928_v38, %v913_v46  ;;  %v876_v36 = vadd.f32 %v875_v39, %v8235_v55  ;;  %v914_v31 = vmul.f32 %v8235_v55, %v8235_v55 }
 0x34d   :  { %v857_v28 = vadd.f32 %v856_v21, %v855_v5  ;;  %v930_v40 = vrot.slane %v929_v11, 4  ;;  %v877_v34 = vrot.slane %v876_v36, 4  ;;  %v950_v18 = vadd.f32 %v949_v57, %v914_v31 }
 0x34f   :  { %v858_v33 = vrot.slane %v857_v28, 2  ;;  %v931_v19 = vadd.f32 %v930_v40, %v929_v11  ;;  %v878_v20 = vadd.f32 %v877_v34, %v876_v36  ;;  %v951_v22 = vrot.slane %v950_v18, 4 }
 0x351   :  { %v859_v25 = vadd.f32 %v858_v33, %v857_v28  ;;  %v932_v27 = vrot.slane %v931_v19, 2  ;;  %v879_v54 = vrot.slane %v878_v20, 2  ;;  %v952_v59 = vadd.f32 %v951_v22, %v950_v18 }
 0x353   :  { %v860_v3 = vrot.slane %v859_v25, 1  ;;  %v933_v53 = vadd.f32 %v932_v27, %v931_v19  ;;  %v880_v49 = vadd.f32 %v879_v54, %v878_v20  ;;  %v953_v38 = vrot.slane %v952_v59, 2 }
 0x355   :  { %v861_v39 = vadd.f32 %v860_v3, %v859_v25  ;;  %v934_v46 = vrot.slane %v933_v53, 1  ;;  %v881_v35 = vrot.slane %v880_v49, 1  ;;  %v954_v44 = vadd.f32 %v953_v38, %v952_v59 }
 0x356   :  { %v8251_v38 = vsub.s32 6, %v7934_v60 }
 0x357   :  { %v935_v5 = vadd.f32 %v934_v46, %v933_v53  ;;  %v957_v21 = vmul.f32 0.0078125, %v861_v39  ;;  %v882_v61 = vadd.f32 %v881_v35, %v880_v49  ;;  %v955_v57 = vrot.slane %v954_v44, 1  ;;  %v31_v35 = vld [vmem:[%s11729_s2 + $0x8] sm:$0xff] }
 0x358   :  { %11845 = vst [vmem:[#allocation14_spill] sm:$0xff] %v8251_v38 }
 0x359   :  { %v959_v31 = vmul.f32 0.0078125, %v935_v5  ;;  %v961_v11 = vmul.f32 %v957_v21, %v957_v21  ;;  %v956_v36 = vadd.f32 %v955_v57, %v954_v44  ;;  %v958_v40 = vmul.f32 0.0078125, %v882_v61 }
 0x35a   :  { %v8245_v44 = vsub.s32 5, %v7934_v60 }
 0x35b   :  { %v963_v28 = vsub.f32 %v959_v31, %v961_v11  ;;  %v960_v34 = vmul.f32 0.0078125, %v956_v36  ;;  %v962_v33 = vmul.f32 %v958_v40, %v958_v40 }
 0x35c   :  { %11844 = vst [vmem:[#allocation13_spill] sm:$0xff] %v8245_v44 }
 0x35d   :  { %v965_v18 = vmax.f32 %v963_v28, 0.0  ;;  %v964_v22 = vsub.f32 %v960_v34, %v962_v33 }
 0x35f   :  { %v967_v19 = vadd.f32 1e-05, %v965_v18  ;;  %v966_v20 = vmax.f32 %v964_v22, 0.0 }
 0x361   :  { %7524 = vrsqrt.f32 %v967_v19  ;;  %v968_v25 = vadd.f32 1e-05, %v966_v20 }
 0x363   :  { %7526 = vrsqrt.f32 %v968_v25 }
 0x36e   :  { %v7525_v27 = vpop.eup %7524 }
 0x36f   :  { %v971_v54 = vmul.f32 %v7525_v27, %v7939_v62 }
 0x370   :  { %v7527_v61 = vpop.eup %7526 }
 0x371   :  { %v1013_v59 = vmul.f32 %v971_v54, %v957_v21  ;;  %v972_v3 = vmul.f32 %v7527_v61, %v31_v35  ;;  %v8248_v53 = vrot.slane %v971_v54, %v8245_v44 }
 0x373   :  { %v1017_v49 = vrot.slane %v1013_v59, 7  ;;  %v1014_v39 = vmul.f32 %v972_v3, %v958_v40  ;;  %v8254_v46 = vrot.slane %v972_v3, %v8245_v44  ;;  %v981_v21 = vmul.f32 %v8248_v53, %v8080_v1 }
 0x374   :  { %v983_v36 = vmul.f32 %v8248_v53, %v8084_v50 }
 0x375   :  { %v1021_v5 = vsub.f32 %v7939_v62, %v1017_v49  ;;  %v1018_v57 = vrot.slane %v1014_v39, 7  ;;  %v982_v28 = vmul.f32 %v8254_v46, %v8082_v48  ;;  %v984_v62 = vmul.f32 %v8254_v46, %v8086_v51 }
 0x376   :  { %v986_v18 = vmul.f32 %v8254_v46, %v8090_v17  ;;  %v988_v1 = vmul.f32 %v8254_v46, %v8094_v63  ;;  %v985_v17 = vmul.f32 %v8248_v53, %v8088_v9  ;;  %v987_v63 = vmul.f32 %v8248_v53, %v8092_v58 }
 0x377   :  { %v8258_v31 = vrot.slane %v1021_v5, %v8251_v38  ;;  %v1022_v11 = vsub.f32 %v31_v35, %v1018_v57  ;;  %v990_v59 = vmul.f32 %v8254_v46, %v8098_v6  ;;  %v992_v3 = vmul.f32 %v8254_v46, %v8102_v10 }
 0x378   :  { %v989_v10 = vmul.f32 %v8248_v53, %v8096_v2 }
 0x379   :  { %v8267_v40 = vrot.slane %v1022_v11, %v8251_v38  ;;  %v1031_v34 = vadd.f32 %v8258_v31, %v981_v21  ;;  %v1033_v33 = vadd.f32 %v8258_v31, %v983_v36  ;;  %v1035_v39 = vadd.f32 %v8258_v31, %v985_v17 }
 0x37a   :  { %v1037_v5 = vadd.f32 %v8258_v31, %v987_v63 }
 0x37b   :  { %v1032_v50 = vadd.f32 %v8267_v40, %v982_v28  ;;  %v1034_v48 = vadd.f32 %v8267_v40, %v984_v62  ;;  %v1063_v22 = vmax.f32 %v1031_v34, 0.0  ;;  %v1065_v19 = vmax.f32 %v1033_v33, 0.0 }
 0x37c   :  { %v1036_v20 = vadd.f32 %v8267_v40, %v986_v18  ;;  %v1038_v51 = vadd.f32 %v8267_v40, %v988_v1  ;;  %v1040_v11 = vadd.f32 %v8267_v40, %v990_v59  ;;  %v1042_v9 = vadd.f32 %v8267_v40, %v992_v3 }
 0x37d   :  { %v1064_v25 = vmax.f32 %v1032_v50, 0.0  ;;  %v1066_v27 = vmax.f32 %v1034_v48, 0.0  ;;  %v1127_v49 = vpack.c.bf16 %v1065_v19, %v1063_v22  ;;  %v1067_v58 = vmax.f32 %v1035_v39, 0.0 }
 0x37e   :  { %v1068_v35 = vmax.f32 %v1036_v20, 0.0  ;;  %v1070_v54 = vmax.f32 %v1038_v51, 0.0  ;;  %v1069_v21 = vmax.f32 %v1037_v5, 0.0  ;;  %v1072_v36 = vmax.f32 %v1040_v11, 0.0 }
 0x37f   :  { %v1128_v61 = vpack.c.bf16 %v1066_v27, %v1064_v25  ;;  %v1074_v6 = vmax.f32 %v1042_v9, 0.0  ;;  %v991_v28 = vmul.f32 %v8248_v53, %v8100_v8  ;;  %v994_v62 = vmul.f32 %v8254_v46, %v8106_v14 }
 0x380   :  { %v1130_v57 = vpack.c.bf16 %v1070_v54, %v1068_v35  ;;  %v996_v34 = vmul.f32 %v8254_v46, %v8110_v32  ;;  %v1129_v33 = vpack.c.bf16 %v1069_v21, %v1067_v58  ;;  %v1039_v18 = vadd.f32 %v8258_v31, %v989_v10 }
 0x381   :  { %1271 = vmatprep.mubr.bf16.mxu1 %v1128_v61  ;;  %v1041_v1 = vadd.f32 %v8258_v31, %v991_v28  ;;  %v1132_v50 = vpack.c.bf16 %v1074_v6, %v1072_v36  ;;  %v1044_v48 = vadd.f32 %v8267_v40, %v994_v62  ;;  %v993_v14 = vmul.f32 %v8248_v53, %v8104_v12 }
 0x382   :  { %1272 = vmatmul.mubr.bf16.vlgmr.msra.gmra.mxu1 %v1127_v49  ;;  %v1046_v22 = vadd.f32 %v8267_v40, %v996_v34  ;;  %v1071_v2 = vmax.f32 %v1039_v18, 0.0  ;;  %v995_v32 = vmul.f32 %v8248_v53, %v8108_v41  ;;  %v998_v51 = vmul.f32 %v8254_v46, %v8128_v23 }
 0x383   :  { %1279 = vmatprep.mubr.bf16.mxu1 %v1130_v57  ;;  %v1073_v8 = vmax.f32 %v1041_v1, 0.0  ;;  %v1076_v19 = vmax.f32 %v1044_v48, 0.0  ;;  %v1000_v25 = vmul.f32 %v8254_v46, %v8145_v37  ;;  %v1043_v35 = vadd.f32 %v8258_v31, %v993_v14 }
 0x384   :  { %v1078_v20 = vmax.f32 %v1046_v22, 0.0  ;;  %v1045_v54 = vadd.f32 %v8258_v31, %v995_v32  ;;  %v1048_v63 = vadd.f32 %v8267_v40, %v998_v51  ;;  %v997_v23 = vmul.f32 %v8248_v53, %v8116_v13 }
 0x385   :  { %v1131_v27 = vpack.c.bf16 %v1073_v8, %v1071_v2  ;;  %v1050_v61 = vadd.f32 %v8267_v40, %v1000_v25  ;;  %v1075_v12 = vmax.f32 %v1043_v35, 0.0  ;;  %v999_v37 = vmul.f32 %v8248_v53, %v8137_v52 }
 0x386   :  { %v1134_v17 = vpack.c.bf16 %v1078_v20, %v1076_v19  ;;  %v1077_v41 = vmax.f32 %v1045_v54, 0.0  ;;  %v1080_v59 = vmax.f32 %v1048_v63, 0.0  ;;  %v1002_v49 = vmul.f32 %v8254_v46, %v8161_v42 }
 0x387   :  { %v1082_v3 = vmax.f32 %v1050_v61, 0.0  ;;  %v1004_v39 = vmul.f32 %v8254_v46, %v8177_v16  ;;  %v1047_v57 = vadd.f32 %v8258_v31, %v997_v23  ;;  %v1049_v11 = vadd.f32 %v8258_v31, %v999_v37  ;;  %v7470_v23 = vld [vmem:[#allocation2 + $0x230] ss:$8 sps:$4 sm:$0xff]  }
 0x388   :  { %v1133_v5 = vpack.c.bf16 %v1077_v41, %v1075_v12  ;;  %v1052_v58 = vadd.f32 %v8267_v40, %v1002_v49  ;;  %v1001_v42 = vmul.f32 %v8248_v53, %v8153_v29  ;;  %v1003_v16 = vmul.f32 %v8248_v53, %v8169_v4 }
 0x389   :  { %v1136_v9 = vpack.c.bf16 %v1082_v3, %v1080_v59  ;;  %v1054_v21 = vadd.f32 %v8267_v40, %v1004_v39  ;;  %v1079_v13 = vmax.f32 %v1047_v57, 0.0  ;;  %v1081_v52 = vmax.f32 %v1049_v11, 0.0  ;;  %v8360_v59 = vld [vmem:[#allocation2 + $0x290] ss:$8 sps:$4 sm:$0xff]   ;;  %v7469_v3 = vld [vmem:[#allocation2 + $0x240] ss:$8 sps:$4 sm:$0xff]  }
 0x38a   :  { %1280 = vmatmul.mubr.bf16.gmra.mxu1 %v1129_v33  ;;  %v1084_v36 = vmax.f32 %v1052_v58, 0.0  ;;  %v1006_v10 = vmul.f32 %v8254_v46, %v8193_v45  ;;  %v1008_v28 = vmul.f32 %v8254_v46, %v8209_v15  ;;  %v1051_v34 = vadd.f32 %v8258_v31, %v1001_v42  ;;  %7135 = vmatprep.subr.bf16.mxu0 %v8360_v59  ;;  %v7471_v39 = vld [vmem:[#allocation2 + $0x220] ss:$8 sps:$4 sm:$0xff]  }
 0x38b   :  { %1287 = vmatprep.mubr.bf16.mxu1 %v1132_v50  ;;  %v1086_v6 = vmax.f32 %v1054_v21, 0.0  ;;  %v1135_v62 = vpack.c.bf16 %v1081_v52, %v1079_v13  ;;  %v1053_v33 = vadd.f32 %v8258_v31, %v1003_v16  ;;  %v1005_v45 = vmul.f32 %v8248_v53, %v8185_v24  ;;  %7136 = vmatpush3.bf16.msra.mxu0 %v8360_v59 }
 0x38c   :  { %v1056_v1 = vadd.f32 %v8267_v40, %v1006_v10  ;;  %v1058_v50 = vadd.f32 %v8267_v40, %v1008_v28  ;;  %v1083_v29 = vmax.f32 %v1051_v34, 0.0  ;;  %v1007_v15 = vmul.f32 %v8248_v53, %v8201_v43 }
 0x38d   :  { %v1138_v18 = vpack.c.bf16 %v1086_v6, %v1084_v36  ;;  %v1085_v4 = vmax.f32 %v1053_v33, 0.0  ;;  %v1012_v2 = vmul.f32 %v8254_v46, %v8235_v55  ;;  %v1010_v8 = vmul.f32 %v8254_v46, %v8223_v47 }
 0x38e   :  { %v1088_v48 = vmax.f32 %v1056_v1, 0.0  ;;  %v1090_v22 = vmax.f32 %v1058_v50, 0.0  ;;  %v1055_v20 = vadd.f32 %v8258_v31, %v1005_v45  ;;  %v1057_v14 = vadd.f32 %v8258_v31, %v1007_v15 }
 0x38f   :  { %v1137_v19 = vpack.c.bf16 %v1085_v4, %v1083_v29  ;;  %v1060_v51 = vadd.f32 %v8267_v40, %v1010_v8  ;;  %v1062_v25 = vadd.f32 %v8267_v40, %v1012_v2  ;;  %v1011_v55 = vmul.f32 %v8248_v53, %v8229_v30  ;;  %v7466_v30 = vld [vmem:[#allocation2 + $0x270] ss:$8 sps:$4 sm:$0xff]  }
 0x390   :  { %v1140_v32 = vpack.c.bf16 %v1090_v22, %v1088_v48  ;;  %v1087_v24 = vmax.f32 %v1055_v20, 0.0  ;;  %v1089_v43 = vmax.f32 %v1057_v14, 0.0  ;;  %v1009_v47 = vmul.f32 %v8248_v53, %v8217_v56  ;;  %v7465_v56 = vld [vmem:[#allocation2 + $0x280] ss:$8 sps:$4 sm:$0xff]  }
 0x391   :  { %v1094_v35 = vmax.f32 %v1062_v25, 0.0  ;;  %v1061_v46 = vadd.f32 %v8258_v31, %v1011_v55  ;;  %v11846_v41 = vmov 0   ;;  %7137 = vmatprep.subr.bf16.mxu0 %v7465_v56  ;;  %v7467_v53 = vld [vmem:[#allocation2 + $0x260] ss:$8 sps:$4 sm:$0xff]  }
 0x392   :  { %1288 = vmatmul.mubr.bf16.gmra.mxu1 %v1131_v27  ;;  %v1092_v27 = vmax.f32 %v1060_v51, 0.0  ;;  %v1139_v54 = vpack.c.bf16 %v1089_v43, %v1087_v24  ;;  %7138 = vmatpush3.bf16.msra.mxu0 %v7465_v56 }
 0x393   :  { %1295 = vmatprep.mubr.bf16.mxu1 %v1134_v17  ;;  %v1059_v17 = vadd.f32 %v8258_v31, %v1009_v47  ;;  %v1093_v61 = vmax.f32 %v1061_v46, 0.0  ;;  %7139 = vmatprep.subr.bf16.mxu0 %v7466_v30  ;;  %v7468_v31 = vld [vmem:[#allocation2 + $0x250] ss:$8 sps:$4 sm:$0xff]  }
 0x394   :  { %v1142_v63 = vpack.c.bf16 %v1094_v35, %v1092_v27 }
 0x395   :  { %v1091_v40 = vmax.f32 %v1059_v17, 0.0 }
 0x396   :  { %7140 = vmatpush3.bf16.msra.mxu0 %v7466_v30 }
 0x397   :  { %v1141_v12 = vpack.c.bf16 %v1093_v61, %v1091_v40  ;;  %7141 = vmatprep.subr.bf16.mxu0 %v7467_v53 }
 0x39a   :  { %1296 = vmatmul.mubr.bf16.gmra.mxu1 %v1133_v5  ;;  %7142 = vmatpush3.bf16.msra.mxu0 %v7467_v53 }
 0x39b   :  { %1303 = vmatprep.mubr.bf16.mxu1 %v1136_v9  ;;  %7143 = vmatprep.subr.bf16.mxu0 %v7468_v31 }
 0x39e   :  { %7144 = vmatpush3.bf16.msra.mxu0 %v7468_v31 }
 0x39f   :  { %7145 = vmatprep.subr.bf16.mxu0 %v7469_v3 }
 0x3a2   :  { %1304 = vmatmul.mubr.bf16.gmra.mxu1 %v1135_v62  ;;  %7146 = vmatpush3.bf16.msra.mxu0 %v7469_v3 }
 0x3a3   :  { %1311 = vmatprep.mubr.bf16.mxu1 %v1138_v18  ;;  %7147 = vmatprep.subr.bf16.mxu0 %v7470_v23 }
 0x3a6   :  { %7148 = vmatpush3.bf16.msra.mxu0 %v7470_v23 }
 0x3a7   :  { %7149 = vmatprep.subr.bf16.mxu0 %v7471_v39 }
 0x3aa   :  { %1312 = vmatmul.mubr.bf16.gmra.mxu1 %v1137_v19  ;;  %7150 = vmatpush3.bf16.msra.mxu0 %v7471_v39 }
 0x3ab   :  { %1319 = vmatprep.mubr.bf16.mxu1 %v1140_v32 }
 0x3b2   :  { %1320 = vmatmul.mubr.bf16.gmra.mxu1 %v1139_v54 }
 0x3b3   :  { %1327 = vmatprep.mubr.bf16.mxu1 %v1142_v63 }
 0x3ba   :  { %1328 = vmatmul.mubr.bf16.gmra.mxu1 %v1141_v12 }
 0x3bb   :  { %1895 = vmatprep.mubr.bf16.mxu1 %v11846_v41 }
 0x442   :  { %v6651_v37 = vpop.f32.mrf.mxu1 }
 0x444   :  { %v6652_v49 = vpop.f32.mrf.mxu1 }
 0x445   :  { %v8366_v33 = vadd.f32 %v6652_v49, %v6651_v37 }
 0x446   :  { %v6654_v5 = vpop.f32.mrf.mxu1 }
 0x447   :  { %v1357_v48 = vmul.f32 %v8366_v33, %v8366_v33 }
 0x448   :  { %v6655_v57 = vpop.f32.mrf.mxu1 }
 0x449   :  { %v8364_v62 = vadd.f32 %v6655_v57, %v6654_v5 }
 0x44a   :  { %v6657_v11 = vpop.f32.mrf.mxu1 }
 0x44b   :  { %v1358_v50 = vmul.f32 %v8364_v62, %v8364_v62  ;;  %v1336_v22 = vadd.f32 %v8364_v62, %v8366_v33 }
 0x44c   :  { %v6658_v9 = vpop.f32.mrf.mxu1 }
 0x44d   :  { %v8368_v18 = vadd.f32 %v6658_v9, %v6657_v11  ;;  %v1373_v8 = vadd.f32 %v1358_v50, %v1357_v48 }
 0x44e   :  { %v6660_v58 = vpop.f32.mrf.mxu1 }
 0x44f   :  { %v1359_v45 = vmul.f32 %v8368_v18, %v8368_v18  ;;  %v1337_v19 = vadd.f32 %v8368_v18, %v1336_v22 }
 0x450   :  { %v6661_v21 = vpop.f32.mrf.mxu1 }
 0x451   :  { %v8372_v29 = vadd.f32 %v6661_v21, %v6660_v58  ;;  %v1374_v51 = vadd.f32 %v1373_v8, %v1359_v45 }
 0x452   :  { %v6663_v13 = vpop.f32.mrf.mxu1 }
 0x453   :  { %v1360_v20 = vmul.f32 %v8372_v29, %v8372_v29  ;;  %v1338_v25 = vadd.f32 %v8372_v29, %v1337_v19 }
 0x454   :  { %v6664_v52 = vpop.f32.mrf.mxu1 }
 0x455   :  { %v8380_v15 = vadd.f32 %v6664_v52, %v6663_v13  ;;  %v1375_v35 = vadd.f32 %v1374_v51, %v1360_v20 }
 0x456   :  { %v6666_v36 = vpop.f32.mrf.mxu1 }
 0x457   :  { %v1361_v24 = vmul.f32 %v8380_v15, %v8380_v15  ;;  %v1339_v55 = vadd.f32 %v8380_v15, %v1338_v25 }
 0x458   :  { %v6667_v6 = vpop.f32.mrf.mxu1 }
 0x459   :  { %v8385_v14 = vadd.f32 %v6667_v6, %v6666_v36  ;;  %v1376_v17 = vadd.f32 %v1375_v35, %v1361_v24 }
 0x45a   :  { %v6669_v42 = vpop.f32.mrf.mxu1 }
 0x45b   :  { %v1362_v47 = vmul.f32 %v8385_v14, %v8385_v14  ;;  %v1340_v63 = vadd.f32 %v8385_v14, %v1339_v55 }
 0x45c   :  { %v6670_v16 = vpop.f32.mrf.mxu1 }
 0x45d   :  { %v8390_v43 = vadd.f32 %v6670_v16, %v6669_v42  ;;  %v1377_v56 = vadd.f32 %v1376_v17, %v1362_v47 }
 0x45e   :  { %v6672_v10 = vpop.f32.mrf.mxu1 }
 0x45f   :  { %v1363_v40 = vmul.f32 %v8390_v43, %v8390_v43  ;;  %v1341_v30 = vadd.f32 %v8390_v43, %v1340_v63 }
 0x460   :  { %v6673_v28 = vpop.f32.mrf.mxu1 }
 0x461   :  { %v8395_v46 = vadd.f32 %v6673_v28, %v6672_v10  ;;  %v1378_v23 = vadd.f32 %v1377_v56, %v1363_v40 }
 0x462   :  { %v6675_v34 = vpop.f32.mrf.mxu1 }
 0x463   :  { %v1364_v53 = vmul.f32 %v8395_v46, %v8395_v46  ;;  %v1342_v37 = vadd.f32 %v8395_v46, %v1341_v30 }
 0x464   :  { %v6676_v1 = vpop.f32.mrf.mxu1 }
 0x465   :  { %v8400_v61 = vadd.f32 %v6676_v1, %v6675_v34  ;;  %v1379_v57 = vadd.f32 %v1378_v23, %v1364_v53 }
 0x466   :  { %v6678_v4 = vpop.f32.mrf.mxu1 }
 0x467   :  { %v1365_v49 = vmul.f32 %v8400_v61, %v8400_v61  ;;  %v1343_v11 = vadd.f32 %v8400_v61, %v1342_v37 }
 0x468   :  { %v6679_v2 = vpop.f32.mrf.mxu1 }
 0x469   :  { %v8405_v31 = vadd.f32 %v6679_v2, %v6678_v4  ;;  %v1380_v13 = vadd.f32 %v1379_v57, %v1365_v49 }
 0x46a   :  { %v6681_v32 = vpop.f32.mrf.mxu1 }
 0x46b   :  { %v1366_v9 = vmul.f32 %v8405_v31, %v8405_v31  ;;  %v1344_v52 = vadd.f32 %v8405_v31, %v1343_v11 }
 0x46c   :  { %v6682_v27 = vpop.f32.mrf.mxu1 }
 0x46d   :  { %v8410_v39 = vadd.f32 %v6682_v27, %v6681_v32  ;;  %v1381_v16 = vadd.f32 %v1380_v13, %v1366_v9 }
 0x46e   :  { %v6684_v54 = vpop.f32.mrf.mxu1 }
 0x46f   :  { %v1367_v36 = vmul.f32 %v8410_v39, %v8410_v39  ;;  %v1345_v10 = vadd.f32 %v8410_v39, %v1344_v52 }
 0x470   :  { %v6685_v12 = vpop.f32.mrf.mxu1 }
 0x471   :  { %v8415_v58 = vadd.f32 %v6685_v12, %v6684_v54  ;;  %v1382_v50 = vadd.f32 %v1381_v16, %v1367_v36 }
 0x472   :  { %v6687_v3 = vpop.f32.mrf.mxu1 }
 0x473   :  { %v1368_v28 = vmul.f32 %v8415_v58, %v8415_v58  ;;  %v1346_v4 = vadd.f32 %v8415_v58, %v1345_v10  ;;  %v8445_v10 = vsub.s32 7, %v7934_v60 }
 0x474   :  { %v6688_v5 = vpop.f32.mrf.mxu1 }
 0x475   :  { %v8420_v6 = vadd.f32 %v6688_v5, %v6687_v3  ;;  %v1383_v45 = vadd.f32 %v1382_v50, %v1368_v28  ;;  %11847 = vst [vmem:[#allocation15_spill] sm:$0xff] %v8445_v10  ;;  %v7570_v28 = vld [vmem:[%s11729_s2] sm:$0xff] }
 0x476   :  { %v6690_v21 = vpop.f32.mrf.mxu1 }
 0x477   :  { %v1369_v48 = vmul.f32 %v8420_v6, %v8420_v6  ;;  %v1347_v2 = vadd.f32 %v8420_v6, %v1346_v4  ;;  %v8453_v4 = vld [vmem:[%s11729_s2 + $0x10] sm:$0xff] }
 0x478   :  { %v6691_v42 = vpop.f32.mrf.mxu1 }
 0x479   :  { %v8425_v34 = vadd.f32 %v6691_v42, %v6690_v21  ;;  %v1384_v32 = vadd.f32 %v1383_v45, %v1369_v48 }
 0x47a   :  { %v6693_v1 = vpop.f32.mrf.mxu1 }
 0x47b   :  { %v1370_v8 = vmul.f32 %v8425_v34, %v8425_v34  ;;  %v1348_v51 = vadd.f32 %v8425_v34, %v1347_v2 }
 0x47c   :  { %v6694_v22 = vpop.f32.mrf.mxu1 }
 0x47d   :  { %v8433_v19 = vadd.f32 %v6694_v22, %v6693_v1  ;;  %v1385_v27 = vadd.f32 %v1384_v32, %v1370_v8 }
 0x47e   :  { %v6696_v20 = vpop.f32.mrf.mxu1 }
 0x47f   :  { %v1371_v25 = vmul.f32 %v8433_v19, %v8433_v19  ;;  %v1349_v35 = vadd.f32 %v8433_v19, %v1348_v51 }
 0x480   :  { %v6697_v24 = vpop.f32.mrf.mxu1 }
 0x481   :  { %v8439_v55 = vadd.f32 %v6697_v24, %v6696_v20  ;;  %v1386_v47 = vadd.f32 %v1385_v27, %v1371_v25 }
 0x483   :  { %v1350_v54 = vadd.f32 %v8439_v55, %v1349_v35  ;;  %v1372_v17 = vmul.f32 %v8439_v55, %v8439_v55 }
 0x485   :  { %v1351_v63 = vrot.slane %v1350_v54, 4  ;;  %v1387_v40 = vadd.f32 %v1386_v47, %v1372_v17 }
 0x487   :  { %v1352_v12 = vadd.f32 %v1351_v63, %v1350_v54  ;;  %v1388_v56 = vrot.slane %v1387_v40, 4 }
 0x489   :  { %v1353_v30 = vrot.slane %v1352_v12, 2  ;;  %v1389_v53 = vadd.f32 %v1388_v56, %v1387_v40 }
 0x48b   :  { %v1354_v3 = vadd.f32 %v1353_v30, %v1352_v12  ;;  %v1390_v23 = vrot.slane %v1389_v53, 2 }
 0x48d   :  { %v1355_v37 = vrot.slane %v1354_v3, 1  ;;  %v1391_v49 = vadd.f32 %v1390_v23, %v1389_v53 }
 0x48f   :  { %v1356_v5 = vadd.f32 %v1355_v37, %v1354_v3  ;;  %v1392_v57 = vrot.slane %v1391_v49, 1 }
 0x491   :  { %v1393_v11 = vadd.f32 %v1392_v57, %v1391_v49  ;;  %v1394_v9 = vmul.f32 0.0078125, %v1356_v5 }
 0x493   :  { %v1395_v21 = vmul.f32 0.0078125, %v1393_v11  ;;  %v1396_v13 = vmul.f32 %v1394_v9, %v1394_v9 }
 0x495   :  { %v1397_v52 = vsub.f32 %v1395_v21, %v1396_v13 }
 0x497   :  { %v1398_v36 = vmax.f32 %v1397_v52, 0.0 }
 0x499   :  { %v1399_v42 = vadd.f32 1e-05, %v1398_v36 }
 0x49b   :  { %7528 = vrsqrt.f32 %v1399_v42 }
 0x4a8   :  { %v7529_v16 = vpop.eup %7528 }
 0x4a9   :  { %v1401_v1 = vmul.f32 %v7570_v28, %v7529_v16 }
 0x4ab   :  { %v1422_v50 = vmul.f32 %v1401_v1, %v1394_v9  ;;  %v1405_v48 = vrot.slane %v1401_v1, %v8445_v10 }
 0x4ad   :  { %v1424_v22 = vrot.slane %v1422_v50, 7  ;;  %v1406_v2 = vmul.f32 %v8366_v33, %v1405_v48  ;;  %v1407_v8 = vmul.f32 %v8364_v62, %v1405_v48  ;;  %v1408_v20 = vmul.f32 %v8368_v18, %v1405_v48 }
 0x4ae   :  { %v1409_v32 = vmul.f32 %v8372_v29, %v1405_v48  ;;  %v1410_v51 = vmul.f32 %v8380_v15, %v1405_v48  ;;  %v1411_v25 = vmul.f32 %v8385_v14, %v1405_v48  ;;  %v1412_v63 = vmul.f32 %v8390_v43, %v1405_v48 }
 0x4af   :  { %v1426_v45 = vsub.f32 %v8453_v4, %v1424_v22  ;;  %v1413_v40 = vmul.f32 %v8395_v46, %v1405_v48  ;;  %v1414_v30 = vmul.f32 %v8400_v61, %v1405_v48  ;;  %v1415_v53 = vmul.f32 %v8405_v31, %v1405_v48 }
 0x4b0   :  { %v1416_v57 = vmul.f32 %v8410_v39, %v1405_v48  ;;  %v1417_v11 = vmul.f32 %v8415_v58, %v1405_v48  ;;  %v1418_v9 = vmul.f32 %v8420_v6, %v1405_v48  ;;  %v1419_v21 = vmul.f32 %v8425_v34, %v1405_v48 }
 0x4b1   :  { %v1430_v60 = vrot.slane %v1426_v45, %v7942_v0  ;;  %v1421_v1 = vmul.f32 %v8439_v55, %v1405_v48  ;;  %v1420_v50 = vmul.f32 %v8433_v19, %v1405_v48 }
 0x4b3   :  { %v8464_v24 = vadd.f32 %v1430_v60, %v1406_v2  ;;  %v8466_v27 = vadd.f32 %v1430_v60, %v1407_v8  ;;  %v8468_v35 = vadd.f32 %v1430_v60, %v1408_v20  ;;  %v8470_v47 = vadd.f32 %v1430_v60, %v1409_v32  ;;  %v7472_v20 = vld [vmem:[#allocation2 + $0x314] ss:$8 sps:$4 sm:$0xff]   ;;  %v7475_v32 = vld [vmem:[#allocation2 + $0x304] ss:$8 sps:$4 sm:$0xff]  }
 0x4b4   :  { %v8472_v33 = vadd.f32 %v1430_v60, %v1410_v51  ;;  %v8474_v54 = vadd.f32 %v1430_v60, %v1411_v25  ;;  %v8494_v3 = vadd.f32 %v1430_v60, %v1412_v63  ;;  %v8496_v23 = vadd.f32 %v1430_v60, %v1413_v40  ;;  %1863 = vmatprep.subr.bf16.mxu1 %v7472_v20  ;;  %v7477_v51 = vld [vmem:[#allocation2 + $0x300] ss:$8 sps:$4 sm:$0xff]   ;;  %v7478_v25 = vld [vmem:[#allocation2 + $0x2f4] ss:$8 sps:$4 sm:$0xff]   ;;  %v7480_v63 = vld [vmem:[#allocation2 + $0x2f0] ss:$8 sps:$4 sm:$0xff]  }
 0x4b5   :  { %11848 = vst [vmem:[#allocation16_spill] sm:$0xff] %v8464_v24  ;;  %11849 = vst [vmem:[#allocation17_spill] sm:$0xff] %v8466_v27  ;;  %v11750_v62 = vmax.f32 %v8464_v24, 0.0  ;;  %v11749_v18 = vmax.f32 %v8466_v27, 0.0  ;;  %v11752_v29 = vmax.f32 %v8468_v35, 0.0  ;;  %v11751_v15 = vmax.f32 %v8470_v47, 0.0 }
 0x4b6   :  { %11850 = vst [vmem:[#allocation18_spill] sm:$0xff] %v8468_v35  ;;  %11851 = vst [vmem:[#allocation19_spill] sm:$0xff] %v8470_v47  ;;  %v11748_v14 = vmax.f32 %v8472_v33, 0.0  ;;  %v11747_v17 = vmax.f32 %v8474_v54, 0.0  ;;  %v8502_v46 = vadd.f32 %v1430_v60, %v1414_v30  ;;  %v8504_v37 = vadd.f32 %v1430_v60, %v1415_v53  ;;  %v7481_v40 = vld [vmem:[#allocation2 + $0x2e4] ss:$8 sps:$4 sm:$0xff]  }
 0x4b7   :  { %11852 = vst [vmem:[#allocation20_spill] sm:$0xff] %v8472_v33  ;;  %11853 = vst [vmem:[#allocation21_spill] sm:$0xff] %v8474_v54  ;;  %v1479_v12 = vpack.c.bf16 %v11749_v18, %v11750_v62  ;;  %v1480_v56 = vpack.c.bf16 %v11751_v15, %v11752_v29  ;;  %v11746_v61 = vmax.f32 %v8494_v3, 0.0  ;;  %v11745_v31 = vmax.f32 %v8496_v23, 0.0  ;;  %v7486_v30 = vld [vmem:[#allocation2 + $0x2d0] ss:$8 sps:$4 sm:$0xff]  }
 0x4b8   :  { %11854 = vst [vmem:[#allocation22_spill] sm:$0xff] %v8494_v3  ;;  %11855 = vst [vmem:[#allocation23_spill] sm:$0xff] %v8496_v23  ;;  %v1481_v43 = vpack.c.bf16 %v11747_v17, %v11748_v14  ;;  %v11744_v49 = vmax.f32 %v8502_v46, 0.0  ;;  %v11743_v5 = vmax.f32 %v8504_v37, 0.0  ;;  %v8518_v52 = vadd.f32 %v1430_v60, %v1416_v57  ;;  %v7487_v53 = vld [vmem:[#allocation2 + $0x2c4] ss:$8 sps:$4 sm:$0xff]  }
 0x4b9   :  { %7151 = vmatprep.mubr.bf16.mxu0 %v1479_v12  ;;  %11856 = vst [vmem:[#allocation24_spill] sm:$0xff] %v8502_v46  ;;  %11857 = vst [vmem:[#allocation25_spill] sm:$0xff] %v8504_v37  ;;  %v1482_v13 = vpack.c.bf16 %v11745_v31, %v11746_v61  ;;  %v8520_v36 = vadd.f32 %v1430_v60, %v1417_v11  ;;  %v8526_v42 = vadd.f32 %v1430_v60, %v1418_v9  ;;  %v7483_v12 = vld [vmem:[#allocation2 + $0x2e0] ss:$8 sps:$4 sm:$0xff]   ;;  %v7490_v57 = vld [vmem:[#allocation2 + $0x2b4] ss:$8 sps:$4 sm:$0xff]  }
 0x4ba   :  { %7152 = vmatmul.mubr.bf16.vlgmr.msra.gmra.mxu0 %v1480_v56  ;;  %11858 = vst [vmem:[#allocation26_spill] sm:$0xff] %v8518_v52  ;;  %v1483_v39 = vpack.c.bf16 %v11743_v5, %v11744_v49  ;;  %v8528_v58 = vadd.f32 %v1430_v60, %v1419_v21  ;;  %v11742_v6 = vmax.f32 %v8518_v52, 0.0  ;;  %v8540_v45 = vadd.f32 %v1430_v60, %v1420_v50  ;;  %v7484_v56 = vld [vmem:[#allocation2 + $0x2d4] ss:$8 sps:$4 sm:$0xff]   ;;  %v7492_v11 = vld [vmem:[#allocation2 + $0x2b0] ss:$8 sps:$4 sm:$0xff]  }
 0x4bb   :  { %7155 = vmatprep.mubr.bf16.mxu0 %v1481_v43  ;;  %11859 = vst [vmem:[#allocation27_spill] sm:$0xff] %v8520_v36  ;;  %11860 = vst [vmem:[#allocation28_spill] sm:$0xff] %v8526_v42  ;;  %v11741_v34 = vmax.f32 %v8520_v36, 0.0  ;;  %v11740_v16 = vmax.f32 %v8526_v42, 0.0  ;;  %v8542_v2 = vadd.f32 %v1430_v60, %v1421_v1  ;;  %v7474_v60 = vld [vmem:[#allocation2 + $0x310] ss:$8 sps:$4 sm:$0xff]  }
 0x4bc   :  { %11861 = vst [vmem:[#allocation29_spill] sm:$0xff] %v8528_v58  ;;  %v11739_v28 = vmax.f32 %v8528_v58, 0.0  ;;  %11862 = vst [vmem:[#allocation30_spill] sm:$0xff] %v8540_v45  ;;  %v11738_v55 = vmax.f32 %v8540_v45, 0.0  ;;  %1864 = vmatpush1.bf16.msra.mxu1 %v7474_v60  ;;  %v7489_v43 = vld [vmem:[#allocation2 + $0x2c0] ss:$8 sps:$4 sm:$0xff]  }
 0x4bd   :  { %v1484_v22 = vpack.c.bf16 %v11741_v34, %v11742_v6  ;;  %11863 = vst [vmem:[#allocation31_spill] sm:$0xff] %v8542_v2  ;;  %v11737_v19 = vmax.f32 %v8542_v2, 0.0  ;;  %1865 = vmatprep.subr.bf16.mxu1 %v7475_v32  ;;  %v7493_v9 = vld [vmem:[#allocation2 + $0x2a4] ss:$8 sps:$4 sm:$0xff]   ;;  %v7495_v21 = vld [vmem:[#allocation2 + $0x2a0] ss:$8 sps:$4 sm:$0xff]  }
 0x4be   :  { %v1485_v8 = vpack.c.bf16 %v11739_v28, %v11740_v16 }
 0x4bf   :  { %v1486_v48 = vpack.c.bf16 %v11737_v19, %v11738_v55 }
 0x4c0   :  { %1866 = vmatpush1.bf16.msra.mxu1 %v7477_v51 }
 0x4c1   :  { %1867 = vmatprep.subr.bf16.mxu1 %v7478_v25 }
 0x4c2   :  { %7156 = vmatmul.mubr.bf16.gmra.mxu0 %v1482_v13 }
 0x4c3   :  { %7159 = vmatprep.mubr.bf16.mxu0 %v1483_v39 }
 0x4c4   :  { %1868 = vmatpush1.bf16.msra.mxu1 %v7480_v63 }
 0x4c5   :  { %1869 = vmatprep.subr.bf16.mxu1 %v7481_v40 }
 0x4c8   :  { %1870 = vmatpush1.bf16.msra.mxu1 %v7483_v12 }
 0x4c9   :  { %1871 = vmatprep.subr.bf16.mxu1 %v7484_v56 }
 0x4ca   :  { %7160 = vmatmul.mubr.bf16.gmra.mxu0 %v1484_v22 }
 0x4cb   :  { %7163 = vmatprep.mubr.bf16.mxu0 %v1485_v8 }
 0x4cc   :  { %1872 = vmatpush1.bf16.msra.mxu1 %v7486_v30 }
 0x4cd   :  { %1873 = vmatprep.subr.bf16.mxu1 %v7487_v53 }
 0x4d0   :  { %1874 = vmatpush1.bf16.msra.mxu1 %v7489_v43 }
 0x4d1   :  { %1875 = vmatprep.subr.bf16.mxu1 %v7490_v57 }
 0x4d2   :  { %7164 = vmatmul.mubr.bf16.gmra.mxu0 %v1486_v48 }
 0x4d4   :  { %1876 = vmatpush1.bf16.msra.mxu1 %v7492_v11 }
 0x4d5   :  { %1877 = vmatprep.subr.bf16.mxu1 %v7493_v9 }
 0x4d8   :  { %1878 = vmatpush1.bf16.msra.mxu1 %v7495_v21 }
 0x57a   :  { %v8554_v13 = vpop.f32.mrf.mxu0 }
 0x57b   :  { %v1655_v60 = vmul.f32 %v8554_v13, %v8554_v13 }
 0x57c   :  { %v8556_v39 = vpop.f32.mrf.mxu0 }
 0x57d   :  { %v1653_v22 = vmul.f32 %v8556_v39, %v8556_v39 }
 0x57e   :  { %v8558_v1 = vpop.f32.mrf.mxu0 }
 0x57f   :  { %v1656_v63 = vmul.f32 %v8558_v1, %v8558_v1 }
 0x580   :  { %v8560_v50 = vpop.f32.mrf.mxu0 }
 0x581   :  { %v1632_v8 = vadd.f32 %v8560_v50, %v8556_v39  ;;  %v1654_v48 = vmul.f32 %v8560_v50, %v8560_v50 }
 0x582   :  { %v8568_v20 = vpop.f32.mrf.mxu0 }
 0x583   :  { %v1669_v32 = vadd.f32 %v1654_v48, %v1653_v22  ;;  %v1633_v51 = vadd.f32 %v8554_v13, %v1632_v8  ;;  %v1659_v8 = vmul.f32 %v8568_v20, %v8568_v20 }
 0x584   :  { %v8573_v25 = vpop.f32.mrf.mxu0 }
 0x585   :  { %v1634_v40 = vadd.f32 %v8558_v1, %v1633_v51  ;;  %v1670_v12 = vadd.f32 %v1669_v32, %v1655_v60  ;;  %v1657_v53 = vmul.f32 %v8573_v25, %v8573_v25 }
 0x586   :  { %v8578_v56 = vpop.f32.mrf.mxu0 }
 0x587   :  { %v1635_v30 = vadd.f32 %v1634_v40, %v8573_v25  ;;  %v1671_v43 = vadd.f32 %v1670_v12, %v1656_v63  ;;  %v1660_v51 = vmul.f32 %v8578_v56, %v8578_v56 }
 0x588   :  { %v8583_v57 = vpop.f32.mrf.mxu0 }
 0x589   :  { %v1672_v11 = vadd.f32 %v1671_v43, %v1657_v53  ;;  %v1636_v9 = vadd.f32 %v1635_v30, %v8583_v57  ;;  %v1658_v21 = vmul.f32 %v8583_v57, %v8583_v57 }
 0x58a   :  { %v8588_v22 = vpop.f32.mrf.mxu0 }
 0x58b   :  { %v1673_v48 = vadd.f32 %v1672_v11, %v1658_v21  ;;  %v1637_v60 = vadd.f32 %v8568_v20, %v1636_v9 }
 0x58c   :  { %v8593_v32 = vpop.f32.mrf.mxu0 }
 0x58d   :  { %v1638_v63 = vadd.f32 %v8578_v56, %v1637_v60  ;;  %v1674_v40 = vadd.f32 %v1673_v48, %v1659_v8  ;;  %v1661_v53 = vmul.f32 %v8593_v32, %v8593_v32  ;;  %v1663_v8 = vmul.f32 %v8588_v22, %v8588_v22 }
 0x58e   :  { %v8598_v12 = vpop.f32.mrf.mxu0 }
 0x58f   :  { %v1639_v30 = vadd.f32 %v1638_v63, %v8593_v32  ;;  %v1675_v43 = vadd.f32 %v1674_v40, %v1660_v51  ;;  %v1664_v51 = vmul.f32 %v8598_v12, %v8598_v12 }
 0x590   :  { %v8603_v19 = vpop.f32.mrf.mxu0 }
 0x591   :  { %v1676_v11 = vadd.f32 %v1675_v43, %v1661_v53  ;;  %v1640_v9 = vadd.f32 %v1639_v30, %v8603_v19  ;;  %v1662_v21 = vmul.f32 %v8603_v19, %v8603_v19 }
 0x592   :  { %v8608_v55 = vpop.f32.mrf.mxu0 }
 0x593   :  { %v1677_v48 = vadd.f32 %v1676_v11, %v1662_v21  ;;  %v1641_v60 = vadd.f32 %v8588_v22, %v1640_v9  ;;  %v1667_v6 = vmul.f32 %v8608_v55, %v8608_v55 }
 0x594   :  { %v8613_v63 = vpop.f32.mrf.mxu0 }
 0x595   :  { %v1642_v40 = vadd.f32 %v8598_v12, %v1641_v60  ;;  %v1678_v53 = vadd.f32 %v1677_v48, %v1663_v8  ;;  %v1665_v28 = vmul.f32 %v8613_v63, %v8613_v63 }
 0x596   :  { %v7166_v30 = vpop.f32.mrf.mxu0 }
 0x597   :  { %v1643_v43 = vadd.f32 %v1642_v40, %v8613_v63  ;;  %v1679_v16 = vadd.f32 %v1678_v53, %v1664_v51  ;;  %v1668_v60 = vmul.f32 %v7166_v30, %v7166_v30 }
 0x598   :  { %v8621_v34 = vpop.f32.mrf.mxu0 }
 0x599   :  { %v1680_v11 = vadd.f32 %v1679_v16, %v1665_v28  ;;  %v1644_v9 = vadd.f32 %v1643_v43, %v8621_v34  ;;  %v1666_v21 = vmul.f32 %v8621_v34, %v8621_v34 }
 0x59b   :  { %v1645_v8 = vadd.f32 %v8608_v55, %v1644_v9  ;;  %v1681_v48 = vadd.f32 %v1680_v11, %v1666_v21 }
 0x59d   :  { %v1646_v40 = vadd.f32 %v7166_v30, %v1645_v8  ;;  %v1682_v5 = vadd.f32 %v1681_v48, %v1667_v6 }
 0x59f   :  { %v1647_v49 = vrot.slane %v1646_v40, 4  ;;  %v1683_v31 = vadd.f32 %v1682_v5, %v1668_v60 }
 0x5a1   :  { %v1648_v51 = vadd.f32 %v1647_v49, %v1646_v40  ;;  %v1684_v53 = vrot.slane %v1683_v31, 4 }
 0x5a3   :  { %v1649_v61 = vrot.slane %v1648_v51, 2  ;;  %v1685_v16 = vadd.f32 %v1684_v53, %v1683_v31 }
 0x5a5   :  { %v1650_v28 = vadd.f32 %v1649_v61, %v1648_v51  ;;  %v1686_v43 = vrot.slane %v1685_v16, 2 }
 0x5a7   :  { %v1651_v17 = vrot.slane %v1650_v28, 1  ;;  %v1687_v14 = vadd.f32 %v1686_v43, %v1685_v16 }
 0x5a9   :  { %v1652_v18 = vadd.f32 %v1651_v17, %v1650_v28  ;;  %v1688_v62 = vrot.slane %v1687_v14, 1 }
 0x5ab   :  { %v1689_v15 = vadd.f32 %v1688_v62, %v1687_v14  ;;  %v1690_v29 = vmul.f32 0.0078125, %v1652_v18 }
 0x5ad   :  { %v1691_v2 = vmul.f32 0.0078125, %v1689_v15  ;;  %v1692_v9 = vmul.f32 %v1690_v29, %v1690_v29 }
 0x5af   :  { %v1693_v11 = vsub.f32 %v1691_v2, %v1692_v9 }
 0x5b1   :  { %v1694_v21 = vmax.f32 %v1693_v11, 0.0 }
 0x5b3   :  { %v1695_v8 = vadd.f32 1e-05, %v1694_v21 }
 0x5b5   :  { %7530 = vrsqrt.f32 %v1695_v8 }
 0x5c2   :  { %v7531_v6 = vpop.eup %7530 }
 0x5c3   :  { %v1697_v49 = vmul.f32 %v7531_v6, %v8453_v4 }
 0x5c5   :  { %v1718_v5 = vmul.f32 %v1697_v49, %v1690_v29  ;;  %v8631_v31 = vrot.slane %v1697_v49, %v7947_v7 }
 0x5c7   :  { %v1720_v61 = vrot.slane %v1718_v5, 7  ;;  %v1702_v62 = vmul.f32 %v8631_v31, %v8556_v39  ;;  %v1703_v18 = vmul.f32 %v8631_v31, %v8560_v50  ;;  %v1704_v60 = vmul.f32 %v8554_v13, %v8631_v31 }
 0x5c8   :  { %v1705_v40 = vmul.f32 %v8558_v1, %v8631_v31  ;;  %v1712_v51 = vmul.f32 %v8588_v22, %v8631_v31  ;;  %v1713_v39 = vmul.f32 %v8598_v12, %v8631_v31  ;;  %v1716_v13 = vmul.f32 %v8608_v55, %v8631_v31 }
 0x5c9   :  { %v1722_v48 = vsub.f32 %v8453_v4, %v1720_v61  ;;  %v1717_v1 = vmul.f32 %v7166_v30, %v8631_v31  ;;  %v1706_v61 = vmul.f32 %v8631_v31, %v8573_v25  ;;  %v1707_v55 = vmul.f32 %v8631_v31, %v8583_v57 }
 0x5ca   :  { %v1709_v25 = vmul.f32 %v8578_v56, %v8631_v31 }
 0x5cb   :  { %v8635_v17 = vrot.slane %v1722_v48, %v7969_v26 }
 0x5cd   :  { %v1727_v15 = vadd.f32 %v8635_v17, %v1702_v62  ;;  %v1728_v14 = vadd.f32 %v8635_v17, %v1703_v18  ;;  %v1729_v50 = vadd.f32 %v8635_v17, %v1704_v60  ;;  %v1730_v16 = vadd.f32 %v8635_v17, %v1705_v40 }
 0x5ce   :  { %v1737_v28 = vadd.f32 %v8635_v17, %v1712_v51  ;;  %v1738_v43 = vadd.f32 %v8635_v17, %v1713_v39  ;;  %v1741_v12 = vadd.f32 %v8635_v17, %v1716_v13  ;;  %v1742_v11 = vadd.f32 %v8635_v17, %v1717_v1 }
 0x5cf   :  { %v1743_v29 = vmax.f32 %v1727_v15, 0.0  ;;  %v1744_v2 = vmax.f32 %v1728_v14, 0.0  ;;  %v1745_v21 = vmax.f32 %v1729_v50, 0.0  ;;  %v1746_v8 = vmax.f32 %v1730_v16, 0.0 }
 0x5d0   :  { %v1753_v22 = vmax.f32 %v1737_v28, 0.0  ;;  %v1754_v9 = vmax.f32 %v1738_v43, 0.0  ;;  %v1757_v49 = vmax.f32 %v1741_v12, 0.0  ;;  %v1758_v5 = vmax.f32 %v1742_v11, 0.0  ;;  %v8691_v11 = vld [vmem:[#allocation2 + $0x410] ss:$8 sps:$4 sm:$0xff]  }
 0x5d1   :  { %v1775_v53 = vpack.c.bf16 %v1744_v2, %v1743_v29  ;;  %v1776_v48 = vpack.c.bf16 %v1746_v8, %v1745_v21  ;;  %v1731_v62 = vadd.f32 %v8635_v17, %v1706_v61  ;;  %v1732_v18 = vadd.f32 %v8635_v17, %v1707_v55  ;;  %v7498_v21 = vld [vmem:[#allocation2 + $0x400] ss:$8 sps:$4 sm:$0xff]   ;;  %6715 = vmatprep.subr.bf16.mxu0 %v8691_v11 }
 0x5d2   :  { %v1780_v6 = vpack.c.bf16 %v1754_v9, %v1753_v22  ;;  %v1782_v30 = vpack.c.bf16 %v1758_v5, %v1757_v49  ;;  %v1708_v29 = vmul.f32 %v8568_v20, %v8631_v31  ;;  %v1734_v60 = vadd.f32 %v8635_v17, %v1709_v25  ;;  %v7502_v8 = vld [vmem:[#allocation2 + $0x3e0] ss:$8 sps:$4 sm:$0xff]   ;;  %v7504_v49 = vld [vmem:[#allocation2 + $0x3d0] ss:$8 sps:$4 sm:$0xff]  }
 0x5d3   :  { %1896 = vmatmul.mubr.bf16.vlgmr.msra.gmra.mxu1 %v1775_v53  ;;  %v1747_v15 = vmax.f32 %v1731_v62, 0.0  ;;  %v1748_v14 = vmax.f32 %v1732_v18, 0.0  ;;  %v1710_v39 = vmul.f32 %v8631_v31, %v8593_v32  ;;  %v1711_v53 = vmul.f32 %v8631_v31, %v8603_v19  ;;  %v7505_v5 = vld [vmem:[#allocation2 + $0x350] ss:$8 sps:$4 sm:$0xff]   ;;  %v7506_v61 = vld [vmem:[#allocation2 + $0x3c0] ss:$8 sps:$4 sm:$0xff]  }
 0x5d4   :  { %1905 = vmatprep.mubr.bf16.mxu1 %v11846_v41  ;;  %v1733_v57 = vadd.f32 %v8635_v17, %v1708_v29  ;;  %v1750_v51 = vmax.f32 %v1734_v60, 0.0  ;;  %v1715_v32 = vmul.f32 %v8631_v31, %v8621_v34  ;;  %v1714_v19 = vmul.f32 %v8631_v31, %v8613_v63  ;;  %v7497_v34 = vld [vmem:[#allocation2 + $0x390] ss:$8 sps:$4 sm:$0xff]   ;;  %v7499_v63 = vld [vmem:[#allocation2 + $0x380] ss:$8 sps:$4 sm:$0xff]  }
 0x5d5   :  { %v1777_v2 = vpack.c.bf16 %v1748_v14, %v1747_v15  ;;  %v1735_v50 = vadd.f32 %v8635_v17, %v1710_v39  ;;  %v1736_v56 = vadd.f32 %v8635_v17, %v1711_v53  ;;  %6716 = vmatpush3.bf16.msra.mxu0 %v7497_v34  ;;  %v7500_v31 = vld [vmem:[#allocation2 + $0x3f0] ss:$8 sps:$4 sm:$0xff]   ;;  %v7510_v14 = vld [vmem:[#allocation2 + $0x3a0] ss:$8 sps:$4 sm:$0xff]  }
 0x5d6   :  { %v1749_v40 = vmax.f32 %v1733_v57, 0.0  ;;  %v1739_v13 = vadd.f32 %v8635_v17, %v1714_v19  ;;  %v1740_v1 = vadd.f32 %v8635_v17, %v1715_v32  ;;  %6717 = vmatprep.subr.bf16.mxu0 %v7498_v21  ;;  %v7501_v17 = vld [vmem:[#allocation2 + $0x370] ss:$8 sps:$4 sm:$0xff]  }
 0x5d7   :  { %v1751_v16 = vmax.f32 %v1735_v50, 0.0  ;;  %v1752_v28 = vmax.f32 %v1736_v56, 0.0  ;;  %v7509_v15 = vld [vmem:[#allocation2 + $0x330] ss:$8 sps:$4 sm:$0xff]  }
 0x5d8   :  { %v1778_v20 = vpack.c.bf16 %v1750_v51, %v1749_v40  ;;  %v1755_v22 = vmax.f32 %v1739_v13, 0.0  ;;  %v1756_v9 = vmax.f32 %v1740_v1, 0.0 }
 0x5d9   :  { %v1779_v43 = vpack.c.bf16 %v1752_v28, %v1751_v16  ;;  %6718 = vmatpush3.bf16.msra.mxu0 %v7499_v63 }
 0x5da   :  { %v1781_v12 = vpack.c.bf16 %v1756_v9, %v1755_v22  ;;  %6719 = vmatprep.subr.bf16.mxu0 %v7500_v31 }
 0x5db   :  { %1906 = vmatmul.mubr.bf16.gmra.mxu1 %v1776_v48  ;;  %v7508_v48 = vld [vmem:[#allocation2 + $0x3b0] ss:$8 sps:$4 sm:$0xff]  }
 0x5dc   :  { %1915 = vmatprep.mubr.bf16.mxu1 %v11846_v41 }
 0x5dd   :  { %6720 = vmatpush3.bf16.msra.mxu0 %v7501_v17 }
 0x5de   :  { %6721 = vmatprep.subr.bf16.mxu0 %v7502_v8 }
 0x5e3   :  { %1916 = vmatmul.mubr.bf16.gmra.mxu1 %v1777_v2  ;;  %v7511_v2 = vld [vmem:[#allocation2 + $0x320] ss:$8 sps:$4 sm:$0xff]  }
 0x5e4   :  { %1925 = vmatprep.mubr.bf16.mxu1 %v11846_v41 }
 0x5eb   :  { %1926 = vmatmul.mubr.bf16.gmra.mxu1 %v1778_v20 }
 0x5ec   :  { %1935 = vmatprep.mubr.bf16.mxu1 %v11846_v41 }
 0x5f3   :  { %1936 = vmatmul.mubr.bf16.gmra.mxu1 %v1779_v43 }
 0x5f4   :  { %1945 = vmatprep.mubr.bf16.mxu1 %v11846_v41 }
 0x5fb   :  { %1946 = vmatmul.mubr.bf16.gmra.mxu1 %v1780_v6  ;;  %v7503_v6 = vld [vmem:[#allocation2 + $0x360] ss:$8 sps:$4 sm:$0xff]  }
 0x5fc   :  { %1955 = vmatprep.mubr.bf16.mxu1 %v11846_v41  ;;  %6722 = vmatpush3.bf16.msra.mxu0 %v7503_v6 }
 0x5fd   :  { %6723 = vmatprep.subr.bf16.mxu0 %v7504_v49 }
 0x600   :  { %6724 = vmatpush3.bf16.msra.mxu0 %v7505_v5 }
 0x601   :  { %6725 = vmatprep.subr.bf16.mxu0 %v7506_v61 }
 0x603   :  { %1956 = vmatmul.mubr.bf16.gmra.mxu1 %v1781_v12 }
 0x604   :  { %1965 = vmatprep.mubr.bf16.mxu1 %v11846_v41 }
 0x60b   :  { %1966 = vmatmul.mubr.bf16.gmra.mxu1 %v1782_v30  ;;  %v7507_v30 = vld [vmem:[#allocation2 + $0x340] ss:$8 sps:$4 sm:$0xff]  }
 0x60c   :  { %6726 = vmatpush3.bf16.msra.mxu0 %v7507_v30 }
 0x60d   :  { %6727 = vmatprep.subr.bf16.mxu0 %v7508_v48 }
 0x610   :  { %6728 = vmatpush3.bf16.msra.mxu0 %v7509_v15 }
 0x611   :  { %6729 = vmatprep.subr.bf16.mxu0 %v7510_v14 }
 0x614   :  { %6730 = vmatpush3.bf16.msra.mxu0 %v7511_v2 }
 0x615   :  { %7199 = vmatprep.subr.bf16.mxu0 %v8360_v59 }
 0x693   :  { %v8694_v55 = vpop.f32.mrf.mxu1 }
 0x694   :  { %v2018_v19 = vmul.f32 %v8694_v55, %v8694_v55 }
 0x695   :  { %v8696_v62 = vpop.f32.mrf.mxu1 }
 0x696   :  { %v2019_v22 = vmul.f32 %v8696_v62, %v8696_v62 }
 0x697   :  { %v8698_v18 = vpop.f32.mrf.mxu1 }
 0x698   :  { %v2020_v59 = vmul.f32 %v8698_v18, %v8698_v18  ;;  %v1976_v13 = vadd.f32 %v8698_v18, %v8694_v55 }
 0x699   :  { %v8700_v29 = vpop.f32.mrf.mxu1 }
 0x69a   :  { %v2021_v43 = vmul.f32 %v8700_v29, %v8700_v29  ;;  %v2050_v34 = vadd.f32 %v2020_v59, %v2018_v19  ;;  %v1997_v63 = vadd.f32 %v8700_v29, %v8696_v62 }
 0x69b   :  { %v8702_v25 = vpop.f32.mrf.mxu1 }
 0x69c   :  { %v2022_v1 = vmul.f32 %v8702_v25, %v8702_v25  ;;  %v1977_v21 = vadd.f32 %v1976_v13, %v8702_v25  ;;  %v2071_v17 = vadd.f32 %v2021_v43, %v2019_v22 }
 0x69d   :  { %v8704_v57 = vpop.f32.mrf.mxu1 }
 0x69e   :  { %v2023_v9 = vmul.f32 %v8704_v57, %v8704_v57  ;;  %v2051_v49 = vadd.f32 %v2050_v34, %v2022_v1  ;;  %v1998_v5 = vadd.f32 %v1997_v63, %v8704_v57 }
 0x69f   :  { %v8706_v60 = vpop.f32.mrf.mxu1 }
 0x6a0   :  { %v2024_v31 = vmul.f32 %v8706_v60, %v8706_v60  ;;  %v1978_v61 = vadd.f32 %v1977_v21, %v8706_v60  ;;  %v2072_v48 = vadd.f32 %v2071_v17, %v2023_v9 }
 0x6a1   :  { %v8709_v40 = vpop.f32.mrf.mxu1 }
 0x6a2   :  { %v2025_v8 = vmul.f32 %v8709_v40, %v8709_v40  ;;  %v2052_v2 = vadd.f32 %v2051_v49, %v2024_v31  ;;  %v1999_v43 = vadd.f32 %v1998_v5, %v8709_v40 }
 0x6a3   :  { %v8711_v51 = vpop.f32.mrf.mxu1 }
 0x6a4   :  { %v2026_v30 = vmul.f32 %v8711_v51, %v8711_v51  ;;  %v1979_v59 = vadd.f32 %v1978_v61, %v8711_v51  ;;  %v2073_v13 = vadd.f32 %v2072_v48, %v2025_v8 }
 0x6a5   :  { %v8713_v39 = vpop.f32.mrf.mxu1 }
 0x6a6   :  { %v2027_v15 = vmul.f32 %v8713_v39, %v8713_v39  ;;  %v2053_v9 = vadd.f32 %v2052_v2, %v2026_v30  ;;  %v2000_v34 = vadd.f32 %v1999_v43, %v8713_v39 }
 0x6a7   :  { %v8715_v53 = vpop.f32.mrf.mxu1 }
 0x6a8   :  { %v2028_v19 = vmul.f32 %v8715_v53, %v8715_v53  ;;  %v1980_v21 = vadd.f32 %v1979_v59, %v8715_v53  ;;  %v2074_v31 = vadd.f32 %v2073_v13, %v2027_v15 }
 0x6a9   :  { %v8717_v20 = vpop.f32.mrf.mxu1 }
 0x6aa   :  { %v2029_v1 = vmul.f32 %v8717_v20, %v8717_v20  ;;  %v2054_v8 = vadd.f32 %v2053_v9, %v2028_v19  ;;  %v2001_v61 = vadd.f32 %v2000_v34, %v8717_v20 }
 0x6ab   :  { %v8719_v50 = vpop.f32.mrf.mxu1 }
 0x6ac   :  { %v2030_v63 = vmul.f32 %v8719_v50, %v8719_v50  ;;  %v1981_v5 = vadd.f32 %v1980_v21, %v8719_v50  ;;  %v2075_v48 = vadd.f32 %v2074_v31, %v2029_v1 }
 0x6ad   :  { %v8721_v56 = vpop.f32.mrf.mxu1 }
 0x6ae   :  { %v2031_v17 = vmul.f32 %v8721_v56, %v8721_v56  ;;  %v2055_v15 = vadd.f32 %v2054_v8, %v2030_v63  ;;  %v2002_v43 = vadd.f32 %v2001_v61, %v8721_v56 }
 0x6af   :  { %v8723_v16 = vpop.f32.mrf.mxu1 }
 0x6b0   :  { %v2032_v30 = vmul.f32 %v8723_v16, %v8723_v16  ;;  %v1982_v13 = vadd.f32 %v1981_v5, %v8723_v16  ;;  %v2076_v9 = vadd.f32 %v2075_v48, %v2031_v17 }
 0x6b1   :  { %v8725_v28 = vpop.f32.mrf.mxu1 }
 0x6b2   :  { %v2033_v2 = vmul.f32 %v8725_v28, %v8725_v28  ;;  %v2056_v1 = vadd.f32 %v2055_v15, %v2032_v30  ;;  %v2003_v26 = vadd.f32 %v2002_v43, %v8725_v28 }
 0x6b3   :  { %v8731_v32 = vpop.f32.mrf.mxu1 }
 0x6b4   :  { %v2034_v19 = vmul.f32 %v8731_v32, %v8731_v32  ;;  %v1983_v31 = vadd.f32 %v1982_v13, %v8731_v32  ;;  %v2077_v8 = vadd.f32 %v2076_v9, %v2033_v2 }
 0x6b5   :  { %v8743_v12 = vpop.f32.mrf.mxu1 }
 0x6b6   :  { %v2035_v34 = vmul.f32 %v8743_v12, %v8743_v12  ;;  %v2057_v17 = vadd.f32 %v2056_v1, %v2034_v19  ;;  %v2004_v48 = vadd.f32 %v2003_v26, %v8743_v12 }
 0x6b7   :  { %v8752_v6 = vpop.f32.mrf.mxu1 }
 0x6b8   :  { %v2036_v63 = vmul.f32 %v8752_v6, %v8752_v6  ;;  %v1984_v45 = vadd.f32 %v1983_v31, %v8752_v6  ;;  %v2078_v15 = vadd.f32 %v2077_v8, %v2035_v34 }
 0x6b9   :  { %v8760_v14 = vpop.f32.mrf.mxu1 }
 0x6ba   :  { %v2037_v5 = vmul.f32 %v8760_v14, %v8760_v14  ;;  %v2058_v2 = vadd.f32 %v2057_v17, %v2036_v63  ;;  %v2005_v58 = vadd.f32 %v2004_v48, %v8760_v14 }
 0x6bb   :  { %v8768_v22 = vpop.f32.mrf.mxu1 }
 0x6bc   :  { %v2038_v30 = vmul.f32 %v8768_v22, %v8768_v22  ;;  %v1985_v9 = vadd.f32 %v1984_v45, %v8768_v22  ;;  %v2079_v26 = vadd.f32 %v2078_v15, %v2037_v5 }
 0x6bd   :  { %v8776_v49 = vpop.f32.mrf.mxu1 }
 0x6be   :  { %v2039_v43 = vmul.f32 %v8776_v49, %v8776_v49  ;;  %v2059_v34 = vadd.f32 %v2058_v2, %v2038_v30  ;;  %v2006_v8 = vadd.f32 %v2005_v58, %v8776_v49 }
 0x6bf   :  { %v8784_v59 = vpop.f32.mrf.mxu1 }
 0x6c0   :  { %v2040_v19 = vmul.f32 %v8784_v59, %v8784_v59  ;;  %v1986_v42 = vadd.f32 %v1985_v9, %v8784_v59  ;;  %v2080_v45 = vadd.f32 %v2079_v26, %v2039_v43 }
 0x6c1   :  { %v8792_v21 = vpop.f32.mrf.mxu1 }
 0x6c2   :  { %v2041_v1 = vmul.f32 %v8792_v21, %v8792_v21  ;;  %v2060_v5 = vadd.f32 %v2059_v34, %v2040_v19  ;;  %v2007_v36 = vadd.f32 %v2006_v8, %v8792_v21 }
 0x6c3   :  { %v8800_v61 = vpop.f32.mrf.mxu1 }
 0x6c4   :  { %v2042_v63 = vmul.f32 %v8800_v61, %v8800_v61  ;;  %v1987_v15 = vadd.f32 %v1986_v42, %v8800_v61  ;;  %v2081_v58 = vadd.f32 %v2080_v45, %v2041_v1 }
 0x6c5   :  { %v8808_v13 = vpop.f32.mrf.mxu1 }
 0x6c6   :  { %v2043_v17 = vmul.f32 %v8808_v13, %v8808_v13  ;;  %v2061_v43 = vadd.f32 %v2060_v5, %v2042_v63  ;;  %v2008_v26 = vadd.f32 %v2007_v36, %v8808_v13 }
 0x6c7   :  { %v8816_v31 = vpop.f32.mrf.mxu1 }
 0x6c8   :  { %v2044_v30 = vmul.f32 %v8816_v31, %v8816_v31  ;;  %v1988_v52 = vadd.f32 %v1987_v15, %v8816_v31  ;;  %v2082_v42 = vadd.f32 %v2081_v58, %v2043_v17 }
 0x6c9   :  { %v8824_v48 = vpop.f32.mrf.mxu1 }
 0x6ca   :  { %v2045_v2 = vmul.f32 %v8824_v48, %v8824_v48  ;;  %v2062_v8 = vadd.f32 %v2061_v43, %v2044_v30  ;;  %v2009_v1 = vadd.f32 %v2008_v26, %v8824_v48 }
 0x6cb   :  { %v8832_v9 = vpop.f32.mrf.mxu1 }
 0x6cc   :  { %v2046_v19 = vmul.f32 %v8832_v9, %v8832_v9  ;;  %v1989_v37 = vadd.f32 %v1988_v52, %v8832_v9  ;;  %v2083_v46 = vadd.f32 %v2082_v42, %v2045_v2 }
 0x6cd   :  { %v8838_v34 = vpop.f32.mrf.mxu1 }
 0x6ce   :  { %v2047_v45 = vmul.f32 %v8838_v34, %v8838_v34  ;;  %v2063_v36 = vadd.f32 %v2062_v8, %v2046_v19  ;;  %v2010_v5 = vadd.f32 %v2009_v1, %v8838_v34 }
 0x6cf   :  { %v8844_v63 = vpop.f32.mrf.mxu1 }
 0x6d0   :  { %v1990_v15 = vadd.f32 %v1989_v37, %v8844_v63  ;;  %v2048_v17 = vmul.f32 %v8844_v63, %v8844_v63  ;;  %v2084_v58 = vadd.f32 %v2083_v46, %v2047_v45 }
 0x6d1   :  { %v8850_v30 = vpop.f32.mrf.mxu1 }
 0x6d2   :  { %v1991_v52 = vrot.slane %v1990_v15, 4  ;;  %v2064_v43 = vadd.f32 %v2063_v36, %v2048_v17  ;;  %v2011_v26 = vadd.f32 %v2010_v5, %v8850_v30  ;;  %v2049_v2 = vmul.f32 %v8850_v30, %v8850_v30 }
 0x6d4   :  { %v1992_v42 = vadd.f32 %v1991_v52, %v1990_v15  ;;  %v2065_v23 = vrot.slane %v2064_v43, 4  ;;  %v2012_v19 = vrot.slane %v2011_v26, 4  ;;  %v2085_v8 = vadd.f32 %v2084_v58, %v2049_v2 }
 0x6d6   :  { %v1993_v1 = vrot.slane %v1992_v42, 2  ;;  %v2066_v3 = vadd.f32 %v2065_v23, %v2064_v43  ;;  %v2013_v37 = vadd.f32 %v2012_v19, %v2011_v26  ;;  %v2086_v54 = vrot.slane %v2085_v8, 4 }
 0x6d8   :  { %v1994_v33 = vadd.f32 %v1993_v1, %v1992_v42  ;;  %v2067_v27 = vrot.slane %v2066_v3, 2  ;;  %v2014_v46 = vrot.slane %v2013_v37, 2  ;;  %v2087_v45 = vadd.f32 %v2086_v54, %v2085_v8 }
 0x6da   :  { %v1995_v24 = vrot.slane %v1994_v33, 1  ;;  %v2068_v47 = vadd.f32 %v2067_v27, %v2066_v3  ;;  %v2015_v36 = vadd.f32 %v2014_v46, %v2013_v37  ;;  %v2088_v17 = vrot.slane %v2087_v45, 2  ;;  %v11864_v37 = vld [vmem:[#allocation11_spill] sm:$0xff] }
 0x6dc   :  { %v1996_v5 = vadd.f32 %v1995_v24, %v1994_v33  ;;  %v2069_v35 = vrot.slane %v2068_v47, 1  ;;  %v2016_v7 = vrot.slane %v2015_v36, 1  ;;  %v2089_v0 = vadd.f32 %v2088_v17, %v2087_v45 }
 0x6de   :  { %v2070_v15 = vadd.f32 %v2069_v35, %v2068_v47  ;;  %v2092_v52 = vmul.f32 0.0078125, %v1996_v5  ;;  %v2017_v10 = vadd.f32 %v2016_v7, %v2015_v36  ;;  %v2090_v58 = vrot.slane %v2089_v0, 1  ;;  %v33_v7 = vld [vmem:[%s11729_s2 + $0x18] sm:$0xff] }
 0x6e0   :  { %v2094_v2 = vmul.f32 0.0078125, %v2070_v15  ;;  %v2096_v23 = vmul.f32 %v2092_v52, %v2092_v52  ;;  %v2091_v43 = vadd.f32 %v2090_v58, %v2089_v0  ;;  %v2093_v26 = vmul.f32 0.0078125, %v2017_v10  ;;  %v11865_v58 = vld [vmem:[#allocation12_spill] sm:$0xff] }
 0x6e2   :  { %v2098_v42 = vsub.f32 %v2094_v2, %v2096_v23  ;;  %v2095_v19 = vmul.f32 0.0078125, %v2091_v43  ;;  %v2097_v1 = vmul.f32 %v2093_v26, %v2093_v26 }
 0x6e4   :  { %v2100_v54 = vmax.f32 %v2098_v42, 0.0  ;;  %v2099_v8 = vsub.f32 %v2095_v19, %v2097_v1 }
 0x6e6   :  { %v2102_v27 = vadd.f32 1e-05, %v2100_v54  ;;  %v2101_v3 = vmax.f32 %v2099_v8, 0.0 }
 0x6e8   :  { %7532 = vrsqrt.f32 %v2102_v27  ;;  %v2103_v24 = vadd.f32 1e-05, %v2101_v3 }
 0x6ea   :  { %7534 = vrsqrt.f32 %v2103_v24 }
 0x6f5   :  { %v7533_v33 = vpop.eup %7532 }
 0x6f6   :  { %v2106_v35 = vmul.f32 %v7533_v33, %v8453_v4 }
 0x6f7   :  { %v7535_v47 = vpop.eup %7534 }
 0x6f8   :  { %v2148_v0 = vmul.f32 %v2106_v35, %v2092_v52  ;;  %v2107_v10 = vmul.f32 %v7535_v47, %v33_v7  ;;  %v8860_v46 = vrot.slane %v2106_v35, %v11864_v37 }
 0x6fa   :  { %v2152_v45 = vrot.slane %v2148_v0, 7  ;;  %v2149_v36 = vmul.f32 %v2107_v10, %v2093_v26  ;;  %v8863_v17 = vrot.slane %v2107_v10, %v11864_v37  ;;  %v2116_v43 = vmul.f32 %v8860_v46, %v8694_v55 }
 0x6fb   :  { %v2118_v52 = vmul.f32 %v8860_v46, %v8698_v18 }
 0x6fc   :  { %v2156_v5 = vsub.f32 %v8453_v4, %v2152_v45  ;;  %v2153_v15 = vrot.slane %v2149_v36, 7  ;;  %v2117_v42 = vmul.f32 %v8863_v17, %v8696_v62  ;;  %v2119_v4 = vmul.f32 %v8863_v17, %v8700_v29 }
 0x6fd   :  { %v2121_v54 = vmul.f32 %v8863_v17, %v8704_v57  ;;  %v2123_v55 = vmul.f32 %v8863_v17, %v8709_v40  ;;  %v2120_v57 = vmul.f32 %v8860_v46, %v8702_v25  ;;  %v2122_v40 = vmul.f32 %v8860_v46, %v8706_v60  ;;  %v7571_v60 = vld [vmem:[#allocation2 + $0x290] ss:$8 sps:$4 sm:$0xff]  }
 0x6fe   :  { %v8867_v2 = vrot.slane %v2156_v5, %v11865_v58  ;;  %v2157_v23 = vsub.f32 %v33_v7, %v2153_v15  ;;  %v2125_v0 = vmul.f32 %v8863_v17, %v8713_v39  ;;  %v2127_v10 = vmul.f32 %v8863_v17, %v8717_v20 }
 0x700   :  { %v8876_v26 = vrot.slane %v2157_v23, %v11865_v58  ;;  %v2166_v19 = vadd.f32 %v8867_v2, %v2116_v43  ;;  %v2168_v1 = vadd.f32 %v8867_v2, %v2118_v52  ;;  %v2170_v36 = vadd.f32 %v8867_v2, %v2120_v57  ;;  %v7572_v52 = vld [vmem:[#allocation2 + $0x280] ss:$8 sps:$4 sm:$0xff]  }
 0x701   :  { %v2172_v5 = vadd.f32 %v8867_v2, %v2122_v40  ;;  %v2135_v57 = vmul.f32 %v8863_v17, %v8760_v14 }
 0x702   :  { %v2167_v18 = vadd.f32 %v8876_v26, %v2117_v42  ;;  %v2169_v62 = vadd.f32 %v8876_v26, %v2119_v4  ;;  %v2198_v8 = vmax.f32 %v2166_v19, 0.0  ;;  %v2200_v27 = vmax.f32 %v2168_v1, 0.0 }
 0x703   :  { %v2171_v3 = vadd.f32 %v8876_v26, %v2121_v54  ;;  %v2173_v29 = vadd.f32 %v8876_v26, %v2123_v55  ;;  %v2175_v23 = vadd.f32 %v8876_v26, %v2125_v0  ;;  %v2177_v25 = vadd.f32 %v8876_v26, %v2127_v10  ;;  %v7575_v10 = vld [vmem:[#allocation2 + $0x250] ss:$8 sps:$4 sm:$0xff]  }
 0x704   :  { %v2199_v24 = vmax.f32 %v2167_v18, 0.0  ;;  %v2201_v33 = vmax.f32 %v2169_v62, 0.0  ;;  %v2262_v45 = vpack.c.bf16 %v2200_v27, %v2198_v8  ;;  %v2202_v43 = vmax.f32 %v2170_v36, 0.0  ;;  %v7573_v8 = vld [vmem:[#allocation2 + $0x270] ss:$8 sps:$4 sm:$0xff]  }
 0x705   :  { %v2203_v7 = vmax.f32 %v2171_v3, 0.0  ;;  %v2205_v35 = vmax.f32 %v2173_v29, 0.0  ;;  %v2204_v39 = vmax.f32 %v2172_v5, 0.0  ;;  %v2207_v20 = vmax.f32 %v2175_v23, 0.0  ;;  %v7574_v29 = vld [vmem:[#allocation2 + $0x260] ss:$8 sps:$4 sm:$0xff]  }
 0x706   :  { %v2263_v47 = vpack.c.bf16 %v2201_v33, %v2199_v24  ;;  %v2209_v42 = vmax.f32 %v2177_v25, 0.0  ;;  %v2124_v4 = vmul.f32 %v8860_v46, %v8711_v51  ;;  %v2126_v19 = vmul.f32 %v8860_v46, %v8715_v53  ;;  %v7576_v5 = vld [vmem:[#allocation2 + $0x240] ss:$8 sps:$4 sm:$0xff]  }
 0x707   :  { %v2265_v15 = vpack.c.bf16 %v2205_v35, %v2203_v7  ;;  %v2129_v1 = vmul.f32 %v8863_v17, %v8721_v56  ;;  %v2131_v54 = vmul.f32 %v8863_v17, %v8725_v28  ;;  %v2264_v55 = vpack.c.bf16 %v2204_v39, %v2202_v43 }
 0x708   :  { %2406 = vmatprep.mubr.bf16.mxu0 %v2263_v47  ;;  %v2174_v18 = vadd.f32 %v8867_v2, %v2124_v4  ;;  %v2176_v62 = vadd.f32 %v8867_v2, %v2126_v19  ;;  %v2267_v27 = vpack.c.bf16 %v2209_v42, %v2207_v20  ;;  %v2128_v33 = vmul.f32 %v8860_v46, %v8719_v50  ;;  %v7577_v42 = vld [vmem:[#allocation2 + $0x230] ss:$8 sps:$4 sm:$0xff]  }
 0x709   :  { %2407 = vmatmul.mubr.bf16.vlgmr.msra.gmra.mxu0 %v2262_v45  ;;  %v2179_v51 = vadd.f32 %v8876_v26, %v2129_v1  ;;  %v2181_v3 = vadd.f32 %v8876_v26, %v2131_v54  ;;  %v2130_v7 = vmul.f32 %v8860_v46, %v8723_v16  ;;  %v2133_v35 = vmul.f32 %v8863_v17, %v8743_v12  ;;  %v7578_v1 = vld [vmem:[#allocation2 + $0x220] ss:$8 sps:$4 sm:$0xff]  }
 0x70a   :  { %2414 = vmatprep.mubr.bf16.mxu0 %v2265_v15  ;;  %7200 = vmatpush3.bf16.msra.mxu0 %v7571_v60  ;;  %v2206_v53 = vmax.f32 %v2174_v18, 0.0  ;;  %v2208_v56 = vmax.f32 %v2176_v62, 0.0  ;;  %v2178_v47 = vadd.f32 %v8867_v2, %v2128_v33  ;;  %v2185_v36 = vadd.f32 %v8876_v26, %v2135_v57 }
 0x70b   :  { %7201 = vmatprep.subr.bf16.mxu0 %v7572_v52  ;;  %v2211_v28 = vmax.f32 %v2179_v51, 0.0  ;;  %v2213_v24 = vmax.f32 %v2181_v3, 0.0  ;;  %v2180_v0 = vadd.f32 %v8867_v2, %v2130_v7  ;;  %v2183_v50 = vadd.f32 %v8876_v26, %v2133_v35 }
 0x70c   :  { %v2266_v40 = vpack.c.bf16 %v2208_v56, %v2206_v53  ;;  %v2210_v16 = vmax.f32 %v2178_v47, 0.0  ;;  %v2217_v15 = vmax.f32 %v2185_v36, 0.0  ;;  %v2132_v23 = vmul.f32 %v8860_v46, %v8731_v32 }
 0x70d   :  { %v2269_v45 = vpack.c.bf16 %v2213_v24, %v2211_v28  ;;  %v2212_v12 = vmax.f32 %v2180_v0, 0.0  ;;  %v2215_v14 = vmax.f32 %v2183_v50, 0.0  ;;  %v2134_v25 = vmul.f32 %v8860_v46, %v8752_v6 }
 0x70e   :  { %7202 = vmatpush3.bf16.msra.mxu0 %v7572_v52  ;;  %v2137_v60 = vmul.f32 %v8863_v17, %v8776_v49  ;;  %v2139_v43 = vmul.f32 %v8863_v17, %v8792_v21  ;;  %v2182_v52 = vadd.f32 %v8867_v2, %v2132_v23  ;;  %v2138_v18 = vmul.f32 %v8860_v46, %v8784_v59  ;;  %v7518_v23 = vld [vmem:[#allocation2 + $0x430] ss:$8 sps:$4 sm:$0xff]  }
 0x70f   :  { %7203 = vmatprep.subr.bf16.mxu0 %v7573_v8  ;;  %v2268_v39 = vpack.c.bf16 %v2212_v12, %v2210_v16  ;;  %v2184_v20 = vadd.f32 %v8867_v2, %v2134_v25  ;;  %v2271_v4 = vpack.c.bf16 %v2217_v15, %v2215_v14  ;;  %v2141_v62 = vmul.f32 %v8863_v17, %v8808_v13  ;;  %v8969_v14 = vld [vmem:[#allocation2 + $0x490] ss:$8 sps:$4 sm:$0xff]   ;;  %v7517_v15 = vld [vmem:[#allocation2 + $0x440] ss:$8 sps:$4 sm:$0xff]  }
 0x710   :  { %v2187_v32 = vadd.f32 %v8876_v26, %v2137_v60  ;;  %v2189_v19 = vadd.f32 %v8876_v26, %v2139_v43  ;;  %v2214_v6 = vmax.f32 %v2182_v52, 0.0  ;;  %v2188_v3 = vadd.f32 %v8867_v2, %v2138_v18  ;;  %7167 = vmatprep.subr.bf16.mxu1 %v8969_v14  ;;  %v7519_v43 = vld [vmem:[#allocation2 + $0x420] ss:$8 sps:$4 sm:$0xff]  }
 0x711   :  { %2415 = vmatmul.mubr.bf16.gmra.mxu0 %v2264_v55  ;;  %v2216_v49 = vmax.f32 %v2184_v20, 0.0  ;;  %v2136_v55 = vmul.f32 %v8860_v46, %v8768_v22  ;;  %v2191_v22 = vadd.f32 %v8876_v26, %v2141_v62  ;;  %v2142_v24 = vmul.f32 %v8860_v46, %v8816_v31  ;;  %7168 = vmatpush3.bf16.msra.mxu1 %v8969_v14 }
 0x712   :  { %2422 = vmatprep.mubr.bf16.mxu0 %v2267_v27  ;;  %7204 = vmatpush3.bf16.msra.mxu0 %v7573_v8  ;;  %v2219_v21 = vmax.f32 %v2187_v32, 0.0  ;;  %v2221_v54 = vmax.f32 %v2189_v19, 0.0  ;;  %v2143_v8 = vmul.f32 %v8863_v17, %v8824_v48  ;;  %v2220_v13 = vmax.f32 %v2188_v3, 0.0 }
 0x713   :  { %7205 = vmatprep.subr.bf16.mxu0 %v7574_v29  ;;  %v2270_v27 = vpack.c.bf16 %v2216_v49, %v2214_v6  ;;  %v2186_v51 = vadd.f32 %v8867_v2, %v2136_v55  ;;  %v2140_v48 = vmul.f32 %v8860_v46, %v8800_v61  ;;  %v2145_v33 = vmul.f32 %v8863_v17, %v8838_v34 }
 0x714   :  { %v2273_v53 = vpack.c.bf16 %v2221_v54, %v2219_v21  ;;  %v2193_v56 = vadd.f32 %v8876_v26, %v2143_v8  ;;  %v2192_v57 = vadd.f32 %v8867_v2, %v2142_v24  ;;  %v2144_v34 = vmul.f32 %v8860_v46, %v8832_v9  ;;  %v7514_v9 = vld [vmem:[#allocation2 + $0x470] ss:$8 sps:$4 sm:$0xff]  }
 0x715   :  { %v2218_v59 = vmax.f32 %v2186_v51, 0.0  ;;  %v2190_v35 = vadd.f32 %v8867_v2, %v2140_v48  ;;  %v2195_v47 = vadd.f32 %v8876_v26, %v2145_v33 }
 0x716   :  { %7206 = vmatpush3.bf16.msra.mxu0 %v7574_v29  ;;  %v2223_v29 = vmax.f32 %v2191_v22, 0.0  ;;  %v2225_v28 = vmax.f32 %v2193_v56, 0.0  ;;  %v2224_v31 = vmax.f32 %v2192_v57, 0.0  ;;  %v2194_v36 = vadd.f32 %v8867_v2, %v2144_v34 }
 0x717   :  { %7207 = vmatprep.subr.bf16.mxu0 %v7575_v10  ;;  %v2272_v7 = vpack.c.bf16 %v2220_v13, %v2218_v59  ;;  %v2222_v61 = vmax.f32 %v2190_v35, 0.0 }
 0x719   :  { %2423 = vmatmul.mubr.bf16.gmra.mxu0 %v2266_v40  ;;  %v2275_v40 = vpack.c.bf16 %v2225_v28, %v2223_v29  ;;  %v2274_v50 = vpack.c.bf16 %v2224_v31, %v2222_v61 }
 0x71a   :  { %2430 = vmatprep.mubr.bf16.mxu0 %v2269_v45  ;;  %7208 = vmatpush3.bf16.msra.mxu0 %v7575_v10  ;;  %v2227_v10 = vmax.f32 %v2195_v47, 0.0 }
 0x71b   :  { %7209 = vmatprep.subr.bf16.mxu0 %v7576_v5 }
 0x71e   :  { %7210 = vmatpush3.bf16.msra.mxu0 %v7576_v5 }
 0x71f   :  { %7211 = vmatprep.subr.bf16.mxu0 %v7577_v42 }
 0x721   :  { %2431 = vmatmul.mubr.bf16.gmra.mxu0 %v2268_v39 }
 0x722   :  { %2438 = vmatprep.mubr.bf16.mxu0 %v2271_v4  ;;  %7212 = vmatpush3.bf16.msra.mxu0 %v7577_v42  ;;  %v7579_v4 = vld [vmem:[#allocation2 + $0x314] ss:$8 sps:$4 sm:$0xff]  }
 0x723   :  { %7213 = vmatprep.subr.bf16.mxu0 %v7578_v1 }
 0x726   :  { %7214 = vmatpush3.bf16.msra.mxu0 %v7578_v1 }
 0x727   :  { %6811 = vmatprep.subr.bf16.mxu0 %v8691_v11  ;;  %v2147_v11 = vmul.f32 %v8863_v17, %v8850_v30  ;;  %v2146_v30 = vmul.f32 %v8860_v46, %v8844_v63  ;;  %v7513_v63 = vld [vmem:[#allocation2 + $0x480] ss:$8 sps:$4 sm:$0xff]  }
 0x728   :  { %7169 = vmatprep.subr.bf16.mxu1 %v7513_v63  ;;  %v7515_v46 = vld [vmem:[#allocation2 + $0x460] ss:$8 sps:$4 sm:$0xff]  }
 0x729   :  { %2439 = vmatmul.mubr.bf16.gmra.mxu0 %v2270_v27  ;;  %v2197_v0 = vadd.f32 %v8876_v26, %v2147_v11  ;;  %v2196_v17 = vadd.f32 %v8867_v2, %v2146_v30  ;;  %v2226_v26 = vmax.f32 %v2194_v36, 0.0  ;;  %7170 = vmatpush3.bf16.msra.mxu1 %v7513_v63  ;;  %v7516_v2 = vld [vmem:[#allocation2 + $0x450] ss:$8 sps:$4 sm:$0xff]  }
 0x72a   :  { %2446 = vmatprep.mubr.bf16.mxu0 %v2273_v53  ;;  %7171 = vmatprep.subr.bf16.mxu1 %v7514_v9 }
 0x72b   :  { %v2229_v45 = vmax.f32 %v2197_v0, 0.0  ;;  %v2228_v12 = vmax.f32 %v2196_v17, 0.0 }
 0x72d   :  { %v2277_v16 = vpack.c.bf16 %v2229_v45, %v2227_v10  ;;  %v2276_v5 = vpack.c.bf16 %v2228_v12, %v2226_v26  ;;  %7172 = vmatpush3.bf16.msra.mxu1 %v7514_v9 }
 0x72e   :  { %7173 = vmatprep.subr.bf16.mxu1 %v7515_v46 }
 0x731   :  { %2447 = vmatmul.mubr.bf16.gmra.mxu0 %v2272_v7  ;;  %7174 = vmatpush3.bf16.msra.mxu1 %v7515_v46 }
 0x732   :  { %2454 = vmatprep.mubr.bf16.mxu0 %v2275_v40  ;;  %7175 = vmatprep.subr.bf16.mxu1 %v7516_v2 }
 0x735   :  { %7176 = vmatpush3.bf16.msra.mxu1 %v7516_v2 }
 0x736   :  { %7177 = vmatprep.subr.bf16.mxu1 %v7517_v15 }
 0x739   :  { %2455 = vmatmul.mubr.bf16.gmra.mxu0 %v2274_v50  ;;  %7178 = vmatpush3.bf16.msra.mxu1 %v7517_v15 }
 0x73a   :  { %2462 = vmatprep.mubr.bf16.mxu0 %v2277_v16  ;;  %7179 = vmatprep.subr.bf16.mxu1 %v7518_v23 }
 0x73d   :  { %7180 = vmatpush3.bf16.msra.mxu1 %v7518_v23 }
 0x73e   :  { %7181 = vmatprep.subr.bf16.mxu1 %v7519_v43 }
 0x741   :  { %2463 = vmatmul.mubr.bf16.gmra.mxu0 %v2276_v5  ;;  %7182 = vmatpush3.bf16.msra.mxu1 %v7519_v43 }
 0x742   :  { %3202 = vmatprep.subr.bf16.mxu1 %v7579_v4 }
 0x7c9   :  { %v6731_v25 = vpop.f32.mrf.mxu0 }
 0x7cb   :  { %v6732_v60 = vpop.f32.mrf.mxu0 }
 0x7cc   :  { %v8975_v51 = vadd.f32 %v6732_v60, %v6731_v25 }
 0x7cd   :  { %v6734_v39 = vpop.f32.mrf.mxu0 }
 0x7ce   :  { %v2492_v13 = vmul.f32 %v8975_v51, %v8975_v51 }
 0x7cf   :  { %v6735_v52 = vpop.f32.mrf.mxu0 }
 0x7d0   :  { %v8973_v8 = vadd.f32 %v6735_v52, %v6734_v39 }
 0x7d1   :  { %v6737_v20 = vpop.f32.mrf.mxu0 }
 0x7d2   :  { %v2493_v22 = vmul.f32 %v8973_v8, %v8973_v8  ;;  %v2471_v29 = vadd.f32 %v8973_v8, %v8975_v51 }
 0x7d3   :  { %v6738_v42 = vpop.f32.mrf.mxu0 }
 0x7d4   :  { %v8977_v3 = vadd.f32 %v6738_v42, %v6737_v20  ;;  %v2508_v11 = vadd.f32 %v2493_v22, %v2492_v13 }
 0x7d5   :  { %v6740_v32 = vpop.f32.mrf.mxu0 }
 0x7d6   :  { %v2494_v28 = vmul.f32 %v8977_v3, %v8977_v3  ;;  %v2472_v33 = vadd.f32 %v8977_v3, %v2471_v29 }
 0x7d7   :  { %v6741_v19 = vpop.f32.mrf.mxu0 }
 0x7d8   :  { %v8981_v56 = vadd.f32 %v6741_v19, %v6740_v32  ;;  %v2509_v40 = vadd.f32 %v2508_v11, %v2494_v28 }
 0x7d9   :  { %v6743_v6 = vpop.f32.mrf.mxu0 }
 0x7da   :  { %v2495_v7 = vmul.f32 %v8981_v56, %v8981_v56  ;;  %v2473_v47 = vadd.f32 %v8981_v56, %v2472_v33 }
 0x7db   :  { %v6744_v49 = vpop.f32.mrf.mxu0 }
 0x7dc   :  { %v8989_v48 = vadd.f32 %v6744_v49, %v6743_v6  ;;  %v2510_v10 = vadd.f32 %v2509_v40, %v2495_v7 }
 0x7dd   :  { %v6746_v1 = vpop.f32.mrf.mxu0 }
 0x7de   :  { %v2496_v0 = vmul.f32 %v8989_v48, %v8989_v48  ;;  %v2474_v45 = vadd.f32 %v8989_v48, %v2473_v47 }
 0x7df   :  { %v6747_v21 = vpop.f32.mrf.mxu0 }
 0x7e0   :  { %v8994_v35 = vadd.f32 %v6747_v21, %v6746_v1  ;;  %v2511_v50 = vadd.f32 %v2510_v10, %v2496_v0 }
 0x7e1   :  { %v6749_v54 = vpop.f32.mrf.mxu0 }
 0x7e2   :  { %v2497_v30 = vmul.f32 %v8994_v35, %v8994_v35  ;;  %v2475_v36 = vadd.f32 %v8994_v35, %v2474_v45 }
 0x7e3   :  { %v6750_v55 = vpop.f32.mrf.mxu0 }
 0x7e4   :  { %v8999_v61 = vadd.f32 %v6750_v55, %v6749_v54  ;;  %v2512_v5 = vadd.f32 %v2511_v50, %v2497_v30 }
 0x7e5   :  { %v6752_v18 = vpop.f32.mrf.mxu0 }
 0x7e6   :  { %v2498_v16 = vmul.f32 %v8999_v61, %v8999_v61  ;;  %v2476_v63 = vadd.f32 %v8999_v61, %v2475_v36 }
 0x7e7   :  { %v6753_v62 = vpop.f32.mrf.mxu0 }
 0x7e8   :  { %v9004_v34 = vadd.f32 %v6753_v62, %v6752_v18  ;;  %v2513_v15 = vadd.f32 %v2512_v5, %v2498_v16 }
 0x7e9   :  { %v6755_v27 = vpop.f32.mrf.mxu0 }
 0x7ea   :  { %v2499_v9 = vmul.f32 %v9004_v34, %v9004_v34  ;;  %v2477_v23 = vadd.f32 %v9004_v34, %v2476_v63 }
 0x7eb   :  { %v6756_v53 = vpop.f32.mrf.mxu0 }
 0x7ec   :  { %v9009_v26 = vadd.f32 %v6756_v53, %v6755_v27  ;;  %v2514_v39 = vadd.f32 %v2513_v15, %v2499_v9 }
 0x7ed   :  { %v6758_v59 = vpop.f32.mrf.mxu0 }
 0x7ee   :  { %v2500_v25 = vmul.f32 %v9009_v26, %v9009_v26  ;;  %v2478_v52 = vadd.f32 %v9009_v26, %v2477_v23 }
 0x7ef   :  { %v6759_v24 = vpop.f32.mrf.mxu0 }
 0x7f0   :  { %v9014_v46 = vadd.f32 %v6759_v24, %v6758_v59  ;;  %v2515_v32 = vadd.f32 %v2514_v39, %v2500_v25 }
 0x7f1   :  { %v6761_v57 = vpop.f32.mrf.mxu0 }
 0x7f2   :  { %v2501_v20 = vmul.f32 %v9014_v46, %v9014_v46  ;;  %v2479_v19 = vadd.f32 %v9014_v46, %v2478_v52 }
 0x7f3   :  { %v6762_v31 = vpop.f32.mrf.mxu0 }
 0x7f4   :  { %v9019_v60 = vadd.f32 %v6762_v31, %v6761_v57  ;;  %v2516_v21 = vadd.f32 %v2515_v32, %v2501_v20 }
 0x7f5   :  { %v6764_v17 = vpop.f32.mrf.mxu0 }
 0x7f6   :  { %v2502_v6 = vmul.f32 %v9019_v60, %v9019_v60  ;;  %v2480_v54 = vadd.f32 %v9019_v60, %v2479_v19 }
 0x7f7   :  { %v6765_v12 = vpop.f32.mrf.mxu0 }
 0x7f8   :  { %v9024_v42 = vadd.f32 %v6765_v12, %v6764_v17  ;;  %v2517_v27 = vadd.f32 %v2516_v21, %v2502_v6 }
 0x7f9   :  { %v6767_v2 = vpop.f32.mrf.mxu0 }
 0x7fa   :  { %v2503_v55 = vmul.f32 %v9024_v42, %v9024_v42  ;;  %v2481_v53 = vadd.f32 %v9024_v42, %v2480_v54 }
 0x7fb   :  { %v6768_v43 = vpop.f32.mrf.mxu0 }
 0x7fc   :  { %v9029_v49 = vadd.f32 %v6768_v43, %v6767_v2  ;;  %v2518_v13 = vadd.f32 %v2517_v27, %v2503_v55 }
 0x7fd   :  { %v6770_v4 = vpop.f32.mrf.mxu0 }
 0x7fe   :  { %v2504_v22 = vmul.f32 %v9029_v49, %v9029_v49  ;;  %v2482_v29 = vadd.f32 %v9029_v49, %v2481_v53 }
 0x7ff   :  { %v6771_v1 = vpop.f32.mrf.mxu0 }
 0x800   :  { %v9034_v18 = vadd.f32 %v6771_v1, %v6770_v4  ;;  %v2519_v33 = vadd.f32 %v2518_v13, %v2504_v22  ;;  %v9051_v1 = vld [vmem:[%s11729_s2 + $0x10] sm:$0xff] }
 0x801   :  { %v6773_v62 = vpop.f32.mrf.mxu0 }
 0x802   :  { %v2505_v28 = vmul.f32 %v9034_v18, %v9034_v18  ;;  %v2483_v7 = vadd.f32 %v9034_v18, %v2482_v29 }
 0x803   :  { %v6774_v59 = vpop.f32.mrf.mxu0 }
 0x804   :  { %v9042_v24 = vadd.f32 %v6774_v59, %v6773_v62  ;;  %v2520_v47 = vadd.f32 %v2519_v33, %v2505_v28 }
 0x805   :  { %v6776_v11 = vpop.f32.mrf.mxu0 }
 0x806   :  { %v2506_v57 = vmul.f32 %v9042_v24, %v9042_v24  ;;  %v2484_v0 = vadd.f32 %v9042_v24, %v2483_v7 }
 0x807   :  { %v6777_v40 = vpop.f32.mrf.mxu0 }
 0x808   :  { %v6778_v31 = vadd.f32 %v6777_v40, %v6776_v11  ;;  %v2521_v10 = vadd.f32 %v2520_v47, %v2506_v57 }
 0x80a   :  { %v2485_v45 = vadd.f32 %v6778_v31, %v2484_v0  ;;  %v2507_v30 = vmul.f32 %v6778_v31, %v6778_v31 }
 0x80c   :  { %v2486_v17 = vrot.slane %v2485_v45, 4  ;;  %v2522_v50 = vadd.f32 %v2521_v10, %v2507_v30 }
 0x80e   :  { %v2487_v36 = vadd.f32 %v2486_v17, %v2485_v45  ;;  %v2523_v16 = vrot.slane %v2522_v50, 4 }
 0x810   :  { %v2488_v12 = vrot.slane %v2487_v36, 2  ;;  %v2524_v5 = vadd.f32 %v2523_v16, %v2522_v50 }
 0x812   :  { %v2489_v63 = vadd.f32 %v2488_v12, %v2487_v36  ;;  %v2525_v9 = vrot.slane %v2524_v5, 2 }
 0x814   :  { %v2490_v2 = vrot.slane %v2489_v63, 1  ;;  %v2526_v15 = vadd.f32 %v2525_v9, %v2524_v5 }
 0x816   :  { %v2491_v23 = vadd.f32 %v2490_v2, %v2489_v63  ;;  %v2527_v25 = vrot.slane %v2526_v15, 1 }
 0x818   :  { %v2528_v43 = vadd.f32 %v2527_v25, %v2526_v15  ;;  %v2529_v39 = vmul.f32 0.0078125, %v2491_v23 }
 0x81a   :  { %v2530_v52 = vmul.f32 0.0078125, %v2528_v43  ;;  %v2531_v20 = vmul.f32 %v2529_v39, %v2529_v39 }
 0x81c   :  { %v2532_v4 = vsub.f32 %v2530_v52, %v2531_v20 }
 0x81e   :  { %v2533_v32 = vmax.f32 %v2532_v4, 0.0  ;;  %v7582_v4 = vld [vmem:[#allocation2 + $0x304] ss:$8 sps:$4 sm:$0xff]  }
 0x820   :  { %v2534_v19 = vadd.f32 1e-05, %v2533_v32 }
 0x822   :  { %7536 = vrsqrt.f32 %v2534_v19 }
 0x82f   :  { %v7537_v6 = vpop.eup %7536 }
 0x830   :  { %v2536_v21 = vmul.f32 %v9051_v1, %v7537_v6 }
 0x832   :  { %v2557_v54 = vmul.f32 %v2536_v21, %v2529_v39  ;;  %v2540_v55 = vrot.slane %v2536_v21, %v8245_v44  ;;  %v7581_v39 = vld [vmem:[#allocation2 + $0x310] ss:$8 sps:$4 sm:$0xff]  }
 0x834   :  { %v2559_v62 = vrot.slane %v2557_v54, 7  ;;  %v2541_v53 = vmul.f32 %v8975_v51, %v2540_v55  ;;  %v2542_v59 = vmul.f32 %v8973_v8, %v2540_v55  ;;  %v2543_v13 = vmul.f32 %v8977_v3, %v2540_v55 }
 0x835   :  { %v2544_v29 = vmul.f32 %v8981_v56, %v2540_v55  ;;  %v2556_v28 = vmul.f32 %v6778_v31, %v2540_v55  ;;  %v2545_v11 = vmul.f32 %v8989_v48, %v2540_v55  ;;  %v2546_v33 = vmul.f32 %v8994_v35, %v2540_v55 }
 0x836   :  { %v2561_v27 = vsub.f32 %v9051_v1, %v2559_v62  ;;  %v2547_v51 = vmul.f32 %v8999_v61, %v2540_v55  ;;  %v2548_v45 = vmul.f32 %v9004_v34, %v2540_v55  ;;  %v2549_v48 = vmul.f32 %v9009_v26, %v2540_v55  ;;  %v7583_v62 = vld [vmem:[#allocation2 + $0x300] ss:$8 sps:$4 sm:$0xff]  }
 0x837   :  { %v2550_v35 = vmul.f32 %v9014_v46, %v2540_v55  ;;  %v2553_v16 = vmul.f32 %v9029_v49, %v2540_v55  ;;  %v2554_v12 = vmul.f32 %v9034_v18, %v2540_v55  ;;  %v2555_v34 = vmul.f32 %v9042_v24, %v2540_v55 }
 0x838   :  { %v2565_v22 = vrot.slane %v2561_v27, %v8251_v38  ;;  %v2551_v6 = vmul.f32 %v9019_v60, %v2540_v55  ;;  %v2552_v21 = vmul.f32 %v9024_v42, %v2540_v55  ;;  %v7587_v60 = vld [vmem:[#allocation2 + $0x2e0] ss:$8 sps:$4 sm:$0xff]   ;;  %v7588_v55 = vld [vmem:[#allocation2 + $0x2d4] ss:$8 sps:$4 sm:$0xff]  }
 0x83a   :  { %v2566_v7 = vadd.f32 %v2565_v22, %v2541_v53  ;;  %v2567_v57 = vadd.f32 %v2565_v22, %v2542_v59  ;;  %v2568_v40 = vadd.f32 %v2565_v22, %v2543_v13  ;;  %v2569_v47 = vadd.f32 %v2565_v22, %v2544_v29  ;;  %v7584_v13 = vld [vmem:[#allocation2 + $0x2f4] ss:$8 sps:$4 sm:$0xff]  }
 0x83b   :  { %v2570_v0 = vadd.f32 %v2565_v22, %v2545_v11  ;;  %v2571_v10 = vadd.f32 %v2565_v22, %v2546_v33  ;;  %v2572_v5 = vadd.f32 %v2565_v22, %v2547_v51  ;;  %v2573_v61 = vadd.f32 %v2565_v22, %v2548_v45  ;;  %v7595_v51 = vld [vmem:[#allocation2 + $0x2a0] ss:$8 sps:$4 sm:$0xff]  }
 0x83c   :  { %v2582_v8 = vmax.f32 %v2566_v7, 0.0  ;;  %v2583_v30 = vmax.f32 %v2567_v57, 0.0  ;;  %v2584_v3 = vmax.f32 %v2568_v40, 0.0  ;;  %v2585_v17 = vmax.f32 %v2569_v47, 0.0  ;;  %v7586_v7 = vld [vmem:[#allocation2 + $0x2e4] ss:$8 sps:$4 sm:$0xff]  }
 0x83d   :  { %v2586_v56 = vmax.f32 %v2570_v0, 0.0  ;;  %v2587_v31 = vmax.f32 %v2571_v10, 0.0  ;;  %v2574_v63 = vadd.f32 %v2565_v22, %v2549_v48  ;;  %v2575_v2 = vadd.f32 %v2565_v22, %v2550_v35  ;;  %v7589_v57 = vld [vmem:[#allocation2 + $0x2d0] ss:$8 sps:$4 sm:$0xff]   ;;  %v7591_v40 = vld [vmem:[#allocation2 + $0x2c0] ss:$8 sps:$4 sm:$0xff]  }
 0x83e   :  { %v2614_v50 = vpack.c.bf16 %v2583_v30, %v2582_v8  ;;  %v2615_v36 = vpack.c.bf16 %v2585_v17, %v2584_v3  ;;  %v2578_v15 = vadd.f32 %v2565_v22, %v2553_v16  ;;  %v2579_v23 = vadd.f32 %v2565_v22, %v2554_v12  ;;  %v7592_v47 = vld [vmem:[#allocation2 + $0x2b4] ss:$8 sps:$4 sm:$0xff]   ;;  %v7593_v0 = vld [vmem:[#allocation2 + $0x2b0] ss:$8 sps:$4 sm:$0xff]   ;;  %v7594_v10 = vld [vmem:[#allocation2 + $0x2a4] ss:$8 sps:$4 sm:$0xff]  }
 0x83f   :  { %v2616_v9 = vpack.c.bf16 %v2587_v31, %v2586_v56  ;;  %v2580_v26 = vadd.f32 %v2565_v22, %v2555_v34  ;;  %v2581_v25 = vadd.f32 %v2565_v22, %v2556_v28  ;;  %v2588_v49 = vmax.f32 %v2572_v5, 0.0  ;;  %v7585_v28 = vld [vmem:[#allocation2 + $0x2f0] ss:$8 sps:$4 sm:$0xff]  }
 0x840   :  { %7183 = vmatprep.mubr.bf16.mxu1 %v2614_v50  ;;  %v2594_v46 = vmax.f32 %v2578_v15, 0.0  ;;  %v2595_v43 = vmax.f32 %v2579_v23, 0.0  ;;  %v2589_v18 = vmax.f32 %v2573_v61, 0.0  ;;  %v2590_v24 = vmax.f32 %v2574_v63, 0.0 }
 0x841   :  { %7184 = vmatmul.mubr.bf16.vlgmr.msra.gmra.mxu1 %v2615_v36  ;;  %v2596_v52 = vmax.f32 %v2580_v26, 0.0  ;;  %v2597_v20 = vmax.f32 %v2581_v25, 0.0  ;;  %v2591_v32 = vmax.f32 %v2575_v2, 0.0  ;;  %v2576_v53 = vadd.f32 %v2565_v22, %v2551_v6 }
 0x842   :  { %7187 = vmatprep.mubr.bf16.mxu1 %v2616_v9  ;;  %3203 = vmatpush1.bf16.msra.mxu1 %v7581_v39  ;;  %v2620_v19 = vpack.c.bf16 %v2595_v43, %v2594_v46  ;;  %v2617_v27 = vpack.c.bf16 %v2589_v18, %v2588_v49  ;;  %v2577_v59 = vadd.f32 %v2565_v22, %v2552_v21  ;;  %v7590_v22 = vld [vmem:[#allocation2 + $0x2c4] ss:$8 sps:$4 sm:$0xff]  }
 0x843   :  { %3204 = vmatprep.subr.bf16.mxu1 %v7582_v4  ;;  %v2621_v54 = vpack.c.bf16 %v2597_v20, %v2596_v52  ;;  %v2618_v29 = vpack.c.bf16 %v2591_v32, %v2590_v24  ;;  %v2592_v11 = vmax.f32 %v2576_v53, 0.0 }
 0x844   :  { %v2593_v33 = vmax.f32 %v2577_v59, 0.0 }
 0x846   :  { %3205 = vmatpush1.bf16.msra.mxu1 %v7583_v62  ;;  %v2619_v42 = vpack.c.bf16 %v2593_v33, %v2592_v11 }
 0x847   :  { %3206 = vmatprep.subr.bf16.mxu1 %v7584_v13 }
 0x849   :  { %7188 = vmatmul.mubr.bf16.gmra.mxu1 %v2617_v27 }
 0x84a   :  { %7191 = vmatprep.mubr.bf16.mxu1 %v2618_v29  ;;  %3207 = vmatpush1.bf16.msra.mxu1 %v7585_v28 }
 0x84b   :  { %3208 = vmatprep.subr.bf16.mxu1 %v7586_v7 }
 0x84e   :  { %3209 = vmatpush1.bf16.msra.mxu1 %v7587_v60 }
 0x84f   :  { %3210 = vmatprep.subr.bf16.mxu1 %v7588_v55 }
 0x851   :  { %7192 = vmatmul.mubr.bf16.gmra.mxu1 %v2619_v42 }
 0x852   :  { %7195 = vmatprep.mubr.bf16.mxu1 %v2620_v19  ;;  %3211 = vmatpush1.bf16.msra.mxu1 %v7589_v57 }
 0x853   :  { %3212 = vmatprep.subr.bf16.mxu1 %v7590_v22 }
 0x856   :  { %3213 = vmatpush1.bf16.msra.mxu1 %v7591_v40 }
 0x857   :  { %3214 = vmatprep.subr.bf16.mxu1 %v7592_v47 }
 0x859   :  { %7196 = vmatmul.mubr.bf16.gmra.mxu1 %v2621_v54 }
 0x85a   :  { %3215 = vmatpush1.bf16.msra.mxu1 %v7593_v0  ;;  %3234 = vmatprep.mubr.bf16.mxu1 %v11846_v41 }
 0x85b   :  { %3216 = vmatprep.subr.bf16.mxu1 %v7594_v10 }
 0x85e   :  { %3217 = vmatpush1.bf16.msra.mxu1 %v7595_v51 }
 0x85f   :  { %7231 = vmatprep.subr.bf16.mxu1 %v8969_v14 }
 0x901   :  { %v9074_v45 = vpop.f32.mrf.mxu1 }
 0x902   :  { %v2790_v14 = vmul.f32 %v9074_v45, %v9074_v45 }
 0x903   :  { %v9076_v8 = vpop.f32.mrf.mxu1 }
 0x904   :  { %v2788_v17 = vmul.f32 %v9076_v8, %v9076_v8 }
 0x905   :  { %v9078_v30 = vpop.f32.mrf.mxu1 }
 0x906   :  { %v2791_v16 = vmul.f32 %v9078_v30, %v9078_v30 }
 0x907   :  { %v9080_v3 = vpop.f32.mrf.mxu1 }
 0x908   :  { %v2767_v56 = vadd.f32 %v9080_v3, %v9076_v8  ;;  %v2789_v31 = vmul.f32 %v9080_v3, %v9080_v3 }
 0x909   :  { %v9088_v48 = vpop.f32.mrf.mxu1 }
 0x90a   :  { %v2804_v35 = vadd.f32 %v2789_v31, %v2788_v17  ;;  %v2768_v50 = vadd.f32 %v9074_v45, %v2767_v56  ;;  %v2794_v46 = vmul.f32 %v9088_v48, %v9088_v48 }
 0x90b   :  { %v9093_v36 = vpop.f32.mrf.mxu1 }
 0x90c   :  { %v2769_v12 = vadd.f32 %v9078_v30, %v2768_v50  ;;  %v2805_v5 = vadd.f32 %v2804_v35, %v2790_v14  ;;  %v2792_v34 = vmul.f32 %v9093_v36, %v9093_v36 }
 0x90d   :  { %v9098_v61 = vpop.f32.mrf.mxu1 }
 0x90e   :  { %v2770_v63 = vadd.f32 %v2769_v12, %v9093_v36  ;;  %v2806_v9 = vadd.f32 %v2805_v5, %v2791_v16  ;;  %v2795_v18 = vmul.f32 %v9098_v61, %v9098_v61 }
 0x90f   :  { %v9103_v2 = vpop.f32.mrf.mxu1 }
 0x910   :  { %v2807_v15 = vadd.f32 %v2806_v9, %v2792_v34  ;;  %v2771_v23 = vadd.f32 %v2770_v63, %v9103_v2  ;;  %v2793_v26 = vmul.f32 %v9103_v2, %v9103_v2 }
 0x911   :  { %v9108_v25 = vpop.f32.mrf.mxu1 }
 0x912   :  { %v2808_v43 = vadd.f32 %v2807_v15, %v2793_v26  ;;  %v2772_v39 = vadd.f32 %v9088_v48, %v2771_v23  ;;  %v2798_v53 = vmul.f32 %v9108_v25, %v9108_v25 }
 0x913   :  { %v9113_v49 = vpop.f32.mrf.mxu1 }
 0x914   :  { %v2773_v52 = vadd.f32 %v9098_v61, %v2772_v39  ;;  %v2809_v20 = vadd.f32 %v2808_v43, %v2794_v46  ;;  %v2796_v32 = vmul.f32 %v9113_v49, %v9113_v49 }
 0x915   :  { %v9118_v4 = vpop.f32.mrf.mxu1 }
 0x916   :  { %v2774_v24 = vadd.f32 %v2773_v52, %v9113_v49  ;;  %v2810_v19 = vadd.f32 %v2809_v20, %v2795_v18  ;;  %v2799_v28 = vmul.f32 %v9118_v4, %v9118_v4 }
 0x917   :  { %v9123_v6 = vpop.f32.mrf.mxu1 }
 0x918   :  { %v2811_v21 = vadd.f32 %v2810_v19, %v2796_v32  ;;  %v2775_v54 = vadd.f32 %v2774_v24, %v9123_v6  ;;  %v2797_v62 = vmul.f32 %v9123_v6, %v9123_v6 }
 0x919   :  { %v9128_v27 = vpop.f32.mrf.mxu1 }
 0x91a   :  { %v2812_v59 = vadd.f32 %v2811_v21, %v2797_v62  ;;  %v2776_v13 = vadd.f32 %v9108_v25, %v2775_v54  ;;  %v2802_v0 = vmul.f32 %v9128_v27, %v9128_v27  ;;  %v34_v54 = vld [vmem:[%s11729_s2 + $0x20] sm:$0xff] }
 0x91b   :  { %v9133_v29 = vpop.f32.mrf.mxu1  ;;  %v11866_v62 = vld [vmem:[#allocation15_spill] sm:$0xff] }
 0x91c   :  { %v2777_v11 = vadd.f32 %v9118_v4, %v2776_v13  ;;  %v2813_v33 = vadd.f32 %v2812_v59, %v2798_v53  ;;  %v2800_v42 = vmul.f32 %v9133_v29, %v9133_v29 }
 0x91d   :  { %v9138_v7 = vpop.f32.mrf.mxu1 }
 0x91e   :  { %v2778_v60 = vadd.f32 %v2777_v11, %v9133_v29  ;;  %v2814_v55 = vadd.f32 %v2813_v33, %v2799_v28  ;;  %v2803_v17 = vmul.f32 %v9138_v7, %v9138_v7  ;;  %v11867_v28 = vld [vmem:[#allocation8_spill] sm:$0xff] }
 0x91f   :  { %v9143_v57 = vpop.f32.mrf.mxu1 }
 0x920   :  { %v2815_v22 = vadd.f32 %v2814_v55, %v2800_v42  ;;  %v2779_v40 = vadd.f32 %v2778_v60, %v9143_v57  ;;  %v2801_v47 = vmul.f32 %v9143_v57, %v9143_v57 }
 0x922   :  { %v2780_v10 = vadd.f32 %v9128_v27, %v2779_v40  ;;  %v2816_v51 = vadd.f32 %v2815_v22, %v2801_v47  ;;  %v11868_v47 = vld [vmem:[#allocation9_spill] sm:$0xff] }
 0x924   :  { %v2781_v56 = vadd.f32 %v9138_v7, %v2780_v10  ;;  %v2817_v31 = vadd.f32 %v2816_v51, %v2802_v0  ;;  %v9177_v0 = vrot.slane %v34_v54, %v11868_v47 }
 0x926   :  { %v2782_v14 = vrot.slane %v2781_v56, 4  ;;  %v2818_v35 = vadd.f32 %v2817_v31, %v2803_v17  ;;  %11869 = vst [vmem:[#allocation11_spill] sm:$0xff] %v9177_v0 }
 0x928   :  { %v2783_v50 = vadd.f32 %v2782_v14, %v2781_v56  ;;  %v2819_v16 = vrot.slane %v2818_v35, 4 }
 0x92a   :  { %v2784_v12 = vrot.slane %v2783_v50, 2  ;;  %v2820_v5 = vadd.f32 %v2819_v16, %v2818_v35 }
 0x92c   :  { %v2785_v63 = vadd.f32 %v2784_v12, %v2783_v50  ;;  %v2821_v34 = vrot.slane %v2820_v5, 2  ;;  %v11870_v12 = vld [vmem:[#allocation18_spill] sm:$0xff] }
 0x92e   :  { %v2786_v9 = vrot.slane %v2785_v63, 1  ;;  %v2822_v15 = vadd.f32 %v2821_v34, %v2820_v5  ;;  %v11871_v5 = vmax.f32 %v11870_v12, 0.0  ;;  %v11873_v34 = vld [vmem:[#allocation19_spill] sm:$0xff] }
 0x930   :  { %v2787_v23 = vadd.f32 %v2786_v9, %v2785_v63  ;;  %v2823_v26 = vrot.slane %v2822_v15, 1  ;;  %v11874_v9 = vmax.f32 %v11873_v34, 0.0  ;;  %v11897_v34 = vld [vmem:[#allocation25_spill] sm:$0xff] }
 0x932   :  { %v2824_v46 = vadd.f32 %v2823_v26, %v2822_v15  ;;  %v2825_v43 = vmul.f32 0.0078125, %v2787_v23 }
 0x934   :  { %v2826_v39 = vmul.f32 0.0078125, %v2824_v46  ;;  %v2827_v18 = vmul.f32 %v2825_v43, %v2825_v43 }
 0x936   :  { %v2828_v52 = vsub.f32 %v2826_v39, %v2827_v18  ;;  %v11882_v18 = vld [vmem:[#allocation20_spill] sm:$0xff] }
 0x938   :  { %v2829_v20 = vmax.f32 %v2828_v52, 0.0  ;;  %v11883_v52 = vmax.f32 %v11882_v18, 0.0 }
 0x93a   :  { %v2830_v24 = vadd.f32 1e-05, %v2829_v20 }
 0x93c   :  { %7538 = vrsqrt.f32 %v2830_v24  ;;  %v11885_v24 = vld [vmem:[#allocation21_spill] sm:$0xff] }
 0x949   :  { %v7539_v32 = vpop.eup %7538 }
 0x94a   :  { %v2832_v19 = vmul.f32 %v9051_v1, %v7539_v32  ;;  %v11886_v32 = vmax.f32 %v11885_v24, 0.0 }
 0x94c   :  { %v2853_v21 = vmul.f32 %v2832_v19, %v2825_v43  ;;  %v9159_v53 = vrot.slane %v2832_v19, %v11866_v62 }
 0x94e   :  { %v2855_v59 = vrot.slane %v2853_v21, 7  ;;  %v2839_v33 = vmul.f32 %v9074_v45, %v9159_v53  ;;  %v2840_v60 = vmul.f32 %v9078_v30, %v9159_v53  ;;  %v2837_v42 = vmul.f32 %v9159_v53, %v9076_v8 }
 0x94f   :  { %v2838_v55 = vmul.f32 %v9159_v53, %v9080_v3  ;;  %v2841_v22 = vmul.f32 %v9159_v53, %v9093_v36  ;;  %v2842_v40 = vmul.f32 %v9159_v53, %v9103_v2  ;;  %v2843_v36 = vmul.f32 %v9088_v48, %v9159_v53  ;;  %v11876_v48 = vld [vmem:[#allocation16_spill] sm:$0xff] }
 0x950   :  { %v2857_v13 = vsub.f32 %v34_v54, %v2855_v59  ;;  %v2844_v31 = vmul.f32 %v9098_v61, %v9159_v53  ;;  %v11877_v23 = vmax.f32 %v11876_v48, 0.0  ;;  %v11879_v61 = vld [vmem:[#allocation17_spill] sm:$0xff] }
 0x951   :  { %v11880_v43 = vmax.f32 %v11879_v61, 0.0 }
 0x952   :  { %v9162_v11 = vrot.slane %v2857_v13, %v11867_v28 }
 0x954   :  { %v2864_v45 = vadd.f32 %v9162_v11, %v2839_v33  ;;  %v2865_v10 = vadd.f32 %v9162_v11, %v2840_v60  ;;  %v2862_v30 = vadd.f32 %v9162_v11, %v2837_v42  ;;  %v2863_v8 = vadd.f32 %v9162_v11, %v2838_v55 }
 0x955   :  { %v2866_v51 = vadd.f32 %v9162_v11, %v2841_v22  ;;  %v2867_v3 = vadd.f32 %v9162_v11, %v2842_v40  ;;  %v2868_v16 = vadd.f32 %v9162_v11, %v2843_v36  ;;  %v2869_v46 = vadd.f32 %v9162_v11, %v2844_v31  ;;  %v11891_v31 = vld [vmem:[#allocation23_spill] sm:$0xff] }
 0x956   :  { %v2880_v17 = vmax.f32 %v2864_v45, 0.0  ;;  %v2881_v2 = vmax.f32 %v2865_v10, 0.0  ;;  %v2878_v56 = vmax.f32 %v2862_v30, 0.0  ;;  %v2879_v14 = vmax.f32 %v2863_v8, 0.0  ;;  %v11888_v8 = vld [vmem:[#allocation22_spill] sm:$0xff] }
 0x957   :  { %v2882_v35 = vmax.f32 %v2866_v51, 0.0  ;;  %v2883_v50 = vmax.f32 %v2867_v3, 0.0  ;;  %v2884_v33 = vmax.f32 %v2868_v16, 0.0  ;;  %v2845_v60 = vmul.f32 %v9159_v53, %v9113_v49  ;;  %v11894_v16 = vld [vmem:[#allocation24_spill] sm:$0xff] }
 0x958   :  { %v9192_v63 = vadd.f32 %v2880_v17, %v11871_v5  ;;  %v9196_v15 = vadd.f32 %v2881_v2, %v11874_v9  ;;  %v9200_v26 = vadd.f32 %v2878_v56, %v11877_v23  ;;  %v9205_v39 = vadd.f32 %v2879_v14, %v11880_v43  ;;  %v7596_v56 = vld [vmem:[#allocation2 + $0x390] ss:$8 sps:$4 sm:$0xff]   ;;  %v7597_v23 = vld [vmem:[#allocation2 + $0x400] ss:$8 sps:$4 sm:$0xff]  }
 0x959   :  { %v9209_v20 = vadd.f32 %v2882_v35, %v11883_v52  ;;  %v9213_v19 = vadd.f32 %v2883_v50, %v11886_v32  ;;  %v2846_v42 = vmul.f32 %v9159_v53, %v9123_v6  ;;  %v2885_v55 = vmax.f32 %v2869_v46, 0.0  ;;  %v7598_v43 = vld [vmem:[#allocation2 + $0x380] ss:$8 sps:$4 sm:$0xff]  }
 0x95a   :  { %11872 = vst [vmem:[#allocation12_spill] sm:$0xff] %v9192_v63  ;;  %11875 = vst [vmem:[#allocation18_spill] sm:$0xff] %v9196_v15  ;;  %v2916_v21 = vmul.f32 %v9177_v0, %v9192_v63  ;;  %v2963_v54 = vpack.c.bf16 %v9196_v15, %v9192_v63  ;;  %v2914_v59 = vmul.f32 %v9177_v0, %v9200_v26  ;;  %v11889_v51 = vmax.f32 %v11888_v8, 0.0 }
 0x95b   :  { %11878 = vst [vmem:[#allocation19_spill] sm:$0xff] %v9200_v26  ;;  %11881 = vst [vmem:[#allocation16_spill] sm:$0xff] %v9205_v39  ;;  %v2962_v13 = vpack.c.bf16 %v9205_v39, %v9200_v26  ;;  %v2850_v22 = vmul.f32 %v9159_v53, %v9143_v57  ;;  %v2964_v40 = vpack.c.bf16 %v9213_v19, %v9209_v20  ;;  %v11892_v14 = vmax.f32 %v11891_v31, 0.0  ;;  %v7602_v31 = vld [vmem:[#allocation2 + $0x360] ss:$8 sps:$4 sm:$0xff]  }
 0x95c   :  { %11884 = vst [vmem:[#allocation17_spill] sm:$0xff] %v9209_v20  ;;  %11887 = vst [vmem:[#allocation20_spill] sm:$0xff] %v9213_v19  ;;  %2934 = vadd.xlane.f32.xlu1 %v2916_v21  ;;  %2930 = vadd.xlane.f32.xlu0 %v2914_v59  ;;  %v2870_v45 = vadd.f32 %v9162_v11, %v2845_v60  ;;  %v2871_v10 = vadd.f32 %v9162_v11, %v2846_v42  ;;  %v11895_v12 = vmax.f32 %v11894_v16, 0.0 }
 0x95d   :  { %7215 = vmatprep.mubr.bf16.mxu0 %v2962_v13  ;;  %v2917_v49 = vmul.f32 %v9177_v0, %v9196_v15  ;;  %v2915_v6 = vmul.f32 %v9177_v0, %v9205_v39  ;;  %v2847_v30 = vmul.f32 %v9108_v25, %v9159_v53  ;;  %v2848_v57 = vmul.f32 %v9118_v4, %v9159_v53  ;;  %v7599_v13 = vld [vmem:[#allocation2 + $0x3f0] ss:$8 sps:$4 sm:$0xff]  }
 0x95e   :  { %7216 = vmatmul.mubr.bf16.vlgmr.msra.gmra.mxu0 %v2963_v54  ;;  %v9243_v3 = vadd.f32 %v2884_v33, %v11889_v51  ;;  %v2886_v36 = vmax.f32 %v2870_v45, 0.0  ;;  %v2887_v17 = vmax.f32 %v2871_v10, 0.0  ;;  %v2849_v2 = vmul.f32 %v9159_v53, %v9133_v29  ;;  %v11903_v10 = vld [vmem:[#allocation27_spill] sm:$0xff] }
 0x95f   :  { %7219 = vmatprep.mubr.bf16.mxu0 %v2964_v40  ;;  %6812 = vmatpush3.bf16.msra.mxu0 %v7596_v56  ;;  %v9249_v25 = vadd.f32 %v2885_v55, %v11892_v14  ;;  %v2872_v4 = vadd.f32 %v9162_v11, %v2847_v30  ;;  %v2873_v35 = vadd.f32 %v9162_v11, %v2848_v57  ;;  %v11898_v29 = vmax.f32 %v11897_v34, 0.0  ;;  %v11906_v57 = vld [vmem:[#allocation28_spill] sm:$0xff]  ;;  %v7604_v34 = vld [vmem:[#allocation2 + $0x350] ss:$8 sps:$4 sm:$0xff]  }
 0x960   :  { %11890 = vst [vmem:[#allocation21_spill] sm:$0xff] %v9243_v3  ;;  %2936 = vadd.xlane.f32.xlu1 %v2917_v49  ;;  %2932 = vadd.xlane.f32.xlu0 %v2915_v6  ;;  %v2875_v50 = vadd.f32 %v9162_v11, %v2850_v22  ;;  %v9256_v5 = vadd.f32 %v2886_v36, %v11895_v12  ;;  %v7600_v22 = vld [vmem:[#allocation2 + $0x370] ss:$8 sps:$4 sm:$0xff]   ;;  %v11904_v49 = vmax.f32 %v11903_v10, 0.0  ;;  %v11907_v8 = vmax.f32 %v11906_v57, 0.0 }
 0x961   :  { %11893 = vst [vmem:[#allocation22_spill] sm:$0xff] %v9249_v25  ;;  %v9260_v9 = vadd.f32 %v2887_v17, %v11898_v29  ;;  %v2874_v48 = vadd.f32 %v9162_v11, %v2849_v2  ;;  %6813 = vmatprep.subr.bf16.mxu0 %v7597_v23  ;;  %v2919_v46 = vmul.f32 %v9177_v0, %v9213_v19  ;;  %v2888_v52 = vmax.f32 %v2872_v4, 0.0  ;;  %v7601_v17 = vld [vmem:[#allocation2 + $0x3e0] ss:$8 sps:$4 sm:$0xff]   ;;  %v11912_v29 = vld [vmem:[#allocation30_spill] sm:$0xff] }
 0x962   :  { %11896 = vst [vmem:[#allocation23_spill] sm:$0xff] %v9256_v5  ;;  %v2918_v61 = vmul.f32 %v9177_v0, %v9209_v20  ;;  %v2965_v18 = vpack.c.bf16 %v9249_v25, %v9243_v3  ;;  %v2889_v24 = vmax.f32 %v2873_v35, 0.0  ;;  %v2891_v32 = vmax.f32 %v2875_v50, 0.0  ;;  %v7603_v50 = vld [vmem:[#allocation2 + $0x3d0] ss:$8 sps:$4 sm:$0xff]  }
 0x963   :  { %11899 = vst [vmem:[#allocation24_spill] sm:$0xff] %v9260_v9  ;;  %6814 = vmatpush3.bf16.msra.mxu0 %v7598_v43  ;;  %v2966_v21 = vpack.c.bf16 %v9260_v9, %v9256_v5  ;;  %v2890_v54 = vmax.f32 %v2874_v48, 0.0  ;;  %v2851_v59 = vmul.f32 %v9128_v27, %v9159_v53  ;;  %v2921_v33 = vmul.f32 %v9177_v0, %v9249_v25  ;;  %v11900_v27 = vld [vmem:[#allocation26_spill] sm:$0xff] }
 0x964   :  { %2940 = vadd.xlane.f32.xlu1 %v2919_v46  ;;  %2938 = vadd.xlane.f32.xlu0 %v2918_v61  ;;  %v2920_v60 = vmul.f32 %v9177_v0, %v9243_v3  ;;  %v2852_v42 = vmul.f32 %v9138_v7, %v9159_v53  ;;  %v11901_v40 = vmax.f32 %v11900_v27, 0.0  ;;  %v9286_v6 = vadd.f32 %v2889_v24, %v11904_v49  ;;  %v11909_v53 = vld [vmem:[#allocation29_spill] sm:$0xff]  ;;  %v11915_v46 = vld [vmem:[#allocation31_spill] sm:$0xff] }
 0x965   :  { %6815 = vmatprep.subr.bf16.mxu0 %v7599_v13  ;;  %v2876_v55 = vadd.f32 %v9162_v11, %v2851_v59  ;;  %v9291_v7 = vadd.f32 %v2890_v54, %v11907_v8  ;;  %v11910_v51 = vmax.f32 %v11909_v53, 0.0  ;;  %v2923_v2 = vmul.f32 %v9177_v0, %v9260_v9  ;;  %v7607_v54 = vld [vmem:[#allocation2 + $0x3b0] ss:$8 sps:$4 sm:$0xff]  }
 0x966   :  { %7220 = vmatmul.mubr.bf16.gmra.mxu0 %v2965_v18  ;;  %v9282_v45 = vadd.f32 %v2888_v52, %v11901_v40  ;;  %11905 = vst [vmem:[#allocation26_spill] sm:$0xff] %v9286_v6  ;;  %v2877_v30 = vadd.f32 %v9162_v11, %v2852_v42  ;;  %v2922_v56 = vmul.f32 %v9177_v0, %v9256_v5  ;;  %v11913_v48 = vmax.f32 %v11912_v29, 0.0  ;;  %v7605_v18 = vld [vmem:[#allocation2 + $0x3c0] ss:$8 sps:$4 sm:$0xff]  }
 0x967   :  { %7223 = vmatprep.mubr.bf16.mxu0 %v2966_v21  ;;  %6816 = vmatpush3.bf16.msra.mxu0 %v7600_v22  ;;  %11908 = vst [vmem:[#allocation27_spill] sm:$0xff] %v9291_v7  ;;  %v9295_v36 = vadd.f32 %v2891_v32, %v11910_v51  ;;  %v2892_v14 = vmax.f32 %v2876_v55, 0.0  ;;  %v2925_v16 = vmul.f32 %v9177_v0, %v9286_v6  ;;  %v11916_v61 = vmax.f32 %v11915_v46, 0.0  ;;  %v7606_v32 = vld [vmem:[#allocation2 + $0x340] ss:$8 sps:$4 sm:$0xff]  }
 0x968   :  { %2944 = vadd.xlane.f32.xlu1 %v2921_v33  ;;  %2942 = vadd.xlane.f32.xlu0 %v2920_v60  ;;  %11902 = vst [vmem:[#allocation25_spill] sm:$0xff] %v9282_v45  ;;  %v2967_v11 = vpack.c.bf16 %v9286_v6, %v9282_v45  ;;  %v2893_v4 = vmax.f32 %v2877_v30, 0.0  ;;  %v2924_v12 = vmul.f32 %v9177_v0, %v9282_v45  ;;  %v7608_v33 = vld [vmem:[#allocation2 + $0x330] ss:$8 sps:$4 sm:$0xff]   ;;  %v7609_v60 = vld [vmem:[#allocation2 + $0x3a0] ss:$8 sps:$4 sm:$0xff]  }
 0x969   :  { %11911 = vst [vmem:[#allocation28_spill] sm:$0xff] %v9295_v36  ;;  %6817 = vmatprep.subr.bf16.mxu0 %v7601_v17  ;;  %v2968_v35 = vpack.c.bf16 %v9295_v36, %v9291_v7  ;;  %v9311_v23 = vadd.f32 %v2892_v14, %v11913_v48  ;;  %v2927_v52 = vmul.f32 %v9177_v0, %v9295_v36  ;;  %v7610_v42 = vld [vmem:[#allocation2 + $0x320] ss:$8 sps:$4 sm:$0xff]   ;;  %v9327_v55 = vld [vmem:[#allocation2 + $0x290] ss:$8 sps:$4 sm:$0xff]  }
 0x96a   :  { %v9315_v43 = vadd.f32 %v2893_v4, %v11916_v61  ;;  %v2926_v24 = vmul.f32 %v9177_v0, %v9291_v7 }
 0x96b   :  { %6818 = vmatpush3.bf16.msra.mxu0 %v7602_v31  ;;  %11914 = vst [vmem:[#allocation29_spill] sm:$0xff] %v9311_v23  ;;  %v2928_v13 = vmul.f32 %v9177_v0, %v9311_v23 }
 0x96c   :  { %2948 = vadd.xlane.f32.xlu1 %v2923_v2  ;;  %2946 = vadd.xlane.f32.xlu0 %v2922_v56  ;;  %11917 = vst [vmem:[#allocation30_spill] sm:$0xff] %v9315_v43  ;;  %v2969_v21 = vpack.c.bf16 %v9315_v43, %v9311_v23  ;;  %v2929_v59 = vmul.f32 %v9177_v0, %v9315_v43 }
 0x96d   :  { %6819 = vmatprep.subr.bf16.mxu0 %v7603_v50 }
 0x96e   :  { %7224 = vmatmul.mubr.bf16.gmra.mxu0 %v2967_v11 }
 0x96f   :  { %7227 = vmatprep.mubr.bf16.mxu0 %v2968_v35  ;;  %6820 = vmatpush3.bf16.msra.mxu0 %v7604_v34 }
 0x970   :  { %2952 = vadd.xlane.f32.xlu1 %v2925_v16  ;;  %2950 = vadd.xlane.f32.xlu0 %v2924_v12 }
 0x971   :  { %6821 = vmatprep.subr.bf16.mxu0 %v7605_v18 }
 0x973   :  { %6822 = vmatpush3.bf16.msra.mxu0 %v7606_v32 }
 0x974   :  { %2956 = vadd.xlane.f32.xlu1 %v2927_v52  ;;  %2954 = vadd.xlane.f32.xlu0 %v2926_v24 }
 0x975   :  { %6823 = vmatprep.subr.bf16.mxu0 %v7607_v54 }
 0x976   :  { %7228 = vmatmul.mubr.bf16.gmra.mxu0 %v2969_v21 }
 0x977   :  { %6824 = vmatpush3.bf16.msra.mxu0 %v7608_v33 }
 0x978   :  { %2960 = vadd.xlane.f32.xlu1 %v2929_v59  ;;  %2958 = vadd.xlane.f32.xlu0 %v2928_v13 }
 0x979   :  { %6825 = vmatprep.subr.bf16.mxu0 %v7609_v60 }
 0x97b   :  { %6826 = vmatpush3.bf16.msra.mxu0 %v7610_v42 }
 0x97c   :  { %7263 = vmatprep.subr.bf16.mxu0 %v9327_v55 }
 0xa1e   :  { %v9330_v22 = vpop.f32.mrf.mxu0 }
 0xa1f   :  { %v3090_v53 = vmul.f32 %v9330_v22, %v9330_v22 }
 0xa20   :  { %v9332_v27 = vpop.f32.mrf.mxu0 }
 0xa21   :  { %v3088_v49 = vmul.f32 %v9332_v27, %v9332_v27 }
 0xa22   :  { %v9334_v40 = vpop.f32.mrf.mxu0 }
 0xa23   :  { %v3091_v56 = vmul.f32 %v9334_v40, %v9334_v40 }
 0xa24   :  { %v9336_v10 = vpop.f32.mrf.mxu0 }
 0xa25   :  { %v3067_v30 = vadd.f32 %v9336_v10, %v9332_v27  ;;  %v3089_v57 = vmul.f32 %v9336_v10, %v9336_v10 }
 0xa26   :  { %v9344_v8 = vpop.f32.mrf.mxu0 }
 0xa27   :  { %v3104_v51 = vadd.f32 %v3089_v57, %v3088_v49  ;;  %v3068_v17 = vadd.f32 %v9330_v22, %v3067_v30  ;;  %v3094_v46 = vmul.f32 %v9344_v8, %v9344_v8 }
 0xa28   :  { %v9349_v2 = vpop.f32.mrf.mxu0 }
 0xa29   :  { %v3069_v31 = vadd.f32 %v9334_v40, %v3068_v17  ;;  %v3105_v11 = vadd.f32 %v3104_v51, %v3090_v53  ;;  %v3092_v35 = vmul.f32 %v9349_v2, %v9349_v2 }
 0xa2a   :  { %v9354_v14 = vpop.f32.mrf.mxu0 }
 0xa2b   :  { %v3070_v4 = vadd.f32 %v3069_v31, %v9349_v2  ;;  %v3106_v50 = vadd.f32 %v3105_v11, %v3091_v56  ;;  %v3095_v24 = vmul.f32 %v9354_v14, %v9354_v14 }
 0xa2c   :  { %v9359_v16 = vpop.f32.mrf.mxu0 }
 0xa2d   :  { %v3107_v12 = vadd.f32 %v3106_v50, %v3092_v35  ;;  %v3071_v34 = vadd.f32 %v3070_v4, %v9359_v16  ;;  %v3093_v29 = vmul.f32 %v9359_v16, %v9359_v16 }
 0xa2e   :  { %v9364_v48 = vpop.f32.mrf.mxu0 }
 0xa2f   :  { %v3108_v61 = vadd.f32 %v3107_v12, %v3093_v29  ;;  %v3072_v18 = vadd.f32 %v9344_v8, %v3071_v34  ;;  %v3098_v53 = vmul.f32 %v9364_v48, %v9364_v48 }
 0xa30   :  { %v9369_v52 = vpop.f32.mrf.mxu0 }
 0xa31   :  { %v3073_v32 = vadd.f32 %v9354_v14, %v3072_v18  ;;  %v3109_v21 = vadd.f32 %v3108_v61, %v3094_v46  ;;  %v3096_v13 = vmul.f32 %v9369_v52, %v9369_v52 }
 0xa32   :  { %v9374_v54 = vpop.f32.mrf.mxu0 }
 0xa33   :  { %v3074_v59 = vadd.f32 %v3073_v32, %v9369_v52  ;;  %v3110_v33 = vadd.f32 %v3109_v21, %v3095_v24  ;;  %v3099_v31 = vmul.f32 %v9374_v54, %v9374_v54 }
 0xa34   :  { %v9379_v60 = vpop.f32.mrf.mxu0 }
 0xa35   :  { %v3111_v42 = vadd.f32 %v3110_v33, %v3096_v13  ;;  %v3075_v49 = vadd.f32 %v3074_v59, %v9379_v60  ;;  %v3097_v30 = vmul.f32 %v9379_v60, %v9379_v60 }
 0xa36   :  { %v9384_v57 = vpop.f32.mrf.mxu0 }
 0xa37   :  { %v3112_v51 = vadd.f32 %v3111_v42, %v3097_v30  ;;  %v3076_v17 = vadd.f32 %v9364_v48, %v3075_v49  ;;  %v3102_v24 = vmul.f32 %v9384_v57, %v9384_v57 }
 0xa38   :  { %v9389_v56 = vpop.f32.mrf.mxu0 }
 0xa39   :  { %v3077_v11 = vadd.f32 %v9374_v54, %v3076_v17  ;;  %v3113_v4 = vadd.f32 %v3112_v51, %v3098_v53  ;;  %v3100_v12 = vmul.f32 %v9389_v56, %v9389_v56 }
 0xa3a   :  { %v7230_v35 = vpop.f32.mrf.mxu0 }
 0xa3b   :  { %v3078_v50 = vadd.f32 %v3077_v11, %v9389_v56  ;;  %v3114_v34 = vadd.f32 %v3113_v4, %v3099_v31  ;;  %v3103_v59 = vmul.f32 %v7230_v35, %v7230_v35 }
 0xa3c   :  { %v9397_v29 = vpop.f32.mrf.mxu0 }
 0xa3d   :  { %v3115_v46 = vadd.f32 %v3114_v34, %v3100_v12  ;;  %v3079_v61 = vadd.f32 %v3078_v50, %v9397_v29  ;;  %v3101_v18 = vmul.f32 %v9397_v29, %v9397_v29 }
 0xa3f   :  { %v3080_v32 = vadd.f32 %v9384_v57, %v3079_v61  ;;  %v3116_v21 = vadd.f32 %v3115_v46, %v3101_v18 }
 0xa41   :  { %v3081_v13 = vadd.f32 %v7230_v35, %v3080_v32  ;;  %v3117_v33 = vadd.f32 %v3116_v21, %v3102_v24 }
 0xa43   :  { %v3082_v42 = vrot.slane %v3081_v13, 4  ;;  %v3118_v49 = vadd.f32 %v3117_v33, %v3103_v59 }
 0xa45   :  { %v3083_v30 = vadd.f32 %v3082_v42, %v3081_v13  ;;  %v3119_v53 = vrot.slane %v3118_v49, 4 }
 0xa47   :  { %v3084_v51 = vrot.slane %v3083_v30, 2  ;;  %v3120_v17 = vadd.f32 %v3119_v53, %v3118_v49  ;;  %v11918_v49 = vld [vmem:[#allocation10_spill] sm:$0xff] }
 0xa49   :  { %v3085_v31 = vadd.f32 %v3084_v51, %v3083_v30  ;;  %v3121_v11 = vrot.slane %v3120_v17, 2 }
 0xa4b   :  { %v3086_v4 = vrot.slane %v3085_v31, 1  ;;  %v3122_v50 = vadd.f32 %v3121_v11, %v3120_v17 }
 0xa4d   :  { %v3087_v12 = vadd.f32 %v3086_v4, %v3085_v31  ;;  %v3123_v34 = vrot.slane %v3122_v50, 1 }
 0xa4f   :  { %v3124_v43 = vadd.f32 %v3123_v34, %v3122_v50  ;;  %v3125_v23 = vmul.f32 0.0078125, %v3087_v12 }
 0xa51   :  { %v3126_v7 = vmul.f32 0.0078125, %v3124_v43  ;;  %v3127_v61 = vmul.f32 %v3125_v23, %v3125_v23 }
 0xa53   :  { %v3128_v46 = vsub.f32 %v3126_v7, %v3127_v61 }
 0xa55   :  { %v3129_v18 = vmax.f32 %v3128_v46, 0.0 }
 0xa57   :  { %v3130_v32 = vadd.f32 1e-05, %v3129_v18  ;;  %v7612_v18 = vld [vmem:[#allocation2 + $0x490] ss:$8 sps:$4 sm:$0xff]  }
 0xa59   :  { %7540 = vrsqrt.f32 %v3130_v32 }
 0xa66   :  { %v7541_v24 = vpop.eup %7540 }
 0xa67   :  { %v3132_v21 = vmul.f32 %v9051_v1, %v7541_v24 }
 0xa69   :  { %v3153_v59 = vmul.f32 %v3132_v21, %v3125_v23  ;;  %v9407_v13 = vrot.slane %v3132_v21, %v11868_v47  ;;  %v7613_v21 = vld [vmem:[#allocation2 + $0x480] ss:$8 sps:$4 sm:$0xff]  }
 0xa6b   :  { %v3155_v33 = vrot.slane %v3153_v59, 7  ;;  %v3137_v43 = vmul.f32 %v9407_v13, %v9332_v27  ;;  %v3138_v7 = vmul.f32 %v9407_v13, %v9336_v10  ;;  %v3139_v31 = vmul.f32 %v9330_v22, %v9407_v13 }
 0xa6c   :  { %v3147_v11 = vmul.f32 %v9364_v48, %v9407_v13  ;;  %v3148_v50 = vmul.f32 %v9374_v54, %v9407_v13  ;;  %v3151_v34 = vmul.f32 %v9384_v57, %v9407_v13  ;;  %v3152_v22 = vmul.f32 %v7230_v35, %v9407_v13 }
 0xa6d   :  { %v3157_v42 = vsub.f32 %v9051_v1, %v3155_v33  ;;  %v3140_v1 = vmul.f32 %v9334_v40, %v9407_v13  ;;  %v3141_v35 = vmul.f32 %v9407_v13, %v9349_v2  ;;  %v3142_v33 = vmul.f32 %v9407_v13, %v9359_v16  ;;  %v7615_v2 = vld [vmem:[#allocation2 + $0x460] ss:$8 sps:$4 sm:$0xff]  }
 0xa6e   :  { %v3143_v16 = vmul.f32 %v9344_v8, %v9407_v13  ;;  %v3145_v8 = vmul.f32 %v9407_v13, %v9369_v52 }
 0xa6f   :  { %v9411_v30 = vrot.slane %v3157_v42, %v11918_v49 }
 0xa71   :  { %v3162_v53 = vadd.f32 %v9411_v30, %v3137_v43  ;;  %v3163_v51 = vadd.f32 %v9411_v30, %v3138_v7  ;;  %v3164_v27 = vadd.f32 %v9411_v30, %v3139_v31  ;;  %v3165_v10 = vadd.f32 %v9411_v30, %v3140_v1 }
 0xa72   :  { %v3172_v12 = vadd.f32 %v9411_v30, %v3147_v11  ;;  %v3173_v40 = vadd.f32 %v9411_v30, %v3148_v50  ;;  %v3176_v61 = vadd.f32 %v9411_v30, %v3151_v34  ;;  %v3177_v46 = vadd.f32 %v9411_v30, %v3152_v22  ;;  %v7617_v34 = vld [vmem:[#allocation2 + $0x440] ss:$8 sps:$4 sm:$0xff]  }
 0xa73   :  { %v3178_v23 = vmax.f32 %v3162_v53, 0.0  ;;  %v3179_v17 = vmax.f32 %v3163_v51, 0.0  ;;  %v3180_v54 = vmax.f32 %v3164_v27, 0.0  ;;  %v3181_v32 = vmax.f32 %v3165_v10, 0.0  ;;  %v7616_v10 = vld [vmem:[#allocation2 + $0x450] ss:$8 sps:$4 sm:$0xff]  }
 0xa74   :  { %v3188_v48 = vmax.f32 %v3172_v12, 0.0  ;;  %v3189_v24 = vmax.f32 %v3173_v40, 0.0  ;;  %v3192_v57 = vmax.f32 %v3176_v61, 0.0  ;;  %v3193_v59 = vmax.f32 %v3177_v46, 0.0  ;;  %v7618_v61 = vld [vmem:[#allocation2 + $0x430] ss:$8 sps:$4 sm:$0xff]  }
 0xa75   :  { %v3194_v4 = vpack.c.bf16 %v3179_v17, %v3178_v23  ;;  %v3195_v7 = vpack.c.bf16 %v3181_v32, %v3180_v54  ;;  %v3166_v53 = vadd.f32 %v9411_v30, %v3141_v35  ;;  %v3167_v51 = vadd.f32 %v9411_v30, %v3142_v33  ;;  %v7614_v23 = vld [vmem:[#allocation2 + $0x470] ss:$8 sps:$4 sm:$0xff]   ;;  %v7619_v54 = vld [vmem:[#allocation2 + $0x420] ss:$8 sps:$4 sm:$0xff]   ;;  %v7620_v32 = vld [vmem:[#allocation2 + $0x314] ss:$8 sps:$4 sm:$0xff]  }
 0xa76   :  { %v3199_v42 = vpack.c.bf16 %v3189_v24, %v3188_v48  ;;  %v3201_v43 = vpack.c.bf16 %v3193_v59, %v3192_v57  ;;  %v3144_v1 = vmul.f32 %v9354_v14, %v9407_v13  ;;  %v3146_v14 = vmul.f32 %v9407_v13, %v9379_v60 }
 0xa77   :  { %3235 = vmatmul.mubr.bf16.vlgmr.msra.gmra.mxu1 %v3194_v4  ;;  %v3182_v17 = vmax.f32 %v3166_v53, 0.0  ;;  %v3183_v31 = vmax.f32 %v3167_v51, 0.0  ;;  %v3168_v4 = vadd.f32 %v9411_v30, %v3143_v16  ;;  %v3170_v40 = vadd.f32 %v9411_v30, %v3145_v8 }
 0xa78   :  { %3244 = vmatprep.mubr.bf16.mxu1 %v11846_v41  ;;  %7232 = vmatpush3.bf16.msra.mxu1 %v7612_v18  ;;  %v3169_v27 = vadd.f32 %v9411_v30, %v3144_v1  ;;  %v3171_v48 = vadd.f32 %v9411_v30, %v3146_v14  ;;  %v3150_v60 = vmul.f32 %v9407_v13, %v9397_v29 }
 0xa79   :  { %7233 = vmatprep.subr.bf16.mxu1 %v7613_v21  ;;  %v3196_v11 = vpack.c.bf16 %v3183_v31, %v3182_v17  ;;  %v3184_v50 = vmax.f32 %v3168_v4, 0.0  ;;  %v3186_v46 = vmax.f32 %v3170_v40, 0.0  ;;  %v3149_v24 = vmul.f32 %v9407_v13, %v9389_v56 }
 0xa7a   :  { %v3185_v12 = vmax.f32 %v3169_v27, 0.0  ;;  %v3187_v18 = vmax.f32 %v3171_v48, 0.0 }
 0xa7b   :  { %v3174_v57 = vadd.f32 %v9411_v30, %v3149_v24 }
 0xa7c   :  { %7234 = vmatpush3.bf16.msra.mxu1 %v7613_v21  ;;  %v3197_v22 = vpack.c.bf16 %v3185_v12, %v3184_v50  ;;  %v3198_v52 = vpack.c.bf16 %v3187_v18, %v3186_v46  ;;  %v3175_v21 = vadd.f32 %v9411_v30, %v3150_v60 }
 0xa7d   :  { %7235 = vmatprep.subr.bf16.mxu1 %v7614_v23  ;;  %v3190_v35 = vmax.f32 %v3174_v57, 0.0 }
 0xa7e   :  { %v3191_v59 = vmax.f32 %v3175_v21, 0.0 }
 0xa7f   :  { %3245 = vmatmul.mubr.bf16.gmra.mxu1 %v3195_v7 }
 0xa80   :  { %3254 = vmatprep.mubr.bf16.mxu1 %v11846_v41  ;;  %7236 = vmatpush3.bf16.msra.mxu1 %v7614_v23  ;;  %v3200_v33 = vpack.c.bf16 %v3191_v59, %v3190_v35 }
 0xa81   :  { %7237 = vmatprep.subr.bf16.mxu1 %v7615_v2 }
 0xa84   :  { %7238 = vmatpush3.bf16.msra.mxu1 %v7615_v2 }
 0xa85   :  { %7239 = vmatprep.subr.bf16.mxu1 %v7616_v10 }
 0xa87   :  { %3255 = vmatmul.mubr.bf16.gmra.mxu1 %v3196_v11 }
 0xa88   :  { %3264 = vmatprep.mubr.bf16.mxu1 %v11846_v41  ;;  %7240 = vmatpush3.bf16.msra.mxu1 %v7616_v10 }
 0xa89   :  { %7241 = vmatprep.subr.bf16.mxu1 %v7617_v34 }
 0xa8c   :  { %7242 = vmatpush3.bf16.msra.mxu1 %v7617_v34 }
 0xa8d   :  { %7243 = vmatprep.subr.bf16.mxu1 %v7618_v61 }
 0xa8f   :  { %3265 = vmatmul.mubr.bf16.gmra.mxu1 %v3197_v22 }
 0xa90   :  { %3274 = vmatprep.mubr.bf16.mxu1 %v11846_v41  ;;  %7244 = vmatpush3.bf16.msra.mxu1 %v7618_v61 }
 0xa91   :  { %7245 = vmatprep.subr.bf16.mxu1 %v7619_v54 }
 0xa94   :  { %7246 = vmatpush3.bf16.msra.mxu1 %v7619_v54 }
 0xa95   :  { %4345 = vmatprep.subr.bf16.mxu1 %v7620_v32 }
 0xa97   :  { %3275 = vmatmul.mubr.bf16.gmra.mxu1 %v3198_v52 }
 0xa98   :  { %3284 = vmatprep.mubr.bf16.mxu1 %v11846_v41 }
 0xa9f   :  { %3285 = vmatmul.mubr.bf16.gmra.mxu1 %v3199_v42 }
 0xaa0   :  { %3294 = vmatprep.mubr.bf16.mxu1 %v11846_v41 }
 0xaa7   :  { %3295 = vmatmul.mubr.bf16.gmra.mxu1 %v3200_v33 }
 0xaa8   :  { %3304 = vmatprep.mubr.bf16.mxu1 %v11846_v41 }
 0xaaf   :  { %3305 = vmatmul.mubr.bf16.gmra.mxu1 %v3201_v43 }
 0xb37   :  { %v9467_v7 = vpop.f32.mrf.mxu1 }
 0xb38   :  { %v3357_v50 = vmul.f32 %v9467_v7, %v9467_v7 }
 0xb39   :  { %v9469_v29 = vpop.f32.mrf.mxu1 }
 0xb3a   :  { %v3358_v8 = vmul.f32 %v9469_v29, %v9469_v29 }
 0xb3b   :  { %v9471_v53 = vpop.f32.mrf.mxu1 }
 0xb3c   :  { %v3359_v4 = vmul.f32 %v9471_v53, %v9471_v53  ;;  %v3315_v12 = vadd.f32 %v9471_v53, %v9467_v7 }
 0xb3d   :  { %v9473_v56 = vpop.f32.mrf.mxu1 }
 0xb3e   :  { %v3360_v27 = vmul.f32 %v9473_v56, %v9473_v56  ;;  %v3389_v40 = vadd.f32 %v3359_v4, %v3357_v50  ;;  %v3336_v61 = vadd.f32 %v9473_v56, %v9469_v29 }
 0xb3f   :  { %v9475_v13 = vpop.f32.mrf.mxu1 }
 0xb40   :  { %v3361_v34 = vmul.f32 %v9475_v13, %v9475_v13  ;;  %v3316_v48 = vadd.f32 %v3315_v12, %v9475_v13  ;;  %v3410_v18 = vadd.f32 %v3360_v27, %v3358_v8 }
 0xb41   :  { %v9477_v30 = vpop.f32.mrf.mxu1 }
 0xb42   :  { %v3362_v14 = vmul.f32 %v9477_v30, %v9477_v30  ;;  %v3390_v32 = vadd.f32 %v3389_v40, %v3361_v34  ;;  %v3337_v60 = vadd.f32 %v3336_v61, %v9477_v30 }
 0xb43   :  { %v9479_v42 = vpop.f32.mrf.mxu1 }
 0xb44   :  { %v3363_v46 = vmul.f32 %v9479_v42, %v9479_v42  ;;  %v3317_v24 = vadd.f32 %v3316_v48, %v9479_v42  ;;  %v3411_v57 = vadd.f32 %v3410_v18, %v3362_v14 }
 0xb45   :  { %v9481_v51 = vpop.f32.mrf.mxu1 }
 0xb46   :  { %v3364_v54 = vmul.f32 %v9481_v51, %v9481_v51  ;;  %v3391_v33 = vadd.f32 %v3390_v32, %v3363_v46  ;;  %v3338_v27 = vadd.f32 %v3337_v60, %v9481_v51 }
 0xb47   :  { %v9483_v23 = vpop.f32.mrf.mxu1 }
 0xb48   :  { %v3365_v21 = vmul.f32 %v9483_v23, %v9483_v23  ;;  %v3318_v4 = vadd.f32 %v3317_v24, %v9483_v23  ;;  %v3412_v12 = vadd.f32 %v3411_v57, %v3364_v54 }
 0xb49   :  { %v9485_v17 = vpop.f32.mrf.mxu1 }
 0xb4a   :  { %v3366_v59 = vmul.f32 %v9485_v17, %v9485_v17  ;;  %v3392_v14 = vadd.f32 %v3391_v33, %v3365_v21  ;;  %v3339_v40 = vadd.f32 %v3338_v27, %v9485_v17 }
 0xb4b   :  { %v9487_v43 = vpop.f32.mrf.mxu1 }
 0xb4c   :  { %v3367_v50 = vmul.f32 %v9487_v43, %v9487_v43  ;;  %v3319_v48 = vadd.f32 %v3318_v4, %v9487_v43  ;;  %v3413_v46 = vadd.f32 %v3412_v12, %v3366_v59 }
 0xb4d   :  { %v9489_v31 = vpop.f32.mrf.mxu1 }
 0xb4e   :  { %v3368_v34 = vmul.f32 %v9489_v31, %v9489_v31  ;;  %v3393_v54 = vadd.f32 %v3392_v14, %v3367_v50  ;;  %v3340_v24 = vadd.f32 %v3339_v40, %v9489_v31 }
 0xb4f   :  { %v9491_v2 = vpop.f32.mrf.mxu1 }
 0xb50   :  { %v3369_v61 = vmul.f32 %v9491_v2, %v9491_v2  ;;  %v3320_v60 = vadd.f32 %v3319_v48, %v9491_v2  ;;  %v3414_v57 = vadd.f32 %v3413_v46, %v3368_v34 }
 0xb51   :  { %v9493_v16 = vpop.f32.mrf.mxu1 }
 0xb52   :  { %v3370_v18 = vmul.f32 %v9493_v16, %v9493_v16  ;;  %v3394_v59 = vadd.f32 %v3393_v54, %v3369_v61  ;;  %v3341_v27 = vadd.f32 %v3340_v24, %v9493_v16 }
 0xb53   :  { %v9495_v1 = vpop.f32.mrf.mxu1 }
 0xb54   :  { %v3371_v21 = vmul.f32 %v9495_v1, %v9495_v1  ;;  %v3321_v12 = vadd.f32 %v3320_v60, %v9495_v1  ;;  %v3415_v14 = vadd.f32 %v3414_v57, %v3370_v18 }
 0xb55   :  { %v9497_v11 = vpop.f32.mrf.mxu1 }
 0xb56   :  { %v3372_v33 = vmul.f32 %v9497_v11, %v9497_v11  ;;  %v3395_v34 = vadd.f32 %v3394_v59, %v3371_v21  ;;  %v3342_v49 = vadd.f32 %v3341_v27, %v9497_v11 }
 0xb57   :  { %v9503_v10 = vpop.f32.mrf.mxu1 }
 0xb58   :  { %v3373_v50 = vmul.f32 %v9503_v10, %v9503_v10  ;;  %v3322_v46 = vadd.f32 %v3321_v12, %v9503_v10  ;;  %v3416_v54 = vadd.f32 %v3415_v14, %v3372_v33 }
 0xb59   :  { %v9515_v22 = vpop.f32.mrf.mxu1 }
 0xb5a   :  { %v3374_v40 = vmul.f32 %v9515_v22, %v9515_v22  ;;  %v3396_v18 = vadd.f32 %v3395_v34, %v3373_v50  ;;  %v3343_v57 = vadd.f32 %v3342_v49, %v9515_v22 }
 0xb5b   :  { %v9524_v52 = vpop.f32.mrf.mxu1 }
 0xb5c   :  { %v3375_v61 = vmul.f32 %v9524_v52, %v9524_v52  ;;  %v3323_v47 = vadd.f32 %v3322_v46, %v9524_v52  ;;  %v3417_v59 = vadd.f32 %v3416_v54, %v3374_v40 }
 0xb5d   :  { %v9532_v35 = vpop.f32.mrf.mxu1 }
 0xb5e   :  { %v3376_v60 = vmul.f32 %v9532_v35, %v9532_v35  ;;  %v3397_v33 = vadd.f32 %v3396_v18, %v3375_v61  ;;  %v3344_v36 = vadd.f32 %v3343_v57, %v9532_v35 }
 0xb5f   :  { %v9540_v8 = vpop.f32.mrf.mxu1 }
 0xb60   :  { %v3377_v21 = vmul.f32 %v9540_v8, %v9540_v8  ;;  %v3324_v14 = vadd.f32 %v3323_v47, %v9540_v8  ;;  %v3418_v49 = vadd.f32 %v3417_v59, %v3376_v60 }
 0xb61   :  { %v9548_v32 = vpop.f32.mrf.mxu1 }
 0xb62   :  { %v3378_v27 = vmul.f32 %v9548_v32, %v9548_v32  ;;  %v3398_v40 = vadd.f32 %v3397_v33, %v3377_v21  ;;  %v3345_v54 = vadd.f32 %v3344_v36, %v9548_v32 }
 0xb63   :  { %v9556_v4 = vpop.f32.mrf.mxu1 }
 0xb64   :  { %v3379_v50 = vmul.f32 %v9556_v4, %v9556_v4  ;;  %v3325_v6 = vadd.f32 %v3324_v14, %v9556_v4  ;;  %v3419_v47 = vadd.f32 %v3418_v49, %v3378_v27 }
 0xb65   :  { %v9564_v48 = vpop.f32.mrf.mxu1 }
 0xb66   :  { %v3380_v34 = vmul.f32 %v9564_v48, %v9564_v48  ;;  %v3399_v60 = vadd.f32 %v3398_v40, %v3379_v50  ;;  %v3346_v45 = vadd.f32 %v3345_v54, %v9564_v48 }
 0xb67   :  { %v9572_v24 = vpop.f32.mrf.mxu1 }
 0xb68   :  { %v3381_v61 = vmul.f32 %v9572_v24, %v9572_v24  ;;  %v3326_v59 = vadd.f32 %v3325_v6, %v9572_v24  ;;  %v3420_v36 = vadd.f32 %v3419_v47, %v3380_v34 }
 0xb69   :  { %v9580_v12 = vpop.f32.mrf.mxu1 }
 0xb6a   :  { %v3382_v18 = vmul.f32 %v9580_v12, %v9580_v12  ;;  %v3400_v27 = vadd.f32 %v3399_v60, %v3381_v61  ;;  %v3347_v49 = vadd.f32 %v3346_v45, %v9580_v12 }
 0xb6b   :  { %v9588_v46 = vpop.f32.mrf.mxu1 }
 0xb6c   :  { %v3383_v21 = vmul.f32 %v9588_v46, %v9588_v46  ;;  %v3327_v9 = vadd.f32 %v3326_v59, %v9588_v46  ;;  %v3421_v6 = vadd.f32 %v3420_v36, %v3382_v18 }
 0xb6d   :  { %v9596_v57 = vpop.f32.mrf.mxu1 }
 0xb6e   :  { %v3384_v33 = vmul.f32 %v9596_v57, %v9596_v57  ;;  %v3401_v54 = vadd.f32 %v3400_v27, %v3383_v21  ;;  %v3348_v34 = vadd.f32 %v3347_v49, %v9596_v57 }
 0xb6f   :  { %v9604_v14 = vpop.f32.mrf.mxu1 }
 0xb70   :  { %v3385_v50 = vmul.f32 %v9604_v14, %v9604_v14  ;;  %v3328_v5 = vadd.f32 %v3327_v9, %v9604_v14  ;;  %v3422_v25 = vadd.f32 %v3421_v6, %v3384_v33 }
 0xb71   :  { %v9610_v40 = vpop.f32.mrf.mxu1 }
 0xb72   :  { %v3386_v47 = vmul.f32 %v9610_v40, %v9610_v40  ;;  %v3402_v45 = vadd.f32 %v3401_v54, %v3385_v50  ;;  %v3349_v60 = vadd.f32 %v3348_v34, %v9610_v40 }
 0xb73   :  { %v9616_v61 = vpop.f32.mrf.mxu1 }
 0xb74   :  { %v3329_v59 = vadd.f32 %v3328_v5, %v9616_v61  ;;  %v3387_v18 = vmul.f32 %v9616_v61, %v9616_v61  ;;  %v3423_v36 = vadd.f32 %v3422_v25, %v3386_v47 }
 0xb75   :  { %v9622_v21 = vpop.f32.mrf.mxu1 }
 0xb76   :  { %v3330_v9 = vrot.slane %v3329_v59, 4  ;;  %v3403_v27 = vadd.f32 %v3402_v45, %v3387_v18  ;;  %v3350_v49 = vadd.f32 %v3349_v60, %v9622_v21  ;;  %v3388_v33 = vmul.f32 %v9622_v21, %v9622_v21 }
 0xb78   :  { %v3331_v6 = vadd.f32 %v3330_v9, %v3329_v59  ;;  %v3404_v3 = vrot.slane %v3403_v27, 4  ;;  %v3351_v50 = vrot.slane %v3350_v49, 4  ;;  %v3424_v54 = vadd.f32 %v3423_v36, %v3388_v33 }
 0xb7a   :  { %v3332_v34 = vrot.slane %v3331_v6, 2  ;;  %v3405_v0 = vadd.f32 %v3404_v3, %v3403_v27  ;;  %v3352_v5 = vadd.f32 %v3351_v50, %v3350_v49  ;;  %v3425_v19 = vrot.slane %v3424_v54, 4 }
 0xb7c   :  { %v3333_v20 = vadd.f32 %v3332_v34, %v3331_v6  ;;  %v3406_v15 = vrot.slane %v3405_v0, 2  ;;  %v3353_v25 = vrot.slane %v3352_v5, 2  ;;  %v3426_v47 = vadd.f32 %v3425_v19, %v3424_v54 }
 0xb7e   :  { %v3334_v63 = vrot.slane %v3333_v20, 1  ;;  %v3407_v26 = vadd.f32 %v3406_v15, %v3405_v0  ;;  %v3354_v45 = vadd.f32 %v3353_v25, %v3352_v5  ;;  %v3427_v18 = vrot.slane %v3426_v47, 2 }
 0xb80   :  { %v3335_v60 = vadd.f32 %v3334_v63, %v3333_v20  ;;  %v3408_v39 = vrot.slane %v3407_v26, 1  ;;  %v3355_v28 = vrot.slane %v3354_v45, 1  ;;  %v3428_v62 = vadd.f32 %v3427_v18, %v3426_v47 }
 0xb82   :  { %v3409_v59 = vadd.f32 %v3408_v39, %v3407_v26  ;;  %v3431_v9 = vmul.f32 0.0078125, %v3335_v60  ;;  %v3356_v41 = vadd.f32 %v3355_v28, %v3354_v45  ;;  %v3429_v36 = vrot.slane %v3428_v62, 1  ;;  %v9630_v28 = vld [vmem:[%s11729_s2 + $0x10] sm:$0xff]  ;;  %v7622_v39 = vld [vmem:[%s11729_s2 + $0x18] sm:$0xff] }
 0xb84   :  { %v3433_v33 = vmul.f32 0.0078125, %v3409_v59  ;;  %v3435_v3 = vmul.f32 %v3431_v9, %v3431_v9  ;;  %v3430_v27 = vadd.f32 %v3429_v36, %v3428_v62  ;;  %v3432_v49 = vmul.f32 0.0078125, %v3356_v41 }
 0xb86   :  { %v3437_v6 = vsub.f32 %v3433_v33, %v3435_v3  ;;  %v3434_v50 = vmul.f32 0.0078125, %v3430_v27  ;;  %v3436_v34 = vmul.f32 %v3432_v49, %v3432_v49 }
 0xb88   :  { %v3439_v19 = vmax.f32 %v3437_v6, 0.0  ;;  %v3438_v54 = vsub.f32 %v3434_v50, %v3436_v34 }
 0xb8a   :  { %v3441_v0 = vadd.f32 1e-05, %v3439_v19  ;;  %v3440_v15 = vmax.f32 %v3438_v54, 0.0 }
 0xb8c   :  { %7542 = vrsqrt.f32 %v3441_v0  ;;  %v3442_v63 = vadd.f32 1e-05, %v3440_v15 }
 0xb8e   :  { %7544 = vrsqrt.f32 %v3442_v63 }
 0xb99   :  { %v7543_v20 = vpop.eup %7542 }
 0xb9a   :  { %v3445_v26 = vmul.f32 %v9630_v28, %v7543_v20 }
 0xb9b   :  { %v7545_v62 = vpop.eup %7544 }
 0xb9c   :  { %v3487_v41 = vmul.f32 %v3445_v26, %v3431_v9  ;;  %v3446_v5 = vmul.f32 %v7622_v39, %v7545_v62  ;;  %v9637_v25 = vrot.slane %v3445_v26, %v11864_v37 }
 0xb9e   :  { %v3491_v47 = vrot.slane %v3487_v41, 7  ;;  %v3488_v45 = vmul.f32 %v3446_v5, %v3432_v49  ;;  %v9640_v18 = vrot.slane %v3446_v5, %v11864_v37  ;;  %v3455_v33 = vmul.f32 %v9637_v25, %v9467_v7 }
 0xb9f   :  { %v3457_v3 = vmul.f32 %v9637_v25, %v9471_v53 }
 0xba0   :  { %v3495_v60 = vsub.f32 %v9630_v28, %v3491_v47  ;;  %v3492_v59 = vrot.slane %v3488_v45, 7  ;;  %v3456_v27 = vmul.f32 %v9640_v18, %v9469_v29  ;;  %v3458_v6 = vmul.f32 %v9640_v18, %v9473_v56 }
 0xba1   :  { %v3460_v19 = vmul.f32 %v9640_v18, %v9477_v30  ;;  %v3462_v7 = vmul.f32 %v9640_v18, %v9481_v51  ;;  %v3459_v30 = vmul.f32 %v9637_v25, %v9475_v13  ;;  %v3461_v51 = vmul.f32 %v9637_v25, %v9479_v42 }
 0xba2   :  { %v9644_v36 = vrot.slane %v3495_v60, %v11865_v58  ;;  %v3496_v9 = vsub.f32 %v7622_v39, %v3492_v59  ;;  %v3464_v39 = vmul.f32 %v9640_v18, %v9485_v17  ;;  %v3466_v5 = vmul.f32 %v9640_v18, %v9489_v31 }
 0xba4   :  { %v9653_v49 = vrot.slane %v3496_v9, %v11865_v58  ;;  %v3505_v50 = vadd.f32 %v9644_v36, %v3455_v33  ;;  %v3507_v34 = vadd.f32 %v9644_v36, %v3457_v3  ;;  %v3509_v45 = vadd.f32 %v9644_v36, %v3459_v30  ;;  %v7623_v33 = vld [vmem:[#allocation2 + $0x280] ss:$8 sps:$4 sm:$0xff]  }
 0xba5   :  { %v3511_v60 = vadd.f32 %v9644_v36, %v3461_v51 }
 0xba6   :  { %v3506_v53 = vadd.f32 %v9653_v49, %v3456_v27  ;;  %v3508_v29 = vadd.f32 %v9653_v49, %v3458_v6  ;;  %v3537_v54 = vmax.f32 %v3505_v50, 0.0  ;;  %v3539_v0 = vmax.f32 %v3507_v34, 0.0 }
 0xba7   :  { %v3510_v15 = vadd.f32 %v9653_v49, %v3460_v19  ;;  %v3512_v56 = vadd.f32 %v9653_v49, %v3462_v7  ;;  %v3514_v9 = vadd.f32 %v9653_v49, %v3464_v39  ;;  %v3516_v13 = vadd.f32 %v9653_v49, %v3466_v5 }
 0xba8   :  { %v3538_v63 = vmax.f32 %v3506_v53, 0.0  ;;  %v3540_v20 = vmax.f32 %v3508_v29, 0.0  ;;  %v3569_v47 = vpack.c.bf16 %v3539_v0, %v3537_v54  ;;  %v3541_v42 = vmax.f32 %v3509_v45, 0.0  ;;  %v7624_v53 = vld [vmem:[#allocation2 + $0x270] ss:$8 sps:$4 sm:$0xff]  }
 0xba9   :  { %v3542_v26 = vmax.f32 %v3510_v15, 0.0  ;;  %v3544_v62 = vmax.f32 %v3512_v56, 0.0  ;;  %v3543_v17 = vmax.f32 %v3511_v60, 0.0  ;;  %v3546_v31 = vmax.f32 %v3514_v9, 0.0  ;;  %v7625_v0 = vld [vmem:[#allocation2 + $0x260] ss:$8 sps:$4 sm:$0xff]  }
 0xbaa   :  { %v3570_v41 = vpack.c.bf16 %v3540_v20, %v3538_v63  ;;  %v3548_v3 = vmax.f32 %v3516_v13, 0.0  ;;  %v3463_v27 = vmul.f32 %v9637_v25, %v9483_v23  ;;  %v3465_v6 = vmul.f32 %v9637_v25, %v9487_v43 }
 0xbab   :  { %v3572_v59 = vpack.c.bf16 %v3544_v62, %v3542_v26  ;;  %v3468_v50 = vmul.f32 %v9640_v18, %v9493_v16  ;;  %v3470_v34 = vmul.f32 %v9640_v18, %v9497_v11  ;;  %v3467_v56 = vmul.f32 %v9637_v25, %v9491_v2 }
 0xbac   :  { %3617 = vmatprep.mubr.bf16.mxu0 %v3570_v41  ;;  %v3513_v19 = vadd.f32 %v9644_v36, %v3463_v27  ;;  %v3515_v7 = vadd.f32 %v9644_v36, %v3465_v6  ;;  %v3574_v29 = vpack.c.bf16 %v3548_v3, %v3546_v31  ;;  %v3469_v63 = vmul.f32 %v9637_v25, %v9495_v1  ;;  %v7626_v41 = vld [vmem:[#allocation2 + $0x250] ss:$8 sps:$4 sm:$0xff]   ;;  %v7629_v6 = vld [vmem:[#allocation2 + $0x220] ss:$8 sps:$4 sm:$0xff]  }
 0xbad   :  { %3618 = vmatmul.mubr.bf16.vlgmr.msra.gmra.mxu0 %v3569_v47  ;;  %v3518_v23 = vadd.f32 %v9653_v49, %v3468_v50  ;;  %v3520_v54 = vadd.f32 %v9653_v49, %v3470_v34  ;;  %v3472_v20 = vmul.f32 %v9640_v18, %v9515_v22  ;;  %v3474_v26 = vmul.f32 %v9640_v18, %v9532_v35  ;;  %v7627_v47 = vld [vmem:[#allocation2 + $0x240] ss:$8 sps:$4 sm:$0xff]   ;;  %v7628_v31 = vld [vmem:[#allocation2 + $0x230] ss:$8 sps:$4 sm:$0xff]  }
 0xbae   :  { %3625 = vmatprep.mubr.bf16.mxu0 %v3572_v59  ;;  %7264 = vmatpush3.bf16.msra.mxu0 %v9327_v55  ;;  %v3571_v55 = vpack.c.bf16 %v3543_v17, %v3541_v42  ;;  %v3545_v43 = vmax.f32 %v3513_v19, 0.0  ;;  %v3547_v16 = vmax.f32 %v3515_v7, 0.0  ;;  %v3517_v30 = vadd.f32 %v9644_v36, %v3467_v56 }
 0xbaf   :  { %7265 = vmatprep.subr.bf16.mxu0 %v7623_v33  ;;  %v3550_v11 = vmax.f32 %v3518_v23, 0.0  ;;  %v3552_v15 = vmax.f32 %v3520_v54, 0.0  ;;  %v3519_v51 = vadd.f32 %v9644_v36, %v3469_v63  ;;  %v3522_v2 = vadd.f32 %v9653_v49, %v3472_v20  ;;  %v7630_v54 = vld [vmem:[#allocation2 + $0x410] ss:$8 sps:$4 sm:$0xff]  }
 0xbb0   :  { %v3573_v62 = vpack.c.bf16 %v3547_v16, %v3545_v43  ;;  %v3524_v5 = vadd.f32 %v9653_v49, %v3474_v26  ;;  %v3549_v1 = vmax.f32 %v3517_v30, 0.0  ;;  %v3471_v60 = vmul.f32 %v9637_v25, %v9503_v10 }
 0xbb1   :  { %v3576_v39 = vpack.c.bf16 %v3552_v15, %v3550_v11  ;;  %v3551_v22 = vmax.f32 %v3519_v51, 0.0  ;;  %v3554_v35 = vmax.f32 %v3522_v2, 0.0  ;;  %v3473_v59 = vmul.f32 %v9637_v25, %v9524_v52 }
 0xbb2   :  { %7266 = vmatpush3.bf16.msra.mxu0 %v7623_v33  ;;  %v3556_v45 = vmax.f32 %v3524_v5, 0.0  ;;  %v3476_v9 = vmul.f32 %v9640_v18, %v9548_v32  ;;  %v3478_v13 = vmul.f32 %v9640_v18, %v9564_v48  ;;  %v3521_v17 = vadd.f32 %v9644_v36, %v3471_v60 }
 0xbb3   :  { %7267 = vmatprep.subr.bf16.mxu0 %v7624_v53  ;;  %v3575_v42 = vpack.c.bf16 %v3551_v22, %v3549_v1  ;;  %v3523_v33 = vadd.f32 %v9644_v36, %v3473_v59  ;;  %v3475_v34 = vmul.f32 %v9637_v25, %v9540_v8  ;;  %v3480_v19 = vmul.f32 %v9640_v18, %v9580_v12 }
 0xbb4   :  { %v3578_v3 = vpack.c.bf16 %v3556_v45, %v3554_v35  ;;  %v3526_v10 = vadd.f32 %v9653_v49, %v3476_v9  ;;  %v3528_v27 = vadd.f32 %v9653_v49, %v3478_v13  ;;  %v3553_v52 = vmax.f32 %v3521_v17, 0.0 }
 0xbb5   :  { %3626 = vmatmul.mubr.bf16.gmra.mxu0 %v3571_v55  ;;  %v3555_v32 = vmax.f32 %v3523_v33, 0.0  ;;  %v3477_v55 = vmul.f32 %v9637_v25, %v9556_v4  ;;  %v3482_v7 = vmul.f32 %v9640_v18, %v9596_v57  ;;  %v3530_v8 = vadd.f32 %v9653_v49, %v3480_v19 }
 0xbb6   :  { %3633 = vmatprep.mubr.bf16.mxu0 %v3574_v29  ;;  %7268 = vmatpush3.bf16.msra.mxu0 %v7624_v53  ;;  %v3558_v48 = vmax.f32 %v3526_v10, 0.0  ;;  %v3560_v50 = vmax.f32 %v3528_v27, 0.0  ;;  %v3525_v29 = vadd.f32 %v9644_v36, %v3475_v34  ;;  %v3479_v57 = vmul.f32 %v9637_v25, %v9572_v24 }
 0xbb7   :  { %7269 = vmatprep.subr.bf16.mxu0 %v7625_v0  ;;  %v3577_v53 = vpack.c.bf16 %v3555_v32, %v3553_v52  ;;  %v3527_v23 = vadd.f32 %v9644_v36, %v3477_v55  ;;  %v3532_v16 = vadd.f32 %v9653_v49, %v3482_v7  ;;  %v3481_v15 = vmul.f32 %v9637_v25, %v9588_v46 }
 0xbb8   :  { %v3580_v43 = vpack.c.bf16 %v3560_v50, %v3558_v48  ;;  %v3557_v4 = vmax.f32 %v3525_v29, 0.0  ;;  %v3486_v56 = vmul.f32 %v9640_v18, %v9622_v21  ;;  %v3484_v63 = vmul.f32 %v9640_v18, %v9610_v40 }
 0xbb9   :  { %v3559_v12 = vmax.f32 %v3527_v23, 0.0  ;;  %v3564_v11 = vmax.f32 %v3532_v16, 0.0  ;;  %v3529_v26 = vadd.f32 %v9644_v36, %v3479_v57  ;;  %v3485_v21 = vmul.f32 %v9637_v25, %v9616_v61 }
 0xbba   :  { %7270 = vmatpush3.bf16.msra.mxu0 %v7625_v0  ;;  %v3562_v0 = vmax.f32 %v3530_v8, 0.0  ;;  %v3536_v30 = vadd.f32 %v9653_v49, %v3486_v56  ;;  %v3483_v40 = vmul.f32 %v9637_v25, %v9604_v14 }
 0xbbb   :  { %7271 = vmatprep.subr.bf16.mxu0 %v7626_v41  ;;  %v3579_v20 = vpack.c.bf16 %v3559_v12, %v3557_v4  ;;  %v3561_v24 = vmax.f32 %v3529_v26, 0.0  ;;  %v3535_v18 = vadd.f32 %v9644_v36, %v3485_v21 }
 0xbbc   :  { %v3582_v51 = vpack.c.bf16 %v3564_v11, %v3562_v0  ;;  %v3568_v2 = vmax.f32 %v3536_v30, 0.0  ;;  %v3533_v1 = vadd.f32 %v9644_v36, %v3483_v40 }
 0xbbd   :  { %3634 = vmatmul.mubr.bf16.gmra.mxu0 %v3573_v62  ;;  %v3531_v62 = vadd.f32 %v9644_v36, %v3481_v15 }
 0xbbe   :  { %3641 = vmatprep.mubr.bf16.mxu0 %v3576_v39  ;;  %7272 = vmatpush3.bf16.msra.mxu0 %v7626_v41  ;;  %v3534_v41 = vadd.f32 %v9653_v49, %v3484_v63  ;;  %v3567_v49 = vmax.f32 %v3535_v18, 0.0 }
 0xbbf   :  { %7273 = vmatprep.subr.bf16.mxu0 %v7627_v47  ;;  %v3563_v46 = vmax.f32 %v3531_v62, 0.0 }
 0xbc0   :  { %v3566_v39 = vmax.f32 %v3534_v41, 0.0 }
 0xbc1   :  { %v3581_v5 = vpack.c.bf16 %v3563_v46, %v3561_v24 }
 0xbc2   :  { %7274 = vmatpush3.bf16.msra.mxu0 %v7627_v47  ;;  %v3584_v22 = vpack.c.bf16 %v3568_v2, %v3566_v39  ;;  %v3565_v47 = vmax.f32 %v3533_v1, 0.0 }
 0xbc3   :  { %7275 = vmatprep.subr.bf16.mxu0 %v7628_v31 }
 0xbc4   :  { %v3583_v35 = vpack.c.bf16 %v3567_v49, %v3565_v47 }
 0xbc5   :  { %3642 = vmatmul.mubr.bf16.gmra.mxu0 %v3575_v42 }
 0xbc6   :  { %3649 = vmatprep.mubr.bf16.mxu0 %v3578_v3  ;;  %7276 = vmatpush3.bf16.msra.mxu0 %v7628_v31 }
 0xbc7   :  { %7277 = vmatprep.subr.bf16.mxu0 %v7629_v6 }
 0xbca   :  { %7278 = vmatpush3.bf16.msra.mxu0 %v7629_v6 }
 0xbcb   :  { %6907 = vmatprep.subr.bf16.mxu0 %v7630_v54 }
 0xbcd   :  { %3650 = vmatmul.mubr.bf16.gmra.mxu0 %v3577_v53 }
 0xbce   :  { %3657 = vmatprep.mubr.bf16.mxu0 %v3580_v43 }
 0xbd5   :  { %3658 = vmatmul.mubr.bf16.gmra.mxu0 %v3579_v20 }
 0xbd6   :  { %3665 = vmatprep.mubr.bf16.mxu0 %v3582_v51 }
 0xbdd   :  { %3666 = vmatmul.mubr.bf16.gmra.mxu0 %v3581_v5 }
 0xbde   :  { %3673 = vmatprep.mubr.bf16.mxu0 %v3584_v22 }
 0xbe5   :  { %3674 = vmatmul.mubr.bf16.gmra.mxu0 %v3583_v35 }
 0xc6d   :  { %v6827_v45 = vpop.f32.mrf.mxu0 }
 0xc6f   :  { %v6828_v60 = vpop.f32.mrf.mxu0 }
 0xc70   :  { %v9748_v6 = vadd.f32 %v6828_v60, %v6827_v45 }
 0xc71   :  { %v6830_v59 = vpop.f32.mrf.mxu0 }
 0xc72   :  { %v3703_v7 = vmul.f32 %v9748_v6, %v9748_v6 }
 0xc73   :  { %v6831_v9 = vpop.f32.mrf.mxu0 }
 0xc74   :  { %v9746_v52 = vadd.f32 %v6831_v9, %v6830_v59 }
 0xc75   :  { %v6833_v61 = vpop.f32.mrf.mxu0 }
 0xc76   :  { %v3704_v34 = vmul.f32 %v9746_v52, %v9746_v52  ;;  %v3682_v53 = vadd.f32 %v9746_v52, %v9748_v6 }
 0xc77   :  { %v6834_v13 = vpop.f32.mrf.mxu0 }
 0xc78   :  { %v9750_v48 = vadd.f32 %v6834_v13, %v6833_v61  ;;  %v3719_v43 = vadd.f32 %v3704_v34, %v3703_v7 }
 0xc79   :  { %v6836_v42 = vpop.f32.mrf.mxu0 }
 0xc7a   :  { %v3705_v29 = vmul.f32 %v9750_v48, %v9750_v48  ;;  %v3683_v8 = vadd.f32 %v9750_v48, %v3682_v53 }
 0xc7b   :  { %v6837_v14 = vpop.f32.mrf.mxu0 }
 0xc7c   :  { %v9754_v55 = vadd.f32 %v6837_v14, %v6836_v42  ;;  %v3720_v0 = vadd.f32 %v3719_v43, %v3705_v29 }
 0xc7d   :  { %v6839_v25 = vpop.f32.mrf.mxu0 }
 0xc7e   :  { %v3706_v16 = vmul.f32 %v9754_v55, %v9754_v55  ;;  %v3684_v11 = vadd.f32 %v9754_v55, %v3683_v8 }
 0xc7f   :  { %v6840_v17 = vpop.f32.mrf.mxu0 }
 0xc80   :  { %v9762_v23 = vadd.f32 %v6840_v17, %v6839_v25  ;;  %v3721_v63 = vadd.f32 %v3720_v0, %v3706_v16 }
 0xc81   :  { %v6842_v33 = vpop.f32.mrf.mxu0 }
 0xc82   :  { %v3707_v57 = vmul.f32 %v9762_v23, %v9762_v23  ;;  %v3685_v20 = vadd.f32 %v9762_v23, %v3684_v11 }
 0xc83   :  { %v6843_v31 = vpop.f32.mrf.mxu0 }
 0xc84   :  { %v9767_v4 = vadd.f32 %v6843_v31, %v6842_v33  ;;  %v3722_v51 = vadd.f32 %v3721_v63, %v3707_v57 }
 0xc85   :  { %v6845_v36 = vpop.f32.mrf.mxu0 }
 0xc86   :  { %v3708_v26 = vmul.f32 %v9767_v4, %v9767_v4  ;;  %v3686_v41 = vadd.f32 %v9767_v4, %v3685_v20 }
 0xc87   :  { %v6846_v3 = vpop.f32.mrf.mxu0 }
 0xc88   :  { %v9772_v15 = vadd.f32 %v6846_v3, %v6845_v36  ;;  %v3723_v2 = vadd.f32 %v3722_v51, %v3708_v26 }
 0xc89   :  { %v6848_v10 = vpop.f32.mrf.mxu0 }
 0xc8a   :  { %v3709_v24 = vmul.f32 %v9772_v15, %v9772_v15  ;;  %v3687_v21 = vadd.f32 %v9772_v15, %v3686_v41 }
 0xc8b   :  { %v6849_v27 = vpop.f32.mrf.mxu0 }
 0xc8c   :  { %v9777_v62 = vadd.f32 %v6849_v27, %v6848_v10  ;;  %v3724_v1 = vadd.f32 %v3723_v2, %v3709_v24 }
 0xc8d   :  { %v6851_v32 = vpop.f32.mrf.mxu0 }
 0xc8e   :  { %v3710_v40 = vmul.f32 %v9777_v62, %v9777_v62  ;;  %v3688_v22 = vadd.f32 %v9777_v62, %v3687_v21 }
 0xc8f   :  { %v6852_v50 = vpop.f32.mrf.mxu0 }
 0xc90   :  { %v9782_v46 = vadd.f32 %v6852_v50, %v6851_v32  ;;  %v3725_v45 = vadd.f32 %v3724_v1, %v3710_v40 }
 0xc91   :  { %v6854_v19 = vpop.f32.mrf.mxu0 }
 0xc92   :  { %v3711_v49 = vmul.f32 %v9782_v46, %v9782_v46  ;;  %v3689_v60 = vadd.f32 %v9782_v46, %v3688_v22 }
 0xc93   :  { %v6855_v54 = vpop.f32.mrf.mxu0 }
 0xc94   :  { %v9787_v18 = vadd.f32 %v6855_v54, %v6854_v19  ;;  %v3726_v13 = vadd.f32 %v3725_v45, %v3711_v49 }
 0xc95   :  { %v6857_v12 = vpop.f32.mrf.mxu0 }
 0xc96   :  { %v3712_v59 = vmul.f32 %v9787_v18, %v9787_v18  ;;  %v3690_v42 = vadd.f32 %v9787_v18, %v3689_v60 }
 0xc97   :  { %v6858_v56 = vpop.f32.mrf.mxu0 }
 0xc98   :  { %v9792_v47 = vadd.f32 %v6858_v56, %v6857_v12  ;;  %v3727_v33 = vadd.f32 %v3726_v13, %v3712_v59 }
 0xc99   :  { %v6860_v30 = vpop.f32.mrf.mxu0 }
 0xc9a   :  { %v3713_v14 = vmul.f32 %v9792_v47, %v9792_v47  ;;  %v3691_v31 = vadd.f32 %v9792_v47, %v3690_v42 }
 0xc9b   :  { %v6861_v39 = vpop.f32.mrf.mxu0 }
 0xc9c   :  { %v9797_v9 = vadd.f32 %v6861_v39, %v6860_v30  ;;  %v3728_v27 = vadd.f32 %v3727_v33, %v3713_v14 }
 0xc9d   :  { %v6863_v5 = vpop.f32.mrf.mxu0 }
 0xc9e   :  { %v3714_v36 = vmul.f32 %v9797_v9, %v9797_v9  ;;  %v3692_v32 = vadd.f32 %v9797_v9, %v3691_v31 }
 0xc9f   :  { %v6864_v35 = vpop.f32.mrf.mxu0 }
 0xca0   :  { %v9802_v25 = vadd.f32 %v6864_v35, %v6863_v5  ;;  %v3729_v19 = vadd.f32 %v3728_v27, %v3714_v36 }
 0xca1   :  { %v6866_v61 = vpop.f32.mrf.mxu0 }
 0xca2   :  { %v3715_v50 = vmul.f32 %v9802_v25, %v9802_v25  ;;  %v3693_v7 = vadd.f32 %v9802_v25, %v3692_v32 }
 0xca3   :  { %v6867_v17 = vpop.f32.mrf.mxu0 }
 0xca4   :  { %v9807_v3 = vadd.f32 %v6867_v17, %v6866_v61  ;;  %v3730_v43 = vadd.f32 %v3729_v19, %v3715_v50 }
 0xca5   :  { %v6869_v10 = vpop.f32.mrf.mxu0 }
 0xca6   :  { %v3716_v53 = vmul.f32 %v9807_v3, %v9807_v3  ;;  %v3694_v8 = vadd.f32 %v9807_v3, %v3693_v7 }
 0xca7   :  { %v6870_v34 = vpop.f32.mrf.mxu0 }
 0xca8   :  { %v9815_v29 = vadd.f32 %v6870_v34, %v6869_v10  ;;  %v3731_v0 = vadd.f32 %v3730_v43, %v3716_v53 }
 0xca9   :  { %v6872_v54 = vpop.f32.mrf.mxu0 }
 0xcaa   :  { %v3717_v16 = vmul.f32 %v9815_v29, %v9815_v29  ;;  %v3695_v11 = vadd.f32 %v9815_v29, %v3694_v8 }
 0xcab   :  { %v6873_v12 = vpop.f32.mrf.mxu0 }
 0xcac   :  { %v6874_v57 = vadd.f32 %v6873_v12, %v6872_v54  ;;  %v3732_v56 = vadd.f32 %v3731_v0, %v3717_v16 }
 0xcae   :  { %v3696_v63 = vadd.f32 %v6874_v57, %v3695_v11  ;;  %v3718_v20 = vmul.f32 %v6874_v57, %v6874_v57 }
 0xcb0   :  { %v3697_v26 = vrot.slane %v3696_v63, 4  ;;  %v3733_v30 = vadd.f32 %v3732_v56, %v3718_v20 }
 0xcb2   :  { %v3698_v51 = vadd.f32 %v3697_v26, %v3696_v63  ;;  %v3734_v41 = vrot.slane %v3733_v30, 4 }
 0xcb4   :  { %v3699_v24 = vrot.slane %v3698_v51, 2  ;;  %v3735_v39 = vadd.f32 %v3734_v41, %v3733_v30 }
 0xcb6   :  { %v3700_v2 = vadd.f32 %v3699_v24, %v3698_v51  ;;  %v3736_v21 = vrot.slane %v3735_v39, 2 }
 0xcb8   :  { %v3701_v40 = vrot.slane %v3700_v2, 1  ;;  %v3737_v5 = vadd.f32 %v3736_v21, %v3735_v39 }
 0xcba   :  { %v3702_v1 = vadd.f32 %v3701_v40, %v3700_v2  ;;  %v3738_v22 = vrot.slane %v3737_v5, 1 }
 0xcbc   :  { %v3739_v49 = vadd.f32 %v3738_v22, %v3737_v5  ;;  %v3740_v35 = vmul.f32 0.0078125, %v3702_v1  ;;  %v7631_v22 = vld [vmem:[#allocation2 + $0x310] ss:$8 sps:$4 sm:$0xff]  }
 0xcbe   :  { %v3741_v45 = vmul.f32 0.0078125, %v3739_v49  ;;  %v3742_v60 = vmul.f32 %v3740_v35, %v3740_v35 }
 0xcc0   :  { %v3743_v59 = vsub.f32 %v3741_v45, %v3742_v60  ;;  %v7632_v45 = vld [vmem:[#allocation2 + $0x304] ss:$8 sps:$4 sm:$0xff]  }
 0xcc2   :  { %v3744_v61 = vmax.f32 %v3743_v59, 0.0 }
 0xcc4   :  { %v3745_v13 = vadd.f32 1e-05, %v3744_v61 }
 0xcc6   :  { %7546 = vrsqrt.f32 %v3745_v13 }
 0xcd3   :  { %v7547_v42 = vpop.eup %7546 }
 0xcd4   :  { %v3747_v14 = vmul.f32 %v9630_v28, %v7547_v42 }
 0xcd6   :  { %v3768_v17 = vmul.f32 %v3747_v14, %v3740_v35  ;;  %v3751_v33 = vrot.slane %v3747_v14, %v8245_v44  ;;  %v7633_v14 = vld [vmem:[#allocation2 + $0x300] ss:$8 sps:$4 sm:$0xff]  }
 0xcd8   :  { %v3770_v31 = vrot.slane %v3768_v17, 7  ;;  %v3752_v27 = vmul.f32 %v9748_v6, %v3751_v33  ;;  %v3753_v32 = vmul.f32 %v9746_v52, %v3751_v33  ;;  %v3754_v50 = vmul.f32 %v9750_v48, %v3751_v33 }
 0xcd9   :  { %v3767_v34 = vmul.f32 %v6874_v57, %v3751_v33  ;;  %v3755_v19 = vmul.f32 %v9754_v55, %v3751_v33  ;;  %v3756_v7 = vmul.f32 %v9762_v23, %v3751_v33  ;;  %v3757_v53 = vmul.f32 %v9767_v4, %v3751_v33 }
 0xcda   :  { %v3772_v36 = vsub.f32 %v9630_v28, %v3770_v31  ;;  %v3758_v16 = vmul.f32 %v9772_v15, %v3751_v33  ;;  %v3759_v6 = vmul.f32 %v9777_v62, %v3751_v33  ;;  %v3760_v57 = vmul.f32 %v9782_v46, %v3751_v33 }
 0xcdb   :  { %v3761_v26 = vmul.f32 %v9787_v18, %v3751_v33  ;;  %v3764_v30 = vmul.f32 %v9802_v25, %v3751_v33  ;;  %v3765_v15 = vmul.f32 %v9807_v3, %v3751_v33  ;;  %v3766_v62 = vmul.f32 %v9815_v29, %v3751_v33 }
 0xcdc   :  { %v3776_v10 = vrot.slane %v3772_v36, %v8251_v38  ;;  %v3762_v59 = vmul.f32 %v9792_v47, %v3751_v33  ;;  %v3763_v61 = vmul.f32 %v9797_v9, %v3751_v33  ;;  %v7637_v47 = vld [vmem:[#allocation2 + $0x2e0] ss:$8 sps:$4 sm:$0xff]   ;;  %v7638_v33 = vld [vmem:[#allocation2 + $0x2d4] ss:$8 sps:$4 sm:$0xff]  }
 0xcde   :  { %v3777_v54 = vadd.f32 %v3776_v10, %v3752_v27  ;;  %v3778_v43 = vadd.f32 %v3776_v10, %v3753_v32  ;;  %v3779_v8 = vadd.f32 %v3776_v10, %v3754_v50  ;;  %v3780_v12 = vadd.f32 %v3776_v10, %v3755_v19  ;;  %v7634_v27 = vld [vmem:[#allocation2 + $0x2f4] ss:$8 sps:$4 sm:$0xff]   ;;  %v7635_v50 = vld [vmem:[#allocation2 + $0x2f0] ss:$8 sps:$4 sm:$0xff]  }
 0xcdf   :  { %v3781_v0 = vadd.f32 %v3776_v10, %v3756_v7  ;;  %v3782_v11 = vadd.f32 %v3776_v10, %v3757_v53  ;;  %v3792_v55 = vadd.f32 %v3776_v10, %v3767_v34  ;;  %v3783_v41 = vadd.f32 %v3776_v10, %v3758_v16  ;;  %v7636_v7 = vld [vmem:[#allocation2 + $0x2e4] ss:$8 sps:$4 sm:$0xff]   ;;  %v7639_v53 = vld [vmem:[#allocation2 + $0x2d0] ss:$8 sps:$4 sm:$0xff]  }
 0xce0   :  { %v3793_v52 = vmax.f32 %v3777_v54, 0.0  ;;  %v3794_v56 = vmax.f32 %v3778_v43, 0.0  ;;  %v3795_v48 = vmax.f32 %v3779_v8, 0.0  ;;  %v3796_v63 = vmax.f32 %v3780_v12, 0.0  ;;  %v7641_v54 = vld [vmem:[#allocation2 + $0x2c0] ss:$8 sps:$4 sm:$0xff]  }
 0xce1   :  { %v3797_v23 = vmax.f32 %v3781_v0, 0.0  ;;  %v3798_v20 = vmax.f32 %v3782_v11, 0.0  ;;  %v3784_v24 = vadd.f32 %v3776_v10, %v3759_v6  ;;  %v3785_v2 = vadd.f32 %v3776_v10, %v3760_v57  ;;  %v7642_v43 = vld [vmem:[#allocation2 + $0x2b4] ss:$8 sps:$4 sm:$0xff]   ;;  %v7643_v8 = vld [vmem:[#allocation2 + $0x2b0] ss:$8 sps:$4 sm:$0xff]  }
 0xce2   :  { %v3809_v4 = vpack.c.bf16 %v3794_v56, %v3793_v52  ;;  %v3810_v51 = vpack.c.bf16 %v3796_v63, %v3795_v48  ;;  %v3786_v46 = vadd.f32 %v3776_v10, %v3761_v26  ;;  %v3789_v21 = vadd.f32 %v3776_v10, %v3764_v30  ;;  %v7644_v12 = vld [vmem:[#allocation2 + $0x2a4] ss:$8 sps:$4 sm:$0xff]   ;;  %v7645_v0 = vld [vmem:[#allocation2 + $0x2a0] ss:$8 sps:$4 sm:$0xff]   ;;  %v9841_v11 = vld [vmem:[#allocation2 + $0x490] ss:$8 sps:$4 sm:$0xff]  }
 0xce3   :  { %v3811_v39 = vpack.c.bf16 %v3798_v20, %v3797_v23  ;;  %v3808_v40 = vmax.f32 %v3792_v55, 0.0  ;;  %v3790_v5 = vadd.f32 %v3776_v10, %v3765_v15  ;;  %v3791_v1 = vadd.f32 %v3776_v10, %v3766_v62 }
 0xce4   :  { %7247 = vmatprep.mubr.bf16.mxu1 %v3809_v4  ;;  %v3805_v18 = vmax.f32 %v3789_v21, 0.0  ;;  %v3799_v25 = vmax.f32 %v3783_v41, 0.0  ;;  %v3800_v3 = vmax.f32 %v3784_v24, 0.0  ;;  %v3801_v29 = vmax.f32 %v3785_v2, 0.0 }
 0xce5   :  { %7248 = vmatmul.mubr.bf16.vlgmr.msra.gmra.mxu1 %v3810_v51  ;;  %v3806_v49 = vmax.f32 %v3790_v5, 0.0  ;;  %v3807_v35 = vmax.f32 %v3791_v1, 0.0  ;;  %v3802_v60 = vmax.f32 %v3786_v46, 0.0  ;;  %v3787_v31 = vadd.f32 %v3776_v10, %v3762_v59 }
 0xce6   :  { %7251 = vmatprep.mubr.bf16.mxu1 %v3811_v39  ;;  %4346 = vmatpush1.bf16.msra.mxu1 %v7631_v22  ;;  %v3812_v17 = vpack.c.bf16 %v3800_v3, %v3799_v25  ;;  %v3788_v36 = vadd.f32 %v3776_v10, %v3763_v61  ;;  %v7640_v10 = vld [vmem:[#allocation2 + $0x2c4] ss:$8 sps:$4 sm:$0xff]   ;;  %v11919_v16 = vmov 0  }
 0xce7   :  { %4347 = vmatprep.subr.bf16.mxu1 %v7632_v45  ;;  %v3815_v13 = vpack.c.bf16 %v3806_v49, %v3805_v18  ;;  %v3816_v42 = vpack.c.bf16 %v3808_v40, %v3807_v35  ;;  %v3813_v32 = vpack.c.bf16 %v3802_v60, %v3801_v29  ;;  %v3803_v34 = vmax.f32 %v3787_v31, 0.0 }
 0xce8   :  { %v3804_v19 = vmax.f32 %v3788_v36, 0.0 }
 0xcea   :  { %4348 = vmatpush1.bf16.msra.mxu1 %v7633_v14  ;;  %v3814_v9 = vpack.c.bf16 %v3804_v19, %v3803_v34 }
 0xceb   :  { %4349 = vmatprep.subr.bf16.mxu1 %v7634_v27 }
 0xced   :  { %7252 = vmatmul.mubr.bf16.gmra.mxu1 %v3812_v17 }
 0xcee   :  { %7255 = vmatprep.mubr.bf16.mxu1 %v3813_v32  ;;  %4350 = vmatpush1.bf16.msra.mxu1 %v7635_v50 }
 0xcef   :  { %4351 = vmatprep.subr.bf16.mxu1 %v7636_v7 }
 0xcf2   :  { %4352 = vmatpush1.bf16.msra.mxu1 %v7637_v47 }
 0xcf3   :  { %4353 = vmatprep.subr.bf16.mxu1 %v7638_v33 }
 0xcf5   :  { %7256 = vmatmul.mubr.bf16.gmra.mxu1 %v3814_v9 }
 0xcf6   :  { %7259 = vmatprep.mubr.bf16.mxu1 %v3815_v13  ;;  %4354 = vmatpush1.bf16.msra.mxu1 %v7639_v53 }
 0xcf7   :  { %4355 = vmatprep.subr.bf16.mxu1 %v7640_v10 }
 0xcfa   :  { %4356 = vmatpush1.bf16.msra.mxu1 %v7641_v54 }
 0xcfb   :  { %4357 = vmatprep.subr.bf16.mxu1 %v7642_v43 }
 0xcfd   :  { %7260 = vmatmul.mubr.bf16.gmra.mxu1 %v3816_v42 }
 0xcfe   :  { %4358 = vmatpush1.bf16.msra.mxu1 %v7643_v8  ;;  %4377 = vmatprep.mubr.bf16.mxu1 %v11919_v16 }
 0xcff   :  { %4359 = vmatprep.subr.bf16.mxu1 %v7644_v12 }
 0xd02   :  { %4360 = vmatpush1.bf16.msra.mxu1 %v7645_v0 }
 0xd03   :  { %7295 = vmatprep.subr.bf16.mxu1 %v9841_v11 }
 0xda5   :  { %v9844_v6 = vpop.f32.mrf.mxu1 }
 0xda6   :  { %v3937_v20 = vmul.f32 %v9844_v6, %v9844_v6 }
 0xda7   :  { %v9846_v52 = vpop.f32.mrf.mxu1 }
 0xda8   :  { %v3935_v57 = vmul.f32 %v9846_v52, %v9846_v52 }
 0xda9   :  { %v9848_v56 = vpop.f32.mrf.mxu1 }
 0xdaa   :  { %v3938_v15 = vmul.f32 %v9848_v56, %v9848_v56 }
 0xdab   :  { %v9850_v48 = vpop.f32.mrf.mxu1 }
 0xdac   :  { %v3914_v55 = vadd.f32 %v9850_v48, %v9846_v52  ;;  %v3936_v63 = vmul.f32 %v9850_v48, %v9850_v48 }
 0xdad   :  { %v9858_v23 = vpop.f32.mrf.mxu1 }
 0xdae   :  { %v3915_v4 = vadd.f32 %v9844_v6, %v3914_v55  ;;  %v3951_v26 = vadd.f32 %v3936_v63, %v3935_v57  ;;  %v3941_v18 = vmul.f32 %v9858_v23, %v9858_v23 }
 0xdaf   :  { %v9863_v30 = vpop.f32.mrf.mxu1 }
 0xdb0   :  { %v3952_v51 = vadd.f32 %v3951_v26, %v3937_v20  ;;  %v3916_v41 = vadd.f32 %v9848_v56, %v3915_v4  ;;  %v3939_v39 = vmul.f32 %v9863_v30, %v9863_v30 }
 0xdb1   :  { %v9868_v24 = vpop.f32.mrf.mxu1 }
 0xdb2   :  { %v3917_v62 = vadd.f32 %v3916_v41, %v9863_v30  ;;  %v3953_v2 = vadd.f32 %v3952_v51, %v3938_v15  ;;  %v3942_v49 = vmul.f32 %v9868_v24, %v9868_v24 }
 0xdb3   :  { %v9873_v46 = vpop.f32.mrf.mxu1 }
 0xdb4   :  { %v3954_v21 = vadd.f32 %v3953_v2, %v3939_v39  ;;  %v3918_v40 = vadd.f32 %v3917_v62, %v9873_v46  ;;  %v3940_v5 = vmul.f32 %v9873_v46, %v9873_v46 }
 0xdb5   :  { %v9878_v1 = vpop.f32.mrf.mxu1 }
 0xdb6   :  { %v3919_v22 = vadd.f32 %v9858_v23, %v3918_v40  ;;  %v3955_v25 = vadd.f32 %v3954_v21, %v3940_v5  ;;  %v3945_v36 = vmul.f32 %v9878_v1, %v9878_v1 }
 0xdb7   :  { %v9883_v3 = vpop.f32.mrf.mxu1 }
 0xdb8   :  { %v3956_v35 = vadd.f32 %v3955_v25, %v3941_v18  ;;  %v3920_v45 = vadd.f32 %v9868_v24, %v3919_v22  ;;  %v3943_v59 = vmul.f32 %v9883_v3, %v9883_v3 }
 0xdb9   :  { %v9888_v29 = vpop.f32.mrf.mxu1 }
 0xdba   :  { %v3921_v60 = vadd.f32 %v3920_v45, %v9883_v3  ;;  %v3957_v61 = vadd.f32 %v3956_v35, %v3942_v49  ;;  %v3946_v34 = vmul.f32 %v9888_v29, %v9888_v29 }
 0xdbb   :  { %v9893_v13 = vpop.f32.mrf.mxu1 }
 0xdbc   :  { %v3958_v42 = vadd.f32 %v3957_v61, %v3943_v59  ;;  %v3922_v14 = vadd.f32 %v3921_v60, %v9893_v13  ;;  %v3944_v17 = vmul.f32 %v9893_v13, %v9893_v13 }
 0xdbd   :  { %v9898_v31 = vpop.f32.mrf.mxu1 }
 0xdbe   :  { %v3923_v27 = vadd.f32 %v9878_v1, %v3922_v14  ;;  %v3959_v32 = vadd.f32 %v3958_v42, %v3944_v17  ;;  %v3949_v12 = vmul.f32 %v9898_v31, %v9898_v31  ;;  %v11920_v17 = vld [vmem:[#allocation15_spill] sm:$0xff] }
 0xdbf   :  { %v9903_v50 = vpop.f32.mrf.mxu1 }
 0xdc0   :  { %v3960_v19 = vadd.f32 %v3959_v32, %v3945_v36  ;;  %v3924_v7 = vadd.f32 %v9888_v29, %v3923_v27  ;;  %v3947_v33 = vmul.f32 %v9903_v50, %v9903_v50  ;;  %v7647_v32 = vld [vmem:[%s11729_s2 + $0x20] sm:$0xff] }
 0xdc1   :  { %v9908_v47 = vpop.f32.mrf.mxu1 }
 0xdc2   :  { %v3925_v9 = vadd.f32 %v3924_v7, %v9903_v50  ;;  %v3961_v53 = vadd.f32 %v3960_v19, %v3946_v34  ;;  %v3950_v55 = vmul.f32 %v9908_v47, %v9908_v47  ;;  %v11921_v19 = vld [vmem:[#allocation8_spill] sm:$0xff] }
 0xdc3   :  { %v9913_v10 = vpop.f32.mrf.mxu1 }
 0xdc4   :  { %v3962_v54 = vadd.f32 %v3961_v53, %v3947_v33  ;;  %v3926_v43 = vadd.f32 %v3925_v9, %v9913_v10  ;;  %v3948_v8 = vmul.f32 %v9913_v10, %v9913_v10 }
 0xdc6   :  { %v3927_v0 = vadd.f32 %v9898_v31, %v3926_v43  ;;  %v3963_v57 = vadd.f32 %v3962_v54, %v3948_v8 }
 0xdc8   :  { %v3928_v63 = vadd.f32 %v9908_v47, %v3927_v0  ;;  %v3964_v20 = vadd.f32 %v3963_v57, %v3949_v12 }
 0xdca   :  { %v3929_v4 = vrot.slane %v3928_v63, 4  ;;  %v3965_v26 = vadd.f32 %v3964_v20, %v3950_v55 }
 0xdcc   :  { %v3930_v15 = vadd.f32 %v3929_v4, %v3928_v63  ;;  %v3966_v51 = vrot.slane %v3965_v26, 4 }
 0xdce   :  { %v3931_v41 = vrot.slane %v3930_v15, 2  ;;  %v3967_v62 = vadd.f32 %v3966_v51, %v3965_v26 }
 0xdd0   :  { %v3932_v39 = vadd.f32 %v3931_v41, %v3930_v15  ;;  %v3968_v2 = vrot.slane %v3967_v62, 2  ;;  %v11922_v15 = vld [vmem:[#allocation16_spill] sm:$0xff] }
 0xdd2   :  { %v3933_v21 = vrot.slane %v3932_v39, 1  ;;  %v3969_v40 = vadd.f32 %v3968_v2, %v3967_v62  ;;  %v11926_v62 = vld [vmem:[#allocation12_spill] sm:$0xff] }
 0xdd4   :  { %v3934_v5 = vadd.f32 %v3933_v21, %v3932_v39  ;;  %v3970_v18 = vrot.slane %v3969_v40, 1 }
 0xdd6   :  { %v3971_v22 = vadd.f32 %v3970_v18, %v3969_v40  ;;  %v3972_v25 = vmul.f32 0.0078125, %v3934_v5  ;;  %v11930_v40 = vld [vmem:[#allocation17_spill] sm:$0xff]  ;;  %v11932_v18 = vld [vmem:[#allocation20_spill] sm:$0xff] }
 0xdd8   :  { %v3973_v49 = vmul.f32 0.0078125, %v3971_v22  ;;  %v3974_v35 = vmul.f32 %v3972_v25, %v3972_v25 }
 0xdda   :  { %v3975_v45 = vsub.f32 %v3973_v49, %v3974_v35  ;;  %v11934_v49 = vld [vmem:[#allocation11_spill] sm:$0xff] }
 0xddc   :  { %v3976_v60 = vmax.f32 %v3975_v45, 0.0 }
 0xdde   :  { %v3977_v59 = vadd.f32 1e-05, %v3976_v60 }
 0xde0   :  { %7548 = vrsqrt.f32 %v3977_v59 }
 0xded   :  { %v7549_v61 = vpop.eup %7548 }
 0xdee   :  { %v3979_v42 = vmul.f32 %v9630_v28, %v7549_v61 }
 0xdf0   :  { %v4000_v14 = vmul.f32 %v3979_v42, %v3972_v25  ;;  %v9926_v36 = vrot.slane %v3979_v42, %v11920_v17 }
 0xdf2   :  { %v4002_v27 = vrot.slane %v4000_v14, 7  ;;  %v3985_v9 = vmul.f32 %v9926_v36, %v9850_v48  ;;  %v3984_v33 = vmul.f32 %v9926_v36, %v9846_v52  ;;  %v3986_v28 = vmul.f32 %v9844_v6, %v9926_v36 }
 0xdf3   :  { %v3987_v53 = vmul.f32 %v9848_v56, %v9926_v36  ;;  %v3988_v54 = vmul.f32 %v9926_v36, %v9863_v30  ;;  %v3989_v43 = vmul.f32 %v9926_v36, %v9873_v46  ;;  %v3990_v52 = vmul.f32 %v9858_v23, %v9926_v36  ;;  %v11924_v23 = vld [vmem:[#allocation19_spill] sm:$0xff] }
 0xdf4   :  { %v4004_v34 = vsub.f32 %v7647_v32, %v4002_v27  ;;  %v3991_v30 = vmul.f32 %v9868_v24, %v9926_v36  ;;  %v11928_v24 = vld [vmem:[#allocation18_spill] sm:$0xff]  ;;  %v3992_v25 = vmul.f32 %v9926_v36, %v9883_v3  ;;  %v3997_v61 = vmul.f32 %v9926_v36, %v9913_v10 }
 0xdf5   :  { %v3993_v14 = vmul.f32 %v9926_v36, %v9893_v13  ;;  %v3996_v13 = vmul.f32 %v9926_v36, %v9903_v50 }
 0xdf6   :  { %v9932_v7 = vrot.slane %v4004_v34, %v11921_v19  ;;  %v3994_v34 = vmul.f32 %v9878_v1, %v9926_v36 }
 0xdf8   :  { %v4010_v8 = vadd.f32 %v9932_v7, %v3985_v9  ;;  %v4009_v12 = vadd.f32 %v9932_v7, %v3984_v33  ;;  %v4011_v48 = vadd.f32 %v9932_v7, %v3986_v28  ;;  %v4012_v6 = vadd.f32 %v9932_v7, %v3987_v53  ;;  %v11935_v53 = vld [vmem:[#allocation21_spill] sm:$0xff] }
 0xdf9   :  { %v4013_v0 = vadd.f32 %v9932_v7, %v3988_v54  ;;  %v4014_v56 = vadd.f32 %v9932_v7, %v3989_v43  ;;  %v4015_v63 = vadd.f32 %v9932_v7, %v3990_v52  ;;  %v4016_v2 = vadd.f32 %v9932_v7, %v3991_v30  ;;  %v7648_v43 = vld [vmem:[#allocation2 + $0x390] ss:$8 sps:$4 sm:$0xff]   ;;  %v7649_v52 = vld [vmem:[#allocation2 + $0x400] ss:$8 sps:$4 sm:$0xff]  }
 0xdfa   :  { %v4026_v57 = vmax.f32 %v4010_v8, 0.0  ;;  %v4025_v46 = vmax.f32 %v4009_v12, 0.0  ;;  %v4027_v55 = vmax.f32 %v4011_v48, 0.0  ;;  %v4028_v20 = vmax.f32 %v4012_v6, 0.0  ;;  %v11937_v8 = vld [vmem:[#allocation22_spill] sm:$0xff] }
 0xdfb   :  { %v4029_v4 = vmax.f32 %v4013_v0, 0.0  ;;  %v4030_v26 = vmax.f32 %v4014_v56, 0.0  ;;  %v4031_v59 = vmax.f32 %v4015_v63, 0.0  ;;  %v4032_v27 = vmax.f32 %v4016_v2, 0.0  ;;  %v11939_v0 = vld [vmem:[#allocation23_spill] sm:$0xff] }
 0xdfc   :  { %v9958_v51 = vadd.f32 %v4026_v57, %v11922_v15  ;;  %v9961_v41 = vadd.f32 %v4025_v46, %v11924_v23  ;;  %v9964_v39 = vadd.f32 %v4027_v55, %v11926_v62  ;;  %v9968_v21 = vadd.f32 %v4028_v20, %v11928_v24  ;;  %v11941_v57 = vld [vmem:[#allocation24_spill] sm:$0xff]  ;;  %v7651_v23 = vld [vmem:[#allocation2 + $0x3f0] ss:$8 sps:$4 sm:$0xff]  }
 0xdfd   :  { %v9971_v5 = vadd.f32 %v4029_v4, %v11930_v40  ;;  %v9974_v22 = vadd.f32 %v4030_v26, %v11932_v18  ;;  %v4017_v32 = vadd.f32 %v9932_v7, %v3992_v25  ;;  %v4018_v10 = vadd.f32 %v9932_v7, %v3993_v14  ;;  %v7650_v63 = vld [vmem:[#allocation2 + $0x380] ss:$8 sps:$4 sm:$0xff]  }
 0xdfe   :  { %11923 = vst [vmem:[#allocation31_spill] sm:$0xff] %v9958_v51  ;;  %11925 = vst [vmem:[#allocation16_spill] sm:$0xff] %v9961_v41  ;;  %v4058_v35 = vmul.f32 %v9958_v51, %v11934_v49  ;;  %v4105_v45 = vpack.c.bf16 %v9958_v51, %v9961_v41  ;;  %v4057_v60 = vmul.f32 %v9961_v41, %v11934_v49 }
 0xdff   :  { %11927 = vst [vmem:[#allocation19_spill] sm:$0xff] %v9964_v39  ;;  %11929 = vst [vmem:[#allocation12_spill] sm:$0xff] %v9968_v21  ;;  %v4106_v42 = vpack.c.bf16 %v9968_v21, %v9964_v39  ;;  %v4107_v3 = vpack.c.bf16 %v9974_v22, %v9971_v5  ;;  %v3995_v9 = vmul.f32 %v9888_v29, %v9926_v36  ;;  %v4033_v1 = vmax.f32 %v4017_v32, 0.0 }
 0xe00   :  { %11931 = vst [vmem:[#allocation18_spill] sm:$0xff] %v9971_v5  ;;  %11933 = vst [vmem:[#allocation17_spill] sm:$0xff] %v9974_v22  ;;  %4075 = vadd.xlane.f32.xlu1 %v4058_v35  ;;  %7279 = vmatprep.mubr.bf16.mxu0 %v4105_v45  ;;  %v4060_v33 = vmul.f32 %v9968_v21, %v11934_v49  ;;  %v4059_v28 = vmul.f32 %v9964_v39, %v11934_v49  ;;  %v4034_v29 = vmax.f32 %v4018_v10, 0.0  ;;  %v7652_v45 = vld [vmem:[#allocation2 + $0x370] ss:$8 sps:$4 sm:$0xff]  }
 0xe01   :  { %4073 = vadd.xlane.f32.xlu0 %v4057_v60  ;;  %7280 = vmatmul.mubr.bf16.vlgmr.msra.gmra.mxu0 %v4106_v42  ;;  %v10005_v54 = vadd.f32 %v4031_v59, %v11935_v53  ;;  %v10008_v12 = vadd.f32 %v4032_v27, %v11937_v8  ;;  %v4019_v48 = vadd.f32 %v9932_v7, %v3994_v34  ;;  %v11943_v60 = vld [vmem:[#allocation25_spill] sm:$0xff]  ;;  %v11949_v27 = vld [vmem:[#allocation27_spill] sm:$0xff] }
 0xe02   :  { %7283 = vmatprep.mubr.bf16.mxu0 %v4107_v3  ;;  %6908 = vmatpush3.bf16.msra.mxu0 %v7648_v43  ;;  %v4020_v50 = vadd.f32 %v9932_v7, %v3995_v9  ;;  %v4022_v6 = vadd.f32 %v9932_v7, %v3997_v61  ;;  %v10014_v56 = vadd.f32 %v4033_v1, %v11939_v0  ;;  %v11945_v61 = vld [vmem:[#allocation26_spill] sm:$0xff]  ;;  %v7654_v10 = vld [vmem:[#allocation2 + $0x360] ss:$8 sps:$4 sm:$0xff]  }
 0xe03   :  { %11936 = vst [vmem:[#allocation20_spill] sm:$0xff] %v10005_v54  ;;  %11938 = vst [vmem:[#allocation21_spill] sm:$0xff] %v10008_v12  ;;  %6909 = vmatprep.subr.bf16.mxu0 %v7649_v52  ;;  %v4021_v30 = vadd.f32 %v9932_v7, %v3996_v13  ;;  %v10018_v46 = vadd.f32 %v4034_v29, %v11941_v57  ;;  %v4062_v55 = vmul.f32 %v9974_v22, %v11934_v49  ;;  %v7656_v43 = vld [vmem:[#allocation2 + $0x350] ss:$8 sps:$4 sm:$0xff]  }
 0xe04   :  { %4079 = vadd.xlane.f32.xlu1 %v4060_v33  ;;  %11940 = vst [vmem:[#allocation22_spill] sm:$0xff] %v10014_v56  ;;  %v4061_v20 = vmul.f32 %v9971_v5, %v11934_v49  ;;  %v4108_v4 = vpack.c.bf16 %v10008_v12, %v10005_v54  ;;  %v4035_v26 = vmax.f32 %v4019_v48, 0.0  ;;  %v4036_v15 = vmax.f32 %v4020_v50, 0.0  ;;  %v11951_v29 = vld [vmem:[#allocation29_spill] sm:$0xff]  ;;  %v11953_v50 = vld [vmem:[#allocation30_spill] sm:$0xff] }
 0xe05   :  { %4077 = vadd.xlane.f32.xlu0 %v4059_v28  ;;  %11942 = vst [vmem:[#allocation23_spill] sm:$0xff] %v10018_v46  ;;  %v4038_v62 = vmax.f32 %v4022_v6, 0.0  ;;  %v4109_v2 = vpack.c.bf16 %v10018_v46, %v10014_v56  ;;  %v4037_v24 = vmax.f32 %v4021_v30, 0.0  ;;  %v3998_v40 = vmul.f32 %v9898_v31, %v9926_v36  ;;  %v7655_v28 = vld [vmem:[#allocation2 + $0x3d0] ss:$8 sps:$4 sm:$0xff]  }
 0xe06   :  { %6910 = vmatpush3.bf16.msra.mxu0 %v7650_v63  ;;  %v3999_v18 = vmul.f32 %v9908_v47, %v9926_v36  ;;  %v4063_v25 = vmul.f32 %v10005_v54, %v11934_v49  ;;  %v4064_v35 = vmul.f32 %v10008_v12, %v11934_v49  ;;  %v10037_v59 = vadd.f32 %v4035_v26, %v11943_v60  ;;  %v7653_v47 = vld [vmem:[#allocation2 + $0x3e0] ss:$8 sps:$4 sm:$0xff]   ;;  %v7659_v63 = vld [vmem:[#allocation2 + $0x3b0] ss:$8 sps:$4 sm:$0xff]  }
 0xe07   :  { %6911 = vmatprep.subr.bf16.mxu0 %v7651_v23  ;;  %v10040_v42 = vadd.f32 %v4036_v15, %v11945_v61  ;;  %v4023_v31 = vadd.f32 %v9932_v7, %v3998_v40  ;;  %v11947_v36 = vld [vmem:[#allocation28_spill] sm:$0xff]  ;;  %v10048_v32 = vadd.f32 %v4037_v24, %v11949_v27  ;;  %v4065_v34 = vmul.f32 %v10014_v56, %v11934_v49 }
 0xe08   :  { %4083 = vadd.xlane.f32.xlu1 %v4062_v55  ;;  %11944 = vst [vmem:[#allocation24_spill] sm:$0xff] %v10037_v59  ;;  %v4024_v14 = vadd.f32 %v9932_v7, %v3999_v18  ;;  %v10045_v3 = vadd.f32 %v4038_v62, %v11947_v36  ;;  %v4066_v9 = vmul.f32 %v10018_v46, %v11934_v49  ;;  %v7657_v6 = vld [vmem:[#allocation2 + $0x3c0] ss:$8 sps:$4 sm:$0xff]   ;;  %v10078_v62 = vld [vmem:[#allocation2 + $0x290] ss:$8 sps:$4 sm:$0xff]  }
 0xe09   :  { %4081 = vadd.xlane.f32.xlu0 %v4061_v20  ;;  %7284 = vmatmul.mubr.bf16.gmra.mxu0 %v4108_v4  ;;  %11946 = vst [vmem:[#allocation25_spill] sm:$0xff] %v10040_v42  ;;  %11950 = vst [vmem:[#allocation28_spill] sm:$0xff] %v10048_v32  ;;  %v4110_v7 = vpack.c.bf16 %v10040_v42, %v10037_v59  ;;  %v4039_v13 = vmax.f32 %v4023_v31, 0.0  ;;  %v4067_v1 = vmul.f32 %v10037_v59, %v11934_v49  ;;  %v7658_v30 = vld [vmem:[#allocation2 + $0x340] ss:$8 sps:$4 sm:$0xff]  }
 0xe0a   :  { %7287 = vmatprep.mubr.bf16.mxu0 %v4109_v2  ;;  %6912 = vmatpush3.bf16.msra.mxu0 %v7652_v45  ;;  %11948 = vst [vmem:[#allocation26_spill] sm:$0xff] %v10045_v3  ;;  %v4040_v33 = vmax.f32 %v4024_v14, 0.0  ;;  %v4111_v53 = vpack.c.bf16 %v10045_v3, %v10048_v32  ;;  %v4068_v8 = vmul.f32 %v10040_v42, %v11934_v49  ;;  %v7660_v4 = vld [vmem:[#allocation2 + $0x330] ss:$8 sps:$4 sm:$0xff]   ;;  %v7661_v15 = vld [vmem:[#allocation2 + $0x3a0] ss:$8 sps:$4 sm:$0xff]  }
 0xe0b   :  { %6913 = vmatprep.subr.bf16.mxu0 %v7653_v47  ;;  %v10063_v48 = vadd.f32 %v4039_v13, %v11951_v29  ;;  %v4069_v0 = vmul.f32 %v10048_v32, %v11934_v49  ;;  %v4070_v57 = vmul.f32 %v10045_v3, %v11934_v49  ;;  %v7662_v23 = vld [vmem:[#allocation2 + $0x320] ss:$8 sps:$4 sm:$0xff]  }
 0xe0c   :  { %4085 = vadd.xlane.f32.xlu1 %v4063_v25  ;;  %v10066_v52 = vadd.f32 %v4040_v33, %v11953_v50 }
 0xe0d   :  { %4087 = vadd.xlane.f32.xlu0 %v4064_v35  ;;  %11952 = vst [vmem:[#allocation27_spill] sm:$0xff] %v10063_v48  ;;  %v4071_v20 = vmul.f32 %v10063_v48, %v11934_v49 }
 0xe0e   :  { %6914 = vmatpush3.bf16.msra.mxu0 %v7654_v10  ;;  %11954 = vst [vmem:[#allocation29_spill] sm:$0xff] %v10066_v52  ;;  %v4112_v55 = vpack.c.bf16 %v10066_v52, %v10063_v48  ;;  %v4072_v26 = vmul.f32 %v10066_v52, %v11934_v49 }
 0xe0f   :  { %6915 = vmatprep.subr.bf16.mxu0 %v7655_v28 }
 0xe10   :  { %4089 = vadd.xlane.f32.xlu1 %v4065_v34 }
 0xe11   :  { %4091 = vadd.xlane.f32.xlu0 %v4066_v9  ;;  %7288 = vmatmul.mubr.bf16.gmra.mxu0 %v4110_v7 }
 0xe12   :  { %7291 = vmatprep.mubr.bf16.mxu0 %v4111_v53  ;;  %6916 = vmatpush3.bf16.msra.mxu0 %v7656_v43 }
 0xe13   :  { %6917 = vmatprep.subr.bf16.mxu0 %v7657_v6 }
 0xe14   :  { %4093 = vadd.xlane.f32.xlu1 %v4067_v1 }
 0xe15   :  { %4095 = vadd.xlane.f32.xlu0 %v4068_v8 }
 0xe16   :  { %6918 = vmatpush3.bf16.msra.mxu0 %v7658_v30 }
 0xe17   :  { %6919 = vmatprep.subr.bf16.mxu0 %v7659_v63 }
 0xe18   :  { %4097 = vadd.xlane.f32.xlu1 %v4069_v0 }
 0xe19   :  { %4099 = vadd.xlane.f32.xlu0 %v4070_v57  ;;  %7292 = vmatmul.mubr.bf16.gmra.mxu0 %v4112_v55 }
 0xe1a   :  { %6920 = vmatpush3.bf16.msra.mxu0 %v7660_v4 }
 0xe1b   :  { %6921 = vmatprep.subr.bf16.mxu0 %v7661_v15 }
 0xe1c   :  { %4101 = vadd.xlane.f32.xlu1 %v4071_v20 }
 0xe1d   :  { %4103 = vadd.xlane.f32.xlu0 %v4072_v26 }
 0xe1e   :  { %6922 = vmatpush3.bf16.msra.mxu0 %v7662_v23 }
 0xe1f   :  { %7327 = vmatprep.subr.bf16.mxu0 %v10078_v62 }
 0xec1   :  { %v10081_v2 = vpop.f32.mrf.mxu0 }
 0xec2   :  { %v4233_v61 = vmul.f32 %v10081_v2, %v10081_v2 }
 0xec3   :  { %v10083_v24 = vpop.f32.mrf.mxu0 }
 0xec4   :  { %v4231_v25 = vmul.f32 %v10083_v24, %v10083_v24 }
 0xec5   :  { %v10085_v40 = vpop.f32.mrf.mxu0 }
 0xec6   :  { %v4234_v36 = vmul.f32 %v10085_v40, %v10085_v40 }
 0xec7   :  { %v10087_v18 = vpop.f32.mrf.mxu0 }
 0xec8   :  { %v4210_v35 = vadd.f32 %v10087_v18, %v10083_v24  ;;  %v4232_v45 = vmul.f32 %v10087_v18, %v10087_v18 }
 0xec9   :  { %v10095_v60 = vpop.f32.mrf.mxu0 }
 0xeca   :  { %v4211_v31 = vadd.f32 %v10081_v2, %v4210_v35  ;;  %v4247_v14 = vadd.f32 %v4232_v45, %v4231_v25  ;;  %v4237_v8 = vmul.f32 %v10095_v60, %v10095_v60 }
 0xecb   :  { %v10100_v47 = vpop.f32.mrf.mxu0 }
 0xecc   :  { %v4248_v27 = vadd.f32 %v4247_v14, %v4233_v61  ;;  %v4212_v34 = vadd.f32 %v10085_v40, %v4211_v31  ;;  %v4235_v7 = vmul.f32 %v10100_v47, %v10100_v47 }
 0xecd   :  { %v10105_v10 = vpop.f32.mrf.mxu0 }
 0xece   :  { %v4213_v9 = vadd.f32 %v4212_v34, %v10100_v47  ;;  %v4249_v13 = vadd.f32 %v4248_v27, %v4234_v36  ;;  %v4238_v0 = vmul.f32 %v10105_v10, %v10105_v10 }
 0xecf   :  { %v10110_v33 = vpop.f32.mrf.mxu0 }
 0xed0   :  { %v4250_v28 = vadd.f32 %v4249_v13, %v4235_v7  ;;  %v4214_v53 = vadd.f32 %v4213_v9, %v10110_v33  ;;  %v4236_v1 = vmul.f32 %v10110_v33, %v10110_v33 }
 0xed1   :  { %v10115_v43 = vpop.f32.mrf.mxu0 }
 0xed2   :  { %v4215_v29 = vadd.f32 %v10095_v60, %v4214_v53  ;;  %v4251_v50 = vadd.f32 %v4250_v28, %v4236_v1  ;;  %v4241_v45 = vmul.f32 %v10115_v43, %v10115_v43 }
 0xed3   :  { %v10120_v6 = vpop.f32.mrf.mxu0 }
 0xed4   :  { %v4252_v30 = vadd.f32 %v4251_v50, %v4237_v8  ;;  %v4216_v57 = vadd.f32 %v10105_v10, %v4215_v29  ;;  %v4239_v20 = vmul.f32 %v10120_v6, %v10120_v6 }
 0xed5   :  { %v10125_v55 = vpop.f32.mrf.mxu0 }
 0xed6   :  { %v4217_v63 = vadd.f32 %v4216_v57, %v10120_v6  ;;  %v4253_v4 = vadd.f32 %v4252_v30, %v4238_v0  ;;  %v4242_v36 = vmul.f32 %v10125_v55, %v10125_v55 }
 0xed7   :  { %v10130_v26 = vpop.f32.mrf.mxu0 }
 0xed8   :  { %v4254_v15 = vadd.f32 %v4253_v4, %v4239_v20  ;;  %v4218_v23 = vadd.f32 %v4217_v63, %v10130_v26  ;;  %v4240_v25 = vmul.f32 %v10130_v26, %v10130_v26 }
 0xed9   :  { %v10135_v35 = vpop.f32.mrf.mxu0 }
 0xeda   :  { %v4219_v61 = vadd.f32 %v10115_v43, %v4218_v23  ;;  %v4255_v31 = vadd.f32 %v4254_v15, %v4240_v25  ;;  %v4245_v50 = vmul.f32 %v10135_v35, %v10135_v35 }
 0xedb   :  { %v10140_v14 = vpop.f32.mrf.mxu0 }
 0xedc   :  { %v4256_v27 = vadd.f32 %v4255_v31, %v4241_v45  ;;  %v4220_v34 = vadd.f32 %v10125_v55, %v4219_v61  ;;  %v4243_v13 = vmul.f32 %v10140_v14, %v10140_v14 }
 0xedd   :  { %v7294_v9 = vpop.f32.mrf.mxu0 }
 0xede   :  { %v4221_v7 = vadd.f32 %v4220_v34, %v10140_v14  ;;  %v4257_v28 = vadd.f32 %v4256_v27, %v4242_v36  ;;  %v4246_v57 = vmul.f32 %v7294_v9, %v7294_v9 }
 0xedf   :  { %v10148_v53 = vpop.f32.mrf.mxu0 }
 0xee0   :  { %v4258_v1 = vadd.f32 %v4257_v28, %v4243_v13  ;;  %v4222_v8 = vadd.f32 %v4221_v7, %v10148_v53  ;;  %v4244_v29 = vmul.f32 %v10148_v53, %v10148_v53 }
 0xee2   :  { %v4223_v0 = vadd.f32 %v10135_v35, %v4222_v8  ;;  %v4259_v30 = vadd.f32 %v4258_v1, %v4244_v29 }
 0xee4   :  { %v4224_v63 = vadd.f32 %v7294_v9, %v4223_v0  ;;  %v4260_v20 = vadd.f32 %v4259_v30, %v4245_v50  ;;  %v10159_v30 = vld [vmem:[%s11729_s2 + $0x10] sm:$0xff] }
 0xee6   :  { %v4225_v4 = vrot.slane %v4224_v63, 4  ;;  %v4261_v15 = vadd.f32 %v4260_v20, %v4246_v57  ;;  %v11955_v20 = vld [vmem:[#allocation9_spill] sm:$0xff] }
 0xee8   :  { %v4226_v23 = vadd.f32 %v4225_v4, %v4224_v63  ;;  %v4262_v25 = vrot.slane %v4261_v15, 4 }
 0xeea   :  { %v4227_v45 = vrot.slane %v4226_v23, 2  ;;  %v4263_v61 = vadd.f32 %v4262_v25, %v4261_v15  ;;  %v11956_v25 = vld [vmem:[#allocation10_spill] sm:$0xff] }
 0xeec   :  { %v4228_v31 = vadd.f32 %v4227_v45, %v4226_v23  ;;  %v4264_v36 = vrot.slane %v4263_v61, 2 }
 0xeee   :  { %v4229_v27 = vrot.slane %v4228_v31, 1  ;;  %v4265_v34 = vadd.f32 %v4264_v36, %v4263_v61 }
 0xef0   :  { %v4230_v7 = vadd.f32 %v4229_v27, %v4228_v31  ;;  %v4266_v13 = vrot.slane %v4265_v34, 1 }
 0xef2   :  { %v4267_v28 = vadd.f32 %v4266_v13, %v4265_v34  ;;  %v4268_v52 = vmul.f32 0.0078125, %v4230_v7 }
 0xef4   :  { %v4269_v48 = vmul.f32 0.0078125, %v4267_v28  ;;  %v4270_v8 = vmul.f32 %v4268_v52, %v4268_v52 }
 0xef6   :  { %v4271_v1 = vsub.f32 %v4269_v48, %v4270_v8 }
 0xef8   :  { %v4272_v29 = vmax.f32 %v4271_v1, 0.0 }
 0xefa   :  { %v4273_v0 = vadd.f32 1e-05, %v4272_v29 }
 0xefc   :  { %7550 = vrsqrt.f32 %v4273_v0 }
 0xf09   :  { %v7551_v50 = vpop.eup %7550 }
 0xf0a   :  { %v4275_v57 = vmul.f32 %v10159_v30, %v7551_v50 }
 0xf0c   :  { %v4296_v63 = vmul.f32 %v4275_v57, %v4268_v52  ;;  %v10163_v4 = vrot.slane %v4275_v57, %v11955_v20 }
 0xf0e   :  { %v4298_v15 = vrot.slane %v4296_v63, 7  ;;  %v4280_v45 = vmul.f32 %v10163_v4, %v10083_v24  ;;  %v4281_v61 = vmul.f32 %v10163_v4, %v10087_v18  ;;  %v4282_v52 = vmul.f32 %v10081_v2, %v10163_v4 }
 0xf0f   :  { %v4283_v27 = vmul.f32 %v10085_v40, %v10163_v4  ;;  %v4288_v13 = vmul.f32 %v10163_v4, %v10120_v6  ;;  %v4289_v24 = vmul.f32 %v10163_v4, %v10130_v26  ;;  %v4290_v28 = vmul.f32 %v10115_v43, %v10163_v4 }
 0xf10   :  { %v4300_v23 = vsub.f32 %v10159_v30, %v4298_v15  ;;  %v4291_v8 = vmul.f32 %v10125_v55, %v10163_v4  ;;  %v4294_v26 = vmul.f32 %v10135_v35, %v10163_v4  ;;  %v4295_v0 = vmul.f32 %v7294_v9, %v10163_v4 }
 0xf12   :  { %v10167_v48 = vrot.slane %v4300_v23, %v11956_v25 }
 0xf14   :  { %v4305_v31 = vadd.f32 %v10167_v48, %v4280_v45  ;;  %v4306_v36 = vadd.f32 %v10167_v48, %v4281_v61  ;;  %v4307_v18 = vadd.f32 %v10167_v48, %v4282_v52  ;;  %v4308_v1 = vadd.f32 %v10167_v48, %v4283_v27 }
 0xf15   :  { %v4313_v40 = vadd.f32 %v10167_v48, %v4288_v13  ;;  %v4314_v29 = vadd.f32 %v10167_v48, %v4289_v24  ;;  %v4315_v6 = vadd.f32 %v10167_v48, %v4290_v28  ;;  %v4316_v57 = vadd.f32 %v10167_v48, %v4291_v8 }
 0xf16   :  { %v4321_v34 = vmax.f32 %v4305_v31, 0.0  ;;  %v4322_v7 = vmax.f32 %v4306_v36, 0.0  ;;  %v4319_v63 = vadd.f32 %v10167_v48, %v4294_v26  ;;  %v4320_v15 = vadd.f32 %v10167_v48, %v4295_v0  ;;  %v7665_v31 = vld [vmem:[#allocation2 + $0x480] ss:$8 sps:$4 sm:$0xff]  }
 0xf17   :  { %v4329_v50 = vmax.f32 %v4313_v40, 0.0  ;;  %v4330_v43 = vmax.f32 %v4314_v29, 0.0  ;;  %v4331_v55 = vmax.f32 %v4315_v6, 0.0  ;;  %v4323_v23 = vmax.f32 %v4307_v18, 0.0  ;;  %v7666_v18 = vld [vmem:[#allocation2 + $0x470] ss:$8 sps:$4 sm:$0xff]  }
 0xf18   :  { %v4337_v2 = vpack.c.bf16 %v4322_v7, %v4321_v34  ;;  %v4324_v45 = vmax.f32 %v4308_v1, 0.0  ;;  %v4332_v35 = vmax.f32 %v4316_v57, 0.0  ;;  %v4335_v9 = vmax.f32 %v4319_v63, 0.0  ;;  %v7668_v6 = vld [vmem:[#allocation2 + $0x450] ss:$8 sps:$4 sm:$0xff]  }
 0xf19   :  { %v4341_v61 = vpack.c.bf16 %v4330_v43, %v4329_v50  ;;  %v4336_v36 = vmax.f32 %v4320_v15, 0.0  ;;  %v4284_v52 = vmul.f32 %v10163_v4, %v10100_v47  ;;  %v4285_v27 = vmul.f32 %v10163_v4, %v10110_v33  ;;  %v7667_v47 = vld [vmem:[#allocation2 + $0x460] ss:$8 sps:$4 sm:$0xff]   ;;  %v7670_v43 = vld [vmem:[#allocation2 + $0x430] ss:$8 sps:$4 sm:$0xff]  }
 0xf1a   :  { %4378 = vmatmul.mubr.bf16.vlgmr.msra.gmra.mxu1 %v4337_v2  ;;  %v4342_v34 = vpack.c.bf16 %v4332_v35, %v4331_v55  ;;  %v4338_v13 = vpack.c.bf16 %v4324_v45, %v4323_v23  ;;  %v4286_v33 = vmul.f32 %v10095_v60, %v10163_v4  ;;  %v4287_v2 = vmul.f32 %v10105_v10, %v10163_v4  ;;  %v7669_v50 = vld [vmem:[#allocation2 + $0x440] ss:$8 sps:$4 sm:$0xff]   ;;  %v7672_v57 = vld [vmem:[#allocation2 + $0x314] ss:$8 sps:$4 sm:$0xff]  }
 0xf1b   :  { %4387 = vmatprep.mubr.bf16.mxu1 %v11919_v16  ;;  %7296 = vmatpush3.bf16.msra.mxu1 %v9841_v11  ;;  %v4344_v7 = vpack.c.bf16 %v4336_v36, %v4335_v9  ;;  %v4309_v11 = vadd.f32 %v10167_v48, %v4284_v52  ;;  %v4310_v24 = vadd.f32 %v10167_v48, %v4285_v27  ;;  %v7671_v10 = vld [vmem:[#allocation2 + $0x420] ss:$8 sps:$4 sm:$0xff]  }
 0xf1c   :  { %7297 = vmatprep.subr.bf16.mxu1 %v7665_v31  ;;  %v4311_v40 = vadd.f32 %v10167_v48, %v4286_v33  ;;  %v4312_v29 = vadd.f32 %v10167_v48, %v4287_v2  ;;  %v4293_v55 = vmul.f32 %v10163_v4, %v10148_v53  ;;  %v4292_v63 = vmul.f32 %v10163_v4, %v10140_v14 }
 0xf1d   :  { %v4325_v28 = vmax.f32 %v4309_v11, 0.0  ;;  %v4326_v8 = vmax.f32 %v4310_v24, 0.0 }
 0xf1e   :  { %v4327_v26 = vmax.f32 %v4311_v40, 0.0  ;;  %v4328_v0 = vmax.f32 %v4312_v29, 0.0  ;;  %v4318_v15 = vadd.f32 %v10167_v48, %v4293_v55  ;;  %v4317_v23 = vadd.f32 %v10167_v48, %v4292_v63 }
 0xf1f   :  { %7298 = vmatpush3.bf16.msra.mxu1 %v7665_v31  ;;  %v4339_v1 = vpack.c.bf16 %v4326_v8, %v4325_v28 }
 0xf20   :  { %7299 = vmatprep.subr.bf16.mxu1 %v7666_v18  ;;  %v4340_v60 = vpack.c.bf16 %v4328_v0, %v4327_v26  ;;  %v4334_v45 = vmax.f32 %v4318_v15, 0.0  ;;  %v4333_v35 = vmax.f32 %v4317_v23, 0.0 }
 0xf22   :  { %4388 = vmatmul.mubr.bf16.gmra.mxu1 %v4338_v13  ;;  %v4343_v31 = vpack.c.bf16 %v4334_v45, %v4333_v35 }
 0xf23   :  { %4397 = vmatprep.mubr.bf16.mxu1 %v11919_v16  ;;  %7300 = vmatpush3.bf16.msra.mxu1 %v7666_v18 }
 0xf24   :  { %7301 = vmatprep.subr.bf16.mxu1 %v7667_v47 }
 0xf27   :  { %7302 = vmatpush3.bf16.msra.mxu1 %v7667_v47 }
 0xf28   :  { %7303 = vmatprep.subr.bf16.mxu1 %v7668_v6 }
 0xf2a   :  { %4398 = vmatmul.mubr.bf16.gmra.mxu1 %v4339_v1 }
 0xf2b   :  { %4407 = vmatprep.mubr.bf16.mxu1 %v11919_v16  ;;  %7304 = vmatpush3.bf16.msra.mxu1 %v7668_v6 }
 0xf2c   :  { %7305 = vmatprep.subr.bf16.mxu1 %v7669_v50 }
 0xf2f   :  { %7306 = vmatpush3.bf16.msra.mxu1 %v7669_v50 }
 0xf30   :  { %7307 = vmatprep.subr.bf16.mxu1 %v7670_v43 }
 0xf32   :  { %4408 = vmatmul.mubr.bf16.gmra.mxu1 %v4340_v60 }
 0xf33   :  { %4417 = vmatprep.mubr.bf16.mxu1 %v11919_v16  ;;  %7308 = vmatpush3.bf16.msra.mxu1 %v7670_v43 }
 0xf34   :  { %7309 = vmatprep.subr.bf16.mxu1 %v7671_v10 }
 0xf37   :  { %7310 = vmatpush3.bf16.msra.mxu1 %v7671_v10 }
 0xf38   :  { %5488 = vmatprep.subr.bf16.mxu1 %v7672_v57 }
 0xf3a   :  { %4418 = vmatmul.mubr.bf16.gmra.mxu1 %v4341_v61 }
 0xf3b   :  { %4427 = vmatprep.mubr.bf16.mxu1 %v11919_v16 }
 0xf42   :  { %4428 = vmatmul.mubr.bf16.gmra.mxu1 %v4342_v34 }
 0xf43   :  { %4437 = vmatprep.mubr.bf16.mxu1 %v11919_v16 }
 0xf4a   :  { %4438 = vmatmul.mubr.bf16.gmra.mxu1 %v4343_v31 }
 0xf4b   :  { %4447 = vmatprep.mubr.bf16.mxu1 %v11919_v16 }
 0xf52   :  { %4448 = vmatmul.mubr.bf16.gmra.mxu1 %v4344_v7 }
 0xfda   :  { %v10224_v61 = vpop.f32.mrf.mxu1 }
 0xfdb   :  { %v4500_v2 = vmul.f32 %v10224_v61, %v10224_v61 }
 0xfdc   :  { %v10226_v53 = vpop.f32.mrf.mxu1 }
 0xfdd   :  { %v4501_v29 = vmul.f32 %v10226_v53, %v10226_v53 }
 0xfde   :  { %v10228_v9 = vpop.f32.mrf.mxu1 }
 0xfdf   :  { %v4502_v8 = vmul.f32 %v10228_v9, %v10228_v9  ;;  %v4458_v1 = vadd.f32 %v10228_v9, %v10224_v61 }
 0xfe0   :  { %v10230_v14 = vpop.f32.mrf.mxu1 }
 0xfe1   :  { %v4503_v47 = vmul.f32 %v10230_v14, %v10230_v14  ;;  %v4532_v0 = vadd.f32 %v4502_v8, %v4500_v2  ;;  %v4479_v50 = vadd.f32 %v10230_v14, %v10226_v53 }
 0xfe2   :  { %v10232_v4 = vpop.f32.mrf.mxu1 }
 0xfe3   :  { %v4504_v40 = vmul.f32 %v10232_v4, %v10232_v4  ;;  %v4459_v60 = vadd.f32 %v4458_v1, %v10232_v4  ;;  %v4553_v10 = vadd.f32 %v4503_v47, %v4501_v29 }
 0xfe4   :  { %v10234_v48 = vpop.f32.mrf.mxu1 }
 0xfe5   :  { %v4505_v6 = vmul.f32 %v10234_v48, %v10234_v48  ;;  %v4533_v63 = vadd.f32 %v4532_v0, %v4504_v40  ;;  %v4480_v15 = vadd.f32 %v4479_v50, %v10234_v48 }
 0xfe6   :  { %v10236_v36 = vpop.f32.mrf.mxu1 }
 0xfe7   :  { %v4506_v43 = vmul.f32 %v10236_v36, %v10236_v36  ;;  %v4460_v23 = vadd.f32 %v4459_v60, %v10236_v36  ;;  %v4554_v35 = vadd.f32 %v4553_v10, %v4505_v6 }
 0xfe8   :  { %v10238_v52 = vpop.f32.mrf.mxu1 }
 0xfe9   :  { %v4507_v57 = vmul.f32 %v10238_v52, %v10238_v52  ;;  %v4534_v47 = vadd.f32 %v4533_v63, %v4506_v43  ;;  %v4481_v2 = vadd.f32 %v4480_v15, %v10238_v52 }
 0xfea   :  { %v10240_v27 = vpop.f32.mrf.mxu1 }
 0xfeb   :  { %v4508_v45 = vmul.f32 %v10240_v27, %v10240_v27  ;;  %v4461_v1 = vadd.f32 %v4460_v23, %v10240_v27  ;;  %v4555_v29 = vadd.f32 %v4554_v35, %v4507_v57 }
 0xfec   :  { %v10242_v34 = vpop.f32.mrf.mxu1 }
 0xfed   :  { %v4509_v31 = vmul.f32 %v10242_v34, %v10242_v34  ;;  %v4535_v6 = vadd.f32 %v4534_v47, %v4508_v45  ;;  %v4482_v60 = vadd.f32 %v4481_v2, %v10242_v34 }
 0xfee   :  { %v10244_v7 = vpop.f32.mrf.mxu1 }
 0xfef   :  { %v4510_v40 = vmul.f32 %v10244_v7, %v10244_v7  ;;  %v4462_v10 = vadd.f32 %v4461_v1, %v10244_v7  ;;  %v4556_v63 = vadd.f32 %v4555_v29, %v4509_v31 }
 0xff0   :  { %v10246_v13 = vpop.f32.mrf.mxu1 }
 0xff1   :  { %v4511_v0 = vmul.f32 %v10246_v13, %v10246_v13  ;;  %v4536_v57 = vadd.f32 %v4535_v6, %v4510_v40  ;;  %v4483_v35 = vadd.f32 %v4482_v60, %v10246_v13 }
 0xff2   :  { %v10248_v11 = vpop.f32.mrf.mxu1 }
 0xff3   :  { %v4512_v43 = vmul.f32 %v10248_v11, %v10248_v11  ;;  %v4463_v25 = vadd.f32 %v4462_v10, %v10248_v11  ;;  %v4557_v47 = vadd.f32 %v4556_v63, %v4511_v0 }
 0xff4   :  { %v10250_v24 = vpop.f32.mrf.mxu1 }
 0xff5   :  { %v4513_v15 = vmul.f32 %v10250_v24, %v10250_v24  ;;  %v4537_v31 = vadd.f32 %v4536_v57, %v4512_v43  ;;  %v4484_v29 = vadd.f32 %v4483_v35, %v10250_v24 }
 0xff6   :  { %v10252_v18 = vpop.f32.mrf.mxu1 }
 0xff7   :  { %v4514_v45 = vmul.f32 %v10252_v18, %v10252_v18  ;;  %v4464_v20 = vadd.f32 %v4463_v25, %v10252_v18  ;;  %v4558_v6 = vadd.f32 %v4557_v47, %v4513_v15 }
 0xff8   :  { %v10254_v28 = vpop.f32.mrf.mxu1 }
 0xff9   :  { %v4515_v2 = vmul.f32 %v10254_v28, %v10254_v28  ;;  %v4538_v0 = vadd.f32 %v4537_v31, %v4514_v45  ;;  %v4485_v63 = vadd.f32 %v4484_v29, %v10254_v28 }
 0xffa   :  { %v10260_v33 = vpop.f32.mrf.mxu1 }
 0xffb   :  { %v4516_v40 = vmul.f32 %v10260_v33, %v10260_v33  ;;  %v4465_v3 = vadd.f32 %v4464_v20, %v10260_v33  ;;  %v4559_v57 = vadd.f32 %v4558_v6, %v4515_v2 }
 0xffc   :  { %v10272_v26 = vpop.f32.mrf.mxu1 }
 0xffd   :  { %v4517_v60 = vmul.f32 %v10272_v26, %v10272_v26  ;;  %v4539_v15 = vadd.f32 %v4538_v0, %v4516_v40  ;;  %v4486_v47 = vadd.f32 %v4485_v63, %v10272_v26 }
 0xffe   :  { %v10281_v55 = vpop.f32.mrf.mxu1 }
 0xfff   :  { %v4518_v43 = vmul.f32 %v10281_v55, %v10281_v55  ;;  %v4466_v42 = vadd.f32 %v4465_v3, %v10281_v55  ;;  %v4560_v31 = vadd.f32 %v4559_v57, %v4517_v60 }
0x1000   :  { %v10289_v8 = vpop.f32.mrf.mxu1 }
0x1001   :  { %v4519_v25 = vmul.f32 %v10289_v8, %v10289_v8  ;;  %v4540_v2 = vadd.f32 %v4539_v15, %v4518_v43  ;;  %v4487_v6 = vadd.f32 %v4486_v47, %v10289_v8 }
0x1002   :  { %v10297_v50 = vpop.f32.mrf.mxu1 }
0x1003   :  { %v4520_v45 = vmul.f32 %v10297_v50, %v10297_v50  ;;  %v4467_v32 = vadd.f32 %v4466_v42, %v10297_v50  ;;  %v4561_v0 = vadd.f32 %v4560_v31, %v4519_v25 }
0x1004   :  { %v10305_v23 = vpop.f32.mrf.mxu1 }
0x1005   :  { %v4521_v20 = vmul.f32 %v10305_v23, %v10305_v23  ;;  %v4541_v60 = vadd.f32 %v4540_v2, %v4520_v45  ;;  %v4488_v57 = vadd.f32 %v4487_v6, %v10305_v23 }
0x1006   :  { %v10313_v1 = vpop.f32.mrf.mxu1 }
0x1007   :  { %v4522_v40 = vmul.f32 %v10313_v1, %v10313_v1  ;;  %v4468_v46 = vadd.f32 %v4467_v32, %v10313_v1  ;;  %v4562_v15 = vadd.f32 %v4561_v0, %v4521_v20 }
0x1008   :  { %v10321_v10 = vpop.f32.mrf.mxu1 }
0x1009   :  { %v4523_v3 = vmul.f32 %v10321_v10, %v10321_v10  ;;  %v4542_v25 = vadd.f32 %v4541_v60, %v4522_v40  ;;  %v4489_v31 = vadd.f32 %v4488_v57, %v10321_v10 }
0x100a   :  { %v10329_v35 = vpop.f32.mrf.mxu1 }
0x100b   :  { %v4524_v43 = vmul.f32 %v10329_v35, %v10329_v35  ;;  %v4469_v12 = vadd.f32 %v4468_v46, %v10329_v35  ;;  %v4563_v2 = vadd.f32 %v4562_v15, %v4523_v3 }
0x100c   :  { %v10337_v29 = vpop.f32.mrf.mxu1 }
0x100d   :  { %v4525_v42 = vmul.f32 %v10337_v29, %v10337_v29  ;;  %v4543_v20 = vadd.f32 %v4542_v25, %v4524_v43  ;;  %v4490_v0 = vadd.f32 %v4489_v31, %v10337_v29 }
0x100e   :  { %v10345_v63 = vpop.f32.mrf.mxu1 }
0x100f   :  { %v4526_v45 = vmul.f32 %v10345_v63, %v10345_v63  ;;  %v4470_v59 = vadd.f32 %v4469_v12, %v10345_v63  ;;  %v4564_v60 = vadd.f32 %v4563_v2, %v4525_v42 }
0x1010   :  { %v10353_v47 = vpop.f32.mrf.mxu1 }
0x1011   :  { %v4527_v32 = vmul.f32 %v10353_v47, %v10353_v47  ;;  %v4544_v46 = vadd.f32 %v4543_v20, %v4526_v45  ;;  %v4491_v56 = vadd.f32 %v4490_v0, %v10353_v47 }
0x1012   :  { %v10361_v6 = vpop.f32.mrf.mxu1 }
0x1013   :  { %v4528_v40 = vmul.f32 %v10361_v6, %v10361_v6  ;;  %v4471_v3 = vadd.f32 %v4470_v59, %v10361_v6  ;;  %v4565_v49 = vadd.f32 %v4564_v60, %v4527_v32 }
0x1014   :  { %v10367_v57 = vpop.f32.mrf.mxu1 }
0x1015   :  { %v4529_v15 = vmul.f32 %v10367_v57, %v10367_v57  ;;  %v4545_v25 = vadd.f32 %v4544_v46, %v4528_v40  ;;  %v4492_v12 = vadd.f32 %v4491_v56, %v10367_v57 }
0x1016   :  { %v10373_v43 = vpop.f32.mrf.mxu1 }
0x1017   :  { %v4472_v31 = vadd.f32 %v4471_v3, %v10373_v43  ;;  %v4530_v42 = vmul.f32 %v10373_v43, %v10373_v43  ;;  %v4566_v2 = vadd.f32 %v4565_v49, %v4529_v15 }
0x1018   :  { %v10379_v45 = vpop.f32.mrf.mxu1 }
0x1019   :  { %v4473_v20 = vrot.slane %v4472_v31, 4  ;;  %v4546_v0 = vadd.f32 %v4545_v25, %v4530_v42  ;;  %v4493_v59 = vadd.f32 %v4492_v12, %v10379_v45  ;;  %v4531_v32 = vmul.f32 %v10379_v45, %v10379_v45 }
0x101b   :  { %v4474_v60 = vadd.f32 %v4473_v20, %v4472_v31  ;;  %v4547_v22 = vrot.slane %v4546_v0, 4  ;;  %v4494_v40 = vrot.slane %v4493_v59, 4  ;;  %v4567_v46 = vadd.f32 %v4566_v2, %v4531_v32 }
0x101d   :  { %v4475_v56 = vrot.slane %v4474_v60, 2  ;;  %v4548_v5 = vadd.f32 %v4547_v22, %v4546_v0  ;;  %v4495_v3 = vadd.f32 %v4494_v40, %v4493_v59  ;;  %v4568_v21 = vrot.slane %v4567_v46, 4 }
0x101f   :  { %v4476_v39 = vadd.f32 %v4475_v56, %v4474_v60  ;;  %v4549_v51 = vrot.slane %v4548_v5, 2  ;;  %v4496_v49 = vrot.slane %v4495_v3, 2  ;;  %v4569_v15 = vadd.f32 %v4568_v21, %v4567_v46 }
0x1021   :  { %v4477_v41 = vrot.slane %v4476_v39, 1  ;;  %v4550_v54 = vadd.f32 %v4549_v51, %v4548_v5  ;;  %v4497_v25 = vadd.f32 %v4496_v49, %v4495_v3  ;;  %v4570_v42 = vrot.slane %v4569_v15, 2 }
0x1023   :  { %v4478_v12 = vadd.f32 %v4477_v41, %v4476_v39  ;;  %v4551_v19 = vrot.slane %v4550_v54, 1  ;;  %v4498_v17 = vrot.slane %v4497_v25, 1  ;;  %v4571_v16 = vadd.f32 %v4570_v42, %v4569_v15 }
0x1025   :  { %v4552_v31 = vadd.f32 %v4551_v19, %v4550_v54  ;;  %v4574_v20 = vmul.f32 0.0078125, %v4478_v12  ;;  %v4499_v38 = vadd.f32 %v4498_v17, %v4497_v25  ;;  %v4572_v2 = vrot.slane %v4571_v16, 1 }
0x1027   :  { %v4576_v32 = vmul.f32 0.0078125, %v4552_v31  ;;  %v4578_v22 = vmul.f32 %v4574_v20, %v4574_v20  ;;  %v4573_v0 = vadd.f32 %v4572_v2, %v4571_v16  ;;  %v4575_v59 = vmul.f32 0.0078125, %v4499_v38  ;;  %v7673_v16 = vld [vmem:[%s11729_s2 + $0x18] sm:$0xff] }
0x1029   :  { %v4580_v60 = vsub.f32 %v4576_v32, %v4578_v22  ;;  %v4577_v40 = vmul.f32 0.0078125, %v4573_v0  ;;  %v4579_v56 = vmul.f32 %v4575_v59, %v4575_v59 }
0x102b   :  { %v4582_v21 = vmax.f32 %v4580_v60, 0.0  ;;  %v4581_v46 = vsub.f32 %v4577_v40, %v4579_v56 }
0x102d   :  { %v4584_v51 = vadd.f32 1e-05, %v4582_v21  ;;  %v4583_v5 = vmax.f32 %v4581_v46, 0.0 }
0x102f   :  { %7552 = vrsqrt.f32 %v4584_v51  ;;  %v4585_v41 = vadd.f32 1e-05, %v4583_v5 }
0x1031   :  { %7554 = vrsqrt.f32 %v4585_v41 }
0x103c   :  { %v7553_v39 = vpop.eup %7552 }
0x103d   :  { %v4588_v19 = vmul.f32 %v10159_v30, %v7553_v39 }
0x103e   :  { %v7555_v54 = vpop.eup %7554 }
0x103f   :  { %v4630_v17 = vmul.f32 %v4588_v19, %v4574_v20  ;;  %v4589_v38 = vmul.f32 %v7673_v16, %v7555_v54  ;;  %v10389_v3 = vrot.slane %v4588_v19, %v11864_v37 }
0x1041   :  { %v4634_v49 = vrot.slane %v4630_v17, 7  ;;  %v4631_v15 = vmul.f32 %v4589_v38, %v4575_v59  ;;  %v10392_v25 = vrot.slane %v4589_v38, %v11864_v37  ;;  %v4598_v2 = vmul.f32 %v10389_v3, %v10224_v61 }
0x1042   :  { %v4600_v32 = vmul.f32 %v10389_v3, %v10228_v9 }
0x1043   :  { %v4638_v42 = vsub.f32 %v10159_v30, %v4634_v49  ;;  %v4635_v12 = vrot.slane %v4631_v15, 7  ;;  %v4599_v22 = vmul.f32 %v10392_v25, %v10226_v53  ;;  %v4601_v30 = vmul.f32 %v10392_v25, %v10230_v14 }
0x1044   :  { %v4603_v40 = vmul.f32 %v10392_v25, %v10234_v48  ;;  %v4605_v61 = vmul.f32 %v10392_v25, %v10238_v52  ;;  %v4602_v48 = vmul.f32 %v10389_v3, %v10232_v4  ;;  %v4604_v52 = vmul.f32 %v10389_v3, %v10236_v36 }
0x1045   :  { %v10396_v31 = vrot.slane %v4638_v42, %v11865_v58  ;;  %v4639_v20 = vsub.f32 %v7673_v16, %v4635_v12  ;;  %v4607_v54 = vmul.f32 %v10392_v25, %v10242_v34  ;;  %v4609_v17 = vmul.f32 %v10392_v25, %v10246_v13  ;;  %v7674_v12 = vld [vmem:[#allocation2 + $0x280] ss:$8 sps:$4 sm:$0xff]  }
0x1047   :  { %v10405_v0 = vrot.slane %v4639_v20, %v11865_v58  ;;  %v4648_v59 = vadd.f32 %v10396_v31, %v4598_v2  ;;  %v4650_v60 = vadd.f32 %v10396_v31, %v4600_v32  ;;  %v4652_v38 = vadd.f32 %v10396_v31, %v4602_v48  ;;  %v7677_v48 = vld [vmem:[#allocation2 + $0x250] ss:$8 sps:$4 sm:$0xff]  }
0x1048   :  { %v4654_v49 = vadd.f32 %v10396_v31, %v4604_v52  ;;  %v4606_v2 = vmul.f32 %v10389_v3, %v10240_v27  ;;  %v4608_v32 = vmul.f32 %v10389_v3, %v10244_v7 }
0x1049   :  { %v4649_v9 = vadd.f32 %v10405_v0, %v4599_v22  ;;  %v4651_v53 = vadd.f32 %v10405_v0, %v4601_v30  ;;  %v4680_v56 = vmax.f32 %v4648_v59, 0.0  ;;  %v4682_v21 = vmax.f32 %v4650_v60, 0.0 }
0x104a   :  { %v4653_v46 = vadd.f32 %v10405_v0, %v4603_v40  ;;  %v4655_v14 = vadd.f32 %v10405_v0, %v4605_v61  ;;  %v4657_v42 = vadd.f32 %v10405_v0, %v4607_v54  ;;  %v4659_v4 = vadd.f32 %v10405_v0, %v4609_v17  ;;  %v7675_v40 = vld [vmem:[#allocation2 + $0x270] ss:$8 sps:$4 sm:$0xff]   ;;  %v7678_v54 = vld [vmem:[#allocation2 + $0x240] ss:$8 sps:$4 sm:$0xff]  }
0x104b   :  { %v4681_v51 = vmax.f32 %v4649_v9, 0.0  ;;  %v4683_v5 = vmax.f32 %v4651_v53, 0.0  ;;  %v4712_v16 = vpack.c.bf16 %v4682_v21, %v4680_v56  ;;  %v4684_v36 = vmax.f32 %v4652_v38, 0.0  ;;  %v7676_v53 = vld [vmem:[#allocation2 + $0x260] ss:$8 sps:$4 sm:$0xff]  }
0x104c   :  { %v4685_v41 = vmax.f32 %v4653_v46, 0.0  ;;  %v4687_v39 = vmax.f32 %v4655_v14, 0.0  ;;  %v4686_v34 = vmax.f32 %v4654_v49, 0.0  ;;  %v4689_v13 = vmax.f32 %v4657_v42, 0.0 }
0x104d   :  { %v4713_v19 = vpack.c.bf16 %v4683_v5, %v4681_v51  ;;  %v4691_v20 = vmax.f32 %v4659_v4, 0.0  ;;  %v4611_v22 = vmul.f32 %v10392_v25, %v10250_v24  ;;  %v4613_v30 = vmul.f32 %v10392_v25, %v10254_v28 }
0x104e   :  { %v4715_v15 = vpack.c.bf16 %v4687_v39, %v4685_v41  ;;  %v4656_v59 = vadd.f32 %v10396_v31, %v4606_v2  ;;  %v4658_v60 = vadd.f32 %v10396_v31, %v4608_v32  ;;  %v4610_v21 = vmul.f32 %v10389_v3, %v10248_v11 }
0x104f   :  { %4760 = vmatprep.mubr.bf16.mxu0 %v4713_v19  ;;  %v4717_v61 = vpack.c.bf16 %v4691_v20, %v4689_v13  ;;  %v4661_v27 = vadd.f32 %v10405_v0, %v4611_v22  ;;  %v4663_v9 = vadd.f32 %v10405_v0, %v4613_v30  ;;  %v4612_v46 = vmul.f32 %v10389_v3, %v10252_v18  ;;  %v7680_v20 = vld [vmem:[#allocation2 + $0x220] ss:$8 sps:$4 sm:$0xff]  }
0x1050   :  { %4761 = vmatmul.mubr.bf16.vlgmr.msra.gmra.mxu0 %v4712_v16  ;;  %v4688_v7 = vmax.f32 %v4656_v59, 0.0  ;;  %v4690_v24 = vmax.f32 %v4658_v60, 0.0  ;;  %v4615_v14 = vmul.f32 %v10392_v25, %v10272_v26  ;;  %v4617_v51 = vmul.f32 %v10392_v25, %v10289_v8 }
0x1051   :  { %4768 = vmatprep.mubr.bf16.mxu0 %v4715_v15  ;;  %7328 = vmatpush3.bf16.msra.mxu0 %v10078_v62  ;;  %v4714_v62 = vpack.c.bf16 %v4686_v34, %v4684_v36  ;;  %v4693_v28 = vmax.f32 %v4661_v27, 0.0  ;;  %v4695_v56 = vmax.f32 %v4663_v9, 0.0  ;;  %v4660_v41 = vadd.f32 %v10396_v31, %v4610_v21  ;;  %v7679_v34 = vld [vmem:[#allocation2 + $0x230] ss:$8 sps:$4 sm:$0xff]  }
0x1052   :  { %7329 = vmatprep.subr.bf16.mxu0 %v7674_v12  ;;  %v4716_v5 = vpack.c.bf16 %v4690_v24, %v4688_v7  ;;  %v4662_v39 = vadd.f32 %v10396_v31, %v4612_v46  ;;  %v4665_v11 = vadd.f32 %v10405_v0, %v4615_v14  ;;  %v4667_v19 = vadd.f32 %v10405_v0, %v4617_v51 }
0x1053   :  { %v4719_v52 = vpack.c.bf16 %v4695_v56, %v4693_v28  ;;  %v4692_v18 = vmax.f32 %v4660_v41, 0.0  ;;  %v4614_v16 = vmul.f32 %v10389_v3, %v10260_v33  ;;  %v4616_v38 = vmul.f32 %v10389_v3, %v10281_v55 }
0x1054   :  { %v4694_v26 = vmax.f32 %v4662_v39, 0.0  ;;  %v4697_v8 = vmax.f32 %v4665_v11, 0.0  ;;  %v4699_v17 = vmax.f32 %v4667_v19, 0.0  ;;  %v4619_v49 = vmul.f32 %v10392_v25, %v10305_v23 }
0x1055   :  { %7330 = vmatpush3.bf16.msra.mxu0 %v7674_v12  ;;  %v4621_v15 = vmul.f32 %v10392_v25, %v10321_v10  ;;  %v4664_v4 = vadd.f32 %v10396_v31, %v4614_v16  ;;  %v4666_v36 = vadd.f32 %v10396_v31, %v4616_v38  ;;  %v4618_v32 = vmul.f32 %v10389_v3, %v10297_v50 }
0x1056   :  { %7331 = vmatprep.subr.bf16.mxu0 %v7675_v40  ;;  %v4718_v42 = vpack.c.bf16 %v4694_v26, %v4692_v18  ;;  %v4721_v12 = vpack.c.bf16 %v4699_v17, %v4697_v8  ;;  %v4669_v33 = vadd.f32 %v10405_v0, %v4619_v49  ;;  %v4620_v22 = vmul.f32 %v10389_v3, %v10313_v1 }
0x1057   :  { %v4671_v13 = vadd.f32 %v10405_v0, %v4621_v15  ;;  %v4696_v55 = vmax.f32 %v4664_v4, 0.0  ;;  %v4698_v23 = vmax.f32 %v4666_v36, 0.0  ;;  %v4623_v30 = vmul.f32 %v10392_v25, %v10337_v29 }
0x1058   :  { %4769 = vmatmul.mubr.bf16.gmra.mxu0 %v4714_v62  ;;  %v4701_v10 = vmax.f32 %v4669_v33, 0.0  ;;  %v4625_v62 = vmul.f32 %v10392_v25, %v10353_v47  ;;  %v4668_v60 = vadd.f32 %v10396_v31, %v4618_v32  ;;  %v4622_v47 = vmul.f32 %v10389_v3, %v10329_v35 }
0x1059   :  { %4776 = vmatprep.mubr.bf16.mxu0 %v4717_v61  ;;  %7332 = vmatpush3.bf16.msra.mxu0 %v7675_v40  ;;  %v4703_v2 = vmax.f32 %v4671_v13, 0.0  ;;  %v4720_v59 = vpack.c.bf16 %v4698_v23, %v4696_v55  ;;  %v4670_v40 = vadd.f32 %v10396_v31, %v4620_v22  ;;  %v7681_v61 = vld [vmem:[#allocation2 + $0x410] ss:$8 sps:$4 sm:$0xff]   ;;  %v4673_v50 = vadd.f32 %v10405_v0, %v4623_v30 }
0x105a   :  { %7333 = vmatprep.subr.bf16.mxu0 %v7676_v53  ;;  %v4675_v9 = vadd.f32 %v10405_v0, %v4625_v62  ;;  %v4700_v1 = vmax.f32 %v4668_v60, 0.0  ;;  %v4629_v28 = vmul.f32 %v10392_v25, %v10379_v45  ;;  %v4627_v56 = vmul.f32 %v10392_v25, %v10367_v57 }
0x105b   :  { %v4723_v27 = vpack.c.bf16 %v4703_v2, %v4701_v10  ;;  %v4702_v29 = vmax.f32 %v4670_v40, 0.0  ;;  %v4705_v7 = vmax.f32 %v4673_v50, 0.0  ;;  %v4672_v46 = vadd.f32 %v10396_v31, %v4622_v47 }
0x105c   :  { %v4707_v24 = vmax.f32 %v4675_v9, 0.0  ;;  %v4679_v51 = vadd.f32 %v10405_v0, %v4629_v28  ;;  %v4677_v41 = vadd.f32 %v10405_v0, %v4627_v56  ;;  %v4628_v45 = vmul.f32 %v10389_v3, %v10373_v43 }
0x105d   :  { %7334 = vmatpush3.bf16.msra.mxu0 %v7676_v53  ;;  %v4624_v53 = vmul.f32 %v10389_v3, %v10345_v63  ;;  %v4722_v21 = vpack.c.bf16 %v4702_v29, %v4700_v1  ;;  %v4704_v35 = vmax.f32 %v4672_v46, 0.0  ;;  %v4626_v57 = vmul.f32 %v10389_v3, %v10361_v6 }
0x105e   :  { %7335 = vmatprep.subr.bf16.mxu0 %v7677_v48  ;;  %v4709_v39 = vmax.f32 %v4677_v41, 0.0  ;;  %v4678_v25 = vadd.f32 %v10396_v31, %v4628_v45 }
0x105f   :  { %v4674_v14 = vadd.f32 %v10396_v31, %v4624_v53  ;;  %v4676_v11 = vadd.f32 %v10396_v31, %v4626_v57 }
0x1060   :  { %4777 = vmatmul.mubr.bf16.gmra.mxu0 %v4716_v5  ;;  %v4725_v5 = vpack.c.bf16 %v4707_v24, %v4705_v7  ;;  %v4710_v0 = vmax.f32 %v4678_v25, 0.0 }
0x1061   :  { %4784 = vmatprep.mubr.bf16.mxu0 %v4719_v52  ;;  %7336 = vmatpush3.bf16.msra.mxu0 %v7677_v48  ;;  %v4706_v63 = vmax.f32 %v4674_v14, 0.0  ;;  %v4711_v48 = vmax.f32 %v4679_v51, 0.0  ;;  %v4708_v18 = vmax.f32 %v4676_v11, 0.0 }
0x1062   :  { %7337 = vmatprep.subr.bf16.mxu0 %v7678_v54 }
0x1063   :  { %v4724_v52 = vpack.c.bf16 %v4706_v63, %v4704_v35  ;;  %v4727_v19 = vpack.c.bf16 %v4711_v48, %v4709_v39  ;;  %v4726_v26 = vpack.c.bf16 %v4710_v0, %v4708_v18 }
0x1065   :  { %7338 = vmatpush3.bf16.msra.mxu0 %v7678_v54 }
0x1066   :  { %7339 = vmatprep.subr.bf16.mxu0 %v7679_v34 }
0x1068   :  { %4785 = vmatmul.mubr.bf16.gmra.mxu0 %v4718_v42 }
0x1069   :  { %4792 = vmatprep.mubr.bf16.mxu0 %v4721_v12  ;;  %7340 = vmatpush3.bf16.msra.mxu0 %v7679_v34 }
0x106a   :  { %7341 = vmatprep.subr.bf16.mxu0 %v7680_v20 }
0x106d   :  { %7342 = vmatpush3.bf16.msra.mxu0 %v7680_v20 }
0x106e   :  { %7003 = vmatprep.subr.bf16.mxu0 %v7681_v61 }
0x1070   :  { %4793 = vmatmul.mubr.bf16.gmra.mxu0 %v4720_v59 }
0x1071   :  { %4800 = vmatprep.mubr.bf16.mxu0 %v4723_v27 }
0x1078   :  { %4801 = vmatmul.mubr.bf16.gmra.mxu0 %v4722_v21 }
0x1079   :  { %4808 = vmatprep.mubr.bf16.mxu0 %v4725_v5 }
0x1080   :  { %4809 = vmatmul.mubr.bf16.gmra.mxu0 %v4724_v52 }
0x1081   :  { %4816 = vmatprep.mubr.bf16.mxu0 %v4727_v19 }
0x1088   :  { %4817 = vmatmul.mubr.bf16.gmra.mxu0 %v4726_v26 }
0x1110   :  { %v6923_v54 = vpop.f32.mrf.mxu0 }
0x1112   :  { %v6924_v8 = vpop.f32.mrf.mxu0 }
0x1113   :  { %v10500_v55 = vadd.f32 %v6924_v8, %v6923_v54 }
0x1114   :  { %v6926_v17 = vpop.f32.mrf.mxu0 }
0x1115   :  { %v4846_v22 = vmul.f32 %v10500_v55, %v10500_v55 }
0x1116   :  { %v6927_v16 = vpop.f32.mrf.mxu0 }
0x1117   :  { %v10498_v33 = vadd.f32 %v6927_v16, %v6926_v17 }
0x1118   :  { %v6929_v43 = vpop.f32.mrf.mxu0 }
0x1119   :  { %v4847_v10 = vmul.f32 %v10498_v33, %v10498_v33  ;;  %v4825_v30 = vadd.f32 %v10498_v33, %v10500_v55 }
0x111a   :  { %v6930_v38 = vpop.f32.mrf.mxu0 }
0x111b   :  { %v10502_v23 = vadd.f32 %v6930_v38, %v6929_v43  ;;  %v4862_v40 = vadd.f32 %v4847_v10, %v4846_v22 }
0x111c   :  { %v6932_v49 = vpop.f32.mrf.mxu0 }
0x111d   :  { %v4848_v62 = vmul.f32 %v10502_v23, %v10502_v23  ;;  %v4826_v61 = vadd.f32 %v10502_v23, %v4825_v30 }
0x111e   :  { %v6933_v6 = vpop.f32.mrf.mxu0 }
0x111f   :  { %v10506_v2 = vadd.f32 %v6933_v6, %v6932_v49  ;;  %v4863_v1 = vadd.f32 %v4862_v40, %v4848_v62 }
0x1120   :  { %v6935_v3 = vpop.f32.mrf.mxu0 }
0x1121   :  { %v4849_v27 = vmul.f32 %v10506_v2, %v10506_v2  ;;  %v4827_v29 = vadd.f32 %v10506_v2, %v4826_v61 }
0x1122   :  { %v6936_v15 = vpop.f32.mrf.mxu0 }
0x1123   :  { %v10514_v59 = vadd.f32 %v6936_v15, %v6935_v3  ;;  %v4864_v53 = vadd.f32 %v4863_v1, %v4849_v27 }
0x1124   :  { %v6938_v42 = vpop.f32.mrf.mxu0 }
0x1125   :  { %v4850_v7 = vmul.f32 %v10514_v59, %v10514_v59  ;;  %v4828_v28 = vadd.f32 %v10514_v59, %v4827_v29 }
0x1126   :  { %v6939_v4 = vpop.f32.mrf.mxu0 }
0x1127   :  { %v10519_v50 = vadd.f32 %v6939_v4, %v6938_v42  ;;  %v4865_v14 = vadd.f32 %v4864_v53, %v4850_v7 }
0x1128   :  { %v6941_v31 = vpop.f32.mrf.mxu0 }
0x1129   :  { %v4851_v56 = vmul.f32 %v10519_v50, %v10519_v50  ;;  %v4829_v51 = vadd.f32 %v10519_v50, %v4828_v28 }
0x112a   :  { %v6942_v36 = vpop.f32.mrf.mxu0 }
0x112b   :  { %v10524_v24 = vadd.f32 %v6942_v36, %v6941_v31  ;;  %v4866_v63 = vadd.f32 %v4865_v14, %v4851_v56 }
0x112c   :  { %v6944_v34 = vpop.f32.mrf.mxu0 }
0x112d   :  { %v4852_v5 = vmul.f32 %v10524_v24, %v10524_v24  ;;  %v4830_v39 = vadd.f32 %v10524_v24, %v4829_v51 }
0x112e   :  { %v6945_v12 = vpop.f32.mrf.mxu0 }
0x112f   :  { %v10529_v21 = vadd.f32 %v6945_v12, %v6944_v34  ;;  %v4867_v25 = vadd.f32 %v4866_v63, %v4852_v5 }
0x1130   :  { %v6947_v13 = vpop.f32.mrf.mxu0 }
0x1131   :  { %v4853_v48 = vmul.f32 %v10529_v21, %v10529_v21  ;;  %v4831_v52 = vadd.f32 %v10529_v21, %v4830_v39 }
0x1132   :  { %v6948_v20 = vpop.f32.mrf.mxu0 }
0x1133   :  { %v10534_v41 = vadd.f32 %v6948_v20, %v6947_v13  ;;  %v4868_v18 = vadd.f32 %v4867_v25, %v4853_v48 }
0x1134   :  { %v6950_v32 = vpop.f32.mrf.mxu0 }
0x1135   :  { %v4854_v11 = vmul.f32 %v10534_v41, %v10534_v41  ;;  %v4832_v26 = vadd.f32 %v10534_v41, %v4831_v52 }
0x1136   :  { %v6951_v60 = vpop.f32.mrf.mxu0 }
0x1137   :  { %v10539_v45 = vadd.f32 %v6951_v60, %v6950_v32  ;;  %v4869_v16 = vadd.f32 %v4868_v18, %v4854_v11 }
0x1138   :  { %v6953_v9 = vpop.f32.mrf.mxu0 }
0x1139   :  { %v4855_v54 = vmul.f32 %v10539_v45, %v10539_v45  ;;  %v4833_v43 = vadd.f32 %v10539_v45, %v4832_v26 }
0x113a   :  { %v6954_v47 = vpop.f32.mrf.mxu0 }
0x113b   :  { %v10544_v19 = vadd.f32 %v6954_v47, %v6953_v9  ;;  %v4870_v3 = vadd.f32 %v4869_v16, %v4855_v54  ;;  %v10576_v16 = vld [vmem:[%s11729_s2 + $0x10] sm:$0xff] }
0x113c   :  { %v6956_v46 = vpop.f32.mrf.mxu0 }
0x113d   :  { %v4856_v38 = vmul.f32 %v10544_v19, %v10544_v19  ;;  %v4834_v15 = vadd.f32 %v10544_v19, %v4833_v43 }
0x113e   :  { %v6957_v35 = vpop.f32.mrf.mxu0 }
0x113f   :  { %v10549_v8 = vadd.f32 %v6957_v35, %v6956_v46  ;;  %v4871_v36 = vadd.f32 %v4870_v3, %v4856_v38 }
0x1140   :  { %v6959_v57 = vpop.f32.mrf.mxu0 }
0x1141   :  { %v4857_v42 = vmul.f32 %v10549_v8, %v10549_v8  ;;  %v4835_v34 = vadd.f32 %v10549_v8, %v4834_v15 }
0x1142   :  { %v6960_v0 = vpop.f32.mrf.mxu0 }
0x1143   :  { %v10554_v49 = vadd.f32 %v6960_v0, %v6959_v57  ;;  %v4872_v20 = vadd.f32 %v4871_v36, %v4857_v42  ;;  %v11957_v42 = vld [vmem:[#allocation14_spill] sm:$0xff] }
0x1144   :  { %v6962_v17 = vpop.f32.mrf.mxu0 }
0x1145   :  { %v4858_v12 = vmul.f32 %v10554_v49, %v10554_v49  ;;  %v4836_v10 = vadd.f32 %v10554_v49, %v4835_v34 }
0x1146   :  { %v6963_v6 = vpop.f32.mrf.mxu0 }
0x1147   :  { %v10559_v4 = vadd.f32 %v6963_v6, %v6962_v17  ;;  %v4873_v62 = vadd.f32 %v4872_v20, %v4858_v12 }
0x1148   :  { %v6965_v31 = vpop.f32.mrf.mxu0 }
0x1149   :  { %v4859_v32 = vmul.f32 %v10559_v4, %v10559_v4  ;;  %v4837_v60 = vadd.f32 %v10559_v4, %v4836_v10 }
0x114a   :  { %v6966_v13 = vpop.f32.mrf.mxu0 }
0x114b   :  { %v10567_v22 = vadd.f32 %v6966_v13, %v6965_v31  ;;  %v4874_v27 = vadd.f32 %v4873_v62, %v4859_v32 }
0x114c   :  { %v6968_v30 = vpop.f32.mrf.mxu0 }
0x114d   :  { %v4860_v40 = vmul.f32 %v10567_v22, %v10567_v22  ;;  %v4838_v9 = vadd.f32 %v10567_v22, %v4837_v60 }
0x114e   :  { %v6969_v61 = vpop.f32.mrf.mxu0 }
0x114f   :  { %v6970_v1 = vadd.f32 %v6969_v61, %v6968_v30  ;;  %v4875_v29 = vadd.f32 %v4874_v27, %v4860_v40 }
0x1151   :  { %v4839_v7 = vadd.f32 %v6970_v1, %v4838_v9  ;;  %v4861_v47 = vmul.f32 %v6970_v1, %v6970_v1 }
0x1153   :  { %v4840_v53 = vrot.slane %v4839_v7, 4  ;;  %v4876_v28 = vadd.f32 %v4875_v29, %v4861_v47 }
0x1155   :  { %v4841_v56 = vadd.f32 %v4840_v53, %v4839_v7  ;;  %v4877_v46 = vrot.slane %v4876_v28, 4 }
0x1157   :  { %v4842_v14 = vrot.slane %v4841_v56, 2  ;;  %v4878_v51 = vadd.f32 %v4877_v46, %v4876_v28 }
0x1159   :  { %v4843_v5 = vadd.f32 %v4842_v14, %v4841_v56  ;;  %v4879_v35 = vrot.slane %v4878_v51, 2 }
0x115b   :  { %v4844_v63 = vrot.slane %v4843_v5, 1  ;;  %v4880_v39 = vadd.f32 %v4879_v35, %v4878_v51 }
0x115d   :  { %v4845_v48 = vadd.f32 %v4844_v63, %v4843_v5  ;;  %v4881_v57 = vrot.slane %v4880_v39, 1 }
0x115f   :  { %v4882_v25 = vadd.f32 %v4881_v57, %v4880_v39  ;;  %v4883_v52 = vmul.f32 0.0078125, %v4845_v48  ;;  %v7683_v57 = vld [vmem:[#allocation2 + $0x310] ss:$8 sps:$4 sm:$0xff]  }
0x1161   :  { %v4884_v11 = vmul.f32 0.0078125, %v4882_v25  ;;  %v4885_v0 = vmul.f32 %v4883_v52, %v4883_v52 }
0x1163   :  { %v4886_v18 = vsub.f32 %v4884_v11, %v4885_v0  ;;  %v7684_v11 = vld [vmem:[#allocation2 + $0x304] ss:$8 sps:$4 sm:$0xff]  }
0x1165   :  { %v4887_v26 = vmax.f32 %v4886_v18, 0.0 }
0x1167   :  { %v4888_v54 = vadd.f32 1e-05, %v4887_v26 }
0x1169   :  { %7556 = vrsqrt.f32 %v4888_v54 }
0x1176   :  { %v7557_v17 = vpop.eup %7556 }
0x1177   :  { %v4890_v43 = vmul.f32 %v10576_v16, %v7557_v17 }
0x1179   :  { %v4911_v38 = vmul.f32 %v4890_v43, %v4883_v52  ;;  %v4894_v6 = vrot.slane %v4890_v43, %v8245_v44  ;;  %v7685_v43 = vld [vmem:[#allocation2 + $0x300] ss:$8 sps:$4 sm:$0xff]  }
0x117b   :  { %v4913_v3 = vrot.slane %v4911_v38, 7  ;;  %v4895_v36 = vmul.f32 %v10500_v55, %v4894_v6  ;;  %v4896_v34 = vmul.f32 %v10498_v33, %v4894_v6  ;;  %v4897_v12 = vmul.f32 %v10502_v23, %v4894_v6 }
0x117c   :  { %v4910_v13 = vmul.f32 %v6970_v1, %v4894_v6  ;;  %v4898_v20 = vmul.f32 %v10506_v2, %v4894_v6  ;;  %v4899_v10 = vmul.f32 %v10514_v59, %v4894_v6  ;;  %v4900_v32 = vmul.f32 %v10519_v50, %v4894_v6 }
0x117d   :  { %v4915_v15 = vsub.f32 %v10576_v16, %v4913_v3  ;;  %v4901_v40 = vmul.f32 %v10524_v24, %v4894_v6  ;;  %v4902_v55 = vmul.f32 %v10529_v21, %v4894_v6  ;;  %v4903_v1 = vmul.f32 %v10534_v41, %v4894_v6 }
0x117e   :  { %v4904_v53 = vmul.f32 %v10539_v45, %v4894_v6  ;;  %v4907_v28 = vmul.f32 %v10554_v49, %v4894_v6  ;;  %v4908_v24 = vmul.f32 %v10559_v4, %v4894_v6  ;;  %v4909_v21 = vmul.f32 %v10567_v22, %v4894_v6 }
0x117f   :  { %v4919_v31 = vrot.slane %v4915_v15, %v11957_v42  ;;  %v4905_v18 = vmul.f32 %v10544_v19, %v4894_v6  ;;  %v4906_v26 = vmul.f32 %v10549_v8, %v4894_v6  ;;  %v7689_v19 = vld [vmem:[#allocation2 + $0x2e0] ss:$8 sps:$4 sm:$0xff]   ;;  %v7690_v6 = vld [vmem:[#allocation2 + $0x2d4] ss:$8 sps:$4 sm:$0xff]  }
0x1181   :  { %v4920_v30 = vadd.f32 %v4919_v31, %v4895_v36  ;;  %v4921_v62 = vadd.f32 %v4919_v31, %v4896_v34  ;;  %v4922_v60 = vadd.f32 %v4919_v31, %v4897_v12  ;;  %v4923_v61 = vadd.f32 %v4919_v31, %v4898_v20  ;;  %v7686_v36 = vld [vmem:[#allocation2 + $0x2f4] ss:$8 sps:$4 sm:$0xff]   ;;  %v7687_v12 = vld [vmem:[#allocation2 + $0x2f0] ss:$8 sps:$4 sm:$0xff]  }
0x1182   :  { %v4924_v27 = vadd.f32 %v4919_v31, %v4899_v10  ;;  %v4925_v9 = vadd.f32 %v4919_v31, %v4900_v32  ;;  %v4935_v2 = vadd.f32 %v4919_v31, %v4910_v13  ;;  %v4926_v46 = vadd.f32 %v4919_v31, %v4901_v40  ;;  %v7688_v10 = vld [vmem:[#allocation2 + $0x2e4] ss:$8 sps:$4 sm:$0xff]   ;;  %v7691_v32 = vld [vmem:[#allocation2 + $0x2d0] ss:$8 sps:$4 sm:$0xff]  }
0x1183   :  { %v4936_v33 = vmax.f32 %v4920_v30, 0.0  ;;  %v4937_v29 = vmax.f32 %v4921_v62, 0.0  ;;  %v4938_v23 = vmax.f32 %v4922_v60, 0.0  ;;  %v4939_v7 = vmax.f32 %v4923_v61, 0.0  ;;  %v7693_v30 = vld [vmem:[#allocation2 + $0x2c0] ss:$8 sps:$4 sm:$0xff]  }
0x1184   :  { %v4940_v59 = vmax.f32 %v4924_v27, 0.0  ;;  %v4941_v47 = vmax.f32 %v4925_v9, 0.0  ;;  %v4927_v14 = vadd.f32 %v4919_v31, %v4902_v55  ;;  %v4928_v5 = vadd.f32 %v4919_v31, %v4903_v1  ;;  %v7694_v62 = vld [vmem:[#allocation2 + $0x2b4] ss:$8 sps:$4 sm:$0xff]   ;;  %v7695_v60 = vld [vmem:[#allocation2 + $0x2b0] ss:$8 sps:$4 sm:$0xff]  }
0x1185   :  { %v4952_v50 = vpack.c.bf16 %v4937_v29, %v4936_v33  ;;  %v4953_v56 = vpack.c.bf16 %v4939_v7, %v4938_v23  ;;  %v4929_v41 = vadd.f32 %v4919_v31, %v4904_v53  ;;  %v4932_v35 = vadd.f32 %v4919_v31, %v4907_v28  ;;  %v7696_v61 = vld [vmem:[#allocation2 + $0x2a4] ss:$8 sps:$4 sm:$0xff]   ;;  %v7697_v27 = vld [vmem:[#allocation2 + $0x2a0] ss:$8 sps:$4 sm:$0xff]   ;;  %v10598_v9 = vld [vmem:[#allocation2 + $0x490] ss:$8 sps:$4 sm:$0xff]  }
0x1186   :  { %v4954_v51 = vpack.c.bf16 %v4941_v47, %v4940_v59  ;;  %v4951_v63 = vmax.f32 %v4935_v2, 0.0  ;;  %v4933_v39 = vadd.f32 %v4919_v31, %v4908_v24  ;;  %v4934_v48 = vadd.f32 %v4919_v31, %v4909_v21 }
0x1187   :  { %7311 = vmatprep.mubr.bf16.mxu1 %v4952_v50  ;;  %v4948_v45 = vmax.f32 %v4932_v35, 0.0  ;;  %v4942_v49 = vmax.f32 %v4926_v46, 0.0  ;;  %v4943_v4 = vmax.f32 %v4927_v14, 0.0  ;;  %v4944_v22 = vmax.f32 %v4928_v5, 0.0 }
0x1188   :  { %7312 = vmatmul.mubr.bf16.vlgmr.msra.gmra.mxu1 %v4953_v56  ;;  %v4949_v25 = vmax.f32 %v4933_v39, 0.0  ;;  %v4950_v52 = vmax.f32 %v4934_v48, 0.0  ;;  %v4945_v0 = vmax.f32 %v4929_v41, 0.0  ;;  %v4930_v3 = vadd.f32 %v4919_v31, %v4905_v18 }
0x1189   :  { %7315 = vmatprep.mubr.bf16.mxu1 %v4954_v51  ;;  %5489 = vmatpush1.bf16.msra.mxu1 %v7683_v57  ;;  %v4955_v38 = vpack.c.bf16 %v4943_v4, %v4942_v49  ;;  %v4931_v15 = vadd.f32 %v4919_v31, %v4906_v26  ;;  %v7692_v31 = vld [vmem:[#allocation2 + $0x2c4] ss:$8 sps:$4 sm:$0xff]   ;;  %v11958_v40 = vmov 0  }
0x118a   :  { %5490 = vmatprep.subr.bf16.mxu1 %v7684_v11  ;;  %v4958_v54 = vpack.c.bf16 %v4949_v25, %v4948_v45  ;;  %v4959_v17 = vpack.c.bf16 %v4951_v63, %v4950_v52  ;;  %v4956_v34 = vpack.c.bf16 %v4945_v0, %v4944_v22  ;;  %v4946_v13 = vmax.f32 %v4930_v3, 0.0 }
0x118b   :  { %v4947_v20 = vmax.f32 %v4931_v15, 0.0 }
0x118d   :  { %5491 = vmatpush1.bf16.msra.mxu1 %v7685_v43  ;;  %v4957_v8 = vpack.c.bf16 %v4947_v20, %v4946_v13 }
0x118e   :  { %5492 = vmatprep.subr.bf16.mxu1 %v7686_v36 }
0x1190   :  { %7316 = vmatmul.mubr.bf16.gmra.mxu1 %v4955_v38 }
0x1191   :  { %7319 = vmatprep.mubr.bf16.mxu1 %v4956_v34  ;;  %5493 = vmatpush1.bf16.msra.mxu1 %v7687_v12 }
0x1192   :  { %5494 = vmatprep.subr.bf16.mxu1 %v7688_v10 }
0x1195   :  { %5495 = vmatpush1.bf16.msra.mxu1 %v7689_v19 }
0x1196   :  { %5496 = vmatprep.subr.bf16.mxu1 %v7690_v6 }
0x1198   :  { %7320 = vmatmul.mubr.bf16.gmra.mxu1 %v4957_v8 }
0x1199   :  { %7323 = vmatprep.mubr.bf16.mxu1 %v4958_v54  ;;  %5497 = vmatpush1.bf16.msra.mxu1 %v7691_v32 }
0x119a   :  { %5498 = vmatprep.subr.bf16.mxu1 %v7692_v31 }
0x119d   :  { %5499 = vmatpush1.bf16.msra.mxu1 %v7693_v30 }
0x119e   :  { %5500 = vmatprep.subr.bf16.mxu1 %v7694_v62 }
0x11a0   :  { %7324 = vmatmul.mubr.bf16.gmra.mxu1 %v4959_v17 }
0x11a1   :  { %5501 = vmatpush1.bf16.msra.mxu1 %v7695_v60  ;;  %5520 = vmatprep.mubr.bf16.mxu1 %v11958_v40 }
0x11a2   :  { %5502 = vmatprep.subr.bf16.mxu1 %v7696_v61 }
0x11a5   :  { %5503 = vmatpush1.bf16.msra.mxu1 %v7697_v27 }
0x11a6   :  { %7391 = vmatprep.subr.bf16.mxu1 %v10598_v9 }
0x1248   :  { %v10601_v55 = vpop.f32.mrf.mxu1 }
0x1249   :  { %v5080_v47 = vmul.f32 %v10601_v55, %v10601_v55 }
0x124a   :  { %v10603_v33 = vpop.f32.mrf.mxu1 }
0x124b   :  { %v5078_v1 = vmul.f32 %v10603_v33, %v10603_v33 }
0x124c   :  { %v10605_v29 = vpop.f32.mrf.mxu1 }
0x124d   :  { %v5081_v24 = vmul.f32 %v10605_v29, %v10605_v29 }
0x124e   :  { %v10607_v23 = vpop.f32.mrf.mxu1 }
0x124f   :  { %v5057_v2 = vadd.f32 %v10607_v23, %v10603_v33  ;;  %v5079_v7 = vmul.f32 %v10607_v23, %v10607_v23 }
0x1250   :  { %v10615_v59 = vpop.f32.mrf.mxu1 }
0x1251   :  { %v5058_v50 = vadd.f32 %v10601_v55, %v5057_v2  ;;  %v5094_v53 = vadd.f32 %v5079_v7, %v5078_v1  ;;  %v5084_v45 = vmul.f32 %v10615_v59, %v10615_v59 }
0x1252   :  { %v10620_v28 = vpop.f32.mrf.mxu1 }
0x1253   :  { %v5095_v56 = vadd.f32 %v5094_v53, %v5080_v47  ;;  %v5059_v46 = vadd.f32 %v10605_v29, %v5058_v50  ;;  %v5082_v51 = vmul.f32 %v10620_v28, %v10620_v28 }
0x1254   :  { %v10625_v14 = vpop.f32.mrf.mxu1 }
0x1255   :  { %v5060_v21 = vadd.f32 %v5059_v46, %v10620_v28  ;;  %v5096_v5 = vadd.f32 %v5095_v56, %v5081_v24  ;;  %v5085_v25 = vmul.f32 %v10625_v14, %v10625_v14 }
0x1256   :  { %v10630_v41 = vpop.f32.mrf.mxu1 }
0x1257   :  { %v5097_v35 = vadd.f32 %v5096_v5, %v5082_v51  ;;  %v5061_v63 = vadd.f32 %v5060_v21, %v10630_v41  ;;  %v5083_v39 = vmul.f32 %v10630_v41, %v10630_v41 }
0x1258   :  { %v10635_v48 = vpop.f32.mrf.mxu1 }
0x1259   :  { %v5062_v57 = vadd.f32 %v10615_v59, %v5061_v63  ;;  %v5098_v49 = vadd.f32 %v5097_v35, %v5083_v39  ;;  %v5088_v15 = vmul.f32 %v10635_v48, %v10635_v48 }
0x125a   :  { %v10640_v4 = vpop.f32.mrf.mxu1 }
0x125b   :  { %v5099_v52 = vadd.f32 %v5098_v49, %v5084_v45  ;;  %v5063_v11 = vadd.f32 %v10625_v14, %v5062_v57  ;;  %v5086_v18 = vmul.f32 %v10640_v4, %v10640_v4 }
0x125c   :  { %v10645_v22 = vpop.f32.mrf.mxu1 }
0x125d   :  { %v5064_v0 = vadd.f32 %v5063_v11, %v10640_v4  ;;  %v5100_v26 = vadd.f32 %v5099_v52, %v5085_v25  ;;  %v5089_v13 = vmul.f32 %v10645_v22, %v10645_v22 }
0x125e   :  { %v10650_v54 = vpop.f32.mrf.mxu1 }
0x125f   :  { %v5101_v17 = vadd.f32 %v5100_v26, %v5086_v18  ;;  %v5065_v43 = vadd.f32 %v5064_v0, %v10650_v54  ;;  %v5087_v38 = vmul.f32 %v10650_v54, %v10650_v54 }
0x1260   :  { %v10655_v3 = vpop.f32.mrf.mxu1 }
0x1261   :  { %v5066_v36 = vadd.f32 %v10635_v48, %v5065_v43  ;;  %v5102_v34 = vadd.f32 %v5101_v17, %v5087_v38  ;;  %v5092_v61 = vmul.f32 %v10655_v3, %v10655_v3  ;;  %v11959_v38 = vld [vmem:[#allocation15_spill] sm:$0xff] }
0x1262   :  { %v10660_v12 = vpop.f32.mrf.mxu1 }
0x1263   :  { %v5103_v20 = vadd.f32 %v5102_v34, %v5088_v15  ;;  %v5067_v10 = vadd.f32 %v10645_v22, %v5066_v36  ;;  %v5090_v6 = vmul.f32 %v10660_v12, %v10660_v12  ;;  %v7699_v34 = vld [vmem:[%s11729_s2 + $0x20] sm:$0xff] }
0x1264   :  { %v10665_v19 = vpop.f32.mrf.mxu1 }
0x1265   :  { %v5068_v8 = vadd.f32 %v5067_v10, %v10660_v12  ;;  %v5104_v32 = vadd.f32 %v5103_v20, %v5089_v13  ;;  %v5093_v2 = vmul.f32 %v10665_v19, %v10665_v19  ;;  %v11960_v10 = vld [vmem:[#allocation8_spill] sm:$0xff] }
0x1266   :  { %v10670_v31 = vpop.f32.mrf.mxu1 }
0x1267   :  { %v5105_v30 = vadd.f32 %v5104_v32, %v5090_v6  ;;  %v5069_v62 = vadd.f32 %v5068_v8, %v10670_v31  ;;  %v5091_v60 = vmul.f32 %v10670_v31, %v10670_v31 }
0x1269   :  { %v5070_v27 = vadd.f32 %v10655_v3, %v5069_v62  ;;  %v5106_v1 = vadd.f32 %v5105_v30, %v5091_v60 }
0x126b   :  { %v5071_v7 = vadd.f32 %v10665_v19, %v5070_v27  ;;  %v5107_v47 = vadd.f32 %v5106_v1, %v5092_v61 }
0x126d   :  { %v5072_v50 = vrot.slane %v5071_v7, 4  ;;  %v5108_v53 = vadd.f32 %v5107_v47, %v5093_v2 }
0x126f   :  { %v5073_v24 = vadd.f32 %v5072_v50, %v5071_v7  ;;  %v5109_v56 = vrot.slane %v5108_v53, 4 }
0x1271   :  { %v5074_v46 = vrot.slane %v5073_v24, 2  ;;  %v5110_v21 = vadd.f32 %v5109_v56, %v5108_v53 }
0x1273   :  { %v5075_v51 = vadd.f32 %v5074_v46, %v5073_v24  ;;  %v5111_v5 = vrot.slane %v5110_v21, 2  ;;  %v11961_v46 = vld [vmem:[#allocation20_spill] sm:$0xff] }
0x1275   :  { %v5076_v35 = vrot.slane %v5075_v51, 1  ;;  %v5112_v63 = vadd.f32 %v5111_v5, %v5110_v21  ;;  %v11963_v21 = vld [vmem:[#allocation16_spill] sm:$0xff]  ;;  %v11965_v5 = vld [vmem:[#allocation31_spill] sm:$0xff] }
0x1277   :  { %v5077_v39 = vadd.f32 %v5076_v35, %v5075_v51  ;;  %v5113_v45 = vrot.slane %v5112_v63, 1 }
0x1279   :  { %v5114_v57 = vadd.f32 %v5113_v45, %v5112_v63  ;;  %v5115_v49 = vmul.f32 0.0078125, %v5077_v39  ;;  %v11967_v39 = vld [vmem:[#allocation19_spill] sm:$0xff] }
0x127b   :  { %v5116_v25 = vmul.f32 0.0078125, %v5114_v57  ;;  %v5117_v52 = vmul.f32 %v5115_v49, %v5115_v49 }
0x127d   :  { %v5118_v11 = vsub.f32 %v5116_v25, %v5117_v52  ;;  %v11973_v52 = vld [vmem:[#allocation17_spill] sm:$0xff] }
0x127f   :  { %v5119_v0 = vmax.f32 %v5118_v11, 0.0 }
0x1281   :  { %v5120_v18 = vadd.f32 1e-05, %v5119_v0  ;;  %v11975_v0 = vld [vmem:[#allocation11_spill] sm:$0xff] }
0x1283   :  { %7558 = vrsqrt.f32 %v5120_v18 }
0x1290   :  { %v7559_v26 = vpop.eup %7558 }
0x1291   :  { %v5122_v17 = vmul.f32 %v10576_v16, %v7559_v26 }
0x1293   :  { %v5143_v43 = vmul.f32 %v5122_v17, %v5115_v49  ;;  %v10683_v15 = vrot.slane %v5122_v17, %v11959_v38  ;;  %v11971_v49 = vld [vmem:[#allocation18_spill] sm:$0xff] }
0x1295   :  { %v5145_v36 = vrot.slane %v5143_v43, 7  ;;  %v5133_v20 = vmul.f32 %v10615_v59, %v10683_v15  ;;  %v5127_v6 = vmul.f32 %v10683_v15, %v10603_v33  ;;  %v5128_v32 = vmul.f32 %v10683_v15, %v10607_v23 }
0x1296   :  { %v5129_v30 = vmul.f32 %v10601_v55, %v10683_v15  ;;  %v5130_v62 = vmul.f32 %v10605_v29, %v10683_v15  ;;  %v5131_v60 = vmul.f32 %v10683_v15, %v10620_v28  ;;  %v5132_v59 = vmul.f32 %v10683_v15, %v10630_v41 }
0x1297   :  { %v5147_v13 = vsub.f32 %v7699_v34, %v5145_v36  ;;  %v5135_v61 = vmul.f32 %v10683_v15, %v10640_v4  ;;  %v5137_v55 = vmul.f32 %v10635_v48, %v10683_v15  ;;  %v5134_v47 = vmul.f32 %v10625_v14, %v10683_v15  ;;  %v11969_v14 = vld [vmem:[#allocation12_spill] sm:$0xff] }
0x1298   :  { %v5136_v63 = vmul.f32 %v10683_v15, %v10650_v54  ;;  %v5140_v43 = vmul.f32 %v10683_v15, %v10670_v31 }
0x1299   :  { %v10691_v8 = vrot.slane %v5147_v13, %v11960_v10  ;;  %v5139_v13 = vmul.f32 %v10683_v15, %v10660_v12  ;;  %v5138_v12 = vmul.f32 %v10645_v22, %v10683_v15 }
0x129b   :  { %v5158_v33 = vadd.f32 %v10691_v8, %v5133_v20  ;;  %v5152_v27 = vadd.f32 %v10691_v8, %v5127_v6  ;;  %v5153_v23 = vadd.f32 %v10691_v8, %v5128_v32  ;;  %v5154_v29 = vadd.f32 %v10691_v8, %v5129_v30 }
0x129c   :  { %v5155_v1 = vadd.f32 %v10691_v8, %v5130_v62  ;;  %v5156_v28 = vadd.f32 %v10691_v8, %v5131_v60  ;;  %v5157_v41 = vadd.f32 %v10691_v8, %v5132_v59  ;;  %v5160_v17 = vadd.f32 %v10691_v8, %v5135_v61  ;;  %v11976_v61 = vld [vmem:[#allocation22_spill] sm:$0xff] }
0x129d   :  { %v5174_v2 = vmax.f32 %v5158_v33, 0.0  ;;  %v5168_v7 = vmax.f32 %v5152_v27, 0.0  ;;  %v5169_v4 = vmax.f32 %v5153_v23, 0.0  ;;  %v5170_v50 = vmax.f32 %v5154_v29, 0.0 }
0x129e   :  { %v5171_v53 = vmax.f32 %v5155_v1, 0.0  ;;  %v5172_v24 = vmax.f32 %v5156_v28, 0.0  ;;  %v5173_v56 = vmax.f32 %v5157_v41, 0.0  ;;  %v5162_v34 = vadd.f32 %v10691_v8, %v5137_v55  ;;  %v7700_v55 = vld [vmem:[#allocation2 + $0x390] ss:$8 sps:$4 sm:$0xff]   ;;  %v11978_v1 = vld [vmem:[#allocation24_spill] sm:$0xff] }
0x129f   :  { %v10719_v48 = vadd.f32 %v5174_v2, %v11961_v46  ;;  %v10722_v51 = vadd.f32 %v5168_v7, %v11963_v21  ;;  %v10725_v35 = vadd.f32 %v5169_v4, %v11965_v5  ;;  %v10730_v45 = vadd.f32 %v5170_v50, %v11967_v39  ;;  %v7701_v41 = vld [vmem:[#allocation2 + $0x400] ss:$8 sps:$4 sm:$0xff]   ;;  %v11980_v7 = vld [vmem:[#allocation21_spill] sm:$0xff] }
0x12a0   :  { %v10733_v57 = vadd.f32 %v5171_v53, %v11969_v14  ;;  %v10736_v25 = vadd.f32 %v5172_v24, %v11971_v49  ;;  %v10739_v11 = vadd.f32 %v5173_v56, %v11973_v52  ;;  %v5176_v6 = vmax.f32 %v5160_v17, 0.0  ;;  %v7702_v5 = vld [vmem:[#allocation2 + $0x380] ss:$8 sps:$4 sm:$0xff]   ;;  %v11986_v17 = vld [vmem:[#allocation25_spill] sm:$0xff] }
0x12a1   :  { %11962 = vst [vmem:[#allocation30_spill] sm:$0xff] %v10719_v48  ;;  %11964 = vst [vmem:[#allocation20_spill] sm:$0xff] %v10722_v51  ;;  %v5206_v18 = vmul.f32 %v10719_v48, %v11975_v0  ;;  %v5248_v26 = vpack.c.bf16 %v10725_v35, %v10722_v51  ;;  %v5200_v54 = vmul.f32 %v10722_v51, %v11975_v0  ;;  %v5178_v31 = vmax.f32 %v5162_v34, 0.0  ;;  %v11984_v14 = vld [vmem:[#allocation28_spill] sm:$0xff]  ;;  %v7704_v34 = vld [vmem:[#allocation2 + $0x370] ss:$8 sps:$4 sm:$0xff]  }
0x12a2   :  { %11966 = vst [vmem:[#allocation16_spill] sm:$0xff] %v10725_v35  ;;  %11968 = vst [vmem:[#allocation31_spill] sm:$0xff] %v10730_v45  ;;  %v5249_v36 = vpack.c.bf16 %v10733_v57, %v10730_v45  ;;  %v5250_v20 = vpack.c.bf16 %v10739_v11, %v10736_v25  ;;  %v5159_v32 = vadd.f32 %v10691_v8, %v5134_v47  ;;  %v11982_v47 = vld [vmem:[#allocation23_spill] sm:$0xff] }
0x12a3   :  { %11970 = vst [vmem:[#allocation19_spill] sm:$0xff] %v10733_v57  ;;  %11972 = vst [vmem:[#allocation12_spill] sm:$0xff] %v10736_v25  ;;  %5228 = vadd.xlane.f32.xlu1 %v5206_v18  ;;  %7343 = vmatprep.mubr.bf16.mxu0 %v5248_v26  ;;  %v5161_v30 = vadd.f32 %v10691_v8, %v5136_v63  ;;  %v5164_v62 = vadd.f32 %v10691_v8, %v5139_v13  ;;  %v7703_v18 = vld [vmem:[#allocation2 + $0x3f0] ss:$8 sps:$4 sm:$0xff]  }
0x12a4   :  { %11974 = vst [vmem:[#allocation18_spill] sm:$0xff] %v10739_v11  ;;  %5216 = vadd.xlane.f32.xlu0 %v5200_v54  ;;  %7344 = vmatmul.mubr.bf16.vlgmr.msra.gmra.mxu0 %v5249_v36  ;;  %v5141_v60 = vmul.f32 %v10655_v3, %v10683_v15  ;;  %v5165_v59 = vadd.f32 %v10691_v8, %v5140_v43  ;;  %v5175_v27 = vmax.f32 %v5159_v32, 0.0  ;;  %v11988_v13 = vld [vmem:[#allocation26_spill] sm:$0xff]  ;;  %v11990_v32 = vld [vmem:[#allocation27_spill] sm:$0xff] }
0x12a5   :  { %7347 = vmatprep.mubr.bf16.mxu0 %v5250_v20  ;;  %v10766_v33 = vadd.f32 %v5176_v6, %v11976_v61  ;;  %v5177_v23 = vmax.f32 %v5161_v30, 0.0  ;;  %7004 = vmatpush3.bf16.msra.mxu0 %v7700_v55  ;;  %v5201_v29 = vmul.f32 %v10725_v35, %v11975_v0  ;;  %v10771_v28 = vadd.f32 %v5178_v31, %v11978_v1  ;;  %v7708_v55 = vld [vmem:[#allocation2 + $0x350] ss:$8 sps:$4 sm:$0xff]  }
0x12a6   :  { %v5166_v3 = vadd.f32 %v10691_v8, %v5141_v60  ;;  %v5163_v22 = vadd.f32 %v10691_v8, %v5138_v12  ;;  %7005 = vmatprep.subr.bf16.mxu0 %v7701_v41  ;;  %v10778_v4 = vadd.f32 %v5175_v27, %v11980_v7  ;;  %v5180_v53 = vmax.f32 %v5164_v62, 0.0  ;;  %v7706_v62 = vld [vmem:[#allocation2 + $0x360] ss:$8 sps:$4 sm:$0xff]   ;;  %v11992_v27 = vld [vmem:[#allocation29_spill] sm:$0xff] }
0x12a7   :  { %11977 = vst [vmem:[#allocation17_spill] sm:$0xff] %v10766_v33  ;;  %11979 = vst [vmem:[#allocation22_spill] sm:$0xff] %v10771_v28  ;;  %v5208_v2 = vmul.f32 %v10766_v33, %v11975_v0  ;;  %v10781_v50 = vadd.f32 %v5177_v23, %v11982_v47  ;;  %v5181_v24 = vmax.f32 %v5165_v59, 0.0  ;;  %v5202_v56 = vmul.f32 %v10730_v45, %v11975_v0  ;;  %v7707_v59 = vld [vmem:[#allocation2 + $0x3d0] ss:$8 sps:$4 sm:$0xff]  }
0x12a8   :  { %11981 = vst [vmem:[#allocation24_spill] sm:$0xff] %v10778_v4  ;;  %5218 = vadd.xlane.f32.xlu0 %v5201_v29  ;;  %v5251_v46 = vpack.c.bf16 %v10778_v4, %v10719_v48  ;;  %v5179_v21 = vmax.f32 %v5163_v22, 0.0  ;;  %v5210_v63 = vmul.f32 %v10771_v28, %v11975_v0  ;;  %v10792_v49 = vadd.f32 %v5180_v53, %v11984_v14  ;;  %v7709_v29 = vld [vmem:[#allocation2 + $0x3c0] ss:$8 sps:$4 sm:$0xff]   ;;  %v7711_v41 = vld [vmem:[#allocation2 + $0x3b0] ss:$8 sps:$4 sm:$0xff]  }
0x12a9   :  { %11983 = vst [vmem:[#allocation21_spill] sm:$0xff] %v10781_v50  ;;  %5232 = vadd.xlane.f32.xlu1 %v5208_v2  ;;  %7006 = vmatpush3.bf16.msra.mxu0 %v7702_v5  ;;  %v5252_v39 = vpack.c.bf16 %v10781_v50, %v10766_v33  ;;  %v5182_v52 = vmax.f32 %v5166_v3, 0.0  ;;  %v5142_v26 = vmul.f32 %v10665_v19, %v10683_v15  ;;  %v7705_v15 = vld [vmem:[#allocation2 + $0x3e0] ss:$8 sps:$4 sm:$0xff]   ;;  %v7712_v7 = vld [vmem:[#allocation2 + $0x330] ss:$8 sps:$4 sm:$0xff]  }
0x12aa   :  { %11985 = vst [vmem:[#allocation23_spill] sm:$0xff] %v10792_v49  ;;  %7007 = vmatprep.subr.bf16.mxu0 %v7703_v18  ;;  %v5203_v54 = vmul.f32 %v10733_v57, %v11975_v0  ;;  %v10799_v43 = vadd.f32 %v5179_v21, %v11986_v17  ;;  %v10803_v20 = vadd.f32 %v5181_v24, %v11988_v13  ;;  %v7710_v22 = vld [vmem:[#allocation2 + $0x340] ss:$8 sps:$4 sm:$0xff]  }
0x12ab   :  { %v5167_v36 = vadd.f32 %v10691_v8, %v5142_v26  ;;  %v5212_v6 = vmul.f32 %v10792_v49, %v11975_v0  ;;  %v10808_v19 = vadd.f32 %v5182_v52, %v11990_v32  ;;  %v5204_v30 = vmul.f32 %v10736_v25, %v11975_v0  ;;  %v7713_v47 = vld [vmem:[#allocation2 + $0x3a0] ss:$8 sps:$4 sm:$0xff]  }
0x12ac   :  { %5220 = vadd.xlane.f32.xlu0 %v5202_v56  ;;  %7348 = vmatmul.mubr.bf16.gmra.mxu0 %v5251_v46  ;;  %11987 = vst [vmem:[#allocation28_spill] sm:$0xff] %v10799_v43  ;;  %11989 = vst [vmem:[#allocation25_spill] sm:$0xff] %v10803_v20  ;;  %v5253_v8 = vpack.c.bf16 %v10799_v43, %v10771_v28  ;;  %v5254_v12 = vpack.c.bf16 %v10803_v20, %v10792_v49  ;;  %v7714_v24 = vld [vmem:[#allocation2 + $0x320] ss:$8 sps:$4 sm:$0xff]  }
0x12ad   :  { %5236 = vadd.xlane.f32.xlu1 %v5210_v63  ;;  %7351 = vmatprep.mubr.bf16.mxu0 %v5252_v39  ;;  %11991 = vst [vmem:[#allocation26_spill] sm:$0xff] %v10808_v19  ;;  %v5183_v31 = vmax.f32 %v5167_v36, 0.0  ;;  %v5214_v60 = vmul.f32 %v10808_v19, %v11975_v0  ;;  %v5205_v61 = vmul.f32 %v10739_v11, %v11975_v0 }
0x12ae   :  { %7008 = vmatpush3.bf16.msra.mxu0 %v7704_v34  ;;  %v5207_v1 = vmul.f32 %v10778_v4, %v11975_v0  ;;  %v5209_v2 = vmul.f32 %v10781_v50, %v11975_v0  ;;  %v5211_v53 = vmul.f32 %v10799_v43, %v11975_v0  ;;  %v5213_v56 = vmul.f32 %v10803_v20, %v11975_v0 }
0x12af   :  { %7009 = vmatprep.subr.bf16.mxu0 %v7705_v15  ;;  %v10821_v23 = vadd.f32 %v5183_v31, %v11992_v27 }
0x12b0   :  { %5222 = vadd.xlane.f32.xlu0 %v5203_v54 }
0x12b1   :  { %5240 = vadd.xlane.f32.xlu1 %v5212_v6  ;;  %11993 = vst [vmem:[#allocation27_spill] sm:$0xff] %v10821_v23  ;;  %v5255_v3 = vpack.c.bf16 %v10821_v23, %v10808_v19  ;;  %v5215_v46 = vmul.f32 %v10821_v23, %v11975_v0 }
0x12b2   :  { %7010 = vmatpush3.bf16.msra.mxu0 %v7706_v62 }
0x12b3   :  { %7011 = vmatprep.subr.bf16.mxu0 %v7707_v59 }
0x12b4   :  { %5224 = vadd.xlane.f32.xlu0 %v5204_v30  ;;  %7352 = vmatmul.mubr.bf16.gmra.mxu0 %v5253_v8 }
0x12b5   :  { %5244 = vadd.xlane.f32.xlu1 %v5214_v60  ;;  %7355 = vmatprep.mubr.bf16.mxu0 %v5254_v12 }
0x12b6   :  { %7012 = vmatpush3.bf16.msra.mxu0 %v7708_v55 }
0x12b7   :  { %7013 = vmatprep.subr.bf16.mxu0 %v7709_v29 }
0x12b8   :  { %5226 = vadd.xlane.f32.xlu0 %v5205_v61 }
0x12ba   :  { %7014 = vmatpush3.bf16.msra.mxu0 %v7710_v22 }
0x12bb   :  { %7015 = vmatprep.subr.bf16.mxu0 %v7711_v41 }
0x12bc   :  { %5230 = vadd.xlane.f32.xlu0 %v5207_v1  ;;  %7356 = vmatmul.mubr.bf16.gmra.mxu0 %v5255_v3 }
0x12be   :  { %7016 = vmatpush3.bf16.msra.mxu0 %v7712_v7 }
0x12bf   :  { %7017 = vmatprep.subr.bf16.mxu0 %v7713_v47 }
0x12c0   :  { %5234 = vadd.xlane.f32.xlu0 %v5209_v2 }
0x12c2   :  { %7018 = vmatpush3.bf16.msra.mxu0 %v7714_v24 }
0x12c3   :  { %7359 = vmatprep.subr.bf16.mxu0 %v10598_v9 }
0x12c4   :  { %5238 = vadd.xlane.f32.xlu0 %v5211_v53 }
0x12c8   :  { %5242 = vadd.xlane.f32.xlu0 %v5213_v56 }
0x12cc   :  { %5246 = vadd.xlane.f32.xlu0 %v5215_v46 }
0x1364   :  { %v10836_v21 = vpop.f32.mrf.mxu0 }
0x1365   :  { %v5376_v54 = vmul.f32 %v10836_v21, %v10836_v21 }
0x1366   :  { %v10838_v5 = vpop.f32.mrf.mxu0 }
0x1367   :  { %v5374_v14 = vmul.f32 %v10838_v5, %v10838_v5 }
0x1368   :  { %v10840_v63 = vpop.f32.mrf.mxu0 }
0x1369   :  { %v5377_v13 = vmul.f32 %v10840_v63, %v10840_v63 }
0x136a   :  { %v10842_v39 = vpop.f32.mrf.mxu0 }
0x136b   :  { %v5353_v52 = vadd.f32 %v10842_v39, %v10838_v5  ;;  %v5375_v18 = vmul.f32 %v10842_v39, %v10842_v39 }
0x136c   :  { %v10850_v26 = vpop.f32.mrf.mxu0 }
0x136d   :  { %v5354_v17 = vadd.f32 %v10836_v21, %v5353_v52  ;;  %v5390_v36 = vadd.f32 %v5375_v18, %v5374_v14  ;;  %v5380_v27 = vmul.f32 %v10850_v26, %v10850_v26 }
0x136e   :  { %v10855_v34 = vpop.f32.mrf.mxu0 }
0x136f   :  { %v5391_v6 = vadd.f32 %v5390_v36, %v5376_v54  ;;  %v5355_v32 = vadd.f32 %v10840_v63, %v5354_v17  ;;  %v5378_v8 = vmul.f32 %v10855_v34, %v10855_v34 }
0x1370   :  { %v10860_v15 = vpop.f32.mrf.mxu0 }
0x1371   :  { %v5356_v30 = vadd.f32 %v5355_v32, %v10855_v34  ;;  %v5392_v31 = vadd.f32 %v5391_v6, %v5377_v13  ;;  %v5381_v3 = vmul.f32 %v10860_v15, %v10860_v15 }
0x1372   :  { %v10865_v62 = vpop.f32.mrf.mxu0 }
0x1373   :  { %v5393_v60 = vadd.f32 %v5392_v31, %v5378_v8  ;;  %v5357_v12 = vadd.f32 %v5356_v30, %v10865_v62  ;;  %v5379_v59 = vmul.f32 %v10865_v62, %v10865_v62 }
0x1374   :  { %v10870_v61 = vpop.f32.mrf.mxu0 }
0x1375   :  { %v5358_v55 = vadd.f32 %v10850_v26, %v5357_v12  ;;  %v5394_v29 = vadd.f32 %v5393_v60, %v5379_v59  ;;  %v5384_v18 = vmul.f32 %v10870_v61, %v10870_v61 }
0x1376   :  { %v10875_v1 = vpop.f32.mrf.mxu0 }
0x1377   :  { %v5395_v22 = vadd.f32 %v5394_v29, %v5380_v27  ;;  %v5359_v41 = vadd.f32 %v10860_v15, %v5358_v55  ;;  %v5382_v47 = vmul.f32 %v10875_v1, %v10875_v1 }
0x1378   :  { %v10880_v2 = vpop.f32.mrf.mxu0 }
0x1379   :  { %v5360_v7 = vadd.f32 %v5359_v41, %v10875_v1  ;;  %v5396_v53 = vadd.f32 %v5395_v22, %v5381_v3  ;;  %v5385_v13 = vmul.f32 %v10880_v2, %v10880_v2 }
0x137a   :  { %v5325_v24 = vpop.f32.mrf.mxu0 }
0x137b   :  { %v5397_v56 = vadd.f32 %v5396_v53, %v5382_v47  ;;  %v5361_v46 = vadd.f32 %v5360_v7, %v5325_v24  ;;  %v5383_v14 = vmul.f32 %v5325_v24, %v5325_v24 }
0x137c   :  { %v10885_v52 = vpop.f32.mrf.mxu0 }
0x137d   :  { %v5362_v54 = vadd.f32 %v10870_v61, %v5361_v46  ;;  %v5398_v17 = vadd.f32 %v5397_v56, %v5383_v14  ;;  %v5388_v29 = vmul.f32 %v10885_v52, %v10885_v52 }
0x137e   :  { %v10890_v36 = vpop.f32.mrf.mxu0 }
0x137f   :  { %v5399_v6 = vadd.f32 %v5398_v17, %v5384_v18  ;;  %v5363_v32 = vadd.f32 %v10880_v2, %v5362_v54  ;;  %v5386_v31 = vmul.f32 %v10890_v36, %v10890_v36 }
0x1380   :  { %v7358_v30 = vpop.f32.mrf.mxu0 }
0x1381   :  { %v5364_v8 = vadd.f32 %v5363_v32, %v10890_v36  ;;  %v5400_v60 = vadd.f32 %v5399_v6, %v5385_v13  ;;  %v5389_v41 = vmul.f32 %v7358_v30, %v7358_v30 }
0x1382   :  { %v10898_v12 = vpop.f32.mrf.mxu0 }
0x1383   :  { %v5401_v59 = vadd.f32 %v5400_v60, %v5386_v31  ;;  %v5365_v27 = vadd.f32 %v5364_v8, %v10898_v12  ;;  %v5387_v55 = vmul.f32 %v10898_v12, %v10898_v12 }
0x1385   :  { %v5366_v3 = vadd.f32 %v10885_v52, %v5365_v27  ;;  %v5402_v22 = vadd.f32 %v5401_v59, %v5387_v55 }
0x1387   :  { %v5367_v7 = vadd.f32 %v7358_v30, %v5366_v3  ;;  %v5403_v47 = vadd.f32 %v5402_v22, %v5388_v29 }
0x1389   :  { %v5368_v53 = vrot.slane %v5367_v7, 4  ;;  %v5404_v56 = vadd.f32 %v5403_v47, %v5389_v41 }
0x138b   :  { %v5369_v46 = vadd.f32 %v5368_v53, %v5367_v7  ;;  %v5405_v14 = vrot.slane %v5404_v56, 4  ;;  %v11994_v7 = vld [vmem:[#allocation9_spill] sm:$0xff] }
0x138d   :  { %v5370_v18 = vrot.slane %v5369_v46, 2  ;;  %v5406_v54 = vadd.f32 %v5405_v14, %v5404_v56 }
0x138f   :  { %v5371_v17 = vadd.f32 %v5370_v18, %v5369_v46  ;;  %v5407_v13 = vrot.slane %v5406_v54, 2  ;;  %v11995_v46 = vld [vmem:[#allocation10_spill] sm:$0xff] }
0x1391   :  { %v5372_v6 = vrot.slane %v5371_v17, 1  ;;  %v5408_v32 = vadd.f32 %v5407_v13, %v5406_v54 }
0x1393   :  { %v5373_v8 = vadd.f32 %v5372_v6, %v5371_v17  ;;  %v5409_v31 = vrot.slane %v5408_v32, 1 }
0x1395   :  { %v5410_v60 = vadd.f32 %v5409_v31, %v5408_v32  ;;  %v5411_v23 = vmul.f32 0.0078125, %v5373_v8 }
0x1397   :  { %v5412_v19 = vmul.f32 0.0078125, %v5410_v60  ;;  %v5413_v27 = vmul.f32 %v5411_v23, %v5411_v23 }
0x1399   :  { %v5414_v59 = vsub.f32 %v5412_v19, %v5413_v27 }
0x139b   :  { %v5415_v55 = vmax.f32 %v5414_v59, 0.0 }
0x139d   :  { %v5416_v3 = vadd.f32 1e-05, %v5415_v55 }
0x139f   :  { %7560 = vrsqrt.f32 %v5416_v3 }
0x13ac   :  { %v7561_v29 = vpop.eup %7560 }
0x13ad   :  { %v5418_v22 = vmul.f32 %v10576_v16, %v7561_v29 }
0x13af   :  { %v5439_v41 = vmul.f32 %v5418_v22, %v5411_v23  ;;  %v10908_v47 = vrot.slane %v5418_v22, %v11994_v7 }
0x13b1   :  { %v5441_v53 = vrot.slane %v5439_v41, 7  ;;  %v5423_v18 = vmul.f32 %v10908_v47, %v10838_v5  ;;  %v5424_v19 = vmul.f32 %v10908_v47, %v10842_v39  ;;  %v5425_v23 = vmul.f32 %v10836_v21, %v10908_v47 }
0x13b2   :  { %v5426_v13 = vmul.f32 %v10840_v63, %v10908_v47  ;;  %v5431_v32 = vmul.f32 %v10908_v47, %v10875_v1  ;;  %v5432_v5 = vmul.f32 %v10908_v47, %v5325_v24  ;;  %v5433_v39 = vmul.f32 %v10870_v61, %v10908_v47 }
0x13b3   :  { %v5443_v56 = vsub.f32 %v10576_v16, %v5441_v53  ;;  %v5434_v31 = vmul.f32 %v10880_v2, %v10908_v47  ;;  %v5437_v1 = vmul.f32 %v10885_v52, %v10908_v47  ;;  %v5438_v24 = vmul.f32 %v7358_v30, %v10908_v47 }
0x13b5   :  { %v10912_v14 = vrot.slane %v5443_v56, %v11995_v46  ;;  %v10944_v56 = vld [vmem:[#allocation2 + $0x480] ss:$8 sps:$4 sm:$0xff]  }
0x13b7   :  { %v5448_v54 = vadd.f32 %v10912_v14, %v5423_v18  ;;  %v5449_v17 = vadd.f32 %v10912_v14, %v5424_v19  ;;  %v5450_v8 = vadd.f32 %v10912_v14, %v5425_v23  ;;  %v5451_v21 = vadd.f32 %v10912_v14, %v5426_v13 }
0x13b8   :  { %v5456_v63 = vadd.f32 %v10912_v14, %v5431_v32  ;;  %v5457_v27 = vadd.f32 %v10912_v14, %v5432_v5  ;;  %v5458_v59 = vadd.f32 %v10912_v14, %v5433_v39  ;;  %v5459_v3 = vadd.f32 %v10912_v14, %v5434_v31 }
0x13b9   :  { %v5464_v16 = vmax.f32 %v5448_v54, 0.0  ;;  %v5465_v6 = vmax.f32 %v5449_v17, 0.0  ;;  %v5462_v29 = vadd.f32 %v10912_v14, %v5437_v1  ;;  %v5463_v22 = vadd.f32 %v10912_v14, %v5438_v24 }
0x13ba   :  { %v5472_v55 = vmax.f32 %v5456_v63, 0.0  ;;  %v5473_v61 = vmax.f32 %v5457_v27, 0.0  ;;  %v5474_v2 = vmax.f32 %v5458_v59, 0.0  ;;  %v5466_v41 = vmax.f32 %v5450_v8, 0.0  ;;  %v10974_v63 = vld [vmem:[#allocation2 + $0x440] ss:$8 sps:$4 sm:$0xff]  }
0x13bb   :  { %v5480_v60 = vpack.c.bf16 %v5465_v6, %v5464_v16  ;;  %v5467_v7 = vmax.f32 %v5451_v21, 0.0  ;;  %v5475_v52 = vmax.f32 %v5459_v3, 0.0  ;;  %v5478_v30 = vmax.f32 %v5462_v29, 0.0  ;;  %v10954_v16 = vld [vmem:[#allocation2 + $0x470] ss:$8 sps:$4 sm:$0xff]  }
0x13bc   :  { %v5484_v53 = vpack.c.bf16 %v5473_v61, %v5472_v55  ;;  %v5479_v46 = vmax.f32 %v5463_v22, 0.0  ;;  %v5427_v18 = vmul.f32 %v10908_v47, %v10855_v34  ;;  %v5428_v19 = vmul.f32 %v10908_v47, %v10865_v62  ;;  %v10959_v6 = vld [vmem:[#allocation2 + $0x460] ss:$8 sps:$4 sm:$0xff]   ;;  %v10978_v27 = vld [vmem:[#allocation2 + $0x430] ss:$8 sps:$4 sm:$0xff]  }
0x13bd   :  { %5521 = vmatmul.mubr.bf16.vlgmr.msra.gmra.mxu1 %v5480_v60  ;;  %v5485_v54 = vpack.c.bf16 %v5475_v52, %v5474_v2  ;;  %v5429_v32 = vmul.f32 %v10850_v26, %v10908_v47  ;;  %v5430_v5 = vmul.f32 %v10860_v15, %v10908_v47  ;;  %v10969_v60 = vld [vmem:[#allocation2 + $0x450] ss:$8 sps:$4 sm:$0xff]   ;;  %v10983_v59 = vld [vmem:[#allocation2 + $0x420] ss:$8 sps:$4 sm:$0xff]   ;;  %v5436_v1 = vmul.f32 %v10908_v47, %v10898_v12 }
0x13be   :  { %5530 = vmatprep.mubr.bf16.mxu1 %v11958_v40  ;;  %7399 = vmatpush3.bf16.msra.mxu1 %v10598_v9  ;;  %v5487_v17 = vpack.c.bf16 %v5479_v46, %v5478_v30  ;;  %v5481_v9 = vpack.c.bf16 %v5467_v7, %v5466_v41  ;;  %v5452_v23 = vadd.f32 %v10912_v14, %v5427_v18 }
0x13bf   :  { %7392 = vmatprep.subr.bf16.mxu1 %v10944_v56  ;;  %v5453_v13 = vadd.f32 %v10912_v14, %v5428_v19  ;;  %v5454_v39 = vadd.f32 %v10912_v14, %v5429_v32  ;;  %v5455_v31 = vadd.f32 %v10912_v14, %v5430_v5  ;;  %v5435_v24 = vmul.f32 %v10908_v47, %v10890_v36 }
0x13c0   :  { %v5468_v34 = vmax.f32 %v5452_v23, 0.0  ;;  %v5461_v55 = vadd.f32 %v10912_v14, %v5436_v1 }
0x13c1   :  { %v5469_v62 = vmax.f32 %v5453_v13, 0.0  ;;  %v5470_v26 = vmax.f32 %v5454_v39, 0.0  ;;  %v5471_v21 = vmax.f32 %v5455_v31, 0.0  ;;  %v5460_v61 = vadd.f32 %v10912_v14, %v5435_v24 }
0x13c2   :  { %7400 = vmatpush3.bf16.msra.mxu1 %v10944_v56  ;;  %v5477_v3 = vmax.f32 %v5461_v55, 0.0 }
0x13c3   :  { %7393 = vmatprep.subr.bf16.mxu1 %v10954_v16  ;;  %v5482_v8 = vpack.c.bf16 %v5469_v62, %v5468_v34  ;;  %v5483_v15 = vpack.c.bf16 %v5471_v21, %v5470_v26  ;;  %v5476_v2 = vmax.f32 %v5460_v61, 0.0 }
0x13c5   :  { %5531 = vmatmul.mubr.bf16.gmra.mxu1 %v5481_v9  ;;  %v5486_v29 = vpack.c.bf16 %v5477_v3, %v5476_v2 }
0x13c6   :  { %5540 = vmatprep.mubr.bf16.mxu1 %v11958_v40  ;;  %7401 = vmatpush3.bf16.msra.mxu1 %v10954_v16 }
0x13c7   :  { %7394 = vmatprep.subr.bf16.mxu1 %v10959_v6 }
0x13ca   :  { %7402 = vmatpush3.bf16.msra.mxu1 %v10959_v6 }
0x13cb   :  { %7395 = vmatprep.subr.bf16.mxu1 %v10969_v60 }
0x13cd   :  { %5541 = vmatmul.mubr.bf16.gmra.mxu1 %v5482_v8 }
0x13ce   :  { %5550 = vmatprep.mubr.bf16.mxu1 %v11958_v40  ;;  %7403 = vmatpush3.bf16.msra.mxu1 %v10969_v60 }
0x13cf   :  { %7396 = vmatprep.subr.bf16.mxu1 %v10974_v63 }
0x13d2   :  { %7404 = vmatpush3.bf16.msra.mxu1 %v10974_v63 }
0x13d3   :  { %7397 = vmatprep.subr.bf16.mxu1 %v10978_v27 }
0x13d5   :  { %5551 = vmatmul.mubr.bf16.gmra.mxu1 %v5483_v15 }
0x13d6   :  { %5560 = vmatprep.mubr.bf16.mxu1 %v11958_v40  ;;  %7405 = vmatpush3.bf16.msra.mxu1 %v10978_v27 }
0x13d7   :  { %7398 = vmatprep.subr.bf16.mxu1 %v10983_v59 }
0x13da   :  { %7406 = vmatpush3.bf16.msra.mxu1 %v10983_v59 }
0x13dd   :  { %5561 = vmatmul.mubr.bf16.gmra.mxu1 %v5484_v53 }
0x13de   :  { %5570 = vmatprep.mubr.bf16.mxu1 %v11958_v40 }
0x13e5   :  { %5571 = vmatmul.mubr.bf16.gmra.mxu1 %v5485_v54 }
0x13e6   :  { %5580 = vmatprep.mubr.bf16.mxu1 %v11958_v40 }
0x13ed   :  { %5581 = vmatmul.mubr.bf16.gmra.mxu1 %v5486_v29 }
0x13ee   :  { %5590 = vmatprep.mubr.bf16.mxu1 %v11958_v40 }
0x13f5   :  { %5591 = vmatmul.mubr.bf16.gmra.mxu1 %v5487_v17 }
0x147d   :  { %v10996_v22 = vpop.f32.mrf.mxu1 }
0x147e   :  { %v5643_v34 = vmul.f32 %v10996_v22, %v10996_v22 }
0x147f   :  { %v10998_v12 = vpop.f32.mrf.mxu1 }
0x1480   :  { %v5644_v5 = vmul.f32 %v10998_v12, %v10998_v12 }
0x1481   :  { %v11000_v41 = vpop.f32.mrf.mxu1 }
0x1482   :  { %v5645_v9 = vmul.f32 %v11000_v41, %v11000_v41  ;;  %v5601_v62 = vadd.f32 %v11000_v41, %v10996_v22 }
0x1483   :  { %v11002_v36 = vpop.f32.mrf.mxu1 }
0x1484   :  { %v5646_v23 = vmul.f32 %v11002_v36, %v11002_v36  ;;  %v5675_v31 = vadd.f32 %v5645_v9, %v5643_v34  ;;  %v5622_v26 = vadd.f32 %v11002_v36, %v10998_v12 }
0x1485   :  { %v11004_v47 = vpop.f32.mrf.mxu1 }
0x1486   :  { %v5647_v32 = vmul.f32 %v11004_v47, %v11004_v47  ;;  %v5602_v21 = vadd.f32 %v5601_v62, %v11004_v47  ;;  %v5696_v1 = vadd.f32 %v5646_v23, %v5644_v5 }
0x1487   :  { %v11006_v14 = vpop.f32.mrf.mxu1 }
0x1488   :  { %v5648_v8 = vmul.f32 %v11006_v14, %v11006_v14  ;;  %v5676_v61 = vadd.f32 %v5675_v31, %v5647_v32  ;;  %v5623_v3 = vadd.f32 %v5622_v26, %v11006_v14 }
0x1489   :  { %v11008_v7 = vpop.f32.mrf.mxu1 }
0x148a   :  { %v5649_v15 = vmul.f32 %v11008_v7, %v11008_v7  ;;  %v5603_v2 = vadd.f32 %v5602_v21, %v11008_v7  ;;  %v5697_v9 = vadd.f32 %v5696_v1, %v5648_v8 }
0x148b   :  { %v11010_v53 = vpop.f32.mrf.mxu1 }
0x148c   :  { %v5650_v24 = vmul.f32 %v11010_v53, %v11010_v53  ;;  %v5677_v23 = vadd.f32 %v5676_v61, %v5649_v15  ;;  %v5624_v5 = vadd.f32 %v5623_v3, %v11010_v53 }
0x148d   :  { %v11012_v52 = vpop.f32.mrf.mxu1 }
0x148e   :  { %v5651_v29 = vmul.f32 %v11012_v52, %v11012_v52  ;;  %v5604_v49 = vadd.f32 %v5603_v2, %v11012_v52  ;;  %v5698_v31 = vadd.f32 %v5697_v9, %v5650_v24 }
0x148f   :  { %v11014_v40 = vpop.f32.mrf.mxu1 }
0x1490   :  { %v5652_v34 = vmul.f32 %v11014_v40, %v11014_v40  ;;  %v5678_v8 = vadd.f32 %v5677_v23, %v5651_v29  ;;  %v5625_v1 = vadd.f32 %v5624_v5, %v11014_v40 }
0x1491   :  { %v11016_v30 = vpop.f32.mrf.mxu1 }
0x1492   :  { %v5653_v32 = vmul.f32 %v11016_v30, %v11016_v30  ;;  %v5605_v28 = vadd.f32 %v5604_v49, %v11016_v30  ;;  %v5699_v61 = vadd.f32 %v5698_v31, %v5652_v34 }
0x1493   :  { %v11018_v46 = vpop.f32.mrf.mxu1 }
0x1494   :  { %v5654_v26 = vmul.f32 %v11018_v46, %v11018_v46  ;;  %v5679_v24 = vadd.f32 %v5678_v8, %v5653_v32  ;;  %v5626_v9 = vadd.f32 %v5625_v1, %v11018_v46 }
0x1495   :  { %v11020_v18 = vpop.f32.mrf.mxu1 }
0x1496   :  { %v5655_v15 = vmul.f32 %v11020_v18, %v11020_v18  ;;  %v5606_v33 = vadd.f32 %v5605_v28, %v11020_v18  ;;  %v5700_v23 = vadd.f32 %v5699_v61, %v5654_v26 }
0x1497   :  { %v11022_v19 = vpop.f32.mrf.mxu1 }
0x1498   :  { %v5656_v3 = vmul.f32 %v11022_v19, %v11022_v19  ;;  %v5680_v34 = vadd.f32 %v5679_v24, %v5655_v15  ;;  %v5627_v31 = vadd.f32 %v5626_v9, %v11022_v19 }
0x1499   :  { %v11024_v54 = vpop.f32.mrf.mxu1 }
0x149a   :  { %v5657_v29 = vmul.f32 %v11024_v54, %v11024_v54  ;;  %v5607_v48 = vadd.f32 %v5606_v33, %v11024_v54  ;;  %v5701_v8 = vadd.f32 %v5700_v23, %v5656_v3 }
0x149b   :  { %v11026_v17 = vpop.f32.mrf.mxu1 }
0x149c   :  { %v5658_v49 = vmul.f32 %v11026_v17, %v11026_v17  ;;  %v5681_v26 = vadd.f32 %v5680_v34, %v5657_v29  ;;  %v5628_v61 = vadd.f32 %v5627_v31, %v11026_v17 }
0x149d   :  { %v11032_v13 = vpop.f32.mrf.mxu1 }
0x149e   :  { %v5659_v32 = vmul.f32 %v11032_v13, %v11032_v13  ;;  %v5608_v25 = vadd.f32 %v5607_v48, %v11032_v13  ;;  %v5702_v24 = vadd.f32 %v5701_v8, %v5658_v49 }
0x149f   :  { %v11044_v39 = vpop.f32.mrf.mxu1 }
0x14a0   :  { %v5660_v28 = vmul.f32 %v11044_v39, %v11044_v39  ;;  %v5682_v3 = vadd.f32 %v5681_v26, %v5659_v32  ;;  %v5629_v23 = vadd.f32 %v5628_v61, %v11044_v39 }
0x14a1   :  { %v11053_v55 = vpop.f32.mrf.mxu1 }
0x14a2   :  { %v5661_v15 = vmul.f32 %v11053_v55, %v11053_v55  ;;  %v5609_v20 = vadd.f32 %v5608_v25, %v11053_v55  ;;  %v5703_v34 = vadd.f32 %v5702_v24, %v5660_v28 }
0x14a3   :  { %v11061_v62 = vpop.f32.mrf.mxu1 }
0x14a4   :  { %v5662_v33 = vmul.f32 %v11061_v62, %v11061_v62  ;;  %v5683_v49 = vadd.f32 %v5682_v3, %v5661_v15  ;;  %v5630_v8 = vadd.f32 %v5629_v23, %v11061_v62 }
0x14a5   :  { %v11069_v21 = vpop.f32.mrf.mxu1 }
0x14a6   :  { %v5663_v29 = vmul.f32 %v11069_v21, %v11069_v21  ;;  %v5610_v43 = vadd.f32 %v5609_v20, %v11069_v21  ;;  %v5704_v26 = vadd.f32 %v5703_v34, %v5662_v33 }
0x14a7   :  { %v11077_v2 = vpop.f32.mrf.mxu1 }
0x14a8   :  { %v5664_v48 = vmul.f32 %v11077_v2, %v11077_v2  ;;  %v5684_v28 = vadd.f32 %v5683_v49, %v5663_v29  ;;  %v5631_v24 = vadd.f32 %v5630_v8, %v11077_v2 }
0x14a9   :  { %v11085_v5 = vpop.f32.mrf.mxu1 }
0x14aa   :  { %v5665_v32 = vmul.f32 %v11085_v5, %v11085_v5  ;;  %v5611_v57 = vadd.f32 %v5610_v43, %v11085_v5  ;;  %v5705_v3 = vadd.f32 %v5704_v26, %v5664_v48 }
0x14ab   :  { %v11093_v1 = vpop.f32.mrf.mxu1 }
0x14ac   :  { %v5666_v25 = vmul.f32 %v11093_v1, %v11093_v1  ;;  %v5685_v33 = vadd.f32 %v5684_v28, %v5665_v32  ;;  %v5632_v34 = vadd.f32 %v5631_v24, %v11093_v1 }
0x14ad   :  { %v11101_v9 = vpop.f32.mrf.mxu1 }
0x14ae   :  { %v5667_v15 = vmul.f32 %v11101_v9, %v11101_v9  ;;  %v5612_v50 = vadd.f32 %v5611_v57, %v11101_v9  ;;  %v5706_v49 = vadd.f32 %v5705_v3, %v5666_v25 }
0x14af   :  { %v11109_v31 = vpop.f32.mrf.mxu1 }
0x14b0   :  { %v5668_v20 = vmul.f32 %v11109_v31, %v11109_v31  ;;  %v5686_v48 = vadd.f32 %v5685_v33, %v5667_v15  ;;  %v5633_v26 = vadd.f32 %v5632_v34, %v11109_v31 }
0x14b1   :  { %v11117_v61 = vpop.f32.mrf.mxu1 }
0x14b2   :  { %v5669_v29 = vmul.f32 %v11117_v61, %v11117_v61  ;;  %v5613_v45 = vadd.f32 %v5612_v50, %v11117_v61  ;;  %v5707_v28 = vadd.f32 %v5706_v49, %v5668_v20 }
0x14b3   :  { %v11125_v23 = vpop.f32.mrf.mxu1 }
0x14b4   :  { %v5670_v43 = vmul.f32 %v11125_v23, %v11125_v23  ;;  %v5687_v57 = vadd.f32 %v5686_v48, %v5669_v29  ;;  %v5634_v4 = vadd.f32 %v5633_v26, %v11125_v23 }
0x14b5   :  { %v11133_v8 = vpop.f32.mrf.mxu1 }
0x14b6   :  { %11996 = vst [vmem:[#allocation29_spill] sm:$0xff] %v11133_v8  ;;  %v5671_v32 = vmul.f32 %v11133_v8, %v11133_v8  ;;  %v5614_v25 = vadd.f32 %v5613_v45, %v11133_v8  ;;  %v5708_v0 = vadd.f32 %v5707_v28, %v5670_v43 }
0x14b7   :  { %v11139_v24 = vpop.f32.mrf.mxu1 }
0x14b8   :  { %11997 = vst [vmem:[#allocation9_spill] sm:$0xff] %v11139_v24  ;;  %v5672_v3 = vmul.f32 %v11139_v24, %v11139_v24  ;;  %v5688_v33 = vadd.f32 %v5687_v57, %v5671_v32  ;;  %v5635_v50 = vadd.f32 %v5634_v4, %v11139_v24 }
0x14b9   :  { %v11145_v15 = vpop.f32.mrf.mxu1 }
0x14ba   :  { %11998 = vst [vmem:[#allocation10_spill] sm:$0xff] %v11145_v15  ;;  %v5615_v34 = vadd.f32 %v5614_v25, %v11145_v15  ;;  %v5673_v20 = vmul.f32 %v11145_v15, %v11145_v15  ;;  %v5709_v49 = vadd.f32 %v5708_v0, %v5672_v3 }
0x14bb   :  { %v11151_v29 = vpop.f32.mrf.mxu1 }
0x14bc   :  { %11999 = vst [vmem:[#allocation32_spill] sm:$0xff] %v11151_v29  ;;  %v5616_v48 = vrot.slane %v5615_v34, 4  ;;  %v5689_v26 = vadd.f32 %v5688_v33, %v5673_v20  ;;  %v5636_v45 = vadd.f32 %v5635_v50, %v11151_v29  ;;  %v5674_v43 = vmul.f32 %v11151_v29, %v11151_v29 }
0x14be   :  { %v5617_v28 = vadd.f32 %v5616_v48, %v5615_v34  ;;  %v5690_v35 = vrot.slane %v5689_v26, 4  ;;  %v5637_v32 = vrot.slane %v5636_v45, 4  ;;  %v5710_v57 = vadd.f32 %v5709_v49, %v5674_v43 }
0x14c0   :  { %v5618_v4 = vrot.slane %v5617_v28, 2  ;;  %v5691_v11 = vadd.f32 %v5690_v35, %v5689_v26  ;;  %v5638_v25 = vadd.f32 %v5637_v32, %v5636_v45  ;;  %v5711_v51 = vrot.slane %v5710_v57, 4 }
0x14c2   :  { %v5619_v10 = vadd.f32 %v5618_v4, %v5617_v28  ;;  %v5692_v38 = vrot.slane %v5691_v11, 2  ;;  %v5639_v0 = vrot.slane %v5638_v25, 2  ;;  %v5712_v3 = vadd.f32 %v5711_v51, %v5710_v57 }
0x14c4   :  { %v5620_v42 = vrot.slane %v5619_v10, 1  ;;  %v5693_v44 = vadd.f32 %v5692_v38, %v5691_v11  ;;  %v5640_v33 = vadd.f32 %v5639_v0, %v5638_v25  ;;  %v5713_v20 = vrot.slane %v5712_v3, 2 }
0x14c6   :  { %v5621_v50 = vadd.f32 %v5620_v42, %v5619_v10  ;;  %v5694_v8 = vrot.slane %v5693_v44, 1  ;;  %v5641_v15 = vrot.slane %v5640_v33, 1  ;;  %v5714_v24 = vadd.f32 %v5713_v20, %v5712_v3 }
0x14c8   :  { %v5695_v34 = vadd.f32 %v5694_v8, %v5693_v44  ;;  %v5717_v48 = vmul.f32 0.0078125, %v5621_v50  ;;  %v5642_v29 = vadd.f32 %v5641_v15, %v5640_v33  ;;  %v5715_v49 = vrot.slane %v5714_v24, 1  ;;  %v11159_v44 = vld [vmem:[%s11729_s2 + $0x10] sm:$0xff] }
0x14ca   :  { %v5719_v43 = vmul.f32 0.0078125, %v5695_v34  ;;  %v5721_v35 = vmul.f32 %v5717_v48, %v5717_v48  ;;  %v5716_v26 = vadd.f32 %v5715_v49, %v5714_v24  ;;  %v5718_v45 = vmul.f32 0.0078125, %v5642_v29  ;;  %v7723_v29 = vld [vmem:[%s11729_s2 + $0x18] sm:$0xff] }
0x14cc   :  { %v5723_v28 = vsub.f32 %v5719_v43, %v5721_v35  ;;  %v5720_v32 = vmul.f32 0.0078125, %v5716_v26  ;;  %v5722_v4 = vmul.f32 %v5718_v45, %v5718_v45 }
0x14ce   :  { %v5725_v51 = vmax.f32 %v5723_v28, 0.0  ;;  %v5724_v57 = vsub.f32 %v5720_v32, %v5722_v4 }
0x14d0   :  { %v5727_v38 = vadd.f32 1e-05, %v5725_v51  ;;  %v5726_v11 = vmax.f32 %v5724_v57, 0.0 }
0x14d2   :  { %7562 = vrsqrt.f32 %v5727_v38  ;;  %v5728_v42 = vadd.f32 1e-05, %v5726_v11 }
0x14d4   :  { %7564 = vrsqrt.f32 %v5728_v42 }
0x14df   :  { %v7563_v10 = vpop.eup %7562 }
0x14e0   :  { %v5731_v8 = vmul.f32 %v11159_v44, %v7563_v10 }
0x14e1   :  { %v7565_v24 = vpop.eup %7564 }
0x14e2   :  { %v5773_v15 = vmul.f32 %v5731_v8, %v5717_v48  ;;  %v5732_v25 = vmul.f32 %v7723_v29, %v7565_v24  ;;  %v11166_v0 = vrot.slane %v5731_v8, %v11864_v37 }
0x14e4   :  { %v5777_v3 = vrot.slane %v5773_v15, 7  ;;  %v5774_v33 = vmul.f32 %v5732_v25, %v5718_v45  ;;  %v11169_v20 = vrot.slane %v5732_v25, %v11864_v37  ;;  %v5741_v43 = vmul.f32 %v11166_v0, %v10996_v22 }
0x14e5   :  { %v5743_v35 = vmul.f32 %v11166_v0, %v11000_v41 }
0x14e6   :  { %v5781_v50 = vsub.f32 %v11159_v44, %v5777_v3  ;;  %v5778_v34 = vrot.slane %v5774_v33, 7  ;;  %v5742_v26 = vmul.f32 %v11169_v20, %v10998_v12  ;;  %v5744_v37 = vmul.f32 %v11169_v20, %v11002_v36 }
0x14e7   :  { %v5746_v4 = vmul.f32 %v11169_v20, %v11006_v14  ;;  %v5748_v22 = vmul.f32 %v11169_v20, %v11010_v53  ;;  %v5745_v14 = vmul.f32 %v11166_v0, %v11004_v47  ;;  %v5747_v53 = vmul.f32 %v11166_v0, %v11008_v7  ;;  %v7724_v7 = vld [vmem:[#allocation2 + $0x490] ss:$8 sps:$4 sm:$0xff]  }
0x14e8   :  { %v11173_v49 = vrot.slane %v5781_v50, %v11865_v58  ;;  %v5782_v48 = vsub.f32 %v7723_v29, %v5778_v34  ;;  %v5750_v24 = vmul.f32 %v11169_v20, %v11014_v40  ;;  %v5752_v15 = vmul.f32 %v11169_v20, %v11018_v46 }
0x14ea   :  { %v11182_v45 = vrot.slane %v5782_v48, %v11865_v58  ;;  %v5791_v28 = vadd.f32 %v11173_v49, %v5741_v43  ;;  %v5793_v32 = vadd.f32 %v11173_v49, %v5743_v35  ;;  %v5795_v25 = vadd.f32 %v11173_v49, %v5745_v14 }
0x14eb   :  { %v5797_v3 = vadd.f32 %v11173_v49, %v5747_v53  ;;  %v5749_v43 = vmul.f32 %v11166_v0, %v11012_v52  ;;  %v5751_v35 = vmul.f32 %v11166_v0, %v11016_v30  ;;  %v5759_v14 = vmul.f32 %v11166_v0, %v11053_v55 }
0x14ec   :  { %v5792_v41 = vadd.f32 %v11182_v45, %v5742_v26  ;;  %v5794_v12 = vadd.f32 %v11182_v45, %v5744_v37  ;;  %v5823_v51 = vmax.f32 %v5791_v28, 0.0  ;;  %v5825_v58 = vmax.f32 %v5793_v32, 0.0 }
0x14ed   :  { %v5796_v57 = vadd.f32 %v11182_v45, %v5746_v4  ;;  %v5798_v36 = vadd.f32 %v11182_v45, %v5748_v22  ;;  %v5800_v50 = vadd.f32 %v11182_v45, %v5750_v24  ;;  %v5802_v47 = vadd.f32 %v11182_v45, %v5752_v15 }
0x14ee   :  { %v5824_v38 = vmax.f32 %v5792_v41, 0.0  ;;  %v5826_v11 = vmax.f32 %v5794_v12, 0.0  ;;  %v5855_v29 = vpack.c.bf16 %v5825_v58, %v5823_v51  ;;  %v5827_v34 = vmax.f32 %v5795_v25, 0.0 }
0x14ef   :  { %v5828_v42 = vmax.f32 %v5796_v57, 0.0  ;;  %v5830_v10 = vmax.f32 %v5798_v36, 0.0  ;;  %v5829_v40 = vmax.f32 %v5797_v3, 0.0  ;;  %v5832_v46 = vmax.f32 %v5800_v50, 0.0 }
0x14f0   :  { %v5856_v8 = vpack.c.bf16 %v5826_v11, %v5824_v38  ;;  %v5834_v48 = vmax.f32 %v5802_v47, 0.0  ;;  %v5754_v26 = vmul.f32 %v11169_v20, %v11022_v19  ;;  %v5756_v37 = vmul.f32 %v11169_v20, %v11026_v17 }
0x14f1   :  { %v5858_v33 = vpack.c.bf16 %v5830_v10, %v5828_v42  ;;  %v5857_v28 = vpack.c.bf16 %v5829_v40, %v5827_v34  ;;  %v5799_v32 = vadd.f32 %v11173_v49, %v5749_v43  ;;  %v5801_v4 = vadd.f32 %v11173_v49, %v5751_v35  ;;  %v12000_v35 = vld [vmem:[#allocation32_spill] sm:$0xff] }
0x14f2   :  { %5903 = vmatprep.mubr.bf16.mxu0 %v5856_v8  ;;  %v5860_v22 = vpack.c.bf16 %v5834_v48, %v5832_v46  ;;  %v5804_v52 = vadd.f32 %v11182_v45, %v5754_v26  ;;  %v5806_v30 = vadd.f32 %v11182_v45, %v5756_v37  ;;  %v5753_v12 = vmul.f32 %v11166_v0, %v11020_v18  ;;  %v12001_v37 = vld [vmem:[#allocation9_spill] sm:$0xff] }
0x14f3   :  { %5904 = vmatmul.mubr.bf16.vlgmr.msra.gmra.mxu0 %v5855_v29  ;;  %v5831_v19 = vmax.f32 %v5799_v32, 0.0  ;;  %v5833_v17 = vmax.f32 %v5801_v4, 0.0  ;;  %v5755_v51 = vmul.f32 %v11166_v0, %v11024_v54  ;;  %v5758_v58 = vmul.f32 %v11169_v20, %v11044_v39 }
0x14f4   :  { %5911 = vmatprep.mubr.bf16.mxu0 %v5858_v33  ;;  %7360 = vmatpush3.bf16.msra.mxu0 %v7724_v7  ;;  %v5838_v41 = vmax.f32 %v5806_v30, 0.0  ;;  %v5760_v57 = vmul.f32 %v11169_v20, %v11061_v62  ;;  %v5803_v36 = vadd.f32 %v11173_v49, %v5753_v12  ;;  %v5757_v10 = vmul.f32 %v11166_v0, %v11032_v13 }
0x14f5   :  { %7361 = vmatprep.subr.bf16.mxu0 %v10944_v56  ;;  %v5805_v38 = vadd.f32 %v11173_v49, %v5755_v51  ;;  %v5808_v18 = vadd.f32 %v11182_v45, %v5758_v58  ;;  %v5762_v53 = vmul.f32 %v11169_v20, %v11077_v2  ;;  %v5764_v8 = vmul.f32 %v11169_v20, %v11093_v1 }
0x14f6   :  { %v5810_v54 = vadd.f32 %v11182_v45, %v5760_v57  ;;  %v5835_v39 = vmax.f32 %v5803_v36, 0.0  ;;  %v5807_v24 = vadd.f32 %v11173_v49, %v5757_v10  ;;  %v5809_v15 = vadd.f32 %v11173_v49, %v5759_v14 }
0x14f7   :  { %v5837_v62 = vmax.f32 %v5805_v38, 0.0  ;;  %v5812_v13 = vadd.f32 %v11182_v45, %v5762_v53  ;;  %v5814_v55 = vadd.f32 %v11182_v45, %v5764_v8  ;;  %v5761_v3 = vmul.f32 %v11166_v0, %v11069_v21 }
0x14f8   :  { %7362 = vmatpush3.bf16.msra.mxu0 %v10944_v56  ;;  %v5836_v56 = vmax.f32 %v5804_v52, 0.0  ;;  %v5842_v42 = vmax.f32 %v5810_v54, 0.0  ;;  %v5839_v2 = vmax.f32 %v5807_v24, 0.0  ;;  %v5841_v1 = vmax.f32 %v5809_v15, 0.0 }
0x14f9   :  { %7363 = vmatprep.subr.bf16.mxu0 %v10954_v16  ;;  %v5846_v25 = vmax.f32 %v5814_v55, 0.0  ;;  %v5763_v33 = vmul.f32 %v11166_v0, %v11085_v5  ;;  %v5766_v50 = vmul.f32 %v11169_v20, %v11109_v31  ;;  %v5768_v47 = vmul.f32 %v11169_v20, %v11125_v23 }
0x14fa   :  { %v5862_v11 = vpack.c.bf16 %v5838_v41, %v5836_v56  ;;  %v5811_v7 = vadd.f32 %v11173_v49, %v5761_v3  ;;  %v5765_v23 = vmul.f32 %v11166_v0, %v11101_v9  ;;  %v5772_v26 = vmul.f32 %v11169_v20, %v12000_v35  ;;  %v12002_v41 = vld [vmem:[#allocation10_spill] sm:$0xff] }
0x14fb   :  { %5912 = vmatmul.mubr.bf16.gmra.mxu0 %v5857_v28  ;;  %v5813_v34 = vadd.f32 %v11173_v49, %v5763_v33  ;;  %v5816_v46 = vadd.f32 %v11182_v45, %v5766_v50  ;;  %v5818_v21 = vadd.f32 %v11182_v45, %v5768_v47  ;;  %v5770_v28 = vmul.f32 %v11169_v20, %v12001_v37  ;;  %v12003_v20 = vld [vmem:[#allocation29_spill] sm:$0xff] }
0x14fc   :  { %5919 = vmatprep.mubr.bf16.mxu0 %v5860_v22  ;;  %7364 = vmatpush3.bf16.msra.mxu0 %v10954_v16  ;;  %v5859_v16 = vpack.c.bf16 %v5833_v17, %v5831_v19  ;;  %v5843_v5 = vmax.f32 %v5811_v7, 0.0  ;;  %v5815_v4 = vadd.f32 %v11173_v49, %v5765_v23  ;;  %v5822_v52 = vadd.f32 %v11182_v45, %v5772_v26 }
0x14fd   :  { %7365 = vmatprep.subr.bf16.mxu0 %v10959_v6  ;;  %v5845_v48 = vmax.f32 %v5813_v34, 0.0  ;;  %v5848_v31 = vmax.f32 %v5816_v46, 0.0  ;;  %v5850_v43 = vmax.f32 %v5818_v21, 0.0  ;;  %v5820_v19 = vadd.f32 %v11182_v45, %v5770_v28 }
0x14fe   :  { %v5847_v9 = vmax.f32 %v5815_v4, 0.0  ;;  %v5854_v56 = vmax.f32 %v5822_v52, 0.0  ;;  %v5771_v12 = vmul.f32 %v11166_v0, %v12002_v41  ;;  %v5769_v51 = vmul.f32 %v11166_v0, %v12003_v20 }
0x14ff   :  { %v5865_v32 = vpack.c.bf16 %v5845_v48, %v5843_v5  ;;  %v5868_v30 = vpack.c.bf16 %v5850_v43, %v5848_v31  ;;  %v5852_v17 = vmax.f32 %v5820_v19, 0.0 }
0x1500   :  { %7366 = vmatpush3.bf16.msra.mxu0 %v10959_v6  ;;  %v5840_v6 = vmax.f32 %v5808_v18, 0.0  ;;  %v5821_v58 = vadd.f32 %v11173_v49, %v5771_v12 }
0x1501   :  { %7367 = vmatprep.subr.bf16.mxu0 %v10969_v60  ;;  %v5870_v36 = vpack.c.bf16 %v5854_v56, %v5852_v17 }
0x1502   :  { %v5864_v29 = vpack.c.bf16 %v5842_v42, %v5840_v6  ;;  %v5853_v45 = vmax.f32 %v5821_v58, 0.0 }
0x1503   :  { %5920 = vmatmul.mubr.bf16.gmra.mxu0 %v5859_v16  ;;  %v5819_v16 = vadd.f32 %v11173_v49, %v5769_v51 }
0x1504   :  { %5927 = vmatprep.mubr.bf16.mxu0 %v5862_v11  ;;  %7368 = vmatpush3.bf16.msra.mxu0 %v10969_v60  ;;  %v5861_v60 = vpack.c.bf16 %v5837_v62, %v5835_v39 }
0x1505   :  { %7369 = vmatprep.subr.bf16.mxu0 %v10974_v63  ;;  %v5851_v38 = vmax.f32 %v5819_v16, 0.0 }
0x1507   :  { %v5869_v11 = vpack.c.bf16 %v5853_v45, %v5851_v38 }
0x1508   :  { %7370 = vmatpush3.bf16.msra.mxu0 %v10974_v63  ;;  %v5844_v63 = vmax.f32 %v5812_v13, 0.0 }
0x1509   :  { %7371 = vmatprep.subr.bf16.mxu0 %v10978_v27 }
0x150a   :  { %v5866_v40 = vpack.c.bf16 %v5846_v25, %v5844_v63 }
0x150b   :  { %5928 = vmatmul.mubr.bf16.gmra.mxu0 %v5861_v60 }
0x150c   :  { %5935 = vmatprep.mubr.bf16.mxu0 %v5864_v29  ;;  %7372 = vmatpush3.bf16.msra.mxu0 %v10978_v27  ;;  %v5863_v27 = vpack.c.bf16 %v5841_v1, %v5839_v2 }
0x150d   :  { %7373 = vmatprep.subr.bf16.mxu0 %v10983_v59 }
0x1510   :  { %7374 = vmatpush3.bf16.msra.mxu0 %v10983_v59  ;;  %v5767_v59 = vmul.f32 %v11166_v0, %v11117_v61 }
0x1512   :  { %v5817_v22 = vadd.f32 %v11173_v49, %v5767_v59 }
0x1513   :  { %5936 = vmatmul.mubr.bf16.gmra.mxu0 %v5863_v27 }
0x1514   :  { %5943 = vmatprep.mubr.bf16.mxu0 %v5866_v40  ;;  %v5849_v61 = vmax.f32 %v5817_v22, 0.0 }
0x1516   :  { %v5867_v57 = vpack.c.bf16 %v5849_v61, %v5847_v9 }
0x151b   :  { %5944 = vmatmul.mubr.bf16.gmra.mxu0 %v5865_v32 }
0x151c   :  { %5951 = vmatprep.mubr.bf16.mxu0 %v5868_v30 }
0x1523   :  { %5952 = vmatmul.mubr.bf16.gmra.mxu0 %v5867_v57 }
0x1524   :  { %5959 = vmatprep.mubr.bf16.mxu0 %v5870_v36 }
0x152b   :  { %5960 = vmatmul.mubr.bf16.gmra.mxu0 %v5869_v11 }
0x15b3   :  { %v7019_v18 = vpop.f32.mrf.mxu0 }
0x15b5   :  { %v7020_v54 = vpop.f32.mrf.mxu0 }
0x15b6   :  { %v11290_v2 = vadd.f32 %v7020_v54, %v7019_v18 }
0x15b7   :  { %v7022_v39 = vpop.f32.mrf.mxu0 }
0x15b8   :  { %v5989_v50 = vmul.f32 %v11290_v2, %v11290_v2 }
0x15b9   :  { %v7023_v62 = vpop.f32.mrf.mxu0 }
0x15ba   :  { %v11288_v13 = vadd.f32 %v7023_v62, %v7022_v39 }
0x15bb   :  { %v7025_v6 = vpop.f32.mrf.mxu0 }
0x15bc   :  { %v5990_v25 = vmul.f32 %v11288_v13, %v11288_v13  ;;  %v5968_v47 = vadd.f32 %v11288_v13, %v11290_v2 }
0x15bd   :  { %v7026_v42 = vpop.f32.mrf.mxu0 }
0x15be   :  { %v11292_v1 = vadd.f32 %v7026_v42, %v7025_v6  ;;  %v6005_v40 = vadd.f32 %v5990_v25, %v5989_v50 }
0x15bf   :  { %v7028_v10 = vpop.f32.mrf.mxu0 }
0x15c0   :  { %v5991_v27 = vmul.f32 %v11292_v1, %v11292_v1  ;;  %v5969_v46 = vadd.f32 %v11292_v1, %v5968_v47 }
0x15c1   :  { %v7029_v0 = vpop.f32.mrf.mxu0 }
0x15c2   :  { %v11296_v3 = vadd.f32 %v7029_v0, %v7028_v10  ;;  %v6006_v31 = vadd.f32 %v6005_v40, %v5991_v27 }
0x15c3   :  { %v7031_v14 = vpop.f32.mrf.mxu0 }
0x15c4   :  { %v5992_v21 = vmul.f32 %v11296_v3, %v11296_v3  ;;  %v5970_v43 = vadd.f32 %v11296_v3, %v5969_v46 }
0x15c5   :  { %v7032_v53 = vpop.f32.mrf.mxu0 }
0x15c6   :  { %v11304_v7 = vadd.f32 %v7032_v53, %v7031_v14  ;;  %v6007_v26 = vadd.f32 %v6006_v31, %v5992_v21 }
0x15c7   :  { %v7034_v8 = vpop.f32.mrf.mxu0 }
0x15c8   :  { %v5993_v23 = vmul.f32 %v11304_v7, %v11304_v7  ;;  %v5971_v37 = vadd.f32 %v11304_v7, %v5970_v43 }
0x15c9   :  { %v7035_v60 = vpop.f32.mrf.mxu0 }
0x15ca   :  { %v11309_v5 = vadd.f32 %v7035_v60, %v7034_v8  ;;  %v6008_v22 = vadd.f32 %v6007_v26, %v5993_v23 }
0x15cb   :  { %v7037_v49 = vpop.f32.mrf.mxu0 }
0x15cc   :  { %v5994_v28 = vmul.f32 %v11309_v5, %v11309_v5  ;;  %v5972_v52 = vadd.f32 %v11309_v5, %v5971_v37 }
0x15cd   :  { %v7038_v24 = vpop.f32.mrf.mxu0 }
0x15ce   :  { %v11314_v59 = vadd.f32 %v7038_v24, %v7037_v49  ;;  %v6009_v61 = vadd.f32 %v6008_v22, %v5994_v28 }
0x15cf   :  { %v7040_v15 = vpop.f32.mrf.mxu0 }
0x15d0   :  { %v5995_v30 = vmul.f32 %v11314_v59, %v11314_v59  ;;  %v5973_v17 = vadd.f32 %v11314_v59, %v5972_v52 }
0x15d1   :  { %v7041_v29 = vpop.f32.mrf.mxu0 }
0x15d2   :  { %v11319_v32 = vadd.f32 %v7041_v29, %v7040_v15  ;;  %v6010_v20 = vadd.f32 %v6009_v61, %v5995_v30 }
0x15d3   :  { %v7043_v55 = vpop.f32.mrf.mxu0 }
0x15d4   :  { %v5996_v56 = vmul.f32 %v11319_v32, %v11319_v32  ;;  %v5974_v51 = vadd.f32 %v11319_v32, %v5973_v17 }
0x15d5   :  { %v7044_v63 = vpop.f32.mrf.mxu0 }
0x15d6   :  { %v11324_v19 = vadd.f32 %v7044_v63, %v7043_v55  ;;  %v6011_v36 = vadd.f32 %v6010_v20, %v5996_v56 }
0x15d7   :  { %v7046_v33 = vpop.f32.mrf.mxu0 }
0x15d8   :  { %v5997_v58 = vmul.f32 %v11324_v19, %v11324_v19  ;;  %v5975_v45 = vadd.f32 %v11324_v19, %v5974_v51 }
0x15d9   :  { %v7047_v34 = vpop.f32.mrf.mxu0 }
0x15da   :  { %v11329_v41 = vadd.f32 %v7047_v34, %v7046_v33  ;;  %v6012_v54 = vadd.f32 %v6011_v36, %v5997_v58 }
0x15db   :  { %v7049_v48 = vpop.f32.mrf.mxu0 }
0x15dc   :  { %v5998_v38 = vmul.f32 %v11329_v41, %v11329_v41  ;;  %v5976_v39 = vadd.f32 %v11329_v41, %v5975_v45 }
0x15dd   :  { %v7050_v35 = vpop.f32.mrf.mxu0 }
0x15de   :  { %v11334_v57 = vadd.f32 %v7050_v35, %v7049_v48  ;;  %v6013_v10 = vadd.f32 %v6012_v54, %v5998_v38 }
0x15df   :  { %v7052_v4 = vpop.f32.mrf.mxu0 }
0x15e0   :  { %v5999_v62 = vmul.f32 %v11334_v57, %v11334_v57  ;;  %v5977_v0 = vadd.f32 %v11334_v57, %v5976_v39 }
0x15e1   :  { %v7053_v9 = vpop.f32.mrf.mxu0 }
0x15e2   :  { %v11339_v11 = vadd.f32 %v7053_v9, %v7052_v4  ;;  %v6014_v60 = vadd.f32 %v6013_v10, %v5999_v62 }
0x15e3   :  { %v7055_v12 = vpop.f32.mrf.mxu0 }
0x15e4   :  { %v6000_v14 = vmul.f32 %v11339_v11, %v11339_v11  ;;  %v5978_v49 = vadd.f32 %v11339_v11, %v5977_v0 }
0x15e5   :  { %v7056_v16 = vpop.f32.mrf.mxu0 }
0x15e6   :  { %v11344_v6 = vadd.f32 %v7056_v16, %v7055_v12  ;;  %v6015_v29 = vadd.f32 %v6014_v60, %v6000_v14 }
0x15e7   :  { %v7058_v18 = vpop.f32.mrf.mxu0 }
0x15e8   :  { %v6001_v24 = vmul.f32 %v11344_v6, %v11344_v6  ;;  %v5979_v55 = vadd.f32 %v11344_v6, %v5978_v49 }
0x15e9   :  { %v7059_v42 = vpop.f32.mrf.mxu0 }
0x15ea   :  { %v11349_v53 = vadd.f32 %v7059_v42, %v7058_v18  ;;  %v6016_v50 = vadd.f32 %v6015_v29, %v6001_v24  ;;  %v12004_v18 = vld [vmem:[#allocation13_spill] sm:$0xff]  ;;  %v12005_v24 = vld [vmem:[#allocation14_spill] sm:$0xff] }
0x15eb   :  { %v7061_v8 = vpop.f32.mrf.mxu0 }
0x15ec   :  { %v6002_v63 = vmul.f32 %v11349_v53, %v11349_v53  ;;  %v5980_v47 = vadd.f32 %v11349_v53, %v5979_v55 }
0x15ed   :  { %v7062_v15 = vpop.f32.mrf.mxu0 }
0x15ee   :  { %v11357_v25 = vadd.f32 %v7062_v15, %v7061_v8  ;;  %v6017_v40 = vadd.f32 %v6016_v50, %v6002_v63 }
0x15ef   :  { %v7064_v33 = vpop.f32.mrf.mxu0 }
0x15f0   :  { %v6003_v27 = vmul.f32 %v11357_v25, %v11357_v25  ;;  %v5981_v46 = vadd.f32 %v11357_v25, %v5980_v47 }
0x15f1   :  { %v7065_v34 = vpop.f32.mrf.mxu0 }
0x15f2   :  { %v7066_v21 = vadd.f32 %v7065_v34, %v7064_v33  ;;  %v6018_v48 = vadd.f32 %v6017_v40, %v6003_v27 }
0x15f4   :  { %v5982_v31 = vadd.f32 %v7066_v21, %v5981_v46  ;;  %v6004_v43 = vmul.f32 %v7066_v21, %v7066_v21 }
0x15f6   :  { %v5983_v23 = vrot.slane %v5982_v31, 4  ;;  %v6019_v35 = vadd.f32 %v6018_v48, %v6004_v43 }
0x15f8   :  { %v5984_v26 = vadd.f32 %v5983_v23, %v5982_v31  ;;  %v6020_v37 = vrot.slane %v6019_v35, 4 }
0x15fa   :  { %v5985_v28 = vrot.slane %v5984_v26, 2  ;;  %v6021_v4 = vadd.f32 %v6020_v37, %v6019_v35 }
0x15fc   :  { %v5986_v22 = vadd.f32 %v5985_v28, %v5984_v26  ;;  %v6022_v52 = vrot.slane %v6021_v4, 2 }
0x15fe   :  { %v5987_v30 = vrot.slane %v5986_v22, 1  ;;  %v6023_v9 = vadd.f32 %v6022_v52, %v6021_v4 }
0x1600   :  { %v5988_v61 = vadd.f32 %v5987_v30, %v5986_v22  ;;  %v6024_v17 = vrot.slane %v6023_v9, 1 }
0x1602   :  { %v6025_v56 = vadd.f32 %v6024_v17, %v6023_v9  ;;  %v6026_v12 = vmul.f32 0.0078125, %v5988_v61 }
0x1604   :  { %v6027_v20 = vmul.f32 0.0078125, %v6025_v56  ;;  %v6028_v51 = vmul.f32 %v6026_v12, %v6026_v12 }
0x1606   :  { %v6029_v58 = vsub.f32 %v6027_v20, %v6028_v51 }
0x1608   :  { %v6030_v16 = vmax.f32 %v6029_v58, 0.0 }
0x160a   :  { %v6031_v36 = vadd.f32 1e-05, %v6030_v16 }
0x160c   :  { %7566 = vrsqrt.f32 %v6031_v36 }
0x1619   :  { %v7567_v45 = vpop.eup %7566 }
0x161a   :  { %v6033_v38 = vmul.f32 %v11159_v44, %v7567_v45 }
0x161c   :  { %v6037_v54 = vrot.slane %v6033_v38, %v12004_v18  ;;  %v6054_v39 = vmul.f32 %v6033_v38, %v6026_v12 }
0x161e   :  { %v6056_v62 = vrot.slane %v6054_v39, 7  ;;  %v6053_v42 = vmul.f32 %v7066_v21, %v6037_v54  ;;  %v6038_v0 = vmul.f32 %v11290_v2, %v6037_v54  ;;  %v6039_v14 = vmul.f32 %v11288_v13, %v6037_v54 }
0x161f   :  { %v6042_v8 = vmul.f32 %v11304_v7, %v6037_v54  ;;  %v6043_v60 = vmul.f32 %v11309_v5, %v6037_v54  ;;  %v6040_v49 = vmul.f32 %v11292_v1, %v6037_v54  ;;  %v6041_v29 = vmul.f32 %v11296_v3, %v6037_v54 }
0x1620   :  { %v6058_v10 = vsub.f32 %v11159_v44, %v6056_v62  ;;  %v6044_v55 = vmul.f32 %v11314_v59, %v6037_v54  ;;  %v6045_v63 = vmul.f32 %v11319_v32, %v6037_v54  ;;  %v6046_v33 = vmul.f32 %v11324_v19, %v6037_v54  ;;  %v11391_v62 = vld [vmem:[%s11729_s2 + $0x20] sm:$0xff] }
0x1621   :  { %v6047_v2 = vmul.f32 %v11329_v41, %v6037_v54  ;;  %v6048_v13 = vmul.f32 %v11334_v57, %v6037_v54  ;;  %v6049_v7 = vmul.f32 %v11339_v11, %v6037_v54  ;;  %v6050_v1 = vmul.f32 %v11344_v6, %v6037_v54 }
0x1622   :  { %v6062_v15 = vrot.slane %v6058_v10, %v12005_v24  ;;  %v6052_v6 = vmul.f32 %v11357_v25, %v6037_v54  ;;  %v6051_v52 = vmul.f32 %v11349_v53, %v6037_v54 }
0x1624   :  { %v6063_v50 = vadd.f32 %v6062_v15, %v6038_v0  ;;  %v6064_v5 = vadd.f32 %v6062_v15, %v6039_v14  ;;  %v6067_v47 = vadd.f32 %v6062_v15, %v6042_v8  ;;  %v6068_v27 = vadd.f32 %v6062_v15, %v6043_v60 }
0x1625   :  { %v6065_v34 = vadd.f32 %v6062_v15, %v6040_v49  ;;  %v6066_v3 = vadd.f32 %v6062_v15, %v6041_v29  ;;  %v6069_v40 = vadd.f32 %v6062_v15, %v6044_v55  ;;  %v6078_v59 = vadd.f32 %v6062_v15, %v6053_v42 }
0x1626   :  { %v6079_v46 = vmax.f32 %v6063_v50, 0.0  ;;  %v6080_v32 = vmax.f32 %v6064_v5, 0.0  ;;  %v6083_v21 = vmax.f32 %v6067_v47, 0.0  ;;  %v6084_v19 = vmax.f32 %v6068_v27, 0.0 }
0x1627   :  { %v6081_v48 = vmax.f32 %v6065_v34, 0.0  ;;  %v6082_v41 = vmax.f32 %v6066_v3, 0.0  ;;  %v6070_v31 = vadd.f32 %v6062_v15, %v6045_v63  ;;  %v6085_v43 = vmax.f32 %v6069_v40, 0.0 }
0x1628   :  { %v6095_v57 = vpack.c.bf16 %v6080_v32, %v6079_v46  ;;  %v6071_v11 = vadd.f32 %v6062_v15, %v6046_v33  ;;  %v6072_v23 = vadd.f32 %v6062_v15, %v6047_v2  ;;  %v6097_v35 = vpack.c.bf16 %v6084_v19, %v6083_v21 }
0x1629   :  { %v6096_v26 = vpack.c.bf16 %v6082_v41, %v6081_v48  ;;  %v6086_v37 = vmax.f32 %v6070_v31, 0.0  ;;  %v6073_v22 = vadd.f32 %v6062_v15, %v6048_v13  ;;  %v6094_v30 = vmax.f32 %v6078_v59, 0.0 }
0x162a   :  { %7375 = vmatprep.mubr.bf16.mxu0 %v6095_v57  ;;  %v6087_v28 = vmax.f32 %v6071_v11, 0.0  ;;  %v6088_v4 = vmax.f32 %v6072_v23, 0.0  ;;  %7379 = vmatprep.mubr.bf16.mxu1 %v6097_v35  ;;  %v6074_v61 = vadd.f32 %v6062_v15, %v6049_v7  ;;  %v6077_v17 = vadd.f32 %v6062_v15, %v6052_v6 }
0x162b   :  { %7376 = vmatmul.mubr.bf16.vlgmr.msra.gmra.mxu0 %v6096_v26  ;;  %v6098_v9 = vpack.c.bf16 %v6086_v37, %v6085_v43  ;;  %v6075_v12 = vadd.f32 %v6062_v15, %v6050_v1  ;;  %v6076_v20 = vadd.f32 %v6062_v15, %v6051_v52  ;;  %v6089_v58 = vmax.f32 %v6073_v22, 0.0 }
0x162c   :  { %v6099_v56 = vpack.c.bf16 %v6088_v4, %v6087_v28  ;;  %v6093_v51 = vmax.f32 %v6077_v17, 0.0  ;;  %v6090_v25 = vmax.f32 %v6074_v61, 0.0  ;;  %v6443_v42 = vrot.slane %v11391_v62, 2 }
0x162d   :  { %7380 = vmatmul.mubr.bf16.vlgmr.msra.gmra.mxu1 %v6098_v9  ;;  %v6091_v36 = vmax.f32 %v6075_v12, 0.0  ;;  %v6092_v45 = vmax.f32 %v6076_v20, 0.0 }
0x162e   :  { %7383 = vmatprep.mubr.bf16.mxu1 %v6099_v56  ;;  %v6102_v16 = vpack.c.bf16 %v6094_v30, %v6093_v51  ;;  %v6100_v38 = vpack.c.bf16 %v6090_v25, %v6089_v58  ;;  %7407 = vpush %v6443_v42 }
0x162f   :  { %v6101_v18 = vpack.c.bf16 %v6092_v45, %v6091_v36 }
0x1635   :  { %7384 = vmatmul.mubr.bf16.gmra.mxu1 %v6100_v38 }
0x1636   :  { %7387 = vmatprep.mubr.bf16.mxu1 %v6101_v18 }
0x163d   :  { %7388 = vmatmul.mubr.bf16.gmra.mxu1 %v6102_v16 }
0x165f   :  { %s7408_s2 = spop %7407 }
0x16eb   :  { %v11382_v53 = vpop.f32.mrf.mxu0 }
0x16ec   :  { %v6223_v29 = vmul.f32 %v11382_v53, %v11382_v53 }
0x16ed   :  { %v11384_v54 = vpop.f32.mrf.mxu1  ;;  %v11386_v39 = vpop.f32.mrf.mxu0 }
0x16ee   :  { %v6221_v60 = vmul.f32 %v11386_v39, %v11386_v39  ;;  %v6227_v46 = vmul.f32 %v11384_v54, %v11384_v54 }
0x16ef   :  { %v11394_v10 = vpop.f32.mrf.mxu1  ;;  %v11396_v0 = vpop.f32.mrf.mxu0 }
0x16f0   :  { %v6224_v2 = vmul.f32 %v11396_v0, %v11396_v0  ;;  %v6225_v5 = vmul.f32 %v11394_v10, %v11394_v10 }
0x16f1   :  { %v11398_v14 = vpop.f32.mrf.mxu1  ;;  %v11400_v8 = vpop.f32.mrf.mxu0 }
0x16f2   :  { %v6200_v49 = vadd.f32 %v11400_v8, %v11386_v39  ;;  %v6222_v24 = vmul.f32 %v11400_v8, %v11400_v8  ;;  %v6228_v48 = vmul.f32 %v11398_v14, %v11398_v14 }
0x16f3   :  { %v11408_v15 = vpop.f32.mrf.mxu1 }
0x16f4   :  { %v6201_v55 = vadd.f32 %v11382_v53, %v6200_v49  ;;  %v6237_v63 = vadd.f32 %v6222_v24, %v6221_v60  ;;  %v6226_v3 = vmul.f32 %v11408_v15, %v11408_v15 }
0x16f5   :  { %v11413_v33 = vpop.f32.mrf.mxu1 }
0x16f6   :  { %v6202_v13 = vadd.f32 %v11396_v0, %v6201_v55  ;;  %v6238_v7 = vadd.f32 %v6237_v63, %v6223_v29  ;;  %v6231_v28 = vmul.f32 %v11413_v33, %v11413_v33 }
0x16f7   :  { %v11418_v50 = vpop.f32.mrf.mxu1 }
0x16f8   :  { %v6239_v47 = vadd.f32 %v6238_v7, %v6224_v2  ;;  %v6203_v1 = vadd.f32 %v6202_v13, %v11394_v10  ;;  %v6229_v11 = vmul.f32 %v11418_v50, %v11418_v50 }
0x16f9   :  { %v11423_v27 = vpop.f32.mrf.mxu1 }
0x16fa   :  { %v6204_v34 = vadd.f32 %v6203_v1, %v11408_v15  ;;  %v6240_v40 = vadd.f32 %v6239_v47, %v6225_v5  ;;  %v6232_v52 = vmul.f32 %v11423_v27, %v11423_v27 }
0x16fb   :  { %v11428_v59 = vpop.f32.mrf.mxu1 }
0x16fc   :  { %v6205_v32 = vadd.f32 %v11384_v54, %v6204_v34  ;;  %v6241_v21 = vadd.f32 %v6240_v40, %v6226_v3  ;;  %v6230_v37 = vmul.f32 %v11428_v59, %v11428_v59 }
0x16fd   :  { %v11433_v19 = vpop.f32.mrf.mxu1 }
0x16fe   :  { %v6242_v41 = vadd.f32 %v6241_v21, %v6227_v46  ;;  %v6206_v31 = vadd.f32 %v11398_v14, %v6205_v32  ;;  %v6235_v25 = vmul.f32 %v11433_v19, %v11433_v19 }
0x16ff   :  { %v11438_v57 = vpop.f32.mrf.mxu1 }
0x1700   :  { %v6207_v43 = vadd.f32 %v6206_v31, %v11418_v50  ;;  %v6243_v23 = vadd.f32 %v6242_v41, %v6228_v48  ;;  %v6233_v56 = vmul.f32 %v11438_v57, %v11438_v57 }
0x1701   :  { %v11446_v6 = vpop.f32.mrf.mxu1 }
0x1702   :  { %v6244_v35 = vadd.f32 %v6243_v23, %v6229_v11  ;;  %v6208_v26 = vadd.f32 %v6207_v43, %v11428_v59  ;;  %v6236_v45 = vmul.f32 %v11446_v6, %v11446_v6  ;;  %v12006_v43 = vld [vmem:[#allocation15_spill] sm:$0xff] }
0x1703   :  { %v11454_v61 = vpop.f32.mrf.mxu1 }
0x1704   :  { %v6209_v4 = vadd.f32 %v11413_v33, %v6208_v26  ;;  %v6245_v22 = vadd.f32 %v6244_v35, %v6230_v37  ;;  %v6234_v58 = vmul.f32 %v11454_v61, %v11454_v61  ;;  %v12007_v26 = vld [vmem:[#allocation8_spill] sm:$0xff] }
0x1706   :  { %v6246_v30 = vadd.f32 %v6245_v22, %v6231_v28  ;;  %v6210_v9 = vadd.f32 %v11423_v27, %v6209_v4 }
0x1708   :  { %v6211_v17 = vadd.f32 %v6210_v9, %v11438_v57  ;;  %v6247_v12 = vadd.f32 %v6246_v30, %v6232_v52 }
0x170a   :  { %v6248_v20 = vadd.f32 %v6247_v12, %v6233_v56  ;;  %v6212_v51 = vadd.f32 %v6211_v17, %v11454_v61 }
0x170c   :  { %v6213_v16 = vadd.f32 %v11433_v19, %v6212_v51  ;;  %v6249_v36 = vadd.f32 %v6248_v20, %v6234_v58  ;;  %v12009_v58 = vld [vmem:[#allocation18_spill] sm:$0xff] }
0x170e   :  { %v6214_v38 = vadd.f32 %v11446_v6, %v6213_v16  ;;  %v6250_v18 = vadd.f32 %v6249_v36, %v6235_v25  ;;  %v11500_v36 = vpop.xlane.xlu0 %2930 }
0x1710   :  { %v6215_v42 = vrot.slane %v6214_v38, 4  ;;  %v6251_v60 = vadd.f32 %v6250_v18, %v6236_v45  ;;  %v12010_v45 = vld [vmem:[#allocation16_spill] sm:$0xff] }
0x1712   :  { %v6216_v49 = vadd.f32 %v6215_v42, %v6214_v38  ;;  %v6252_v24 = vrot.slane %v6251_v60, 4 }
0x1714   :  { %v6217_v29 = vrot.slane %v6216_v49, 2  ;;  %v6253_v55 = vadd.f32 %v6252_v24, %v6251_v60 }
0x1716   :  { %v6218_v63 = vadd.f32 %v6217_v29, %v6216_v49  ;;  %v6254_v2 = vrot.slane %v6253_v55, 2  ;;  %v12011_v49 = vld [vmem:[#allocation11_spill] sm:$0xff] }
0x1718   :  { %v6219_v13 = vrot.slane %v6218_v63, 1  ;;  %v6255_v7 = vadd.f32 %v6254_v2, %v6253_v55 }
0x171a   :  { %v6220_v5 = vadd.f32 %v6219_v13, %v6218_v63  ;;  %v6256_v47 = vrot.slane %v6255_v7, 1 }
0x171c   :  { %v6257_v1 = vadd.f32 %v6256_v47, %v6255_v7  ;;  %v6258_v34 = vmul.f32 0.0078125, %v6220_v5  ;;  %v12013_v7 = vld [vmem:[#allocation31_spill] sm:$0xff]  ;;  %v12014_v47 = vld [vmem:[#allocation21_spill] sm:$0xff] }
0x171e   :  { %v6259_v3 = vmul.f32 0.0078125, %v6257_v1  ;;  %v6260_v40 = vmul.f32 %v6258_v34, %v6258_v34 }
0x1720   :  { %v6261_v46 = vsub.f32 %v6259_v3, %v6260_v40 }
0x1722   :  { %v6262_v32 = vmax.f32 %v6261_v46, 0.0 }
0x1724   :  { %v6263_v21 = vadd.f32 1e-05, %v6262_v32 }
0x1726   :  { %7568 = vrsqrt.f32 %v6263_v21 }
0x1733   :  { %v7569_v48 = vpop.eup %7568 }
0x1734   :  { %v6265_v41 = vmul.f32 %v11159_v44, %v7569_v48 }
0x1736   :  { %v6286_v31 = vmul.f32 %v6265_v41, %v6258_v34  ;;  %v11470_v11 = vrot.slane %v6265_v41, %v12006_v43  ;;  %v12015_v41 = vld [vmem:[#allocation19_spill] sm:$0xff] }
0x1738   :  { %v6288_v23 = vrot.slane %v6286_v31, 7  ;;  %v6270_v28 = vmul.f32 %v11470_v11, %v11386_v39  ;;  %v6275_v4 = vmul.f32 %v11470_v11, %v11408_v15  ;;  %v6271_v22 = vmul.f32 %v11470_v11, %v11400_v8 }
0x1739   :  { %v6277_v44 = vmul.f32 %v11398_v14, %v11470_v11  ;;  %v6272_v52 = vmul.f32 %v11382_v53, %v11470_v11  ;;  %v6273_v53 = vmul.f32 %v11396_v0, %v11470_v11  ;;  %v6281_v16 = vmul.f32 %v11423_v27, %v11470_v11  ;;  %v12012_v0 = vld [vmem:[#allocation24_spill] sm:$0xff] }
0x173a   :  { %v6290_v35 = vsub.f32 %v11391_v62, %v6288_v23  ;;  %v6279_v62 = vmul.f32 %v11470_v11, %v11428_v59  ;;  %v12008_v59 = vld [vmem:[#allocation20_spill] sm:$0xff]  ;;  %v6283_v2 = vmul.f32 %v11470_v11, %v11454_v61  ;;  %v6274_v27 = vmul.f32 %v11470_v11, %v11394_v10  ;;  %v11518_v61 = vpop.xlane.xlu0 %2932 }
0x173b   :  { %v6276_v10 = vmul.f32 %v11384_v54, %v11470_v11  ;;  %v12016_v23 = vld [vmem:[#allocation28_spill] sm:$0xff] }
0x173c   :  { %v11474_v37 = vrot.slane %v6290_v35, %v12007_v26 }
0x173e   :  { %v6295_v30 = vadd.f32 %v11474_v37, %v6270_v28  ;;  %v6300_v9 = vadd.f32 %v11474_v37, %v6275_v4  ;;  %v6296_v39 = vadd.f32 %v11474_v37, %v6271_v22  ;;  %v6302_v15 = vadd.f32 %v11474_v37, %v6277_v44  ;;  %v11529_v22 = vpop.xlane.xlu0 %2938  ;;  %v12017_v44 = vld [vmem:[#allocation25_spill] sm:$0xff] }
0x173f   :  { %v6297_v17 = vadd.f32 %v11474_v37, %v6272_v52  ;;  %v6304_v8 = vadd.f32 %v11474_v37, %v6279_v62  ;;  %v6298_v60 = vadd.f32 %v11474_v37, %v6273_v53  ;;  %v6306_v63 = vadd.f32 %v11474_v37, %v6281_v16 }
0x1740   :  { %v6311_v56 = vmax.f32 %v6295_v30, 0.0  ;;  %v6316_v14 = vmax.f32 %v6300_v9, 0.0  ;;  %v6312_v12 = vmax.f32 %v6296_v39, 0.0  ;;  %v6318_v20 = vmax.f32 %v6302_v15, 0.0  ;;  %v12018_v30 = vld [vmem:[#allocation12_spill] sm:$0xff] }
0x1741   :  { %v6313_v18 = vmax.f32 %v6297_v17, 0.0  ;;  %v6320_v42 = vmax.f32 %v6304_v8, 0.0  ;;  %v6308_v13 = vadd.f32 %v11474_v37, %v6283_v2  ;;  %v6314_v34 = vmax.f32 %v6298_v60, 0.0  ;;  %v12021_v60 = vld [vmem:[#allocation22_spill] sm:$0xff]  ;;  %v12022_v2 = vld [vmem:[#allocation23_spill] sm:$0xff] }
0x1742   :  { %v6327_v51 = vadd.f32 %v6311_v56, %v12008_v59  ;;  %v6332_v25 = vadd.f32 %v6316_v14, %v12009_v58  ;;  %v6328_v38 = vadd.f32 %v6312_v12, %v12010_v45  ;;  %v6334_v55 = vadd.f32 %v6318_v20, %v12012_v0  ;;  %v12019_v14 = vld [vmem:[#allocation30_spill] sm:$0xff]  ;;  %v11542_v53 = vpop.xlane.xlu0 %2942  ;;  %v12020_v58 = vld [vmem:[#allocation17_spill] sm:$0xff] }
0x1743   :  { %v6329_v5 = vadd.f32 %v6313_v18, %v12013_v7  ;;  %v6336_v1 = vadd.f32 %v6320_v42, %v12014_v47  ;;  %v6322_v46 = vmax.f32 %v6306_v63, 0.0  ;;  %v6299_v32 = vadd.f32 %v11474_v37, %v6274_v27 }
0x1744   :  { %v6343_v24 = vmul.f32 %v6327_v51, %v12011_v49  ;;  %v6348_v29 = vmul.f32 %v6332_v25, %v12011_v49  ;;  %v6344_v3 = vmul.f32 %v6328_v38, %v12011_v49  ;;  %v6350_v40 = vmul.f32 %v6334_v55, %v12011_v49  ;;  %v11546_v51 = vpop.xlane.xlu1 %2934 }
0x1745   :  { %v6324_v21 = vmax.f32 %v6308_v13, 0.0  ;;  %v6345_v48 = vmul.f32 %v6329_v5, %v12011_v49  ;;  %v6330_v31 = vadd.f32 %v6314_v34, %v12015_v41  ;;  %v6352_v43 = vmul.f32 %v6336_v1, %v12011_v49  ;;  %v12023_v1 = vld [vmem:[#allocation26_spill] sm:$0xff] }
0x1746   :  { %6359 = vadd.xlane.f32.xlu1 %v6343_v24  ;;  %6369 = vadd.xlane.f32.xlu0 %v6348_v29  ;;  %v6338_v35 = vadd.f32 %v6322_v46, %v12016_v23  ;;  %v6315_v26 = vmax.f32 %v6299_v32, 0.0  ;;  %v6301_v28 = vadd.f32 %v11474_v37, %v6276_v10  ;;  %v6278_v4 = vmul.f32 %v11470_v11, %v11418_v50  ;;  %v11553_v18 = vpop.xlane.xlu0 %2946 }
0x1747   :  { %v6346_v54 = vmul.f32 %v6330_v31, %v12011_v49  ;;  %v6340_v52 = vadd.f32 %v6324_v21, %v12017_v44  ;;  %v6280_v17 = vmul.f32 %v11413_v33, %v11470_v11  ;;  %v6282_v59 = vmul.f32 %v11470_v11, %v11438_v57 }
0x1748   :  { %v6354_v62 = vmul.f32 %v6338_v35, %v12011_v49  ;;  %v6331_v9 = vadd.f32 %v6315_v26, %v12018_v30  ;;  %v6317_v39 = vmax.f32 %v6301_v28, 0.0  ;;  %v6303_v15 = vadd.f32 %v11474_v37, %v6278_v4  ;;  %v11558_v0 = vpop.xlane.xlu1 %2936 }
0x1749   :  { %v6305_v50 = vadd.f32 %v11474_v37, %v6280_v17  ;;  %v6356_v56 = vmul.f32 %v6340_v52, %v12011_v49  ;;  %v6307_v45 = vadd.f32 %v11474_v37, %v6282_v59  ;;  %v6284_v38 = vmul.f32 %v11433_v19, %v11470_v11 }
0x174a   :  { %6361 = vadd.xlane.f32.xlu1 %v6344_v3  ;;  %6373 = vadd.xlane.f32.xlu0 %v6350_v40  ;;  %v6347_v8 = vmul.f32 %v6331_v9, %v12011_v49  ;;  %v6333_v12 = vadd.f32 %v6317_v39, %v12019_v14  ;;  %v6319_v20 = vmax.f32 %v6303_v15, 0.0  ;;  %v6285_v55 = vmul.f32 %v11446_v6, %v11470_v11  ;;  %v11565_v7 = vpop.xlane.xlu0 %2950  ;;  %v12024_v11 = vld [vmem:[#allocation27_spill] sm:$0xff] }
0x174b   :  { %v6321_v16 = vmax.f32 %v6305_v50, 0.0  ;;  %v6323_v57 = vmax.f32 %v6307_v45, 0.0  ;;  %v6309_v29 = vadd.f32 %v11474_v37, %v6284_v38 }
0x174c   :  { %v6349_v33 = vmul.f32 %v6333_v12, %v12011_v49  ;;  %v6335_v25 = vadd.f32 %v6319_v20, %v12020_v58  ;;  %v6310_v13 = vadd.f32 %v11474_v37, %v6285_v55  ;;  %v11567_v5 = vpop.xlane.xlu1 %2940 }
0x174d   :  { %v6337_v24 = vadd.f32 %v6321_v16, %v12021_v60  ;;  %v6339_v27 = vadd.f32 %v6323_v57, %v12022_v2  ;;  %v6325_v19 = vmax.f32 %v6309_v29, 0.0  ;;  %v11620_v60 = vstv %s7408_s2 }
0x174e   :  { %6363 = vadd.xlane.f32.xlu1 %v6345_v48  ;;  %6377 = vadd.xlane.f32.xlu0 %v6352_v43  ;;  %v6351_v42 = vmul.f32 %v6335_v25, %v12011_v49  ;;  %v6326_v3 = vmax.f32 %v6310_v13, 0.0  ;;  %v11571_v40 = vpop.xlane.xlu0 %2954 }
0x174f   :  { %v6353_v63 = vmul.f32 %v6337_v24, %v12011_v49  ;;  %v6355_v47 = vmul.f32 %v6339_v27, %v12011_v49  ;;  %v6341_v34 = vadd.f32 %v6325_v19, %v12023_v1 }
0x1750   :  { %v6342_v46 = vadd.f32 %v6326_v3, %v12024_v11  ;;  %v11575_v32 = vpop.xlane.xlu1 %2944 }
0x1751   :  { %v6357_v6 = vmul.f32 %v6341_v34, %v12011_v49 }
0x1752   :  { %6365 = vadd.xlane.f32.xlu1 %v6346_v54  ;;  %6381 = vadd.xlane.f32.xlu0 %v6354_v62  ;;  %v6358_v37 = vmul.f32 %v6342_v46, %v12011_v49  ;;  %v11578_v10 = vpop.xlane.xlu0 %2958 }
0x1754   :  { %v11580_v21 = vpop.xlane.xlu1 %2948 }
0x1756   :  { %6367 = vadd.xlane.f32.xlu1 %v6347_v8  ;;  %6385 = vadd.xlane.f32.xlu0 %v6356_v56  ;;  %v4074_v48 = vpop.xlane.xlu0 %4073 }
0x1758   :  { %v11582_v41 = vpop.xlane.xlu1 %2952 }
0x175a   :  { %6371 = vadd.xlane.f32.xlu1 %v6349_v33  ;;  %v4078_v31 = vpop.xlane.xlu0 %4077 }
0x175b   :  { %v6394_v1 = vsel %vm6391_vm1, %v11546_v51, %v4078_v31 }
0x175c   :  { %v11584_v43 = vpop.xlane.xlu1 %2956 }
0x175e   :  { %6375 = vadd.xlane.f32.xlu1 %v6351_v42  ;;  %v4082_v23 = vpop.xlane.xlu0 %4081  ;;  %v6392_v42 = vsel %vm6391_vm1, %v11500_v36, %v4074_v48 }
0x175f   :  { %v6396_v31 = vsel %vm6391_vm1, %v11529_v22, %v4082_v23 }
0x1760   :  { %v11586_v35 = vpop.xlane.xlu1 %2960 }
0x1762   :  { %6379 = vadd.xlane.f32.xlu1 %v6353_v63  ;;  %v11588_v26 = vpop.xlane.xlu0 %4087 }
0x1764   :  { %v4076_v28 = vpop.xlane.xlu1 %4075 }
0x1765   :  { %v6393_v2 = vsel %vm6391_vm1, %v11518_v61, %v4076_v28 }
0x1766   :  { %6383 = vadd.xlane.f32.xlu1 %v6355_v47  ;;  %v11590_v4 = vpop.xlane.xlu0 %4091 }
0x1768   :  { %v4080_v49 = vpop.xlane.xlu1 %4079 }
0x1769   :  { %v6395_v11 = vsel %vm6391_vm1, %v11558_v0, %v4080_v49 }
0x176a   :  { %6387 = vadd.xlane.f32.xlu1 %v6357_v6  ;;  %v11592_v54 = vpop.xlane.xlu0 %4095 }
0x176c   :  { %v4084_v44 = vpop.xlane.xlu1 %4083 }
0x176d   :  { %v6397_v0 = vsel %vm6391_vm1, %v11567_v5, %v4084_v44 }
0x176e   :  { %6389 = vadd.xlane.f32.xlu1 %v6358_v37  ;;  %v11594_v52 = vpop.xlane.xlu0 %4099 }
0x1770   :  { %v11596_v62 = vpop.xlane.xlu1 %4085 }
0x1771   :  { %v6398_v22 = vsel %vm6391_vm1, %v11542_v53, %v11596_v62 }
0x1772   :  { %v11598_v30 = vpop.xlane.xlu0 %4103 }
0x1774   :  { %v11600_v9 = vpop.xlane.xlu1 %4089 }
0x1775   :  { %v6400_v53 = vsel %vm6391_vm1, %v11553_v18, %v11600_v9 }
0x1776   :  { %v5217_v39 = vpop.xlane.xlu0 %5216 }
0x1777   :  { %v6409_v24 = vsel %vm6408_vm2, %v6392_v42, %v5217_v39 }
0x1778   :  { %v11602_v15 = vpop.xlane.xlu1 %4093 }
0x177a   :  { %v5219_v17 = vpop.xlane.xlu0 %5218 }
0x177b   :  { %v6410_v27 = vsel %vm6408_vm2, %v6393_v2, %v5219_v17 }
0x177c   :  { %v11604_v50 = vpop.xlane.xlu1 %4097 }
0x177e   :  { %v5221_v8 = vpop.xlane.xlu0 %5220 }
0x177f   :  { %v6411_v34 = vsel %vm6408_vm2, %v6394_v1, %v5221_v8 }
0x1780   :  { %v11606_v56 = vpop.xlane.xlu1 %4101 }
0x1782   :  { %v5223_v14 = vpop.xlane.xlu0 %5222 }
0x1783   :  { %v6412_v46 = vsel %vm6408_vm2, %v6395_v11, %v5223_v14 }
0x1784   :  { %v5229_v12 = vpop.xlane.xlu1 %5228 }
0x1785   :  { %v6415_v23 = vsel %vm6408_vm2, %v6398_v22, %v5229_v12 }
0x1786   :  { %v5225_v20 = vpop.xlane.xlu0 %5224 }
0x1787   :  { %v6413_v39 = vsel %vm6408_vm2, %v6396_v31, %v5225_v20 }
0x1788   :  { %v11608_v59 = vpop.xlane.xlu1 %5232 }
0x1789   :  { %v6417_v62 = vsel %vm6408_vm2, %v6400_v53, %v11608_v59  ;;  %v6402_v59 = vsel %vm6391_vm1, %v11565_v7, %v11602_v15 }
0x178a   :  { %v5227_v33 = vpop.xlane.xlu0 %5226 }
0x178b   :  { %v6414_v14 = vsel %vm6408_vm2, %v6397_v0, %v5227_v33  ;;  %v6399_v33 = vsel %vm6391_vm1, %v11575_v32, %v11588_v26  ;;  %v6401_v26 = vsel %vm6391_vm1, %v11580_v21, %v11590_v4 }
0x178c   :  { %v11610_v58 = vpop.xlane.xlu1 %5236 }
0x178e   :  { %v5231_v25 = vpop.xlane.xlu0 %5230 }
0x1790   :  { %v11612_v16 = vpop.xlane.xlu1 %5240 }
0x1792   :  { %v11614_v45 = vpop.xlane.xlu0 %5234 }
0x1794   :  { %v11616_v38 = vpop.xlane.xlu1 %5244 }
0x1796   :  { %v11623_v57 = vpop.xlane.xlu0 %5238 }
0x179a   :  { %v11631_v13 = vpop.xlane.xlu0 %5242 }
0x179e   :  { %v11642_v37 = vpop.xlane.xlu0 %5246 }
0x17cf   :  { %v6360_v29 = vpop.xlane.xlu1 %6359  ;;  %v6370_v17 = vpop.xlane.xlu0 %6369 }
0x17d0   :  { %v6426_v55 = vsel %vm6425_vm3, %v6409_v24, %v6360_v29  ;;  %v6431_v24 = vsel %vm6425_vm3, %v6414_v14, %v6370_v17 }
0x17d1   :  { %v6447_v63 = vadd.f32 %v11620_v60, %v6426_v55  ;;  %v6452_v20 = vadd.f32 %v11620_v60, %v6431_v24  ;;  %v6416_v55 = vsel %vm6408_vm2, %v6399_v33, %v5231_v25  ;;  %v6418_v25 = vsel %vm6408_vm2, %v6401_v26, %v11614_v45 }
0x17d2   :  { %v6403_v45 = vsel %vm6391_vm1, %v11582_v41, %v11592_v54 }
0x17d3   :  { %v6362_v19 = vpop.xlane.xlu1 %6361  ;;  %6463 = vxpose.xlu0.b32.start [1/16] (narrow) %v6447_v63, 8  ;;  %v6374_v44 = vpop.xlane.xlu0 %6373 }
0x17d4   :  { %v6427_v36 = vsel %vm6425_vm3, %v6410_v27, %v6362_v19  ;;  %v6433_v2 = vsel %vm6425_vm3, %v6416_v55, %v6374_v44 }
0x17d5   :  { %v6448_v47 = vadd.f32 %v11620_v60, %v6427_v36  ;;  %v6454_v12 = vadd.f32 %v11620_v60, %v6433_v2 }
0x17d7   :  { %v6364_v3 = vpop.xlane.xlu1 %6363  ;;  %6464 = vxpose.xlu0.b32.cont [2/16] (narrow) %v6448_v47, 8  ;;  %v6378_v32 = vpop.xlane.xlu0 %6377  ;;  %v6419_v47 = vsel %vm6408_vm2, %v6402_v59, %v11610_v58  ;;  %v6404_v58 = vsel %vm6391_vm1, %v11571_v40, %v11604_v50  ;;  %v6406_v50 = vsel %vm6391_vm1, %v11578_v10, %v11606_v56 }
0x17d8   :  { %v6428_v6 = vsel %vm6425_vm3, %v6411_v34, %v6364_v3  ;;  %v6435_v18 = vsel %vm6425_vm3, %v6418_v25, %v6378_v32  ;;  %v6420_v34 = vsel %vm6408_vm2, %v6403_v45, %v11623_v57  ;;  %v6405_v57 = vsel %vm6391_vm1, %v11584_v43, %v11594_v52 }
0x17d9   :  { %v6449_v61 = vadd.f32 %v11620_v60, %v6428_v6  ;;  %v6456_v1 = vadd.f32 %v11620_v60, %v6435_v18  ;;  %v6421_v6 = vsel %vm6408_vm2, %v6404_v58, %v11612_v16  ;;  %v6422_v11 = vsel %vm6408_vm2, %v6405_v57, %v11631_v13 }
0x17da   :  { %v6423_v16 = vsel %vm6408_vm2, %v6406_v50, %v11616_v38  ;;  %v6407_v13 = vsel %vm6391_vm1, %v11586_v35, %v11598_v30 }
0x17db   :  { %v6366_v48 = vpop.xlane.xlu1 %6365  ;;  %6465 = vxpose.xlu0.b32.cont [3/16] (narrow) %v6449_v61, 8  ;;  %v6382_v4 = vpop.xlane.xlu0 %6381 }
0x17dc   :  { %v6429_v28 = vsel %vm6425_vm3, %v6412_v46, %v6366_v48  ;;  %v6437_v7 = vsel %vm6425_vm3, %v6420_v34, %v6382_v4 }
0x17dd   :  { %v6450_v51 = vadd.f32 %v11620_v60, %v6429_v28  ;;  %v6458_v61 = vadd.f32 %v11620_v60, %v6437_v7 }
0x17df   :  { %v6368_v8 = vpop.xlane.xlu1 %6367  ;;  %6466 = vxpose.xlu0.b32.cont [4/16] (narrow) %v6450_v51, 8  ;;  %v6386_v54 = vpop.xlane.xlu0 %6385  ;;  %v6424_v51 = vsel %vm6408_vm2, %v6407_v13, %v11642_v37 }
0x17e0   :  { %v6430_v49 = vsel %vm6425_vm3, %v6413_v39, %v6368_v8  ;;  %v6439_v40 = vsel %vm6425_vm3, %v6422_v11, %v6386_v54 }
0x17e1   :  { %v6451_v42 = vadd.f32 %v11620_v60, %v6430_v49  ;;  %v6460_v28 = vadd.f32 %v11620_v60, %v6439_v40 }
0x17e3   :  { %v6372_v29 = vpop.xlane.xlu1 %6371  ;;  %6467 = vxpose.xlu0.b32.cont [5/16] (narrow) %v6451_v42, 8 }
0x17e4   :  { %v6432_v5 = vsel %vm6425_vm3, %v6415_v23, %v6372_v29 }
0x17e5   :  { %v6453_v63 = vadd.f32 %v11620_v60, %v6432_v5 }
0x17e7   :  { %6468 = vxpose.xlu0.b32.cont [6/16] (narrow) %v6452_v20, 8  ;;  %v6376_v27 = vpop.xlane.xlu1 %6375 }
0x17e8   :  { %v6434_v19 = vsel %vm6425_vm3, %v6417_v62, %v6376_v27 }
0x17e9   :  { %v6455_v36 = vadd.f32 %v11620_v60, %v6434_v19 }
0x17eb   :  { %6469 = vxpose.xlu0.b32.cont [7/16] (narrow) %v6453_v63, 8  ;;  %v6380_v9 = vpop.xlane.xlu1 %6379 }
0x17ec   :  { %v6436_v21 = vsel %vm6425_vm3, %v6419_v47, %v6380_v9 }
0x17ed   :  { %v6457_v3 = vadd.f32 %v11620_v60, %v6436_v21 }
0x17ef   :  { %6470 = vxpose.xlu0.b32.cont [8/16] (narrow) %v6454_v12, 8  ;;  %v6384_v15 = vpop.xlane.xlu1 %6383 }
0x17f0   :  { %v6438_v41 = vsel %vm6425_vm3, %v6421_v6, %v6384_v15 }
0x17f1   :  { %v6459_v46 = vadd.f32 %v11620_v60, %v6438_v41 }
0x17f3   :  { %6471 = vxpose.xlu0.b32.cont [9/16] (narrow) %v6455_v36, 8  ;;  %v6388_v48 = vpop.xlane.xlu1 %6387 }
0x17f4   :  { %v6440_v43 = vsel %vm6425_vm3, %v6423_v16, %v6388_v48 }
0x17f5   :  { %v6461_v31 = vadd.f32 %v11620_v60, %v6440_v43 }
0x17f7   :  { %6472 = vxpose.xlu0.b32.cont [10/16] (narrow) %v6456_v1, 8  ;;  %v6390_v52 = vpop.xlane.xlu1 %6389 }
0x17f8   :  { %v6441_v10 = vsel %vm6425_vm3, %v6424_v51, %v6390_v52 }
0x17f9   :  { %v6462_v56 = vadd.f32 %v11620_v60, %v6441_v10 }
0x17fb   :  { %6473 = vxpose.xlu0.b32.cont [11/16] (narrow) %v6457_v3, 8 }
0x17ff   :  { %6474 = vxpose.xlu0.b32.cont [12/16] (narrow) %v6458_v61, 8 }
0x1803   :  { %6475 = vxpose.xlu0.b32.cont [13/16] (narrow) %v6459_v46, 8 }
0x1807   :  { %6476 = vxpose.xlu0.b32.cont [14/16] (narrow) %v6460_v28, 8 }
0x180b   :  { %6477 = vxpose.xlu0.b32.cont [15/16] (narrow) %v6461_v31, 8 }
0x180f   :  { %6478 = vxpose.xlu0.b32.end [16/16] (narrow) %v6462_v56, 8 }
0x184f   :  { %v6479_v38 = vpop.trf.xlu0 }
0x1850   :  { %6495 = vst [vmem:[#allocation5] sm:$0xf] %v6479_v38 }
0x1851   :  { %7757 = shalt.err (!%p7754_p9)
}
0x1852   :  { %6505 = dma.vmem_to_hbm [thread:$0]  %s6503_s27, 64, %s11730_s3, [#allocation4]  }
0x1853   :  { %7768 = dma.done.wait [#allocation4], 64  }
0x1854   :  { %7769 = vsyncadd [#allocation4], 4294967232 }
0x1855   :  { %6509 = vsyncpa [#allocation3], 1 }
0x1856   :  { %6510 = vsyncpa [#allocation4], 1 }

</bundles_post_ra>
